<compile_context>
chip_gen: v7x
topology: tpu7x:2x2x1
jax: 0.10.0
libtpu: 0.0.40
codegen_flags: <defaults>
</compile_context>

<pallas_src>
import math

import jax
import jax.numpy as jnp
from jax import lax
from jax.experimental import pallas as pl
from jax.experimental.pallas import tpu as pltpu


# ---------------------------------------------------------------------------
# Fused Pallas kernel
# ---------------------------------------------------------------------------

def _make_sep_rnn_kernel(n_layers, T, B):
    """Builds the fused SepRNN kernel for `n_layers` stacked BiLSTM layers.

    Ref layout (inputs):
      x_ref        [T*B, D]            time-major, flattened
      spk_ref      [T*B, 2H]           spkinfo broadcast over time, flattened
      per layer l: wih_l [Din_l, 8H]   (fwd | bwd input weights, concatenated)
                   whhf_l [H, 4H], whhb_l [H, 4H]
                   b_l   [1, 8H]       (bias_ih + bias_hh, fwd | bwd)
      wlin [2H, P], blin [1, P]        per-speaker linears fused, padded to P
    Output:
      o_ref [T*B, P]                   relu(x @ Wlin + b), lane-dense (P % 128 == 0)
    Scratch:
      gi_f, gi_b   [T*B, 4H]           hoisted input-projection gates per direction
      out_f, out_b [T*B, H]            per-direction layer outputs (reused per layer)
      h_f, c_f, h_b, c_b [B, H]        recurrent state
    Gate order matches torch.nn.LSTM: i, f, g, o.
    """

    def kernel(*refs):
        x_ref, spk_ref = refs[0], refs[1]
        np_ = 4 * n_layers
        layer_refs = refs[2:2 + np_]
        wlin_ref = refs[2 + np_]
        blin_ref = refs[3 + np_]
        o_ref = refs[4 + np_]
        (gi_f_scr, gi_b_scr, out_f_scr, out_b_scr,
         h_f, c_f, h_b, c_b) = refs[5 + np_:]

        H = h_f.shape[1]
        H4 = 4 * H

        def run_layer(gi_cat, whh_f_ref, whh_b_ref):
            # gi_cat: [T*B, 8H] hoisted input projection (+bias), fwd | bwd halves.
            gi_f_scr[...] = gi_cat[:, :H4]
            gi_b_scr[...] = gi_cat[:, H4:]
            zeros = jnp.zeros((B, H), jnp.float32)
            h_f[...] = zeros
            c_f[...] = zeros
            h_b[...] = zeros
            c_b[...] = zeros

            whh_f = whh_f_ref[...]
            whh_b = whh_b_ref[...]

            def cell(g, c_prev):
                # Full-vreg activations, then 32-lane gate slices.
                sg = jax.nn.sigmoid(g)          # i, f, -, o lanes
                th = jnp.tanh(g)                # -, -, g, - lanes
                c_new = sg[:, H:2 * H] * c_prev + sg[:, 0:H] * th[:, 2 * H:3 * H]
                h_new = sg[:, 3 * H:4 * H] * jnp.tanh(c_new)
                return h_new, c_new

            def step(t, carry):
                tb = T - 1 - t
                g_f = gi_f_scr[pl.ds(t * B, B), :] + jnp.dot(
                    h_f[...], whh_f, preferred_element_type=jnp.float32)
                g_b = gi_b_scr[pl.ds(tb * B, B), :] + jnp.dot(
                    h_b[...], whh_b, preferred_element_type=jnp.float32)

                hf_new, cf_new = cell(g_f, c_f[...])
                hb_new, cb_new = cell(g_b, c_b[...])

                h_f[...] = hf_new
                c_f[...] = cf_new
                h_b[...] = hb_new
                c_b[...] = cb_new

                out_f_scr[pl.ds(t * B, B), :] = hf_new
                out_b_scr[pl.ds(tb * B, B), :] = hb_new
                return carry

            lax.fori_loop(0, T, step, 0, unroll=True)

        # ---- layer 0 (rnn1): input = x --------------------------------------
        wih0, whhf0, whhb0, b0 = layer_refs[0:4]
        gi = jnp.dot(x_ref[...], wih0[...],
                     preferred_element_type=jnp.float32) + b0[...]
        run_layer(gi, whhf0, whhb0)

        # ---- x = x * spkinfo (on rnn1 output) --------------------------------
        spk = spk_ref[...]                       # [T*B, 2H]
        out_f_scr[...] = out_f_scr[...] * spk[:, 0:H]
        out_b_scr[...] = out_b_scr[...] * spk[:, H:2 * H]

        # ---- remaining layers (rnn2, stacked) --------------------------------
        for l in range(1, n_layers):
            wih, whhf, whhb, b = layer_refs[4 * l:4 * l + 4]
            gi = (jnp.dot(out_f_scr[...], wih[0:H, :],
                          preferred_element_type=jnp.float32)
                  + jnp.dot(out_b_scr[...], wih[H:2 * H, :],
                            preferred_element_type=jnp.float32)
                  + b[...])
            run_layer(gi, whhf, whhb)

        # ---- dropout(p=0.0) = identity; fused per-speaker linears + relu -----
        y = (jnp.dot(out_f_scr[...], wlin_ref[0:H, :],
                     preferred_element_type=jnp.float32)
             + jnp.dot(out_b_scr[...], wlin_ref[H:2 * H, :],
                       preferred_element_type=jnp.float32)
             + blin_ref[...])
        o_ref[...] = jnp.maximum(y, 0.0)

    return kernel


# ---------------------------------------------------------------------------
# Parameter init (same structure / shapes as torch.nn.LSTM / Linear)
# ---------------------------------------------------------------------------

def _init_lstm_dir(key, in_dim, hidden):
    k1, k2, k3, k4 = jax.random.split(key, 4)
    bound = 1.0 / math.sqrt(hidden)
    u = lambda k, s: jax.random.uniform(k, s, jnp.float32, -bound, bound)
    wih = u(k1, (in_dim, 4 * hidden))            # transposed torch weight_ih
    whh = u(k2, (hidden, 4 * hidden))            # transposed torch weight_hh
    bias = u(k3, (1, 4 * hidden)) + u(k4, (1, 4 * hidden))   # b_ih + b_hh
    return wih, whh, bias


def init_sep_rnn_params(key, input_dim, num_bins, num_spks=2, num_layers=3,
                        hidden_size=32):
    keys = iter(jax.random.split(key, 2 * num_layers + 2 * num_spks + 4))
    layers = []
    in_dims = [input_dim] + [2 * hidden_size] * (num_layers - 1)
    for d in in_dims:
        wih_f, whh_f, b_f = _init_lstm_dir(next(keys), d, hidden_size)
        wih_b, whh_b, b_b = _init_lstm_dir(next(keys), d, hidden_size)
        layers.append((jnp.concatenate([wih_f, wih_b], axis=1),   # [d, 8H]
                       whh_f, whh_b,
                       jnp.concatenate([b_f, b_b], axis=1)))      # [1, 8H]

    # per-speaker linears, fused along the output axis and zero-padded to a
    # multiple of 128 lanes (lane-dense output stores).
    bound = 1.0 / math.sqrt(2 * hidden_size)
    ws, bs = [], []
    for _ in range(num_spks):
        kw, kb = next(keys), next(keys)
        ws.append(jax.random.uniform(kw, (2 * hidden_size, num_bins),
                                     jnp.float32, -bound, bound))
        bs.append(jax.random.uniform(kb, (1, num_bins), jnp.float32,
                                     -bound, bound))
    w_cat = jnp.concatenate(ws, axis=1)          # [2H, num_spks*num_bins]
    b_cat = jnp.concatenate(bs, axis=1)
    nc = num_spks * num_bins
    pad = (-nc) % 128
    w_pad = jnp.pad(w_cat, ((0, 0), (0, pad)))
    b_pad = jnp.pad(b_cat, ((0, 0), (0, pad)))

    return {"layers": layers, "linear": (w_pad, b_pad),
            "num_spks": num_spks, "hidden": hidden_size, "num_bins": num_bins}


# ---------------------------------------------------------------------------
# SepRNN forward (single fused pallas_call)
# ---------------------------------------------------------------------------

def sep_rnn_forward(params, x_btd, spkinfo_b1f, num_bins, train=True):
    """x_btd: [B, T, input_dim] (batch_first), spkinfo_b1f: [B, 1, 2*hidden].
    Returns a list (per speaker) of [B, T, num_bins] masks (train=True)."""
    B, T, D = x_btd.shape
    layers = params["layers"]
    wlin, blin = params["linear"]
    H = params["hidden"]
    num_spks = params["num_spks"]
    P = wlin.shape[1]
    n_layers = len(layers)

    # time-major + flatten (XLA-side, tiny)
    x_flat = jnp.transpose(x_btd, (1, 0, 2)).reshape(T * B, D).astype(jnp.float32)
    spk_t = jnp.transpose(spkinfo_b1f, (1, 0, 2)).astype(jnp.float32)   # [1, B, 2H]
    spk_flat = jnp.broadcast_to(spk_t, (T, B, 2 * H)).reshape(T * B, 2 * H)

    flat_args = [x_flat, spk_flat]
    for wih, whhf, whhb, b in layers:
        flat_args += [wih, whhf, whhb, b]
    flat_args += [wlin, blin]

    kernel = _make_sep_rnn_kernel(n_layers, T, B)
    y = pl.pallas_call(
        kernel,
        out_shape=jax.ShapeDtypeStruct((T * B, P), jnp.float32),
        scratch_shapes=[
            pltpu.VMEM((T * B, 4 * H), jnp.float32),   # gi_f
            pltpu.VMEM((T * B, 4 * H), jnp.float32),   # gi_b
            pltpu.VMEM((T * B, H), jnp.float32),       # out_f
            pltpu.VMEM((T * B, H), jnp.float32),       # out_b
            pltpu.VMEM((B, H), jnp.float32),           # h_f
            pltpu.VMEM((B, H), jnp.float32),           # c_f
            pltpu.VMEM((B, H), jnp.float32),           # h_b
            pltpu.VMEM((B, H), jnp.float32),           # c_b
        ],
    )(*flat_args)

    y = y.reshape(T, B, P)
    masks = []
    for s in range(num_spks):
        m = jnp.transpose(y[:, :, s * num_bins:(s + 1) * num_bins], (1, 0, 2))
        if not train:
            m = m.reshape(-1, num_bins)
        masks.append(m)
    return masks


# ---------------------------------------------------------------------------
# Main
# ---------------------------------------------------------------------------

if __name__ == "__main__":
    B, T = 2, 8
    input_dim = 16
    num_bins = 24
    hidden_size = 32
    num_spks = 2
    num_layers = 3

    key = jax.random.PRNGKey(0)
    k_param, k_x, k_spk = jax.random.split(key, 3)

    params = init_sep_rnn_params(k_param, input_dim, num_bins,
                                 num_spks=num_spks, num_layers=num_layers,
                                 hidden_size=hidden_size)

    x = jax.random.normal(k_x, (B, T, input_dim), jnp.float32)
    spkinfo = jax.random.normal(k_spk, (B, 1, 2 * hidden_size), jnp.float32)

    masks = sep_rnn_forward(params, x, spkinfo, num_bins, train=True)
    for m in masks:
        jax.block_until_ready(m)
        assert m.shape == (B, T, num_bins)
        assert bool(jnp.all(jnp.isfinite(m)))

    print("KERNEL_OK")
</pallas_src>

<mosaic_0001>
module attributes {stable_mosaic.version = 11 : i64} {
  func.func @kernel(%arg0: memref<16x16xf32, #tpu.memory_space<vmem>>, %arg1: memref<16x64xf32, #tpu.memory_space<vmem>>, %arg2: memref<16x256xf32, #tpu.memory_space<vmem>>, %arg3: memref<32x128xf32, #tpu.memory_space<vmem>>, %arg4: memref<32x128xf32, #tpu.memory_space<vmem>>, %arg5: memref<1x256xf32, #tpu.memory_space<vmem>>, %arg6: memref<64x256xf32, #tpu.memory_space<vmem>>, %arg7: memref<32x128xf32, #tpu.memory_space<vmem>>, %arg8: memref<32x128xf32, #tpu.memory_space<vmem>>, %arg9: memref<1x256xf32, #tpu.memory_space<vmem>>, %arg10: memref<64x256xf32, #tpu.memory_space<vmem>>, %arg11: memref<32x128xf32, #tpu.memory_space<vmem>>, %arg12: memref<32x128xf32, #tpu.memory_space<vmem>>, %arg13: memref<1x256xf32, #tpu.memory_space<vmem>>, %arg14: memref<64x128xf32, #tpu.memory_space<vmem>>, %arg15: memref<1x128xf32, #tpu.memory_space<vmem>>, %arg16: memref<16x128xf32, #tpu.memory_space<vmem>>, %arg17: memref<16x128xf32, #tpu.memory_space<vmem>>, %arg18: memref<16x128xf32, #tpu.memory_space<vmem>>, %arg19: memref<16x32xf32, #tpu.memory_space<vmem>>, %arg20: memref<16x32xf32, #tpu.memory_space<vmem>>, %arg21: memref<2x32xf32, #tpu.memory_space<vmem>>, %arg22: memref<2x32xf32, #tpu.memory_space<vmem>>, %arg23: memref<2x32xf32, #tpu.memory_space<vmem>>, %arg24: memref<2x32xf32, #tpu.memory_space<vmem>>) attributes {dimension_semantics = [], scalar_prefetch = 0 : i64, scratch_operands = 8 : i64, tpu.core_type = #tpu.core_type<tc>} {
    %c0 = arith.constant 0 : index
    %c0_0 = arith.constant 0 : index
    %0 = vector.load %arg0[%c0, %c0_0] : memref<16x16xf32, #tpu.memory_space<vmem>>, vector<16x16xf32>
    %c0_1 = arith.constant 0 : index
    %c0_2 = arith.constant 0 : index
    %1 = vector.load %arg2[%c0_1, %c0_2] : memref<16x256xf32, #tpu.memory_space<vmem>>, vector<16x256xf32>
    %cst = arith.constant dense<0.000000e+00> : vector<16x256xf32>
    %2 = tpu.matmul %0, %1, %cst {dimension_numbers = #tpu.dot_dimension_numbers<[1], [0], [0], [1], [0, 0, 1, 1], [], []>} : vector<16x16xf32>, vector<16x256xf32>, vector<16x256xf32> -> vector<16x256xf32>
    %c0_3 = arith.constant 0 : index
    %c0_4 = arith.constant 0 : index
    %3 = vector.load %arg5[%c0_3, %c0_4] : memref<1x256xf32, #tpu.memory_space<vmem>>, vector<1x256xf32>
    %4 = vector.broadcast %3 : vector<1x256xf32> to vector<16x256xf32>
    %5 = arith.addf %2, %4 : vector<16x256xf32>
    %6 = vector.extract_strided_slice %5 {offsets = [0, 0], sizes = [16, 128], strides = [1, 1]} : vector<16x256xf32> to vector<16x128xf32>
    %c0_5 = arith.constant 0 : index
    %c0_6 = arith.constant 0 : index
    %7 = vector.load %arg17[%c0_5, %c0_6] : memref<16x128xf32, #tpu.memory_space<vmem>>, vector<16x128xf32>
    tpu.vector_store %arg17[%c0_5, %c0_6], %6 {strides = array<i32>} : memref<16x128xf32, #tpu.memory_space<vmem>>, vector<16x128xf32>,
    %8 = vector.extract_strided_slice %5 {offsets = [0, 128], sizes = [16, 128], strides = [1, 1]} : vector<16x256xf32> to vector<16x128xf32>
    %c0_7 = arith.constant 0 : index
    %c0_8 = arith.constant 0 : index
    %9 = vector.load %arg18[%c0_7, %c0_8] : memref<16x128xf32, #tpu.memory_space<vmem>>, vector<16x128xf32>
    tpu.vector_store %arg18[%c0_7, %c0_8], %8 {strides = array<i32>} : memref<16x128xf32, #tpu.memory_space<vmem>>, vector<16x128xf32>,
    %cst_9 = arith.constant 0.000000e+00 : f32
    %10 = vector.broadcast %cst_9 : f32 to vector<2x32xf32>
    %c0_10 = arith.constant 0 : index
    %c0_11 = arith.constant 0 : index
    %11 = vector.load %arg21[%c0_10, %c0_11] : memref<2x32xf32, #tpu.memory_space<vmem>>, vector<2x32xf32>
    tpu.vector_store %arg21[%c0_10, %c0_11], %10 {strides = array<i32>} : memref<2x32xf32, #tpu.memory_space<vmem>>, vector<2x32xf32>,
    %c0_12 = arith.constant 0 : index
    %c0_13 = arith.constant 0 : index
    %12 = vector.load %arg22[%c0_12, %c0_13] : memref<2x32xf32, #tpu.memory_space<vmem>>, vector<2x32xf32>
    tpu.vector_store %arg22[%c0_12, %c0_13], %10 {strides = array<i32>} : memref<2x32xf32, #tpu.memory_space<vmem>>, vector<2x32xf32>,
    %c0_14 = arith.constant 0 : index
    %c0_15 = arith.constant 0 : index
    %13 = vector.load %arg23[%c0_14, %c0_15] : memref<2x32xf32, #tpu.memory_space<vmem>>, vector<2x32xf32>
    tpu.vector_store %arg23[%c0_14, %c0_15], %10 {strides = array<i32>} : memref<2x32xf32, #tpu.memory_space<vmem>>, vector<2x32xf32>,
    %c0_16 = arith.constant 0 : index
    %c0_17 = arith.constant 0 : index
    %14 = vector.load %arg24[%c0_16, %c0_17] : memref<2x32xf32, #tpu.memory_space<vmem>>, vector<2x32xf32>
    tpu.vector_store %arg24[%c0_16, %c0_17], %10 {strides = array<i32>} : memref<2x32xf32, #tpu.memory_space<vmem>>, vector<2x32xf32>,
    %c0_18 = arith.constant 0 : index
    %c0_19 = arith.constant 0 : index
    %15 = vector.load %arg3[%c0_18, %c0_19] : memref<32x128xf32, #tpu.memory_space<vmem>>, vector<32x128xf32>
    %c0_20 = arith.constant 0 : index
    %c0_21 = arith.constant 0 : index
    %16 = vector.load %arg4[%c0_20, %c0_21] : memref<32x128xf32, #tpu.memory_space<vmem>>, vector<32x128xf32>
    %c0_i32 = arith.constant 0 : i32
    %c7_i32 = arith.constant 7 : i32
    %17 = arith.subi %c7_i32, %c0_i32 : i32
    %c2_i32 = arith.constant 2 : i32
    %18 = arith.muli %c0_i32, %c2_i32 : i32
    %19 = arith.index_cast %18 : i32 to index
    %c0_22 = arith.constant 0 : index
    %20 = vector.load %arg17[%19, %c0_22] : memref<16x128xf32, #tpu.memory_space<vmem>>, vector<2x128xf32>
    %c0_23 = arith.constant 0 : index
    %c0_24 = arith.constant 0 : index
    %21 = vector.load %arg21[%c0_23, %c0_24] : memref<2x32xf32, #tpu.memory_space<vmem>>, vector<2x32xf32>
    %cst_25 = arith.constant dense<0.000000e+00> : vector<2x128xf32>
    %22 = tpu.matmul %21, %15, %cst_25 {dimension_numbers = #tpu.dot_dimension_numbers<[1], [0], [0], [1], [0, 0, 1, 1], [], []>} : vector<2x32xf32>, vector<32x128xf32>, vector<2x128xf32> -> vector<2x128xf32>
    %23 = arith.addf %20, %22 : vector<2x128xf32>
    %c2_i32_26 = arith.constant 2 : i32
    %24 = arith.muli %17, %c2_i32_26 : i32
    %25 = arith.index_cast %24 : i32 to index
    %c0_27 = arith.constant 0 : index
    %26 = vector.load %arg18[%25, %c0_27] : memref<16x128xf32, #tpu.memory_space<vmem>>, vector<2x128xf32>
    %c0_28 = arith.constant 0 : index
    %c0_29 = arith.constant 0 : index
    %27 = vector.load %arg23[%c0_28, %c0_29] : memref<2x32xf32, #tpu.memory_space<vmem>>, vector<2x32xf32>
    %cst_30 = arith.constant dense<0.000000e+00> : vector<2x128xf32>
    %28 = tpu.matmul %27, %16, %cst_30 {dimension_numbers = #tpu.dot_dimension_numbers<[1], [0], [0], [1], [0, 0, 1, 1], [], []>} : vector<2x32xf32>, vector<32x128xf32>, vector<2x128xf32> -> vector<2x128xf32>
    %29 = arith.addf %26, %28 : vector<2x128xf32>
    %c0_31 = arith.constant 0 : index
    %c0_32 = arith.constant 0 : index
    %30 = vector.load %arg22[%c0_31, %c0_32] : memref<2x32xf32, #tpu.memory_space<vmem>>, vector<2x32xf32>
    %31 = arith.negf %23 : vector<2x128xf32>
    %32 = math.exp %31 : vector<2x128xf32>
    %cst_33 = arith.constant 1.000000e+00 : f32
    %33 = vector.broadcast %cst_33 : f32 to vector<2x128xf32>
    %34 = arith.addf %33, %32 : vector<2x128xf32>
    %35 = arith.divf %33, %34 : vector<2x128xf32>
    %36 = math.tanh %23 : vector<2x128xf32>
    %37 = vector.extract_strided_slice %35 {offsets = [0, 32], sizes = [2, 32], strides = [1, 1]} : vector<2x128xf32> to vector<2x32xf32>
    %38 = arith.mulf %37, %30 : vector<2x32xf32>
    %39 = vector.extract_strided_slice %35 {offsets = [0, 0], sizes = [2, 32], strides = [1, 1]} : vector<2x128xf32> to vector<2x32xf32>
    %40 = vector.extract_strided_slice %36 {offsets = [0, 64], sizes = [2, 32], strides = [1, 1]} : vector<2x128xf32> to vector<2x32xf32>
    %41 = arith.mulf %39, %40 : vector<2x32xf32>
    %42 = arith.addf %38, %41 : vector<2x32xf32>
    %43 = vector.extract_strided_slice %35 {offsets = [0, 96], sizes = [2, 32], strides = [1, 1]} : vector<2x128xf32> to vector<2x32xf32>
    %44 = math.tanh %42 : vector<2x32xf32>
    %45 = arith.mulf %43, %44 : vector<2x32xf32>
    %c0_34 = arith.constant 0 : index
    %c0_35 = arith.constant 0 : index
    %46 = vector.load %arg24[%c0_34, %c0_35] : memref<2x32xf32, #tpu.memory_space<vmem>>, vector<2x32xf32>
    %47 = arith.negf %29 : vector<2x128xf32>
    %48 = math.exp %47 : vector<2x128xf32>
    %cst_36 = arith.constant 1.000000e+00 : f32
    %49 = vector.broadcast %cst_36 : f32 to vector<2x128xf32>
    %50 = arith.addf %49, %48 : vector<2x128xf32>
    %51 = arith.divf %49, %50 : vector<2x128xf32>
    %52 = math.tanh %29 : vector<2x128xf32>
    %53 = vector.extract_strided_slice %51 {offsets = [0, 32], sizes = [2, 32], strides = [1, 1]} : vector<2x128xf32> to vector<2x32xf32>
    %54 = arith.mulf %53, %46 : vector<2x32xf32>
    %55 = vector.extract_strided_slice %51 {offsets = [0, 0], sizes = [2, 32], strides = [1, 1]} : vector<2x128xf32> to vector<2x32xf32>
    %56 = vector.extract_strided_slice %52 {offsets = [0, 64], sizes = [2, 32], strides = [1, 1]} : vector<2x128xf32> to vector<2x32xf32>
    %57 = arith.mulf %55, %56 : vector<2x32xf32>
    %58 = arith.addf %54, %57 : vector<2x32xf32>
    %59 = vector.extract_strided_slice %51 {offsets = [0, 96], sizes = [2, 32], strides = [1, 1]} : vector<2x128xf32> to vector<2x32xf32>
    %60 = math.tanh %58 : vector<2x32xf32>
    %61 = arith.mulf %59, %60 : vector<2x32xf32>
    %c0_37 = arith.constant 0 : index
    %c0_38 = arith.constant 0 : index
    %62 = vector.load %arg21[%c0_37, %c0_38] : memref<2x32xf32, #tpu.memory_space<vmem>>, vector<2x32xf32>
    tpu.vector_store %arg21[%c0_37, %c0_38], %45 {strides = array<i32>} : memref<2x32xf32, #tpu.memory_space<vmem>>, vector<2x32xf32>,
    %c0_39 = arith.constant 0 : index
    %c0_40 = arith.constant 0 : index
    %63 = vector.load %arg22[%c0_39, %c0_40] : memref<2x32xf32, #tpu.memory_space<vmem>>, vector<2x32xf32>
    tpu.vector_store %arg22[%c0_39, %c0_40], %42 {strides = array<i32>} : memref<2x32xf32, #tpu.memory_space<vmem>>, vector<2x32xf32>,
    %c0_41 = arith.constant 0 : index
    %c0_42 = arith.constant 0 : index
    %64 = vector.load %arg23[%c0_41, %c0_42] : memref<2x32xf32, #tpu.memory_space<vmem>>, vector<2x32xf32>
    tpu.vector_store %arg23[%c0_41, %c0_42], %61 {strides = array<i32>} : memref<2x32xf32, #tpu.memory_space<vmem>>, vector<2x32xf32>,
    %c0_43 = arith.constant 0 : index
    %c0_44 = arith.constant 0 : index
    %65 = vector.load %arg24[%c0_43, %c0_44] : memref<2x32xf32, #tpu.memory_space<vmem>>, vector<2x32xf32>
    tpu.vector_store %arg24[%c0_43, %c0_44], %58 {strides = array<i32>} : memref<2x32xf32, #tpu.memory_space<vmem>>, vector<2x32xf32>,
    %c2_i32_45 = arith.constant 2 : i32
    %66 = arith.muli %c0_i32, %c2_i32_45 : i32
    %67 = arith.index_cast %66 : i32 to index
    %c0_46 = arith.constant 0 : index
    %68 = vector.load %arg19[%67, %c0_46] : memref<16x32xf32, #tpu.memory_space<vmem>>, vector<2x32xf32>
    tpu.vector_store %arg19[%67, %c0_46], %45 {strides = array<i32>} : memref<16x32xf32, #tpu.memory_space<vmem>>, vector<2x32xf32>,
    %c2_i32_47 = arith.constant 2 : i32
    %69 = arith.muli %17, %c2_i32_47 : i32
    %70 = arith.index_cast %69 : i32 to index
    %c0_48 = arith.constant 0 : index
    %71 = vector.load %arg20[%70, %c0_48] : memref<16x32xf32, #tpu.memory_space<vmem>>, vector<2x32xf32>
    tpu.vector_store %arg20[%70, %c0_48], %61 {strides = array<i32>} : memref<16x32xf32, #tpu.memory_space<vmem>>, vector<2x32xf32>,
    %c1_i32 = arith.constant 1 : i32
    %c7_i32_49 = arith.constant 7 : i32
    %72 = arith.subi %c7_i32_49, %c1_i32 : i32
    %c2_i32_50 = arith.constant 2 : i32
    %73 = arith.muli %c1_i32, %c2_i32_50 : i32
    %74 = arith.index_cast %73 : i32 to index
    %c0_51 = arith.constant 0 : index
    %75 = vector.load %arg17[%74, %c0_51] : memref<16x128xf32, #tpu.memory_space<vmem>>, vector<2x128xf32>
    %c0_52 = arith.constant 0 : index
    %c0_53 = arith.constant 0 : index
    %76 = vector.load %arg21[%c0_52, %c0_53] : memref<2x32xf32, #tpu.memory_space<vmem>>, vector<2x32xf32>
    %cst_54 = arith.constant dense<0.000000e+00> : vector<2x128xf32>
    %77 = tpu.matmul %76, %15, %cst_54 {dimension_numbers = #tpu.dot_dimension_numbers<[1], [0], [0], [1], [0, 0, 1, 1], [], []>} : vector<2x32xf32>, vector<32x128xf32>, vector<2x128xf32> -> vector<2x128xf32>
    %78 = arith.addf %75, %77 : vector<2x128xf32>
    %c2_i32_55 = arith.constant 2 : i32
    %79 = arith.muli %72, %c2_i32_55 : i32
    %80 = arith.index_cast %79 : i32 to index
    %c0_56 = arith.constant 0 : index
    %81 = vector.load %arg18[%80, %c0_56] : memref<16x128xf32, #tpu.memory_space<vmem>>, vector<2x128xf32>
    %c0_57 = arith.constant 0 : index
    %c0_58 = arith.constant 0 : index
    %82 = vector.load %arg23[%c0_57, %c0_58] : memref<2x32xf32, #tpu.memory_space<vmem>>, vector<2x32xf32>
    %cst_59 = arith.constant dense<0.000000e+00> : vector<2x128xf32>
    %83 = tpu.matmul %82, %16, %cst_59 {dimension_numbers = #tpu.dot_dimension_numbers<[1], [0], [0], [1], [0, 0, 1, 1], [], []>} : vector<2x32xf32>, vector<32x128xf32>, vector<2x128xf32> -> vector<2x128xf32>
    %84 = arith.addf %81, %83 : vector<2x128xf32>
    %c0_60 = arith.constant 0 : index
    %c0_61 = arith.constant 0 : index
    %85 = vector.load %arg22[%c0_60, %c0_61] : memref<2x32xf32, #tpu.memory_space<vmem>>, vector<2x32xf32>
    %86 = arith.negf %78 : vector<2x128xf32>
    %87 = math.exp %86 : vector<2x128xf32>
    %cst_62 = arith.constant 1.000000e+00 : f32
    %88 = vector.broadcast %cst_62 : f32 to vector<2x128xf32>
    %89 = arith.addf %88, %87 : vector<2x128xf32>
    %90 = arith.divf %88, %89 : vector<2x128xf32>
    %91 = math.tanh %78 : vector<2x128xf32>
    %92 = vector.extract_strided_slice %90 {offsets = [0, 32], sizes = [2, 32], strides = [1, 1]} : vector<2x128xf32> to vector<2x32xf32>
    %93 = arith.mulf %92, %85 : vector<2x32xf32>
    %94 = vector.extract_strided_slice %90 {offsets = [0, 0], sizes = [2, 32], strides = [1, 1]} : vector<2x128xf32> to vector<2x32xf32>
    %95 = vector.extract_strided_slice %91 {offsets = [0, 64], sizes = [2, 32], strides = [1, 1]} : vector<2x128xf32> to vector<2x32xf32>
    %96 = arith.mulf %94, %95 : vector<2x32xf32>
    %97 = arith.addf %93, %96 : vector<2x32xf32>
    %98 = vector.extract_strided_slice %90 {offsets = [0, 96], sizes = [2, 32], strides = [1, 1]} : vector<2x128xf32> to vector<2x32xf32>
    %99 = math.tanh %97 : vector<2x32xf32>
    %100 = arith.mulf %98, %99 : vector<2x32xf32>
    %c0_63 = arith.constant 0 : index
    %c0_64 = arith.constant 0 : index
    %101 = vector.load %arg24[%c0_63, %c0_64] : memref<2x32xf32, #tpu.memory_space<vmem>>, vector<2x32xf32>
    %102 = arith.negf %84 : vector<2x128xf32>
    %103 = math.exp %102 : vector<2x128xf32>
    %cst_65 = arith.constant 1.000000e+00 : f32
    %104 = vector.broadcast %cst_65 : f32 to vector<2x128xf32>
    %105 = arith.addf %104, %103 : vector<2x128xf32>
    %106 = arith.divf %104, %105 : vector<2x128xf32>
    %107 = math.tanh %84 : vector<2x128xf32>
    %108 = vector.extract_strided_slice %106 {offsets = [0, 32], sizes = [2, 32], strides = [1, 1]} : vector<2x128xf32> to vector<2x32xf32>
    %109 = arith.mulf %108, %101 : vector<2x32xf32>
    %110 = vector.extract_strided_slice %106 {offsets = [0, 0], sizes = [2, 32], strides = [1, 1]} : vector<2x128xf32> to vector<2x32xf32>
    %111 = vector.extract_strided_slice %107 {offsets = [0, 64], sizes = [2, 32], strides = [1, 1]} : vector<2x128xf32> to vector<2x32xf32>
    %112 = arith.mulf %110, %111 : vector<2x32xf32>
    %113 = arith.addf %109, %112 : vector<2x32xf32>
    %114 = vector.extract_strided_slice %106 {offsets = [0, 96], sizes = [2, 32], strides = [1, 1]} : vector<2x128xf32> to vector<2x32xf32>
    %115 = math.tanh %113 : vector<2x32xf32>
    %116 = arith.mulf %114, %115 : vector<2x32xf32>
    %c0_66 = arith.constant 0 : index
    %c0_67 = arith.constant 0 : index
    %117 = vector.load %arg21[%c0_66, %c0_67] : memref<2x32xf32, #tpu.memory_space<vmem>>, vector<2x32xf32>
    tpu.vector_store %arg21[%c0_66, %c0_67], %100 {strides = array<i32>} : memref<2x32xf32, #tpu.memory_space<vmem>>, vector<2x32xf32>,
    %c0_68 = arith.constant 0 : index
    %c0_69 = arith.constant 0 : index
    %118 = vector.load %arg22[%c0_68, %c0_69] : memref<2x32xf32, #tpu.memory_space<vmem>>, vector<2x32xf32>
    tpu.vector_store %arg22[%c0_68, %c0_69], %97 {strides = array<i32>} : memref<2x32xf32, #tpu.memory_space<vmem>>, vector<2x32xf32>,
    %c0_70 = arith.constant 0 : index
    %c0_71 = arith.constant 0 : index
    %119 = vector.load %arg23[%c0_70, %c0_71] : memref<2x32xf32, #tpu.memory_space<vmem>>, vector<2x32xf32>
    tpu.vector_store %arg23[%c0_70, %c0_71], %116 {strides = array<i32>} : memref<2x32xf32, #tpu.memory_space<vmem>>, vector<2x32xf32>,
    %c0_72 = arith.constant 0 : index
    %c0_73 = arith.constant 0 : index
    %120 = vector.load %arg24[%c0_72, %c0_73] : memref<2x32xf32, #tpu.memory_space<vmem>>, vector<2x32xf32>
    tpu.vector_store %arg24[%c0_72, %c0_73], %113 {strides = array<i32>} : memref<2x32xf32, #tpu.memory_space<vmem>>, vector<2x32xf32>,
    %c2_i32_74 = arith.constant 2 : i32
    %121 = arith.muli %c1_i32, %c2_i32_74 : i32
    %122 = arith.index_cast %121 : i32 to index
    %c0_75 = arith.constant 0 : index
    %123 = vector.load %arg19[%122, %c0_75] : memref<16x32xf32, #tpu.memory_space<vmem>>, vector<2x32xf32>
    tpu.vector_store %arg19[%122, %c0_75], %100 {strides = array<i32>} : memref<16x32xf32, #tpu.memory_space<vmem>>, vector<2x32xf32>,
    %c2_i32_76 = arith.constant 2 : i32
    %124 = arith.muli %72, %c2_i32_76 : i32
    %125 = arith.index_cast %124 : i32 to index
    %c0_77 = arith.constant 0 : index
    %126 = vector.load %arg20[%125, %c0_77] : memref<16x32xf32, #tpu.memory_space<vmem>>, vector<2x32xf32>
    tpu.vector_store %arg20[%125, %c0_77], %116 {strides = array<i32>} : memref<16x32xf32, #tpu.memory_space<vmem>>, vector<2x32xf32>,
    %c2_i32_78 = arith.constant 2 : i32
    %c7_i32_79 = arith.constant 7 : i32
    %127 = arith.subi %c7_i32_79, %c2_i32_78 : i32
    %c2_i32_80 = arith.constant 2 : i32
    %128 = arith.muli %c2_i32_78, %c2_i32_80 : i32
    %129 = arith.index_cast %128 : i32 to index
    %c0_81 = arith.constant 0 : index
    %130 = vector.load %arg17[%129, %c0_81] : memref<16x128xf32, #tpu.memory_space<vmem>>, vector<2x128xf32>
    %c0_82 = arith.constant 0 : index
    %c0_83 = arith.constant 0 : index
    %131 = vector.load %arg21[%c0_82, %c0_83] : memref<2x32xf32, #tpu.memory_space<vmem>>, vector<2x32xf32>
    %cst_84 = arith.constant dense<0.000000e+00> : vector<2x128xf32>
    %132 = tpu.matmul %131, %15, %cst_84 {dimension_numbers = #tpu.dot_dimension_numbers<[1], [0], [0], [1], [0, 0, 1, 1], [], []>} : vector<2x32xf32>, vector<32x128xf32>, vector<2x128xf32> -> vector<2x128xf32>
    %133 = arith.addf %130, %132 : vector<2x128xf32>
    %c2_i32_85 = arith.constant 2 : i32
    %134 = arith.muli %127, %c2_i32_85 : i32
    %135 = arith.index_cast %134 : i32 to index
    %c0_86 = arith.constant 0 : index
    %136 = vector.load %arg18[%135, %c0_86] : memref<16x128xf32, #tpu.memory_space<vmem>>, vector<2x128xf32>
    %c0_87 = arith.constant 0 : index
    %c0_88 = arith.constant 0 : index
    %137 = vector.load %arg23[%c0_87, %c0_88] : memref<2x32xf32, #tpu.memory_space<vmem>>, vector<2x32xf32>
    %cst_89 = arith.constant dense<0.000000e+00> : vector<2x128xf32>
    %138 = tpu.matmul %137, %16, %cst_89 {dimension_numbers = #tpu.dot_dimension_numbers<[1], [0], [0], [1], [0, 0, 1, 1], [], []>} : vector<2x32xf32>, vector<32x128xf32>, vector<2x128xf32> -> vector<2x128xf32>
    %139 = arith.addf %136, %138 : vector<2x128xf32>
    %c0_90 = arith.constant 0 : index
    %c0_91 = arith.constant 0 : index
    %140 = vector.load %arg22[%c0_90, %c0_91] : memref<2x32xf32, #tpu.memory_space<vmem>>, vector<2x32xf32>
    %141 = arith.negf %133 : vector<2x128xf32>
    %142 = math.exp %141 : vector<2x128xf32>
    %cst_92 = arith.constant 1.000000e+00 : f32
    %143 = vector.broadcast %cst_92 : f32 to vector<2x128xf32>
    %144 = arith.addf %143, %142 : vector<2x128xf32>
    %145 = arith.divf %143, %144 : vector<2x128xf32>
    %146 = math.tanh %133 : vector<2x128xf32>
    %147 = vector.extract_strided_slice %145 {offsets = [0, 32], sizes = [2, 32], strides = [1, 1]} : vector<2x128xf32> to vector<2x32xf32>
    %148 = arith.mulf %147, %140 : vector<2x32xf32>
    %149 = vector.extract_strided_slice %145 {offsets = [0, 0], sizes = [2, 32], strides = [1, 1]} : vector<2x128xf32> to vector<2x32xf32>
    %150 = vector.extract_strided_slice %146 {offsets = [0, 64], sizes = [2, 32], strides = [1, 1]} : vector<2x128xf32> to vector<2x32xf32>
    %151 = arith.mulf %149, %150 : vector<2x32xf32>
    %152 = arith.addf %148, %151 : vector<2x32xf32>
    %153 = vector.extract_strided_slice %145 {offsets = [0, 96], sizes = [2, 32], strides = [1, 1]} : vector<2x128xf32> to vector<2x32xf32>
    %154 = math.tanh %152 : vector<2x32xf32>
    %155 = arith.mulf %153, %154 : vector<2x32xf32>
    %c0_93 = arith.constant 0 : index
    %c0_94 = arith.constant 0 : index
    %156 = vector.load %arg24[%c0_93, %c0_94] : memref<2x32xf32, #tpu.memory_space<vmem>>, vector<2x32xf32>
    %157 = arith.negf %139 : vector<2x128xf32>
    %158 = math.exp %157 : vector<2x128xf32>
    %cst_95 = arith.constant 1.000000e+00 : f32
    %159 = vector.broadcast %cst_95 : f32 to vector<2x128xf32>
    %160 = arith.addf %159, %158 : vector<2x128xf32>
    %161 = arith.divf %159, %160 : vector<2x128xf32>
    %162 = math.tanh %139 : vector<2x128xf32>
    %163 = vector.extract_strided_slice %161 {offsets = [0, 32], sizes = [2, 32], strides = [1, 1]} : vector<2x128xf32> to vector<2x32xf32>
    %164 = arith.mulf %163, %156 : vector<2x32xf32>
    %165 = vector.extract_strided_slice %161 {offsets = [0, 0], sizes = [2, 32], strides = [1, 1]} : vector<2x128xf32> to vector<2x32xf32>
    %166 = vector.extract_strided_slice %162 {offsets = [0, 64], sizes = [2, 32], strides = [1, 1]} : vector<2x128xf32> to vector<2x32xf32>
    %167 = arith.mulf %165, %166 : vector<2x32xf32>
    %168 = arith.addf %164, %167 : vector<2x32xf32>
    %169 = vector.extract_strided_slice %161 {offsets = [0, 96], sizes = [2, 32], strides = [1, 1]} : vector<2x128xf32> to vector<2x32xf32>
    %170 = math.tanh %168 : vector<2x32xf32>
    %171 = arith.mulf %169, %170 : vector<2x32xf32>
    %c0_96 = arith.constant 0 : index
    %c0_97 = arith.constant 0 : index
    %172 = vector.load %arg21[%c0_96, %c0_97] : memref<2x32xf32, #tpu.memory_space<vmem>>, vector<2x32xf32>
    tpu.vector_store %arg21[%c0_96, %c0_97], %155 {strides = array<i32>} : memref<2x32xf32, #tpu.memory_space<vmem>>, vector<2x32xf32>,
    %c0_98 = arith.constant 0 : index
    %c0_99 = arith.constant 0 : index
    %173 = vector.load %arg22[%c0_98, %c0_99] : memref<2x32xf32, #tpu.memory_space<vmem>>, vector<2x32xf32>
    tpu.vector_store %arg22[%c0_98, %c0_99], %152 {strides = array<i32>} : memref<2x32xf32, #tpu.memory_space<vmem>>, vector<2x32xf32>,
    %c0_100 = arith.constant 0 : index
    %c0_101 = arith.constant 0 : index
    %174 = vector.load %arg23[%c0_100, %c0_101] : memref<2x32xf32, #tpu.memory_space<vmem>>, vector<2x32xf32>
    tpu.vector_store %arg23[%c0_100, %c0_101], %171 {strides = array<i32>} : memref<2x32xf32, #tpu.memory_space<vmem>>, vector<2x32xf32>,
    %c0_102 = arith.constant 0 : index
    %c0_103 = arith.constant 0 : index
    %175 = vector.load %arg24[%c0_102, %c0_103] : memref<2x32xf32, #tpu.memory_space<vmem>>, vector<2x32xf32>
    tpu.vector_store %arg24[%c0_102, %c0_103], %168 {strides = array<i32>} : memref<2x32xf32, #tpu.memory_space<vmem>>, vector<2x32xf32>,
    %c2_i32_104 = arith.constant 2 : i32
    %176 = arith.muli %c2_i32_78, %c2_i32_104 : i32
    %177 = arith.index_cast %176 : i32 to index
    %c0_105 = arith.constant 0 : index
    %178 = vector.load %arg19[%177, %c0_105] : memref<16x32xf32, #tpu.memory_space<vmem>>, vector<2x32xf32>
    tpu.vector_store %arg19[%177, %c0_105], %155 {strides = array<i32>} : memref<16x32xf32, #tpu.memory_space<vmem>>, vector<2x32xf32>,
    %c2_i32_106 = arith.constant 2 : i32
    %179 = arith.muli %127, %c2_i32_106 : i32
    %180 = arith.index_cast %179 : i32 to index
    %c0_107 = arith.constant 0 : index
    %181 = vector.load %arg20[%180, %c0_107] : memref<16x32xf32, #tpu.memory_space<vmem>>, vector<2x32xf32>
    tpu.vector_store %arg20[%180, %c0_107], %171 {strides = array<i32>} : memref<16x32xf32, #tpu.memory_space<vmem>>, vector<2x32xf32>,
    %c3_i32 = arith.constant 3 : i32
    %c7_i32_108 = arith.constant 7 : i32
    %182 = arith.subi %c7_i32_108, %c3_i32 : i32
    %c2_i32_109 = arith.constant 2 : i32
    %183 = arith.muli %c3_i32, %c2_i32_109 : i32
    %184 = arith.index_cast %183 : i32 to index
    %c0_110 = arith.constant 0 : index
    %185 = vector.load %arg17[%184, %c0_110] : memref<16x128xf32, #tpu.memory_space<vmem>>, vector<2x128xf32>
    %c0_111 = arith.constant 0 : index
    %c0_112 = arith.constant 0 : index
    %186 = vector.load %arg21[%c0_111, %c0_112] : memref<2x32xf32, #tpu.memory_space<vmem>>, vector<2x32xf32>
    %cst_113 = arith.constant dense<0.000000e+00> : vector<2x128xf32>
    %187 = tpu.matmul %186, %15, %cst_113 {dimension_numbers = #tpu.dot_dimension_numbers<[1], [0], [0], [1], [0, 0, 1, 1], [], []>} : vector<2x32xf32>, vector<32x128xf32>, vector<2x128xf32> -> vector<2x128xf32>
    %188 = arith.addf %185, %187 : vector<2x128xf32>
    %c2_i32_114 = arith.constant 2 : i32
    %189 = arith.muli %182, %c2_i32_114 : i32
    %190 = arith.index_cast %189 : i32 to index
    %c0_115 = arith.constant 0 : index
    %191 = vector.load %arg18[%190, %c0_115] : memref<16x128xf32, #tpu.memory_space<vmem>>, vector<2x128xf32>
    %c0_116 = arith.constant 0 : index
    %c0_117 = arith.constant 0 : index
    %192 = vector.load %arg23[%c0_116, %c0_117] : memref<2x32xf32, #tpu.memory_space<vmem>>, vector<2x32xf32>
    %cst_118 = arith.constant dense<0.000000e+00> : vector<2x128xf32>
    %193 = tpu.matmul %192, %16, %cst_118 {dimension_numbers = #tpu.dot_dimension_numbers<[1], [0], [0], [1], [0, 0, 1, 1], [], []>} : vector<2x32xf32>, vector<32x128xf32>, vector<2x128xf32> -> vector<2x128xf32>
    %194 = arith.addf %191, %193 : vector<2x128xf32>
    %c0_119 = arith.constant 0 : index
    %c0_120 = arith.constant 0 : index
    %195 = vector.load %arg22[%c0_119, %c0_120] : memref<2x32xf32, #tpu.memory_space<vmem>>, vector<2x32xf32>
    %196 = arith.negf %188 : vector<2x128xf32>
    %197 = math.exp %196 : vector<2x128xf32>
    %cst_121 = arith.constant 1.000000e+00 : f32
    %198 = vector.broadcast %cst_121 : f32 to vector<2x128xf32>
    %199 = arith.addf %198, %197 : vector<2x128xf32>
    %200 = arith.divf %198, %199 : vector<2x128xf32>
    %201 = math.tanh %188 : vector<2x128xf32>
    %202 = vector.extract_strided_slice %200 {offsets = [0, 32], sizes = [2, 32], strides = [1, 1]} : vector<2x128xf32> to vector<2x32xf32>
    %203 = arith.mulf %202, %195 : vector<2x32xf32>
    %204 = vector.extract_strided_slice %200 {offsets = [0, 0], sizes = [2, 32], strides = [1, 1]} : vector<2x128xf32> to vector<2x32xf32>
    %205 = vector.extract_strided_slice %201 {offsets = [0, 64], sizes = [2, 32], strides = [1, 1]} : vector<2x128xf32> to vector<2x32xf32>
    %206 = arith.mulf %204, %205 : vector<2x32xf32>
    %207 = arith.addf %203, %206 : vector<2x32xf32>
    %208 = vector.extract_strided_slice %200 {offsets = [0, 96], sizes = [2, 32], strides = [1, 1]} : vector<2x128xf32> to vector<2x32xf32>
    %209 = math.tanh %207 : vector<2x32xf32>
    %210 = arith.mulf %208, %209 : vector<2x32xf32>
    %c0_122 = arith.constant 0 : index
    %c0_123 = arith.constant 0 : index
    %211 = vector.load %arg24[%c0_122, %c0_123] : memref<2x32xf32, #tpu.memory_space<vmem>>, vector<2x32xf32>
    %212 = arith.negf %194 : vector<2x128xf32>
    %213 = math.exp %212 : vector<2x128xf32>
    %cst_124 = arith.constant 1.000000e+00 : f32
    %214 = vector.broadcast %cst_124 : f32 to vector<2x128xf32>
    %215 = arith.addf %214, %213 : vector<2x128xf32>
    %216 = arith.divf %214, %215 : vector<2x128xf32>
    %217 = math.tanh %194 : vector<2x128xf32>
    %218 = vector.extract_strided_slice %216 {offsets = [0, 32], sizes = [2, 32], strides = [1, 1]} : vector<2x128xf32> to vector<2x32xf32>
    %219 = arith.mulf %218, %211 : vector<2x32xf32>
    %220 = vector.extract_strided_slice %216 {offsets = [0, 0], sizes = [2, 32], strides = [1, 1]} : vector<2x128xf32> to vector<2x32xf32>
    %221 = vector.extract_strided_slice %217 {offsets = [0, 64], sizes = [2, 32], strides = [1, 1]} : vector<2x128xf32> to vector<2x32xf32>
    %222 = arith.mulf %220, %221 : vector<2x32xf32>
    %223 = arith.addf %219, %222 : vector<2x32xf32>
    %224 = vector.extract_strided_slice %216 {offsets = [0, 96], sizes = [2, 32], strides = [1, 1]} : vector<2x128xf32> to vector<2x32xf32>
    %225 = math.tanh %223 : vector<2x32xf32>
    %226 = arith.mulf %224, %225 : vector<2x32xf32>
    %c0_125 = arith.constant 0 : index
    %c0_126 = arith.constant 0 : index
    %227 = vector.load %arg21[%c0_125, %c0_126] : memref<2x32xf32, #tpu.memory_space<vmem>>, vector<2x32xf32>
    tpu.vector_store %arg21[%c0_125, %c0_126], %210 {strides = array<i32>} : memref<2x32xf32, #tpu.memory_space<vmem>>, vector<2x32xf32>,
    %c0_127 = arith.constant 0 : index
    %c0_128 = arith.constant 0 : index
    %228 = vector.load %arg22[%c0_127, %c0_128] : memref<2x32xf32, #tpu.memory_space<vmem>>, vector<2x32xf32>
    tpu.vector_store %arg22[%c0_127, %c0_128], %207 {strides = array<i32>} : memref<2x32xf32, #tpu.memory_space<vmem>>, vector<2x32xf32>,
    %c0_129 = arith.constant 0 : index
    %c0_130 = arith.constant 0 : index
    %229 = vector.load %arg23[%c0_129, %c0_130] : memref<2x32xf32, #tpu.memory_space<vmem>>, vector<2x32xf32>
    tpu.vector_store %arg23[%c0_129, %c0_130], %226 {strides = array<i32>} : memref<2x32xf32, #tpu.memory_space<vmem>>, vector<2x32xf32>,
    %c0_131 = arith.constant 0 : index
    %c0_132 = arith.constant 0 : index
    %230 = vector.load %arg24[%c0_131, %c0_132] : memref<2x32xf32, #tpu.memory_space<vmem>>, vector<2x32xf32>
    tpu.vector_store %arg24[%c0_131, %c0_132], %223 {strides = array<i32>} : memref<2x32xf32, #tpu.memory_space<vmem>>, vector<2x32xf32>,
    %c2_i32_133 = arith.constant 2 : i32
    %231 = arith.muli %c3_i32, %c2_i32_133 : i32
    %232 = arith.index_cast %231 : i32 to index
    %c0_134 = arith.constant 0 : index
    %233 = vector.load %arg19[%232, %c0_134] : memref<16x32xf32, #tpu.memory_space<vmem>>, vector<2x32xf32>
    tpu.vector_store %arg19[%232, %c0_134], %210 {strides = array<i32>} : memref<16x32xf32, #tpu.memory_space<vmem>>, vector<2x32xf32>,
    %c2_i32_135 = arith.constant 2 : i32
    %234 = arith.muli %182, %c2_i32_135 : i32
    %235 = arith.index_cast %234 : i32 to index
    %c0_136 = arith.constant 0 : index
    %236 = vector.load %arg20[%235, %c0_136] : memref<16x32xf32, #tpu.memory_space<vmem>>, vector<2x32xf32>
    tpu.vector_store %arg20[%235, %c0_136], %226 {strides = array<i32>} : memref<16x32xf32, #tpu.memory_space<vmem>>, vector<2x32xf32>,
    %c4_i32 = arith.constant 4 : i32
    %c7_i32_137 = arith.constant 7 : i32
    %237 = arith.subi %c7_i32_137, %c4_i32 : i32
    %c2_i32_138 = arith.constant 2 : i32
    %238 = arith.muli %c4_i32, %c2_i32_138 : i32
    %239 = arith.index_cast %238 : i32 to index
    %c0_139 = arith.constant 0 : index
    %240 = vector.load %arg17[%239, %c0_139] : memref<16x128xf32, #tpu.memory_space<vmem>>, vector<2x128xf32>
    %c0_140 = arith.constant 0 : index
    %c0_141 = arith.constant 0 : index
    %241 = vector.load %arg21[%c0_140, %c0_141] : memref<2x32xf32, #tpu.memory_space<vmem>>, vector<2x32xf32>
    %cst_142 = arith.constant dense<0.000000e+00> : vector<2x128xf32>
    %242 = tpu.matmul %241, %15, %cst_142 {dimension_numbers = #tpu.dot_dimension_numbers<[1], [0], [0], [1], [0, 0, 1, 1], [], []>} : vector<2x32xf32>, vector<32x128xf32>, vector<2x128xf32> -> vector<2x128xf32>
    %243 = arith.addf %240, %242 : vector<2x128xf32>
    %c2_i32_143 = arith.constant 2 : i32
    %244 = arith.muli %237, %c2_i32_143 : i32
    %245 = arith.index_cast %244 : i32 to index
    %c0_144 = arith.constant 0 : index
    %246 = vector.load %arg18[%245, %c0_144] : memref<16x128xf32, #tpu.memory_space<vmem>>, vector<2x128xf32>
    %c0_145 = arith.constant 0 : index
    %c0_146 = arith.constant 0 : index
    %247 = vector.load %arg23[%c0_145, %c0_146] : memref<2x32xf32, #tpu.memory_space<vmem>>, vector<2x32xf32>
    %cst_147 = arith.constant dense<0.000000e+00> : vector<2x128xf32>
    %248 = tpu.matmul %247, %16, %cst_147 {dimension_numbers = #tpu.dot_dimension_numbers<[1], [0], [0], [1], [0, 0, 1, 1], [], []>} : vector<2x32xf32>, vector<32x128xf32>, vector<2x128xf32> -> vector<2x128xf32>
    %249 = arith.addf %246, %248 : vector<2x128xf32>
    %c0_148 = arith.constant 0 : index
    %c0_149 = arith.constant 0 : index
    %250 = vector.load %arg22[%c0_148, %c0_149] : memref<2x32xf32, #tpu.memory_space<vmem>>, vector<2x32xf32>
    %251 = arith.negf %243 : vector<2x128xf32>
    %252 = math.exp %251 : vector<2x128xf32>
    %cst_150 = arith.constant 1.000000e+00 : f32
    %253 = vector.broadcast %cst_150 : f32 to vector<2x128xf32>
    %254 = arith.addf %253, %252 : vector<2x128xf32>
    %255 = arith.divf %253, %254 : vector<2x128xf32>
    %256 = math.tanh %243 : vector<2x128xf32>
    %257 = vector.extract_strided_slice %255 {offsets = [0, 32], sizes = [2, 32], strides = [1, 1]} : vector<2x128xf32> to vector<2x32xf32>
    %258 = arith.mulf %257, %250 : vector<2x32xf32>
    %259 = vector.extract_strided_slice %255 {offsets = [0, 0], sizes = [2, 32], strides = [1, 1]} : vector<2x128xf32> to vector<2x32xf32>
    %260 = vector.extract_strided_slice %256 {offsets = [0, 64], sizes = [2, 32], strides = [1, 1]} : vector<2x128xf32> to vector<2x32xf32>
    %261 = arith.mulf %259, %260 : vector<2x32xf32>
    %262 = arith.addf %258, %261 : vector<2x32xf32>
    %263 = vector.extract_strided_slice %255 {offsets = [0, 96], sizes = [2, 32], strides = [1, 1]} : vector<2x128xf32> to vector<2x32xf32>
    %264 = math.tanh %262 : vector<2x32xf32>
    %265 = arith.mulf %263, %264 : vector<2x32xf32>
    %c0_151 = arith.constant 0 : index
    %c0_152 = arith.constant 0 : index
    %266 = vector.load %arg24[%c0_151, %c0_152] : memref<2x32xf32, #tpu.memory_space<vmem>>, vector<2x32xf32>
    %267 = arith.negf %249 : vector<2x128xf32>
    %268 = math.exp %267 : vector<2x128xf32>
    %cst_153 = arith.constant 1.000000e+00 : f32
    %269 = vector.broadcast %cst_153 : f32 to vector<2x128xf32>
    %270 = arith.addf %269, %268 : vector<2x128xf32>
    %271 = arith.divf %269, %270 : vector<2x128xf32>
    %272 = math.tanh %249 : vector<2x128xf32>
    %273 = vector.extract_strided_slice %271 {offsets = [0, 32], sizes = [2, 32], strides = [1, 1]} : vector<2x128xf32> to vector<2x32xf32>
    %274 = arith.mulf %273, %266 : vector<2x32xf32>
    %275 = vector.extract_strided_slice %271 {offsets = [0, 0], sizes = [2, 32], strides = [1, 1]} : vector<2x128xf32> to vector<2x32xf32>
    %276 = vector.extract_strided_slice %272 {offsets = [0, 64], sizes = [2, 32], strides = [1, 1]} : vector<2x128xf32> to vector<2x32xf32>
    %277 = arith.mulf %275, %276 : vector<2x32xf32>
    %278 = arith.addf %274, %277 : vector<2x32xf32>
    %279 = vector.extract_strided_slice %271 {offsets = [0, 96], sizes = [2, 32], strides = [1, 1]} : vector<2x128xf32> to vector<2x32xf32>
    %280 = math.tanh %278 : vector<2x32xf32>
    %281 = arith.mulf %279, %280 : vector<2x32xf32>
    %c0_154 = arith.constant 0 : index
    %c0_155 = arith.constant 0 : index
    %282 = vector.load %arg21[%c0_154, %c0_155] : memref<2x32xf32, #tpu.memory_space<vmem>>, vector<2x32xf32>
    tpu.vector_store %arg21[%c0_154, %c0_155], %265 {strides = array<i32>} : memref<2x32xf32, #tpu.memory_space<vmem>>, vector<2x32xf32>,
    %c0_156 = arith.constant 0 : index
    %c0_157 = arith.constant 0 : index
    %283 = vector.load %arg22[%c0_156, %c0_157] : memref<2x32xf32, #tpu.memory_space<vmem>>, vector<2x32xf32>
    tpu.vector_store %arg22[%c0_156, %c0_157], %262 {strides = array<i32>} : memref<2x32xf32, #tpu.memory_space<vmem>>, vector<2x32xf32>,
    %c0_158 = arith.constant 0 : index
    %c0_159 = arith.constant 0 : index
    %284 = vector.load %arg23[%c0_158, %c0_159] : memref<2x32xf32, #tpu.memory_space<vmem>>, vector<2x32xf32>
    tpu.vector_store %arg23[%c0_158, %c0_159], %281 {strides = array<i32>} : memref<2x32xf32, #tpu.memory_space<vmem>>, vector<2x32xf32>,
    %c0_160 = arith.constant 0 : index
    %c0_161 = arith.constant 0 : index
    %285 = vector.load %arg24[%c0_160, %c0_161] : memref<2x32xf32, #tpu.memory_space<vmem>>, vector<2x32xf32>
    tpu.vector_store %arg24[%c0_160, %c0_161], %278 {strides = array<i32>} : memref<2x32xf32, #tpu.memory_space<vmem>>, vector<2x32xf32>,
    %c2_i32_162 = arith.constant 2 : i32
    %286 = arith.muli %c4_i32, %c2_i32_162 : i32
    %287 = arith.index_cast %286 : i32 to index
    %c0_163 = arith.constant 0 : index
    %288 = vector.load %arg19[%287, %c0_163] : memref<16x32xf32, #tpu.memory_space<vmem>>, vector<2x32xf32>
    tpu.vector_store %arg19[%287, %c0_163], %265 {strides = array<i32>} : memref<16x32xf32, #tpu.memory_space<vmem>>, vector<2x32xf32>,
    %c2_i32_164 = arith.constant 2 : i32
    %289 = arith.muli %237, %c2_i32_164 : i32
    %290 = arith.index_cast %289 : i32 to index
    %c0_165 = arith.constant 0 : index
    %291 = vector.load %arg20[%290, %c0_165] : memref<16x32xf32, #tpu.memory_space<vmem>>, vector<2x32xf32>
    tpu.vector_store %arg20[%290, %c0_165], %281 {strides = array<i32>} : memref<16x32xf32, #tpu.memory_space<vmem>>, vector<2x32xf32>,
    %c5_i32 = arith.constant 5 : i32
    %c7_i32_166 = arith.constant 7 : i32
    %292 = arith.subi %c7_i32_166, %c5_i32 : i32
    %c2_i32_167 = arith.constant 2 : i32
    %293 = arith.muli %c5_i32, %c2_i32_167 : i32
    %294 = arith.index_cast %293 : i32 to index
    %c0_168 = arith.constant 0 : index
    %295 = vector.load %arg17[%294, %c0_168] : memref<16x128xf32, #tpu.memory_space<vmem>>, vector<2x128xf32>
    %c0_169 = arith.constant 0 : index
    %c0_170 = arith.constant 0 : index
    %296 = vector.load %arg21[%c0_169, %c0_170] : memref<2x32xf32, #tpu.memory_space<vmem>>, vector<2x32xf32>
    %cst_171 = arith.constant dense<0.000000e+00> : vector<2x128xf32>
    %297 = tpu.matmul %296, %15, %cst_171 {dimension_numbers = #tpu.dot_dimension_numbers<[1], [0], [0], [1], [0, 0, 1, 1], [], []>} : vector<2x32xf32>, vector<32x128xf32>, vector<2x128xf32> -> vector<2x128xf32>
    %298 = arith.addf %295, %297 : vector<2x128xf32>
    %c2_i32_172 = arith.constant 2 : i32
    %299 = arith.muli %292, %c2_i32_172 : i32
    %300 = arith.index_cast %299 : i32 to index
    %c0_173 = arith.constant 0 : index
    %301 = vector.load %arg18[%300, %c0_173] : memref<16x128xf32, #tpu.memory_space<vmem>>, vector<2x128xf32>
    %c0_174 = arith.constant 0 : index
    %c0_175 = arith.constant 0 : index
    %302 = vector.load %arg23[%c0_174, %c0_175] : memref<2x32xf32, #tpu.memory_space<vmem>>, vector<2x32xf32>
    %cst_176 = arith.constant dense<0.000000e+00> : vector<2x128xf32>
    %303 = tpu.matmul %302, %16, %cst_176 {dimension_numbers = #tpu.dot_dimension_numbers<[1], [0], [0], [1], [0, 0, 1, 1], [], []>} : vector<2x32xf32>, vector<32x128xf32>, vector<2x128xf32> -> vector<2x128xf32>
    %304 = arith.addf %301, %303 : vector<2x128xf32>
    %c0_177 = arith.constant 0 : index
    %c0_178 = arith.constant 0 : index
    %305 = vector.load %arg22[%c0_177, %c0_178] : memref<2x32xf32, #tpu.memory_space<vmem>>, vector<2x32xf32>
    %306 = arith.negf %298 : vector<2x128xf32>
    %307 = math.exp %306 : vector<2x128xf32>
    %cst_179 = arith.constant 1.000000e+00 : f32
    %308 = vector.broadcast %cst_179 : f32 to vector<2x128xf32>
    %309 = arith.addf %308, %307 : vector<2x128xf32>
    %310 = arith.divf %308, %309 : vector<2x128xf32>
    %311 = math.tanh %298 : vector<2x128xf32>
    %312 = vector.extract_strided_slice %310 {offsets = [0, 32], sizes = [2, 32], strides = [1, 1]} : vector<2x128xf32> to vector<2x32xf32>
    %313 = arith.mulf %312, %305 : vector<2x32xf32>
    %314 = vector.extract_strided_slice %310 {offsets = [0, 0], sizes = [2, 32], strides = [1, 1]} : vector<2x128xf32> to vector<2x32xf32>
    %315 = vector.extract_strided_slice %311 {offsets = [0, 64], sizes = [2, 32], strides = [1, 1]} : vector<2x128xf32> to vector<2x32xf32>
    %316 = arith.mulf %314, %315 : vector<2x32xf32>
    %317 = arith.addf %313, %316 : vector<2x32xf32>
    %318 = vector.extract_strided_slice %310 {offsets = [0, 96], sizes = [2, 32], strides = [1, 1]} : vector<2x128xf32> to vector<2x32xf32>
    %319 = math.tanh %317 : vector<2x32xf32>
    %320 = arith.mulf %318, %319 : vector<2x32xf32>
    %c0_180 = arith.constant 0 : index
    %c0_181 = arith.constant 0 : index
    %321 = vector.load %arg24[%c0_180, %c0_181] : memref<2x32xf32, #tpu.memory_space<vmem>>, vector<2x32xf32>
    %322 = arith.negf %304 : vector<2x128xf32>
    %323 = math.exp %322 : vector<2x128xf32>
    %cst_182 = arith.constant 1.000000e+00 : f32
    %324 = vector.broadcast %cst_182 : f32 to vector<2x128xf32>
    %325 = arith.addf %324, %323 : vector<2x128xf32>
    %326 = arith.divf %324, %325 : vector<2x128xf32>
    %327 = math.tanh %304 : vector<2x128xf32>
    %328 = vector.extract_strided_slice %326 {offsets = [0, 32], sizes = [2, 32], strides = [1, 1]} : vector<2x128xf32> to vector<2x32xf32>
    %329 = arith.mulf %328, %321 : vector<2x32xf32>
    %330 = vector.extract_strided_slice %326 {offsets = [0, 0], sizes = [2, 32], strides = [1, 1]} : vector<2x128xf32> to vector<2x32xf32>
    %331 = vector.extract_strided_slice %327 {offsets = [0, 64], sizes = [2, 32], strides = [1, 1]} : vector<2x128xf32> to vector<2x32xf32>
    %332 = arith.mulf %330, %331 : vector<2x32xf32>
    %333 = arith.addf %329, %332 : vector<2x32xf32>
    %334 = vector.extract_strided_slice %326 {offsets = [0, 96], sizes = [2, 32], strides = [1, 1]} : vector<2x128xf32> to vector<2x32xf32>
    %335 = math.tanh %333 : vector<2x32xf32>
    %336 = arith.mulf %334, %335 : vector<2x32xf32>
    %c0_183 = arith.constant 0 : index
    %c0_184 = arith.constant 0 : index
    %337 = vector.load %arg21[%c0_183, %c0_184] : memref<2x32xf32, #tpu.memory_space<vmem>>, vector<2x32xf32>
    tpu.vector_store %arg21[%c0_183, %c0_184], %320 {strides = array<i32>} : memref<2x32xf32, #tpu.memory_space<vmem>>, vector<2x32xf32>,
    %c0_185 = arith.constant 0 : index
    %c0_186 = arith.constant 0 : index
    %338 = vector.load %arg22[%c0_185, %c0_186] : memref<2x32xf32, #tpu.memory_space<vmem>>, vector<2x32xf32>
    tpu.vector_store %arg22[%c0_185, %c0_186], %317 {strides = array<i32>} : memref<2x32xf32, #tpu.memory_space<vmem>>, vector<2x32xf32>,
    %c0_187 = arith.constant 0 : index
    %c0_188 = arith.constant 0 : index
    %339 = vector.load %arg23[%c0_187, %c0_188] : memref<2x32xf32, #tpu.memory_space<vmem>>, vector<2x32xf32>
    tpu.vector_store %arg23[%c0_187, %c0_188], %336 {strides = array<i32>} : memref<2x32xf32, #tpu.memory_space<vmem>>, vector<2x32xf32>,
    %c0_189 = arith.constant 0 : index
    %c0_190 = arith.constant 0 : index
    %340 = vector.load %arg24[%c0_189, %c0_190] : memref<2x32xf32, #tpu.memory_space<vmem>>, vector<2x32xf32>
    tpu.vector_store %arg24[%c0_189, %c0_190], %333 {strides = array<i32>} : memref<2x32xf32, #tpu.memory_space<vmem>>, vector<2x32xf32>,
    %c2_i32_191 = arith.constant 2 : i32
    %341 = arith.muli %c5_i32, %c2_i32_191 : i32
    %342 = arith.index_cast %341 : i32 to index
    %c0_192 = arith.constant 0 : index
    %343 = vector.load %arg19[%342, %c0_192] : memref<16x32xf32, #tpu.memory_space<vmem>>, vector<2x32xf32>
    tpu.vector_store %arg19[%342, %c0_192], %320 {strides = array<i32>} : memref<16x32xf32, #tpu.memory_space<vmem>>, vector<2x32xf32>,
    %c2_i32_193 = arith.constant 2 : i32
    %344 = arith.muli %292, %c2_i32_193 : i32
    %345 = arith.index_cast %344 : i32 to index
    %c0_194 = arith.constant 0 : index
    %346 = vector.load %arg20[%345, %c0_194] : memref<16x32xf32, #tpu.memory_space<vmem>>, vector<2x32xf32>
    tpu.vector_store %arg20[%345, %c0_194], %336 {strides = array<i32>} : memref<16x32xf32, #tpu.memory_space<vmem>>, vector<2x32xf32>,
    %c6_i32 = arith.constant 6 : i32
    %c7_i32_195 = arith.constant 7 : i32
    %347 = arith.subi %c7_i32_195, %c6_i32 : i32
    %c2_i32_196 = arith.constant 2 : i32
    %348 = arith.muli %c6_i32, %c2_i32_196 : i32
    %349 = arith.index_cast %348 : i32 to index
    %c0_197 = arith.constant 0 : index
    %350 = vector.load %arg17[%349, %c0_197] : memref<16x128xf32, #tpu.memory_space<vmem>>, vector<2x128xf32>
    %c0_198 = arith.constant 0 : index
    %c0_199 = arith.constant 0 : index
    %351 = vector.load %arg21[%c0_198, %c0_199] : memref<2x32xf32, #tpu.memory_space<vmem>>, vector<2x32xf32>
    %cst_200 = arith.constant dense<0.000000e+00> : vector<2x128xf32>
    %352 = tpu.matmul %351, %15, %cst_200 {dimension_numbers = #tpu.dot_dimension_numbers<[1], [0], [0], [1], [0, 0, 1, 1], [], []>} : vector<2x32xf32>, vector<32x128xf32>, vector<2x128xf32> -> vector<2x128xf32>
    %353 = arith.addf %350, %352 : vector<2x128xf32>
    %c2_i32_201 = arith.constant 2 : i32
    %354 = arith.muli %347, %c2_i32_201 : i32
    %355 = arith.index_cast %354 : i32 to index
    %c0_202 = arith.constant 0 : index
    %356 = vector.load %arg18[%355, %c0_202] : memref<16x128xf32, #tpu.memory_space<vmem>>, vector<2x128xf32>
    %c0_203 = arith.constant 0 : index
    %c0_204 = arith.constant 0 : index
    %357 = vector.load %arg23[%c0_203, %c0_204] : memref<2x32xf32, #tpu.memory_space<vmem>>, vector<2x32xf32>
    %cst_205 = arith.constant dense<0.000000e+00> : vector<2x128xf32>
    %358 = tpu.matmul %357, %16, %cst_205 {dimension_numbers = #tpu.dot_dimension_numbers<[1], [0], [0], [1], [0, 0, 1, 1], [], []>} : vector<2x32xf32>, vector<32x128xf32>, vector<2x128xf32> -> vector<2x128xf32>
    %359 = arith.addf %356, %358 : vector<2x128xf32>
    %c0_206 = arith.constant 0 : index
    %c0_207 = arith.constant 0 : index
    %360 = vector.load %arg22[%c0_206, %c0_207] : memref<2x32xf32, #tpu.memory_space<vmem>>, vector<2x32xf32>
    %361 = arith.negf %353 : vector<2x128xf32>
    %362 = math.exp %361 : vector<2x128xf32>
    %cst_208 = arith.constant 1.000000e+00 : f32
    %363 = vector.broadcast %cst_208 : f32 to vector<2x128xf32>
    %364 = arith.addf %363, %362 : vector<2x128xf32>
    %365 = arith.divf %363, %364 : vector<2x128xf32>
    %366 = math.tanh %353 : vector<2x128xf32>
    %367 = vector.extract_strided_slice %365 {offsets = [0, 32], sizes = [2, 32], strides = [1, 1]} : vector<2x128xf32> to vector<2x32xf32>
    %368 = arith.mulf %367, %360 : vector<2x32xf32>
    %369 = vector.extract_strided_slice %365 {offsets = [0, 0], sizes = [2, 32], strides = [1, 1]} : vector<2x128xf32> to vector<2x32xf32>
    %370 = vector.extract_strided_slice %366 {offsets = [0, 64], sizes = [2, 32], strides = [1, 1]} : vector<2x128xf32> to vector<2x32xf32>
    %371 = arith.mulf %369, %370 : vector<2x32xf32>
    %372 = arith.addf %368, %371 : vector<2x32xf32>
    %373 = vector.extract_strided_slice %365 {offsets = [0, 96], sizes = [2, 32], strides = [1, 1]} : vector<2x128xf32> to vector<2x32xf32>
    %374 = math.tanh %372 : vector<2x32xf32>
    %375 = arith.mulf %373, %374 : vector<2x32xf32>
    %c0_209 = arith.constant 0 : index
    %c0_210 = arith.constant 0 : index
    %376 = vector.load %arg24[%c0_209, %c0_210] : memref<2x32xf32, #tpu.memory_space<vmem>>, vector<2x32xf32>
    %377 = arith.negf %359 : vector<2x128xf32>
    %378 = math.exp %377 : vector<2x128xf32>
    %cst_211 = arith.constant 1.000000e+00 : f32
    %379 = vector.broadcast %cst_211 : f32 to vector<2x128xf32>
    %380 = arith.addf %379, %378 : vector<2x128xf32>
    %381 = arith.divf %379, %380 : vector<2x128xf32>
    %382 = math.tanh %359 : vector<2x128xf32>
    %383 = vector.extract_strided_slice %381 {offsets = [0, 32], sizes = [2, 32], strides = [1, 1]} : vector<2x128xf32> to vector<2x32xf32>
    %384 = arith.mulf %383, %376 : vector<2x32xf32>
    %385 = vector.extract_strided_slice %381 {offsets = [0, 0], sizes = [2, 32], strides = [1, 1]} : vector<2x128xf32> to vector<2x32xf32>
    %386 = vector.extract_strided_slice %382 {offsets = [0, 64], sizes = [2, 32], strides = [1, 1]} : vector<2x128xf32> to vector<2x32xf32>
    %387 = arith.mulf %385, %386 : vector<2x32xf32>
    %388 = arith.addf %384, %387 : vector<2x32xf32>
    %389 = vector.extract_strided_slice %381 {offsets = [0, 96], sizes = [2, 32], strides = [1, 1]} : vector<2x128xf32> to vector<2x32xf32>
    %390 = math.tanh %388 : vector<2x32xf32>
    %391 = arith.mulf %389, %390 : vector<2x32xf32>
    %c0_212 = arith.constant 0 : index
    %c0_213 = arith.constant 0 : index
    %392 = vector.load %arg21[%c0_212, %c0_213] : memref<2x32xf32, #tpu.memory_space<vmem>>, vector<2x32xf32>
    tpu.vector_store %arg21[%c0_212, %c0_213], %375 {strides = array<i32>} : memref<2x32xf32, #tpu.memory_space<vmem>>, vector<2x32xf32>,
    %c0_214 = arith.constant 0 : index
    %c0_215 = arith.constant 0 : index
    %393 = vector.load %arg22[%c0_214, %c0_215] : memref<2x32xf32, #tpu.memory_space<vmem>>, vector<2x32xf32>
    tpu.vector_store %arg22[%c0_214, %c0_215], %372 {strides = array<i32>} : memref<2x32xf32, #tpu.memory_space<vmem>>, vector<2x32xf32>,
    %c0_216 = arith.constant 0 : index
    %c0_217 = arith.constant 0 : index
    %394 = vector.load %arg23[%c0_216, %c0_217] : memref<2x32xf32, #tpu.memory_space<vmem>>, vector<2x32xf32>
    tpu.vector_store %arg23[%c0_216, %c0_217], %391 {strides = array<i32>} : memref<2x32xf32, #tpu.memory_space<vmem>>, vector<2x32xf32>,
    %c0_218 = arith.constant 0 : index
    %c0_219 = arith.constant 0 : index
    %395 = vector.load %arg24[%c0_218, %c0_219] : memref<2x32xf32, #tpu.memory_space<vmem>>, vector<2x32xf32>
    tpu.vector_store %arg24[%c0_218, %c0_219], %388 {strides = array<i32>} : memref<2x32xf32, #tpu.memory_space<vmem>>, vector<2x32xf32>,
    %c2_i32_220 = arith.constant 2 : i32
    %396 = arith.muli %c6_i32, %c2_i32_220 : i32
    %397 = arith.index_cast %396 : i32 to index
    %c0_221 = arith.constant 0 : index
    %398 = vector.load %arg19[%397, %c0_221] : memref<16x32xf32, #tpu.memory_space<vmem>>, vector<2x32xf32>
    tpu.vector_store %arg19[%397, %c0_221], %375 {strides = array<i32>} : memref<16x32xf32, #tpu.memory_space<vmem>>, vector<2x32xf32>,
    %c2_i32_222 = arith.constant 2 : i32
    %399 = arith.muli %347, %c2_i32_222 : i32
    %400 = arith.index_cast %399 : i32 to index
    %c0_223 = arith.constant 0 : index
    %401 = vector.load %arg20[%400, %c0_223] : memref<16x32xf32, #tpu.memory_space<vmem>>, vector<2x32xf32>
    tpu.vector_store %arg20[%400, %c0_223], %391 {strides = array<i32>} : memref<16x32xf32, #tpu.memory_space<vmem>>, vector<2x32xf32>,
    %c7_i32_224 = arith.constant 7 : i32
    %c7_i32_225 = arith.constant 7 : i32
    %402 = arith.subi %c7_i32_225, %c7_i32_224 : i32
    %c2_i32_226 = arith.constant 2 : i32
    %403 = arith.muli %c7_i32_224, %c2_i32_226 : i32
    %404 = arith.index_cast %403 : i32 to index
    %c0_227 = arith.constant 0 : index
    %405 = vector.load %arg17[%404, %c0_227] : memref<16x128xf32, #tpu.memory_space<vmem>>, vector<2x128xf32>
    %c0_228 = arith.constant 0 : index
    %c0_229 = arith.constant 0 : index
    %406 = vector.load %arg21[%c0_228, %c0_229] : memref<2x32xf32, #tpu.memory_space<vmem>>, vector<2x32xf32>
    %cst_230 = arith.constant dense<0.000000e+00> : vector<2x128xf32>
    %407 = tpu.matmul %406, %15, %cst_230 {dimension_numbers = #tpu.dot_dimension_numbers<[1], [0], [0], [1], [0, 0, 1, 1], [], []>} : vector<2x32xf32>, vector<32x128xf32>, vector<2x128xf32> -> vector<2x128xf32>
    %408 = arith.addf %405, %407 : vector<2x128xf32>
    %c2_i32_231 = arith.constant 2 : i32
    %409 = arith.muli %402, %c2_i32_231 : i32
    %410 = arith.index_cast %409 : i32 to index
    %c0_232 = arith.constant 0 : index
    %411 = vector.load %arg18[%410, %c0_232] : memref<16x128xf32, #tpu.memory_space<vmem>>, vector<2x128xf32>
    %c0_233 = arith.constant 0 : index
    %c0_234 = arith.constant 0 : index
    %412 = vector.load %arg23[%c0_233, %c0_234] : memref<2x32xf32, #tpu.memory_space<vmem>>, vector<2x32xf32>
    %cst_235 = arith.constant dense<0.000000e+00> : vector<2x128xf32>
    %413 = tpu.matmul %412, %16, %cst_235 {dimension_numbers = #tpu.dot_dimension_numbers<[1], [0], [0], [1], [0, 0, 1, 1], [], []>} : vector<2x32xf32>, vector<32x128xf32>, vector<2x128xf32> -> vector<2x128xf32>
    %414 = arith.addf %411, %413 : vector<2x128xf32>
    %c0_236 = arith.constant 0 : index
    %c0_237 = arith.constant 0 : index
    %415 = vector.load %arg22[%c0_236, %c0_237] : memref<2x32xf32, #tpu.memory_space<vmem>>, vector<2x32xf32>
    %416 = arith.negf %408 : vector<2x128xf32>
    %417 = math.exp %416 : vector<2x128xf32>
    %cst_238 = arith.constant 1.000000e+00 : f32
    %418 = vector.broadcast %cst_238 : f32 to vector<2x128xf32>
    %419 = arith.addf %418, %417 : vector<2x128xf32>
    %420 = arith.divf %418, %419 : vector<2x128xf32>
    %421 = math.tanh %408 : vector<2x128xf32>
    %422 = vector.extract_strided_slice %420 {offsets = [0, 32], sizes = [2, 32], strides = [1, 1]} : vector<2x128xf32> to vector<2x32xf32>
    %423 = arith.mulf %422, %415 : vector<2x32xf32>
    %424 = vector.extract_strided_slice %420 {offsets = [0, 0], sizes = [2, 32], strides = [1, 1]} : vector<2x128xf32> to vector<2x32xf32>
    %425 = vector.extract_strided_slice %421 {offsets = [0, 64], sizes = [2, 32], strides = [1, 1]} : vector<2x128xf32> to vector<2x32xf32>
    %426 = arith.mulf %424, %425 : vector<2x32xf32>
    %427 = arith.addf %423, %426 : vector<2x32xf32>
    %428 = vector.extract_strided_slice %420 {offsets = [0, 96], sizes = [2, 32], strides = [1, 1]} : vector<2x128xf32> to vector<2x32xf32>
    %429 = math.tanh %427 : vector<2x32xf32>
    %430 = arith.mulf %428, %429 : vector<2x32xf32>
    %c0_239 = arith.constant 0 : index
    %c0_240 = arith.constant 0 : index
    %431 = vector.load %arg24[%c0_239, %c0_240] : memref<2x32xf32, #tpu.memory_space<vmem>>, vector<2x32xf32>
    %432 = arith.negf %414 : vector<2x128xf32>
    %433 = math.exp %432 : vector<2x128xf32>
    %cst_241 = arith.constant 1.000000e+00 : f32
    %434 = vector.broadcast %cst_241 : f32 to vector<2x128xf32>
    %435 = arith.addf %434, %433 : vector<2x128xf32>
    %436 = arith.divf %434, %435 : vector<2x128xf32>
    %437 = math.tanh %414 : vector<2x128xf32>
    %438 = vector.extract_strided_slice %436 {offsets = [0, 32], sizes = [2, 32], strides = [1, 1]} : vector<2x128xf32> to vector<2x32xf32>
    %439 = arith.mulf %438, %431 : vector<2x32xf32>
    %440 = vector.extract_strided_slice %436 {offsets = [0, 0], sizes = [2, 32], strides = [1, 1]} : vector<2x128xf32> to vector<2x32xf32>
    %441 = vector.extract_strided_slice %437 {offsets = [0, 64], sizes = [2, 32], strides = [1, 1]} : vector<2x128xf32> to vector<2x32xf32>
    %442 = arith.mulf %440, %441 : vector<2x32xf32>
    %443 = arith.addf %439, %442 : vector<2x32xf32>
    %444 = vector.extract_strided_slice %436 {offsets = [0, 96], sizes = [2, 32], strides = [1, 1]} : vector<2x128xf32> to vector<2x32xf32>
    %445 = math.tanh %443 : vector<2x32xf32>
    %446 = arith.mulf %444, %445 : vector<2x32xf32>
    %c0_242 = arith.constant 0 : index
    %c0_243 = arith.constant 0 : index
    %447 = vector.load %arg21[%c0_242, %c0_243] : memref<2x32xf32, #tpu.memory_space<vmem>>, vector<2x32xf32>
    tpu.vector_store %arg21[%c0_242, %c0_243], %430 {strides = array<i32>} : memref<2x32xf32, #tpu.memory_space<vmem>>, vector<2x32xf32>,
    %c0_244 = arith.constant 0 : index
    %c0_245 = arith.constant 0 : index
    %448 = vector.load %arg22[%c0_244, %c0_245] : memref<2x32xf32, #tpu.memory_space<vmem>>, vector<2x32xf32>
    tpu.vector_store %arg22[%c0_244, %c0_245], %427 {strides = array<i32>} : memref<2x32xf32, #tpu.memory_space<vmem>>, vector<2x32xf32>,
    %c0_246 = arith.constant 0 : index
    %c0_247 = arith.constant 0 : index
    %449 = vector.load %arg23[%c0_246, %c0_247] : memref<2x32xf32, #tpu.memory_space<vmem>>, vector<2x32xf32>
    tpu.vector_store %arg23[%c0_246, %c0_247], %446 {strides = array<i32>} : memref<2x32xf32, #tpu.memory_space<vmem>>, vector<2x32xf32>,
    %c0_248 = arith.constant 0 : index
    %c0_249 = arith.constant 0 : index
    %450 = vector.load %arg24[%c0_248, %c0_249] : memref<2x32xf32, #tpu.memory_space<vmem>>, vector<2x32xf32>
    tpu.vector_store %arg24[%c0_248, %c0_249], %443 {strides = array<i32>} : memref<2x32xf32, #tpu.memory_space<vmem>>, vector<2x32xf32>,
    %c2_i32_250 = arith.constant 2 : i32
    %451 = arith.muli %c7_i32_224, %c2_i32_250 : i32
    %452 = arith.index_cast %451 : i32 to index
    %c0_251 = arith.constant 0 : index
    %453 = vector.load %arg19[%452, %c0_251] : memref<16x32xf32, #tpu.memory_space<vmem>>, vector<2x32xf32>
    tpu.vector_store %arg19[%452, %c0_251], %430 {strides = array<i32>} : memref<16x32xf32, #tpu.memory_space<vmem>>, vector<2x32xf32>,
    %c2_i32_252 = arith.constant 2 : i32
    %454 = arith.muli %402, %c2_i32_252 : i32
    %455 = arith.index_cast %454 : i32 to index
    %c0_253 = arith.constant 0 : index
    %456 = vector.load %arg20[%455, %c0_253] : memref<16x32xf32, #tpu.memory_space<vmem>>, vector<2x32xf32>
    tpu.vector_store %arg20[%455, %c0_253], %446 {strides = array<i32>} : memref<16x32xf32, #tpu.memory_space<vmem>>, vector<2x32xf32>,
    %c8_i32 = arith.constant 8 : i32
    %c0_254 = arith.constant 0 : index
    %c0_255 = arith.constant 0 : index
    %457 = vector.load %arg1[%c0_254, %c0_255] : memref<16x64xf32, #tpu.memory_space<vmem>>, vector<16x64xf32>
    %c0_256 = arith.constant 0 : index
    %c0_257 = arith.constant 0 : index
    %458 = vector.load %arg19[%c0_256, %c0_257] : memref<16x32xf32, #tpu.memory_space<vmem>>, vector<16x32xf32>
    %459 = vector.extract_strided_slice %457 {offsets = [0, 0], sizes = [16, 32], strides = [1, 1]} : vector<16x64xf32> to vector<16x32xf32>
    %460 = arith.mulf %458, %459 : vector<16x32xf32>
    %c0_258 = arith.constant 0 : index
    %c0_259 = arith.constant 0 : index
    %461 = vector.load %arg19[%c0_258, %c0_259] : memref<16x32xf32, #tpu.memory_space<vmem>>, vector<16x32xf32>
    tpu.vector_store %arg19[%c0_258, %c0_259], %460 {strides = array<i32>} : memref<16x32xf32, #tpu.memory_space<vmem>>, vector<16x32xf32>,
    %c0_260 = arith.constant 0 : index
    %c0_261 = arith.constant 0 : index
    %462 = vector.load %arg20[%c0_260, %c0_261] : memref<16x32xf32, #tpu.memory_space<vmem>>, vector<16x32xf32>
    %463 = vector.extract_strided_slice %457 {offsets = [0, 32], sizes = [16, 32], strides = [1, 1]} : vector<16x64xf32> to vector<16x32xf32>
    %464 = arith.mulf %462, %463 : vector<16x32xf32>
    %c0_262 = arith.constant 0 : index
    %c0_263 = arith.constant 0 : index
    %465 = vector.load %arg20[%c0_262, %c0_263] : memref<16x32xf32, #tpu.memory_space<vmem>>, vector<16x32xf32>
    tpu.vector_store %arg20[%c0_262, %c0_263], %464 {strides = array<i32>} : memref<16x32xf32, #tpu.memory_space<vmem>>, vector<16x32xf32>,
    %c0_264 = arith.constant 0 : index
    %c0_265 = arith.constant 0 : index
    %466 = vector.load %arg19[%c0_264, %c0_265] : memref<16x32xf32, #tpu.memory_space<vmem>>, vector<16x32xf32>
    %c0_266 = arith.constant 0 : index
    %c0_267 = arith.constant 0 : index
    %467 = vector.load %arg6[%c0_266, %c0_267] : memref<64x256xf32, #tpu.memory_space<vmem>>, vector<32x256xf32>
    %cst_268 = arith.constant dense<0.000000e+00> : vector<16x256xf32>
    %468 = tpu.matmul %466, %467, %cst_268 {dimension_numbers = #tpu.dot_dimension_numbers<[1], [0], [0], [1], [0, 0, 1, 1], [], []>} : vector<16x32xf32>, vector<32x256xf32>, vector<16x256xf32> -> vector<16x256xf32>
    %c0_269 = arith.constant 0 : index
    %c0_270 = arith.constant 0 : index
    %469 = vector.load %arg20[%c0_269, %c0_270] : memref<16x32xf32, #tpu.memory_space<vmem>>, vector<16x32xf32>
    %c32 = arith.constant 32 : index
    %c0_271 = arith.constant 0 : index
    %470 = vector.load %arg6[%c32, %c0_271] : memref<64x256xf32, #tpu.memory_space<vmem>>, vector<32x256xf32>
    %cst_272 = arith.constant dense<0.000000e+00> : vector<16x256xf32>
    %471 = tpu.matmul %469, %470, %cst_272 {dimension_numbers = #tpu.dot_dimension_numbers<[1], [0], [0], [1], [0, 0, 1, 1], [], []>} : vector<16x32xf32>, vector<32x256xf32>, vector<16x256xf32> -> vector<16x256xf32>
    %472 = arith.addf %468, %471 : vector<16x256xf32>
    %c0_273 = arith.constant 0 : index
    %c0_274 = arith.constant 0 : index
    %473 = vector.load %arg9[%c0_273, %c0_274] : memref<1x256xf32, #tpu.memory_space<vmem>>, vector<1x256xf32>
    %474 = vector.broadcast %473 : vector<1x256xf32> to vector<16x256xf32>
    %475 = arith.addf %472, %474 : vector<16x256xf32>
    %476 = vector.extract_strided_slice %475 {offsets = [0, 0], sizes = [16, 128], strides = [1, 1]} : vector<16x256xf32> to vector<16x128xf32>
    %c0_275 = arith.constant 0 : index
    %c0_276 = arith.constant 0 : index
    %477 = vector.load %arg17[%c0_275, %c0_276] : memref<16x128xf32, #tpu.memory_space<vmem>>, vector<16x128xf32>
    tpu.vector_store %arg17[%c0_275, %c0_276], %476 {strides = array<i32>} : memref<16x128xf32, #tpu.memory_space<vmem>>, vector<16x128xf32>,
    %478 = vector.extract_strided_slice %475 {offsets = [0, 128], sizes = [16, 128], strides = [1, 1]} : vector<16x256xf32> to vector<16x128xf32>
    %c0_277 = arith.constant 0 : index
    %c0_278 = arith.constant 0 : index
    %479 = vector.load %arg18[%c0_277, %c0_278] : memref<16x128xf32, #tpu.memory_space<vmem>>, vector<16x128xf32>
    tpu.vector_store %arg18[%c0_277, %c0_278], %478 {strides = array<i32>} : memref<16x128xf32, #tpu.memory_space<vmem>>, vector<16x128xf32>,
    %cst_279 = arith.constant 0.000000e+00 : f32
    %480 = vector.broadcast %cst_279 : f32 to vector<2x32xf32>
    %c0_280 = arith.constant 0 : index
    %c0_281 = arith.constant 0 : index
    %481 = vector.load %arg21[%c0_280, %c0_281] : memref<2x32xf32, #tpu.memory_space<vmem>>, vector<2x32xf32>
    tpu.vector_store %arg21[%c0_280, %c0_281], %480 {strides = array<i32>} : memref<2x32xf32, #tpu.memory_space<vmem>>, vector<2x32xf32>,
    %c0_282 = arith.constant 0 : index
    %c0_283 = arith.constant 0 : index
    %482 = vector.load %arg22[%c0_282, %c0_283] : memref<2x32xf32, #tpu.memory_space<vmem>>, vector<2x32xf32>
    tpu.vector_store %arg22[%c0_282, %c0_283], %480 {strides = array<i32>} : memref<2x32xf32, #tpu.memory_space<vmem>>, vector<2x32xf32>,
    %c0_284 = arith.constant 0 : index
    %c0_285 = arith.constant 0 : index
    %483 = vector.load %arg23[%c0_284, %c0_285] : memref<2x32xf32, #tpu.memory_space<vmem>>, vector<2x32xf32>
    tpu.vector_store %arg23[%c0_284, %c0_285], %480 {strides = array<i32>} : memref<2x32xf32, #tpu.memory_space<vmem>>, vector<2x32xf32>,
    %c0_286 = arith.constant 0 : index
    %c0_287 = arith.constant 0 : index
    %484 = vector.load %arg24[%c0_286, %c0_287] : memref<2x32xf32, #tpu.memory_space<vmem>>, vector<2x32xf32>
    tpu.vector_store %arg24[%c0_286, %c0_287], %480 {strides = array<i32>} : memref<2x32xf32, #tpu.memory_space<vmem>>, vector<2x32xf32>,
    %c0_288 = arith.constant 0 : index
    %c0_289 = arith.constant 0 : index
    %485 = vector.load %arg7[%c0_288, %c0_289] : memref<32x128xf32, #tpu.memory_space<vmem>>, vector<32x128xf32>
    %c0_290 = arith.constant 0 : index
    %c0_291 = arith.constant 0 : index
    %486 = vector.load %arg8[%c0_290, %c0_291] : memref<32x128xf32, #tpu.memory_space<vmem>>, vector<32x128xf32>
    %c0_i32_292 = arith.constant 0 : i32
    %c7_i32_293 = arith.constant 7 : i32
    %487 = arith.subi %c7_i32_293, %c0_i32_292 : i32
    %c2_i32_294 = arith.constant 2 : i32
    %488 = arith.muli %c0_i32_292, %c2_i32_294 : i32
    %489 = arith.index_cast %488 : i32 to index
    %c0_295 = arith.constant 0 : index
    %490 = vector.load %arg17[%489, %c0_295] : memref<16x128xf32, #tpu.memory_space<vmem>>, vector<2x128xf32>
    %c0_296 = arith.constant 0 : index
    %c0_297 = arith.constant 0 : index
    %491 = vector.load %arg21[%c0_296, %c0_297] : memref<2x32xf32, #tpu.memory_space<vmem>>, vector<2x32xf32>
    %cst_298 = arith.constant dense<0.000000e+00> : vector<2x128xf32>
    %492 = tpu.matmul %491, %485, %cst_298 {dimension_numbers = #tpu.dot_dimension_numbers<[1], [0], [0], [1], [0, 0, 1, 1], [], []>} : vector<2x32xf32>, vector<32x128xf32>, vector<2x128xf32> -> vector<2x128xf32>
    %493 = arith.addf %490, %492 : vector<2x128xf32>
    %c2_i32_299 = arith.constant 2 : i32
    %494 = arith.muli %487, %c2_i32_299 : i32
    %495 = arith.index_cast %494 : i32 to index
    %c0_300 = arith.constant 0 : index
    %496 = vector.load %arg18[%495, %c0_300] : memref<16x128xf32, #tpu.memory_space<vmem>>, vector<2x128xf32>
    %c0_301 = arith.constant 0 : index
    %c0_302 = arith.constant 0 : index
    %497 = vector.load %arg23[%c0_301, %c0_302] : memref<2x32xf32, #tpu.memory_space<vmem>>, vector<2x32xf32>
    %cst_303 = arith.constant dense<0.000000e+00> : vector<2x128xf32>
    %498 = tpu.matmul %497, %486, %cst_303 {dimension_numbers = #tpu.dot_dimension_numbers<[1], [0], [0], [1], [0, 0, 1, 1], [], []>} : vector<2x32xf32>, vector<32x128xf32>, vector<2x128xf32> -> vector<2x128xf32>
    %499 = arith.addf %496, %498 : vector<2x128xf32>
    %c0_304 = arith.constant 0 : index
    %c0_305 = arith.constant 0 : index
    %500 = vector.load %arg22[%c0_304, %c0_305] : memref<2x32xf32, #tpu.memory_space<vmem>>, vector<2x32xf32>
    %501 = arith.negf %493 : vector<2x128xf32>
    %502 = math.exp %501 : vector<2x128xf32>
    %cst_306 = arith.constant 1.000000e+00 : f32
    %503 = vector.broadcast %cst_306 : f32 to vector<2x128xf32>
    %504 = arith.addf %503, %502 : vector<2x128xf32>
    %505 = arith.divf %503, %504 : vector<2x128xf32>
    %506 = math.tanh %493 : vector<2x128xf32>
    %507 = vector.extract_strided_slice %505 {offsets = [0, 32], sizes = [2, 32], strides = [1, 1]} : vector<2x128xf32> to vector<2x32xf32>
    %508 = arith.mulf %507, %500 : vector<2x32xf32>
    %509 = vector.extract_strided_slice %505 {offsets = [0, 0], sizes = [2, 32], strides = [1, 1]} : vector<2x128xf32> to vector<2x32xf32>
    %510 = vector.extract_strided_slice %506 {offsets = [0, 64], sizes = [2, 32], strides = [1, 1]} : vector<2x128xf32> to vector<2x32xf32>
    %511 = arith.mulf %509, %510 : vector<2x32xf32>
    %512 = arith.addf %508, %511 : vector<2x32xf32>
    %513 = vector.extract_strided_slice %505 {offsets = [0, 96], sizes = [2, 32], strides = [1, 1]} : vector<2x128xf32> to vector<2x32xf32>
    %514 = math.tanh %512 : vector<2x32xf32>
    %515 = arith.mulf %513, %514 : vector<2x32xf32>
    %c0_307 = arith.constant 0 : index
    %c0_308 = arith.constant 0 : index
    %516 = vector.load %arg24[%c0_307, %c0_308] : memref<2x32xf32, #tpu.memory_space<vmem>>, vector<2x32xf32>
    %517 = arith.negf %499 : vector<2x128xf32>
    %518 = math.exp %517 : vector<2x128xf32>
    %cst_309 = arith.constant 1.000000e+00 : f32
    %519 = vector.broadcast %cst_309 : f32 to vector<2x128xf32>
    %520 = arith.addf %519, %518 : vector<2x128xf32>
    %521 = arith.divf %519, %520 : vector<2x128xf32>
    %522 = math.tanh %499 : vector<2x128xf32>
    %523 = vector.extract_strided_slice %521 {offsets = [0, 32], sizes = [2, 32], strides = [1, 1]} : vector<2x128xf32> to vector<2x32xf32>
    %524 = arith.mulf %523, %516 : vector<2x32xf32>
    %525 = vector.extract_strided_slice %521 {offsets = [0, 0], sizes = [2, 32], strides = [1, 1]} : vector<2x128xf32> to vector<2x32xf32>
    %526 = vector.extract_strided_slice %522 {offsets = [0, 64], sizes = [2, 32], strides = [1, 1]} : vector<2x128xf32> to vector<2x32xf32>
    %527 = arith.mulf %525, %526 : vector<2x32xf32>
    %528 = arith.addf %524, %527 : vector<2x32xf32>
    %529 = vector.extract_strided_slice %521 {offsets = [0, 96], sizes = [2, 32], strides = [1, 1]} : vector<2x128xf32> to vector<2x32xf32>
    %530 = math.tanh %528 : vector<2x32xf32>
    %531 = arith.mulf %529, %530 : vector<2x32xf32>
    %c0_310 = arith.constant 0 : index
    %c0_311 = arith.constant 0 : index
    %532 = vector.load %arg21[%c0_310, %c0_311] : memref<2x32xf32, #tpu.memory_space<vmem>>, vector<2x32xf32>
    tpu.vector_store %arg21[%c0_310, %c0_311], %515 {strides = array<i32>} : memref<2x32xf32, #tpu.memory_space<vmem>>, vector<2x32xf32>,
    %c0_312 = arith.constant 0 : index
    %c0_313 = arith.constant 0 : index
    %533 = vector.load %arg22[%c0_312, %c0_313] : memref<2x32xf32, #tpu.memory_space<vmem>>, vector<2x32xf32>
    tpu.vector_store %arg22[%c0_312, %c0_313], %512 {strides = array<i32>} : memref<2x32xf32, #tpu.memory_space<vmem>>, vector<2x32xf32>,
    %c0_314 = arith.constant 0 : index
    %c0_315 = arith.constant 0 : index
    %534 = vector.load %arg23[%c0_314, %c0_315] : memref<2x32xf32, #tpu.memory_space<vmem>>, vector<2x32xf32>
    tpu.vector_store %arg23[%c0_314, %c0_315], %531 {strides = array<i32>} : memref<2x32xf32, #tpu.memory_space<vmem>>, vector<2x32xf32>,
    %c0_316 = arith.constant 0 : index
    %c0_317 = arith.constant 0 : index
    %535 = vector.load %arg24[%c0_316, %c0_317] : memref<2x32xf32, #tpu.memory_space<vmem>>, vector<2x32xf32>
    tpu.vector_store %arg24[%c0_316, %c0_317], %528 {strides = array<i32>} : memref<2x32xf32, #tpu.memory_space<vmem>>, vector<2x32xf32>,
    %c2_i32_318 = arith.constant 2 : i32
    %536 = arith.muli %c0_i32_292, %c2_i32_318 : i32
    %537 = arith.index_cast %536 : i32 to index
    %c0_319 = arith.constant 0 : index
    %538 = vector.load %arg19[%537, %c0_319] : memref<16x32xf32, #tpu.memory_space<vmem>>, vector<2x32xf32>
    tpu.vector_store %arg19[%537, %c0_319], %515 {strides = array<i32>} : memref<16x32xf32, #tpu.memory_space<vmem>>, vector<2x32xf32>,
    %c2_i32_320 = arith.constant 2 : i32
    %539 = arith.muli %487, %c2_i32_320 : i32
    %540 = arith.index_cast %539 : i32 to index
    %c0_321 = arith.constant 0 : index
    %541 = vector.load %arg20[%540, %c0_321] : memref<16x32xf32, #tpu.memory_space<vmem>>, vector<2x32xf32>
    tpu.vector_store %arg20[%540, %c0_321], %531 {strides = array<i32>} : memref<16x32xf32, #tpu.memory_space<vmem>>, vector<2x32xf32>,
    %c1_i32_322 = arith.constant 1 : i32
    %c7_i32_323 = arith.constant 7 : i32
    %542 = arith.subi %c7_i32_323, %c1_i32_322 : i32
    %c2_i32_324 = arith.constant 2 : i32
    %543 = arith.muli %c1_i32_322, %c2_i32_324 : i32
    %544 = arith.index_cast %543 : i32 to index
    %c0_325 = arith.constant 0 : index
    %545 = vector.load %arg17[%544, %c0_325] : memref<16x128xf32, #tpu.memory_space<vmem>>, vector<2x128xf32>
    %c0_326 = arith.constant 0 : index
    %c0_327 = arith.constant 0 : index
    %546 = vector.load %arg21[%c0_326, %c0_327] : memref<2x32xf32, #tpu.memory_space<vmem>>, vector<2x32xf32>
    %cst_328 = arith.constant dense<0.000000e+00> : vector<2x128xf32>
    %547 = tpu.matmul %546, %485, %cst_328 {dimension_numbers = #tpu.dot_dimension_numbers<[1], [0], [0], [1], [0, 0, 1, 1], [], []>} : vector<2x32xf32>, vector<32x128xf32>, vector<2x128xf32> -> vector<2x128xf32>
    %548 = arith.addf %545, %547 : vector<2x128xf32>
    %c2_i32_329 = arith.constant 2 : i32
    %549 = arith.muli %542, %c2_i32_329 : i32
    %550 = arith.index_cast %549 : i32 to index
    %c0_330 = arith.constant 0 : index
    %551 = vector.load %arg18[%550, %c0_330] : memref<16x128xf32, #tpu.memory_space<vmem>>, vector<2x128xf32>
    %c0_331 = arith.constant 0 : index
    %c0_332 = arith.constant 0 : index
    %552 = vector.load %arg23[%c0_331, %c0_332] : memref<2x32xf32, #tpu.memory_space<vmem>>, vector<2x32xf32>
    %cst_333 = arith.constant dense<0.000000e+00> : vector<2x128xf32>
    %553 = tpu.matmul %552, %486, %cst_333 {dimension_numbers = #tpu.dot_dimension_numbers<[1], [0], [0], [1], [0, 0, 1, 1], [], []>} : vector<2x32xf32>, vector<32x128xf32>, vector<2x128xf32> -> vector<2x128xf32>
    %554 = arith.addf %551, %553 : vector<2x128xf32>
    %c0_334 = arith.constant 0 : index
    %c0_335 = arith.constant 0 : index
    %555 = vector.load %arg22[%c0_334, %c0_335] : memref<2x32xf32, #tpu.memory_space<vmem>>, vector<2x32xf32>
    %556 = arith.negf %548 : vector<2x128xf32>
    %557 = math.exp %556 : vector<2x128xf32>
    %cst_336 = arith.constant 1.000000e+00 : f32
    %558 = vector.broadcast %cst_336 : f32 to vector<2x128xf32>
    %559 = arith.addf %558, %557 : vector<2x128xf32>
    %560 = arith.divf %558, %559 : vector<2x128xf32>
    %561 = math.tanh %548 : vector<2x128xf32>
    %562 = vector.extract_strided_slice %560 {offsets = [0, 32], sizes = [2, 32], strides = [1, 1]} : vector<2x128xf32> to vector<2x32xf32>
    %563 = arith.mulf %562, %555 : vector<2x32xf32>
    %564 = vector.extract_strided_slice %560 {offsets = [0, 0], sizes = [2, 32], strides = [1, 1]} : vector<2x128xf32> to vector<2x32xf32>
    %565 = vector.extract_strided_slice %561 {offsets = [0, 64], sizes = [2, 32], strides = [1, 1]} : vector<2x128xf32> to vector<2x32xf32>
    %566 = arith.mulf %564, %565 : vector<2x32xf32>
    %567 = arith.addf %563, %566 : vector<2x32xf32>
    %568 = vector.extract_strided_slice %560 {offsets = [0, 96], sizes = [2, 32], strides = [1, 1]} : vector<2x128xf32> to vector<2x32xf32>
    %569 = math.tanh %567 : vector<2x32xf32>
    %570 = arith.mulf %568, %569 : vector<2x32xf32>
    %c0_337 = arith.constant 0 : index
    %c0_338 = arith.constant 0 : index
    %571 = vector.load %arg24[%c0_337, %c0_338] : memref<2x32xf32, #tpu.memory_space<vmem>>, vector<2x32xf32>
    %572 = arith.negf %554 : vector<2x128xf32>
    %573 = math.exp %572 : vector<2x128xf32>
    %cst_339 = arith.constant 1.000000e+00 : f32
    %574 = vector.broadcast %cst_339 : f32 to vector<2x128xf32>
    %575 = arith.addf %574, %573 : vector<2x128xf32>
    %576 = arith.divf %574, %575 : vector<2x128xf32>
    %577 = math.tanh %554 : vector<2x128xf32>
    %578 = vector.extract_strided_slice %576 {offsets = [0, 32], sizes = [2, 32], strides = [1, 1]} : vector<2x128xf32> to vector<2x32xf32>
    %579 = arith.mulf %578, %571 : vector<2x32xf32>
    %580 = vector.extract_strided_slice %576 {offsets = [0, 0], sizes = [2, 32], strides = [1, 1]} : vector<2x128xf32> to vector<2x32xf32>
    %581 = vector.extract_strided_slice %577 {offsets = [0, 64], sizes = [2, 32], strides = [1, 1]} : vector<2x128xf32> to vector<2x32xf32>
    %582 = arith.mulf %580, %581 : vector<2x32xf32>
    %583 = arith.addf %579, %582 : vector<2x32xf32>
    %584 = vector.extract_strided_slice %576 {offsets = [0, 96], sizes = [2, 32], strides = [1, 1]} : vector<2x128xf32> to vector<2x32xf32>
    %585 = math.tanh %583 : vector<2x32xf32>
    %586 = arith.mulf %584, %585 : vector<2x32xf32>
    %c0_340 = arith.constant 0 : index
    %c0_341 = arith.constant 0 : index
    %587 = vector.load %arg21[%c0_340, %c0_341] : memref<2x32xf32, #tpu.memory_space<vmem>>, vector<2x32xf32>
    tpu.vector_store %arg21[%c0_340, %c0_341], %570 {strides = array<i32>} : memref<2x32xf32, #tpu.memory_space<vmem>>, vector<2x32xf32>,
    %c0_342 = arith.constant 0 : index
    %c0_343 = arith.constant 0 : index
    %588 = vector.load %arg22[%c0_342, %c0_343] : memref<2x32xf32, #tpu.memory_space<vmem>>, vector<2x32xf32>
    tpu.vector_store %arg22[%c0_342, %c0_343], %567 {strides = array<i32>} : memref<2x32xf32, #tpu.memory_space<vmem>>, vector<2x32xf32>,
    %c0_344 = arith.constant 0 : index
    %c0_345 = arith.constant 0 : index
    %589 = vector.load %arg23[%c0_344, %c0_345] : memref<2x32xf32, #tpu.memory_space<vmem>>, vector<2x32xf32>
    tpu.vector_store %arg23[%c0_344, %c0_345], %586 {strides = array<i32>} : memref<2x32xf32, #tpu.memory_space<vmem>>, vector<2x32xf32>,
    %c0_346 = arith.constant 0 : index
    %c0_347 = arith.constant 0 : index
    %590 = vector.load %arg24[%c0_346, %c0_347] : memref<2x32xf32, #tpu.memory_space<vmem>>, vector<2x32xf32>
    tpu.vector_store %arg24[%c0_346, %c0_347], %583 {strides = array<i32>} : memref<2x32xf32, #tpu.memory_space<vmem>>, vector<2x32xf32>,
    %c2_i32_348 = arith.constant 2 : i32
    %591 = arith.muli %c1_i32_322, %c2_i32_348 : i32
    %592 = arith.index_cast %591 : i32 to index
    %c0_349 = arith.constant 0 : index
    %593 = vector.load %arg19[%592, %c0_349] : memref<16x32xf32, #tpu.memory_space<vmem>>, vector<2x32xf32>
    tpu.vector_store %arg19[%592, %c0_349], %570 {strides = array<i32>} : memref<16x32xf32, #tpu.memory_space<vmem>>, vector<2x32xf32>,
    %c2_i32_350 = arith.constant 2 : i32
    %594 = arith.muli %542, %c2_i32_350 : i32
    %595 = arith.index_cast %594 : i32 to index
    %c0_351 = arith.constant 0 : index
    %596 = vector.load %arg20[%595, %c0_351] : memref<16x32xf32, #tpu.memory_space<vmem>>, vector<2x32xf32>
    tpu.vector_store %arg20[%595, %c0_351], %586 {strides = array<i32>} : memref<16x32xf32, #tpu.memory_space<vmem>>, vector<2x32xf32>,
    %c2_i32_352 = arith.constant 2 : i32
    %c7_i32_353 = arith.constant 7 : i32
    %597 = arith.subi %c7_i32_353, %c2_i32_352 : i32
    %c2_i32_354 = arith.constant 2 : i32
    %598 = arith.muli %c2_i32_352, %c2_i32_354 : i32
    %599 = arith.index_cast %598 : i32 to index
    %c0_355 = arith.constant 0 : index
    %600 = vector.load %arg17[%599, %c0_355] : memref<16x128xf32, #tpu.memory_space<vmem>>, vector<2x128xf32>
    %c0_356 = arith.constant 0 : index
    %c0_357 = arith.constant 0 : index
    %601 = vector.load %arg21[%c0_356, %c0_357] : memref<2x32xf32, #tpu.memory_space<vmem>>, vector<2x32xf32>
    %cst_358 = arith.constant dense<0.000000e+00> : vector<2x128xf32>
    %602 = tpu.matmul %601, %485, %cst_358 {dimension_numbers = #tpu.dot_dimension_numbers<[1], [0], [0], [1], [0, 0, 1, 1], [], []>} : vector<2x32xf32>, vector<32x128xf32>, vector<2x128xf32> -> vector<2x128xf32>
    %603 = arith.addf %600, %602 : vector<2x128xf32>
    %c2_i32_359 = arith.constant 2 : i32
    %604 = arith.muli %597, %c2_i32_359 : i32
    %605 = arith.index_cast %604 : i32 to index
    %c0_360 = arith.constant 0 : index
    %606 = vector.load %arg18[%605, %c0_360] : memref<16x128xf32, #tpu.memory_space<vmem>>, vector<2x128xf32>
    %c0_361 = arith.constant 0 : index
    %c0_362 = arith.constant 0 : index
    %607 = vector.load %arg23[%c0_361, %c0_362] : memref<2x32xf32, #tpu.memory_space<vmem>>, vector<2x32xf32>
    %cst_363 = arith.constant dense<0.000000e+00> : vector<2x128xf32>
    %608 = tpu.matmul %607, %486, %cst_363 {dimension_numbers = #tpu.dot_dimension_numbers<[1], [0], [0], [1], [0, 0, 1, 1], [], []>} : vector<2x32xf32>, vector<32x128xf32>, vector<2x128xf32> -> vector<2x128xf32>
    %609 = arith.addf %606, %608 : vector<2x128xf32>
    %c0_364 = arith.constant 0 : index
    %c0_365 = arith.constant 0 : index
    %610 = vector.load %arg22[%c0_364, %c0_365] : memref<2x32xf32, #tpu.memory_space<vmem>>, vector<2x32xf32>
    %611 = arith.negf %603 : vector<2x128xf32>
    %612 = math.exp %611 : vector<2x128xf32>
    %cst_366 = arith.constant 1.000000e+00 : f32
    %613 = vector.broadcast %cst_366 : f32 to vector<2x128xf32>
    %614 = arith.addf %613, %612 : vector<2x128xf32>
    %615 = arith.divf %613, %614 : vector<2x128xf32>
    %616 = math.tanh %603 : vector<2x128xf32>
    %617 = vector.extract_strided_slice %615 {offsets = [0, 32], sizes = [2, 32], strides = [1, 1]} : vector<2x128xf32> to vector<2x32xf32>
    %618 = arith.mulf %617, %610 : vector<2x32xf32>
    %619 = vector.extract_strided_slice %615 {offsets = [0, 0], sizes = [2, 32], strides = [1, 1]} : vector<2x128xf32> to vector<2x32xf32>
    %620 = vector.extract_strided_slice %616 {offsets = [0, 64], sizes = [2, 32], strides = [1, 1]} : vector<2x128xf32> to vector<2x32xf32>
    %621 = arith.mulf %619, %620 : vector<2x32xf32>
    %622 = arith.addf %618, %621 : vector<2x32xf32>
    %623 = vector.extract_strided_slice %615 {offsets = [0, 96], sizes = [2, 32], strides = [1, 1]} : vector<2x128xf32> to vector<2x32xf32>
    %624 = math.tanh %622 : vector<2x32xf32>
    %625 = arith.mulf %623, %624 : vector<2x32xf32>
    %c0_367 = arith.constant 0 : index
    %c0_368 = arith.constant 0 : index
    %626 = vector.load %arg24[%c0_367, %c0_368] : memref<2x32xf32, #tpu.memory_space<vmem>>, vector<2x32xf32>
    %627 = arith.negf %609 : vector<2x128xf32>
    %628 = math.exp %627 : vector<2x128xf32>
    %cst_369 = arith.constant 1.000000e+00 : f32
    %629 = vector.broadcast %cst_369 : f32 to vector<2x128xf32>
    %630 = arith.addf %629, %628 : vector<2x128xf32>
    %631 = arith.divf %629, %630 : vector<2x128xf32>
    %632 = math.tanh %609 : vector<2x128xf32>
    %633 = vector.extract_strided_slice %631 {offsets = [0, 32], sizes = [2, 32], strides = [1, 1]} : vector<2x128xf32> to vector<2x32xf32>
    %634 = arith.mulf %633, %626 : vector<2x32xf32>
    %635 = vector.extract_strided_slice %631 {offsets = [0, 0], sizes = [2, 32], strides = [1, 1]} : vector<2x128xf32> to vector<2x32xf32>
    %636 = vector.extract_strided_slice %632 {offsets = [0, 64], sizes = [2, 32], strides = [1, 1]} : vector<2x128xf32> to vector<2x32xf32>
    %637 = arith.mulf %635, %636 : vector<2x32xf32>
    %638 = arith.addf %634, %637 : vector<2x32xf32>
    %639 = vector.extract_strided_slice %631 {offsets = [0, 96], sizes = [2, 32], strides = [1, 1]} : vector<2x128xf32> to vector<2x32xf32>
    %640 = math.tanh %638 : vector<2x32xf32>
    %641 = arith.mulf %639, %640 : vector<2x32xf32>
    %c0_370 = arith.constant 0 : index
    %c0_371 = arith.constant 0 : index
    %642 = vector.load %arg21[%c0_370, %c0_371] : memref<2x32xf32, #tpu.memory_space<vmem>>, vector<2x32xf32>
    tpu.vector_store %arg21[%c0_370, %c0_371], %625 {strides = array<i32>} : memref<2x32xf32, #tpu.memory_space<vmem>>, vector<2x32xf32>,
    %c0_372 = arith.constant 0 : index
    %c0_373 = arith.constant 0 : index
    %643 = vector.load %arg22[%c0_372, %c0_373] : memref<2x32xf32, #tpu.memory_space<vmem>>, vector<2x32xf32>
    tpu.vector_store %arg22[%c0_372, %c0_373], %622 {strides = array<i32>} : memref<2x32xf32, #tpu.memory_space<vmem>>, vector<2x32xf32>,
    %c0_374 = arith.constant 0 : index
    %c0_375 = arith.constant 0 : index
    %644 = vector.load %arg23[%c0_374, %c0_375] : memref<2x32xf32, #tpu.memory_space<vmem>>, vector<2x32xf32>
    tpu.vector_store %arg23[%c0_374, %c0_375], %641 {strides = array<i32>} : memref<2x32xf32, #tpu.memory_space<vmem>>, vector<2x32xf32>,
    %c0_376 = arith.constant 0 : index
    %c0_377 = arith.constant 0 : index
    %645 = vector.load %arg24[%c0_376, %c0_377] : memref<2x32xf32, #tpu.memory_space<vmem>>, vector<2x32xf32>
    tpu.vector_store %arg24[%c0_376, %c0_377], %638 {strides = array<i32>} : memref<2x32xf32, #tpu.memory_space<vmem>>, vector<2x32xf32>,
    %c2_i32_378 = arith.constant 2 : i32
    %646 = arith.muli %c2_i32_352, %c2_i32_378 : i32
    %647 = arith.index_cast %646 : i32 to index
    %c0_379 = arith.constant 0 : index
    %648 = vector.load %arg19[%647, %c0_379] : memref<16x32xf32, #tpu.memory_space<vmem>>, vector<2x32xf32>
    tpu.vector_store %arg19[%647, %c0_379], %625 {strides = array<i32>} : memref<16x32xf32, #tpu.memory_space<vmem>>, vector<2x32xf32>,
    %c2_i32_380 = arith.constant 2 : i32
    %649 = arith.muli %597, %c2_i32_380 : i32
    %650 = arith.index_cast %649 : i32 to index
    %c0_381 = arith.constant 0 : index
    %651 = vector.load %arg20[%650, %c0_381] : memref<16x32xf32, #tpu.memory_space<vmem>>, vector<2x32xf32>
    tpu.vector_store %arg20[%650, %c0_381], %641 {strides = array<i32>} : memref<16x32xf32, #tpu.memory_space<vmem>>, vector<2x32xf32>,
    %c3_i32_382 = arith.constant 3 : i32
    %c7_i32_383 = arith.constant 7 : i32
    %652 = arith.subi %c7_i32_383, %c3_i32_382 : i32
    %c2_i32_384 = arith.constant 2 : i32
    %653 = arith.muli %c3_i32_382, %c2_i32_384 : i32
    %654 = arith.index_cast %653 : i32 to index
    %c0_385 = arith.constant 0 : index
    %655 = vector.load %arg17[%654, %c0_385] : memref<16x128xf32, #tpu.memory_space<vmem>>, vector<2x128xf32>
    %c0_386 = arith.constant 0 : index
    %c0_387 = arith.constant 0 : index
    %656 = vector.load %arg21[%c0_386, %c0_387] : memref<2x32xf32, #tpu.memory_space<vmem>>, vector<2x32xf32>
    %cst_388 = arith.constant dense<0.000000e+00> : vector<2x128xf32>
    %657 = tpu.matmul %656, %485, %cst_388 {dimension_numbers = #tpu.dot_dimension_numbers<[1], [0], [0], [1], [0, 0, 1, 1], [], []>} : vector<2x32xf32>, vector<32x128xf32>, vector<2x128xf32> -> vector<2x128xf32>
    %658 = arith.addf %655, %657 : vector<2x128xf32>
    %c2_i32_389 = arith.constant 2 : i32
    %659 = arith.muli %652, %c2_i32_389 : i32
    %660 = arith.index_cast %659 : i32 to index
    %c0_390 = arith.constant 0 : index
    %661 = vector.load %arg18[%660, %c0_390] : memref<16x128xf32, #tpu.memory_space<vmem>>, vector<2x128xf32>
    %c0_391 = arith.constant 0 : index
    %c0_392 = arith.constant 0 : index
    %662 = vector.load %arg23[%c0_391, %c0_392] : memref<2x32xf32, #tpu.memory_space<vmem>>, vector<2x32xf32>
    %cst_393 = arith.constant dense<0.000000e+00> : vector<2x128xf32>
    %663 = tpu.matmul %662, %486, %cst_393 {dimension_numbers = #tpu.dot_dimension_numbers<[1], [0], [0], [1], [0, 0, 1, 1], [], []>} : vector<2x32xf32>, vector<32x128xf32>, vector<2x128xf32> -> vector<2x128xf32>
    %664 = arith.addf %661, %663 : vector<2x128xf32>
    %c0_394 = arith.constant 0 : index
    %c0_395 = arith.constant 0 : index
    %665 = vector.load %arg22[%c0_394, %c0_395] : memref<2x32xf32, #tpu.memory_space<vmem>>, vector<2x32xf32>
    %666 = arith.negf %658 : vector<2x128xf32>
    %667 = math.exp %666 : vector<2x128xf32>
    %cst_396 = arith.constant 1.000000e+00 : f32
    %668 = vector.broadcast %cst_396 : f32 to vector<2x128xf32>
    %669 = arith.addf %668, %667 : vector<2x128xf32>
    %670 = arith.divf %668, %669 : vector<2x128xf32>
    %671 = math.tanh %658 : vector<2x128xf32>
    %672 = vector.extract_strided_slice %670 {offsets = [0, 32], sizes = [2, 32], strides = [1, 1]} : vector<2x128xf32> to vector<2x32xf32>
    %673 = arith.mulf %672, %665 : vector<2x32xf32>
    %674 = vector.extract_strided_slice %670 {offsets = [0, 0], sizes = [2, 32], strides = [1, 1]} : vector<2x128xf32> to vector<2x32xf32>
    %675 = vector.extract_strided_slice %671 {offsets = [0, 64], sizes = [2, 32], strides = [1, 1]} : vector<2x128xf32> to vector<2x32xf32>
    %676 = arith.mulf %674, %675 : vector<2x32xf32>
    %677 = arith.addf %673, %676 : vector<2x32xf32>
    %678 = vector.extract_strided_slice %670 {offsets = [0, 96], sizes = [2, 32], strides = [1, 1]} : vector<2x128xf32> to vector<2x32xf32>
    %679 = math.tanh %677 : vector<2x32xf32>
    %680 = arith.mulf %678, %679 : vector<2x32xf32>
    %c0_397 = arith.constant 0 : index
    %c0_398 = arith.constant 0 : index
    %681 = vector.load %arg24[%c0_397, %c0_398] : memref<2x32xf32, #tpu.memory_space<vmem>>, vector<2x32xf32>
    %682 = arith.negf %664 : vector<2x128xf32>
    %683 = math.exp %682 : vector<2x128xf32>
    %cst_399 = arith.constant 1.000000e+00 : f32
    %684 = vector.broadcast %cst_399 : f32 to vector<2x128xf32>
    %685 = arith.addf %684, %683 : vector<2x128xf32>
    %686 = arith.divf %684, %685 : vector<2x128xf32>
    %687 = math.tanh %664 : vector<2x128xf32>
    %688 = vector.extract_strided_slice %686 {offsets = [0, 32], sizes = [2, 32], strides = [1, 1]} : vector<2x128xf32> to vector<2x32xf32>
    %689 = arith.mulf %688, %681 : vector<2x32xf32>
    %690 = vector.extract_strided_slice %686 {offsets = [0, 0], sizes = [2, 32], strides = [1, 1]} : vector<2x128xf32> to vector<2x32xf32>
    %691 = vector.extract_strided_slice %687 {offsets = [0, 64], sizes = [2, 32], strides = [1, 1]} : vector<2x128xf32> to vector<2x32xf32>
    %692 = arith.mulf %690, %691 : vector<2x32xf32>
    %693 = arith.addf %689, %692 : vector<2x32xf32>
    %694 = vector.extract_strided_slice %686 {offsets = [0, 96], sizes = [2, 32], strides = [1, 1]} : vector<2x128xf32> to vector<2x32xf32>
    %695 = math.tanh %693 : vector<2x32xf32>
    %696 = arith.mulf %694, %695 : vector<2x32xf32>
    %c0_400 = arith.constant 0 : index
    %c0_401 = arith.constant 0 : index
    %697 = vector.load %arg21[%c0_400, %c0_401] : memref<2x32xf32, #tpu.memory_space<vmem>>, vector<2x32xf32>
    tpu.vector_store %arg21[%c0_400, %c0_401], %680 {strides = array<i32>} : memref<2x32xf32, #tpu.memory_space<vmem>>, vector<2x32xf32>,
    %c0_402 = arith.constant 0 : index
    %c0_403 = arith.constant 0 : index
    %698 = vector.load %arg22[%c0_402, %c0_403] : memref<2x32xf32, #tpu.memory_space<vmem>>, vector<2x32xf32>
    tpu.vector_store %arg22[%c0_402, %c0_403], %677 {strides = array<i32>} : memref<2x32xf32, #tpu.memory_space<vmem>>, vector<2x32xf32>,
    %c0_404 = arith.constant 0 : index
    %c0_405 = arith.constant 0 : index
    %699 = vector.load %arg23[%c0_404, %c0_405] : memref<2x32xf32, #tpu.memory_space<vmem>>, vector<2x32xf32>
    tpu.vector_store %arg23[%c0_404, %c0_405], %696 {strides = array<i32>} : memref<2x32xf32, #tpu.memory_space<vmem>>, vector<2x32xf32>,
    %c0_406 = arith.constant 0 : index
    %c0_407 = arith.constant 0 : index
    %700 = vector.load %arg24[%c0_406, %c0_407] : memref<2x32xf32, #tpu.memory_space<vmem>>, vector<2x32xf32>
    tpu.vector_store %arg24[%c0_406, %c0_407], %693 {strides = array<i32>} : memref<2x32xf32, #tpu.memory_space<vmem>>, vector<2x32xf32>,
    %c2_i32_408 = arith.constant 2 : i32
    %701 = arith.muli %c3_i32_382, %c2_i32_408 : i32
    %702 = arith.index_cast %701 : i32 to index
    %c0_409 = arith.constant 0 : index
    %703 = vector.load %arg19[%702, %c0_409] : memref<16x32xf32, #tpu.memory_space<vmem>>, vector<2x32xf32>
    tpu.vector_store %arg19[%702, %c0_409], %680 {strides = array<i32>} : memref<16x32xf32, #tpu.memory_space<vmem>>, vector<2x32xf32>,
    %c2_i32_410 = arith.constant 2 : i32
    %704 = arith.muli %652, %c2_i32_410 : i32
    %705 = arith.index_cast %704 : i32 to index
    %c0_411 = arith.constant 0 : index
    %706 = vector.load %arg20[%705, %c0_411] : memref<16x32xf32, #tpu.memory_space<vmem>>, vector<2x32xf32>
    tpu.vector_store %arg20[%705, %c0_411], %696 {strides = array<i32>} : memref<16x32xf32, #tpu.memory_space<vmem>>, vector<2x32xf32>,
    %c4_i32_412 = arith.constant 4 : i32
    %c7_i32_413 = arith.constant 7 : i32
    %707 = arith.subi %c7_i32_413, %c4_i32_412 : i32
    %c2_i32_414 = arith.constant 2 : i32
    %708 = arith.muli %c4_i32_412, %c2_i32_414 : i32
    %709 = arith.index_cast %708 : i32 to index
    %c0_415 = arith.constant 0 : index
    %710 = vector.load %arg17[%709, %c0_415] : memref<16x128xf32, #tpu.memory_space<vmem>>, vector<2x128xf32>
    %c0_416 = arith.constant 0 : index
    %c0_417 = arith.constant 0 : index
    %711 = vector.load %arg21[%c0_416, %c0_417] : memref<2x32xf32, #tpu.memory_space<vmem>>, vector<2x32xf32>
    %cst_418 = arith.constant dense<0.000000e+00> : vector<2x128xf32>
    %712 = tpu.matmul %711, %485, %cst_418 {dimension_numbers = #tpu.dot_dimension_numbers<[1], [0], [0], [1], [0, 0, 1, 1], [], []>} : vector<2x32xf32>, vector<32x128xf32>, vector<2x128xf32> -> vector<2x128xf32>
    %713 = arith.addf %710, %712 : vector<2x128xf32>
    %c2_i32_419 = arith.constant 2 : i32
    %714 = arith.muli %707, %c2_i32_419 : i32
    %715 = arith.index_cast %714 : i32 to index
    %c0_420 = arith.constant 0 : index
    %716 = vector.load %arg18[%715, %c0_420] : memref<16x128xf32, #tpu.memory_space<vmem>>, vector<2x128xf32>
    %c0_421 = arith.constant 0 : index
    %c0_422 = arith.constant 0 : index
    %717 = vector.load %arg23[%c0_421, %c0_422] : memref<2x32xf32, #tpu.memory_space<vmem>>, vector<2x32xf32>
    %cst_423 = arith.constant dense<0.000000e+00> : vector<2x128xf32>
    %718 = tpu.matmul %717, %486, %cst_423 {dimension_numbers = #tpu.dot_dimension_numbers<[1], [0], [0], [1], [0, 0, 1, 1], [], []>} : vector<2x32xf32>, vector<32x128xf32>, vector<2x128xf32> -> vector<2x128xf32>
    %719 = arith.addf %716, %718 : vector<2x128xf32>
    %c0_424 = arith.constant 0 : index
    %c0_425 = arith.constant 0 : index
    %720 = vector.load %arg22[%c0_424, %c0_425] : memref<2x32xf32, #tpu.memory_space<vmem>>, vector<2x32xf32>
    %721 = arith.negf %713 : vector<2x128xf32>
    %722 = math.exp %721 : vector<2x128xf32>
    %cst_426 = arith.constant 1.000000e+00 : f32
    %723 = vector.broadcast %cst_426 : f32 to vector<2x128xf32>
    %724 = arith.addf %723, %722 : vector<2x128xf32>
    %725 = arith.divf %723, %724 : vector<2x128xf32>
    %726 = math.tanh %713 : vector<2x128xf32>
    %727 = vector.extract_strided_slice %725 {offsets = [0, 32], sizes = [2, 32], strides = [1, 1]} : vector<2x128xf32> to vector<2x32xf32>
    %728 = arith.mulf %727, %720 : vector<2x32xf32>
    %729 = vector.extract_strided_slice %725 {offsets = [0, 0], sizes = [2, 32], strides = [1, 1]} : vector<2x128xf32> to vector<2x32xf32>
    %730 = vector.extract_strided_slice %726 {offsets = [0, 64], sizes = [2, 32], strides = [1, 1]} : vector<2x128xf32> to vector<2x32xf32>
    %731 = arith.mulf %729, %730 : vector<2x32xf32>
    %732 = arith.addf %728, %731 : vector<2x32xf32>
    %733 = vector.extract_strided_slice %725 {offsets = [0, 96], sizes = [2, 32], strides = [1, 1]} : vector<2x128xf32> to vector<2x32xf32>
    %734 = math.tanh %732 : vector<2x32xf32>
    %735 = arith.mulf %733, %734 : vector<2x32xf32>
    %c0_427 = arith.constant 0 : index
    %c0_428 = arith.constant 0 : index
    %736 = vector.load %arg24[%c0_427, %c0_428] : memref<2x32xf32, #tpu.memory_space<vmem>>, vector<2x32xf32>
    %737 = arith.negf %719 : vector<2x128xf32>
    %738 = math.exp %737 : vector<2x128xf32>
    %cst_429 = arith.constant 1.000000e+00 : f32
    %739 = vector.broadcast %cst_429 : f32 to vector<2x128xf32>
    %740 = arith.addf %739, %738 : vector<2x128xf32>
    %741 = arith.divf %739, %740 : vector<2x128xf32>
    %742 = math.tanh %719 : vector<2x128xf32>
    %743 = vector.extract_strided_slice %741 {offsets = [0, 32], sizes = [2, 32], strides = [1, 1]} : vector<2x128xf32> to vector<2x32xf32>
    %744 = arith.mulf %743, %736 : vector<2x32xf32>
    %745 = vector.extract_strided_slice %741 {offsets = [0, 0], sizes = [2, 32], strides = [1, 1]} : vector<2x128xf32> to vector<2x32xf32>
    %746 = vector.extract_strided_slice %742 {offsets = [0, 64], sizes = [2, 32], strides = [1, 1]} : vector<2x128xf32> to vector<2x32xf32>
    %747 = arith.mulf %745, %746 : vector<2x32xf32>
    %748 = arith.addf %744, %747 : vector<2x32xf32>
    %749 = vector.extract_strided_slice %741 {offsets = [0, 96], sizes = [2, 32], strides = [1, 1]} : vector<2x128xf32> to vector<2x32xf32>
    %750 = math.tanh %748 : vector<2x32xf32>
    %751 = arith.mulf %749, %750 : vector<2x32xf32>
    %c0_430 = arith.constant 0 : index
    %c0_431 = arith.constant 0 : index
    %752 = vector.load %arg21[%c0_430, %c0_431] : memref<2x32xf32, #tpu.memory_space<vmem>>, vector<2x32xf32>
    tpu.vector_store %arg21[%c0_430, %c0_431], %735 {strides = array<i32>} : memref<2x32xf32, #tpu.memory_space<vmem>>, vector<2x32xf32>,
    %c0_432 = arith.constant 0 : index
    %c0_433 = arith.constant 0 : index
    %753 = vector.load %arg22[%c0_432, %c0_433] : memref<2x32xf32, #tpu.memory_space<vmem>>, vector<2x32xf32>
    tpu.vector_store %arg22[%c0_432, %c0_433], %732 {strides = array<i32>} : memref<2x32xf32, #tpu.memory_space<vmem>>, vector<2x32xf32>,
    %c0_434 = arith.constant 0 : index
    %c0_435 = arith.constant 0 : index
    %754 = vector.load %arg23[%c0_434, %c0_435] : memref<2x32xf32, #tpu.memory_space<vmem>>, vector<2x32xf32>
    tpu.vector_store %arg23[%c0_434, %c0_435], %751 {strides = array<i32>} : memref<2x32xf32, #tpu.memory_space<vmem>>, vector<2x32xf32>,
    %c0_436 = arith.constant 0 : index
    %c0_437 = arith.constant 0 : index
    %755 = vector.load %arg24[%c0_436, %c0_437] : memref<2x32xf32, #tpu.memory_space<vmem>>, vector<2x32xf32>
    tpu.vector_store %arg24[%c0_436, %c0_437], %748 {strides = array<i32>} : memref<2x32xf32, #tpu.memory_space<vmem>>, vector<2x32xf32>,
    %c2_i32_438 = arith.constant 2 : i32
    %756 = arith.muli %c4_i32_412, %c2_i32_438 : i32
    %757 = arith.index_cast %756 : i32 to index
    %c0_439 = arith.constant 0 : index
    %758 = vector.load %arg19[%757, %c0_439] : memref<16x32xf32, #tpu.memory_space<vmem>>, vector<2x32xf32>
    tpu.vector_store %arg19[%757, %c0_439], %735 {strides = array<i32>} : memref<16x32xf32, #tpu.memory_space<vmem>>, vector<2x32xf32>,
    %c2_i32_440 = arith.constant 2 : i32
    %759 = arith.muli %707, %c2_i32_440 : i32
    %760 = arith.index_cast %759 : i32 to index
    %c0_441 = arith.constant 0 : index
    %761 = vector.load %arg20[%760, %c0_441] : memref<16x32xf32, #tpu.memory_space<vmem>>, vector<2x32xf32>
    tpu.vector_store %arg20[%760, %c0_441], %751 {strides = array<i32>} : memref<16x32xf32, #tpu.memory_space<vmem>>, vector<2x32xf32>,
    %c5_i32_442 = arith.constant 5 : i32
    %c7_i32_443 = arith.constant 7 : i32
    %762 = arith.subi %c7_i32_443, %c5_i32_442 : i32
    %c2_i32_444 = arith.constant 2 : i32
    %763 = arith.muli %c5_i32_442, %c2_i32_444 : i32
    %764 = arith.index_cast %763 : i32 to index
    %c0_445 = arith.constant 0 : index
    %765 = vector.load %arg17[%764, %c0_445] : memref<16x128xf32, #tpu.memory_space<vmem>>, vector<2x128xf32>
    %c0_446 = arith.constant 0 : index
    %c0_447 = arith.constant 0 : index
    %766 = vector.load %arg21[%c0_446, %c0_447] : memref<2x32xf32, #tpu.memory_space<vmem>>, vector<2x32xf32>
    %cst_448 = arith.constant dense<0.000000e+00> : vector<2x128xf32>
    %767 = tpu.matmul %766, %485, %cst_448 {dimension_numbers = #tpu.dot_dimension_numbers<[1], [0], [0], [1], [0, 0, 1, 1], [], []>} : vector<2x32xf32>, vector<32x128xf32>, vector<2x128xf32> -> vector<2x128xf32>
    %768 = arith.addf %765, %767 : vector<2x128xf32>
    %c2_i32_449 = arith.constant 2 : i32
    %769 = arith.muli %762, %c2_i32_449 : i32
    %770 = arith.index_cast %769 : i32 to index
    %c0_450 = arith.constant 0 : index
    %771 = vector.load %arg18[%770, %c0_450] : memref<16x128xf32, #tpu.memory_space<vmem>>, vector<2x128xf32>
    %c0_451 = arith.constant 0 : index
    %c0_452 = arith.constant 0 : index
    %772 = vector.load %arg23[%c0_451, %c0_452] : memref<2x32xf32, #tpu.memory_space<vmem>>, vector<2x32xf32>
    %cst_453 = arith.constant dense<0.000000e+00> : vector<2x128xf32>
    %773 = tpu.matmul %772, %486, %cst_453 {dimension_numbers = #tpu.dot_dimension_numbers<[1], [0], [0], [1], [0, 0, 1, 1], [], []>} : vector<2x32xf32>, vector<32x128xf32>, vector<2x128xf32> -> vector<2x128xf32>
    %774 = arith.addf %771, %773 : vector<2x128xf32>
    %c0_454 = arith.constant 0 : index
    %c0_455 = arith.constant 0 : index
    %775 = vector.load %arg22[%c0_454, %c0_455] : memref<2x32xf32, #tpu.memory_space<vmem>>, vector<2x32xf32>
    %776 = arith.negf %768 : vector<2x128xf32>
    %777 = math.exp %776 : vector<2x128xf32>
    %cst_456 = arith.constant 1.000000e+00 : f32
    %778 = vector.broadcast %cst_456 : f32 to vector<2x128xf32>
    %779 = arith.addf %778, %777 : vector<2x128xf32>
    %780 = arith.divf %778, %779 : vector<2x128xf32>
    %781 = math.tanh %768 : vector<2x128xf32>
    %782 = vector.extract_strided_slice %780 {offsets = [0, 32], sizes = [2, 32], strides = [1, 1]} : vector<2x128xf32> to vector<2x32xf32>
    %783 = arith.mulf %782, %775 : vector<2x32xf32>
    %784 = vector.extract_strided_slice %780 {offsets = [0, 0], sizes = [2, 32], strides = [1, 1]} : vector<2x128xf32> to vector<2x32xf32>
    %785 = vector.extract_strided_slice %781 {offsets = [0, 64], sizes = [2, 32], strides = [1, 1]} : vector<2x128xf32> to vector<2x32xf32>
    %786 = arith.mulf %784, %785 : vector<2x32xf32>
    %787 = arith.addf %783, %786 : vector<2x32xf32>
    %788 = vector.extract_strided_slice %780 {offsets = [0, 96], sizes = [2, 32], strides = [1, 1]} : vector<2x128xf32> to vector<2x32xf32>
    %789 = math.tanh %787 : vector<2x32xf32>
    %790 = arith.mulf %788, %789 : vector<2x32xf32>
    %c0_457 = arith.constant 0 : index
    %c0_458 = arith.constant 0 : index
    %791 = vector.load %arg24[%c0_457, %c0_458] : memref<2x32xf32, #tpu.memory_space<vmem>>, vector<2x32xf32>
    %792 = arith.negf %774 : vector<2x128xf32>
    %793 = math.exp %792 : vector<2x128xf32>
    %cst_459 = arith.constant 1.000000e+00 : f32
    %794 = vector.broadcast %cst_459 : f32 to vector<2x128xf32>
    %795 = arith.addf %794, %793 : vector<2x128xf32>
    %796 = arith.divf %794, %795 : vector<2x128xf32>
    %797 = math.tanh %774 : vector<2x128xf32>
    %798 = vector.extract_strided_slice %796 {offsets = [0, 32], sizes = [2, 32], strides = [1, 1]} : vector<2x128xf32> to vector<2x32xf32>
    %799 = arith.mulf %798, %791 : vector<2x32xf32>
    %800 = vector.extract_strided_slice %796 {offsets = [0, 0], sizes = [2, 32], strides = [1, 1]} : vector<2x128xf32> to vector<2x32xf32>
    %801 = vector.extract_strided_slice %797 {offsets = [0, 64], sizes = [2, 32], strides = [1, 1]} : vector<2x128xf32> to vector<2x32xf32>
    %802 = arith.mulf %800, %801 : vector<2x32xf32>
    %803 = arith.addf %799, %802 : vector<2x32xf32>
    %804 = vector.extract_strided_slice %796 {offsets = [0, 96], sizes = [2, 32], strides = [1, 1]} : vector<2x128xf32> to vector<2x32xf32>
    %805 = math.tanh %803 : vector<2x32xf32>
    %806 = arith.mulf %804, %805 : vector<2x32xf32>
    %c0_460 = arith.constant 0 : index
    %c0_461 = arith.constant 0 : index
    %807 = vector.load %arg21[%c0_460, %c0_461] : memref<2x32xf32, #tpu.memory_space<vmem>>, vector<2x32xf32>
    tpu.vector_store %arg21[%c0_460, %c0_461], %790 {strides = array<i32>} : memref<2x32xf32, #tpu.memory_space<vmem>>, vector<2x32xf32>,
    %c0_462 = arith.constant 0 : index
    %c0_463 = arith.constant 0 : index
    %808 = vector.load %arg22[%c0_462, %c0_463] : memref<2x32xf32, #tpu.memory_space<vmem>>, vector<2x32xf32>
    tpu.vector_store %arg22[%c0_462, %c0_463], %787 {strides = array<i32>} : memref<2x32xf32, #tpu.memory_space<vmem>>, vector<2x32xf32>,
    %c0_464 = arith.constant 0 : index
    %c0_465 = arith.constant 0 : index
    %809 = vector.load %arg23[%c0_464, %c0_465] : memref<2x32xf32, #tpu.memory_space<vmem>>, vector<2x32xf32>
    tpu.vector_store %arg23[%c0_464, %c0_465], %806 {strides = array<i32>} : memref<2x32xf32, #tpu.memory_space<vmem>>, vector<2x32xf32>,
    %c0_466 = arith.constant 0 : index
    %c0_467 = arith.constant 0 : index
    %810 = vector.load %arg24[%c0_466, %c0_467] : memref<2x32xf32, #tpu.memory_space<vmem>>, vector<2x32xf32>
    tpu.vector_store %arg24[%c0_466, %c0_467], %803 {strides = array<i32>} : memref<2x32xf32, #tpu.memory_space<vmem>>, vector<2x32xf32>,
    %c2_i32_468 = arith.constant 2 : i32
    %811 = arith.muli %c5_i32_442, %c2_i32_468 : i32
    %812 = arith.index_cast %811 : i32 to index
    %c0_469 = arith.constant 0 : index
    %813 = vector.load %arg19[%812, %c0_469] : memref<16x32xf32, #tpu.memory_space<vmem>>, vector<2x32xf32>
    tpu.vector_store %arg19[%812, %c0_469], %790 {strides = array<i32>} : memref<16x32xf32, #tpu.memory_space<vmem>>, vector<2x32xf32>,
    %c2_i32_470 = arith.constant 2 : i32
    %814 = arith.muli %762, %c2_i32_470 : i32
    %815 = arith.index_cast %814 : i32 to index
    %c0_471 = arith.constant 0 : index
    %816 = vector.load %arg20[%815, %c0_471] : memref<16x32xf32, #tpu.memory_space<vmem>>, vector<2x32xf32>
    tpu.vector_store %arg20[%815, %c0_471], %806 {strides = array<i32>} : memref<16x32xf32, #tpu.memory_space<vmem>>, vector<2x32xf32>,
    %c6_i32_472 = arith.constant 6 : i32
    %c7_i32_473 = arith.constant 7 : i32
    %817 = arith.subi %c7_i32_473, %c6_i32_472 : i32
    %c2_i32_474 = arith.constant 2 : i32
    %818 = arith.muli %c6_i32_472, %c2_i32_474 : i32
    %819 = arith.index_cast %818 : i32 to index
    %c0_475 = arith.constant 0 : index
    %820 = vector.load %arg17[%819, %c0_475] : memref<16x128xf32, #tpu.memory_space<vmem>>, vector<2x128xf32>
    %c0_476 = arith.constant 0 : index
    %c0_477 = arith.constant 0 : index
    %821 = vector.load %arg21[%c0_476, %c0_477] : memref<2x32xf32, #tpu.memory_space<vmem>>, vector<2x32xf32>
    %cst_478 = arith.constant dense<0.000000e+00> : vector<2x128xf32>
    %822 = tpu.matmul %821, %485, %cst_478 {dimension_numbers = #tpu.dot_dimension_numbers<[1], [0], [0], [1], [0, 0, 1, 1], [], []>} : vector<2x32xf32>, vector<32x128xf32>, vector<2x128xf32> -> vector<2x128xf32>
    %823 = arith.addf %820, %822 : vector<2x128xf32>
    %c2_i32_479 = arith.constant 2 : i32
    %824 = arith.muli %817, %c2_i32_479 : i32
    %825 = arith.index_cast %824 : i32 to index
    %c0_480 = arith.constant 0 : index
    %826 = vector.load %arg18[%825, %c0_480] : memref<16x128xf32, #tpu.memory_space<vmem>>, vector<2x128xf32>
    %c0_481 = arith.constant 0 : index
    %c0_482 = arith.constant 0 : index
    %827 = vector.load %arg23[%c0_481, %c0_482] : memref<2x32xf32, #tpu.memory_space<vmem>>, vector<2x32xf32>
    %cst_483 = arith.constant dense<0.000000e+00> : vector<2x128xf32>
    %828 = tpu.matmul %827, %486, %cst_483 {dimension_numbers = #tpu.dot_dimension_numbers<[1], [0], [0], [1], [0, 0, 1, 1], [], []>} : vector<2x32xf32>, vector<32x128xf32>, vector<2x128xf32> -> vector<2x128xf32>
    %829 = arith.addf %826, %828 : vector<2x128xf32>
    %c0_484 = arith.constant 0 : index
    %c0_485 = arith.constant 0 : index
    %830 = vector.load %arg22[%c0_484, %c0_485] : memref<2x32xf32, #tpu.memory_space<vmem>>, vector<2x32xf32>
    %831 = arith.negf %823 : vector<2x128xf32>
    %832 = math.exp %831 : vector<2x128xf32>
    %cst_486 = arith.constant 1.000000e+00 : f32
    %833 = vector.broadcast %cst_486 : f32 to vector<2x128xf32>
    %834 = arith.addf %833, %832 : vector<2x128xf32>
    %835 = arith.divf %833, %834 : vector<2x128xf32>
    %836 = math.tanh %823 : vector<2x128xf32>
    %837 = vector.extract_strided_slice %835 {offsets = [0, 32], sizes = [2, 32], strides = [1, 1]} : vector<2x128xf32> to vector<2x32xf32>
    %838 = arith.mulf %837, %830 : vector<2x32xf32>
    %839 = vector.extract_strided_slice %835 {offsets = [0, 0], sizes = [2, 32], strides = [1, 1]} : vector<2x128xf32> to vector<2x32xf32>
    %840 = vector.extract_strided_slice %836 {offsets = [0, 64], sizes = [2, 32], strides = [1, 1]} : vector<2x128xf32> to vector<2x32xf32>
    %841 = arith.mulf %839, %840 : vector<2x32xf32>
    %842 = arith.addf %838, %841 : vector<2x32xf32>
    %843 = vector.extract_strided_slice %835 {offsets = [0, 96], sizes = [2, 32], strides = [1, 1]} : vector<2x128xf32> to vector<2x32xf32>
    %844 = math.tanh %842 : vector<2x32xf32>
    %845 = arith.mulf %843, %844 : vector<2x32xf32>
    %c0_487 = arith.constant 0 : index
    %c0_488 = arith.constant 0 : index
    %846 = vector.load %arg24[%c0_487, %c0_488] : memref<2x32xf32, #tpu.memory_space<vmem>>, vector<2x32xf32>
    %847 = arith.negf %829 : vector<2x128xf32>
    %848 = math.exp %847 : vector<2x128xf32>
    %cst_489 = arith.constant 1.000000e+00 : f32
    %849 = vector.broadcast %cst_489 : f32 to vector<2x128xf32>
    %850 = arith.addf %849, %848 : vector<2x128xf32>
    %851 = arith.divf %849, %850 : vector<2x128xf32>
    %852 = math.tanh %829 : vector<2x128xf32>
    %853 = vector.extract_strided_slice %851 {offsets = [0, 32], sizes = [2, 32], strides = [1, 1]} : vector<2x128xf32> to vector<2x32xf32>
    %854 = arith.mulf %853, %846 : vector<2x32xf32>
    %855 = vector.extract_strided_slice %851 {offsets = [0, 0], sizes = [2, 32], strides = [1, 1]} : vector<2x128xf32> to vector<2x32xf32>
    %856 = vector.extract_strided_slice %852 {offsets = [0, 64], sizes = [2, 32], strides = [1, 1]} : vector<2x128xf32> to vector<2x32xf32>
    %857 = arith.mulf %855, %856 : vector<2x32xf32>
    %858 = arith.addf %854, %857 : vector<2x32xf32>
    %859 = vector.extract_strided_slice %851 {offsets = [0, 96], sizes = [2, 32], strides = [1, 1]} : vector<2x128xf32> to vector<2x32xf32>
    %860 = math.tanh %858 : vector<2x32xf32>
    %861 = arith.mulf %859, %860 : vector<2x32xf32>
    %c0_490 = arith.constant 0 : index
    %c0_491 = arith.constant 0 : index
    %862 = vector.load %arg21[%c0_490, %c0_491] : memref<2x32xf32, #tpu.memory_space<vmem>>, vector<2x32xf32>
    tpu.vector_store %arg21[%c0_490, %c0_491], %845 {strides = array<i32>} : memref<2x32xf32, #tpu.memory_space<vmem>>, vector<2x32xf32>,
    %c0_492 = arith.constant 0 : index
    %c0_493 = arith.constant 0 : index
    %863 = vector.load %arg22[%c0_492, %c0_493] : memref<2x32xf32, #tpu.memory_space<vmem>>, vector<2x32xf32>
    tpu.vector_store %arg22[%c0_492, %c0_493], %842 {strides = array<i32>} : memref<2x32xf32, #tpu.memory_space<vmem>>, vector<2x32xf32>,
    %c0_494 = arith.constant 0 : index
    %c0_495 = arith.constant 0 : index
    %864 = vector.load %arg23[%c0_494, %c0_495] : memref<2x32xf32, #tpu.memory_space<vmem>>, vector<2x32xf32>
    tpu.vector_store %arg23[%c0_494, %c0_495], %861 {strides = array<i32>} : memref<2x32xf32, #tpu.memory_space<vmem>>, vector<2x32xf32>,
    %c0_496 = arith.constant 0 : index
    %c0_497 = arith.constant 0 : index
    %865 = vector.load %arg24[%c0_496, %c0_497] : memref<2x32xf32, #tpu.memory_space<vmem>>, vector<2x32xf32>
    tpu.vector_store %arg24[%c0_496, %c0_497], %858 {strides = array<i32>} : memref<2x32xf32, #tpu.memory_space<vmem>>, vector<2x32xf32>,
    %c2_i32_498 = arith.constant 2 : i32
    %866 = arith.muli %c6_i32_472, %c2_i32_498 : i32
    %867 = arith.index_cast %866 : i32 to index
    %c0_499 = arith.constant 0 : index
    %868 = vector.load %arg19[%867, %c0_499] : memref<16x32xf32, #tpu.memory_space<vmem>>, vector<2x32xf32>
    tpu.vector_store %arg19[%867, %c0_499], %845 {strides = array<i32>} : memref<16x32xf32, #tpu.memory_space<vmem>>, vector<2x32xf32>,
    %c2_i32_500 = arith.constant 2 : i32
    %869 = arith.muli %817, %c2_i32_500 : i32
    %870 = arith.index_cast %869 : i32 to index
    %c0_501 = arith.constant 0 : index
    %871 = vector.load %arg20[%870, %c0_501] : memref<16x32xf32, #tpu.memory_space<vmem>>, vector<2x32xf32>
    tpu.vector_store %arg20[%870, %c0_501], %861 {strides = array<i32>} : memref<16x32xf32, #tpu.memory_space<vmem>>, vector<2x32xf32>,
    %c7_i32_502 = arith.constant 7 : i32
    %c7_i32_503 = arith.constant 7 : i32
    %872 = arith.subi %c7_i32_503, %c7_i32_502 : i32
    %c2_i32_504 = arith.constant 2 : i32
    %873 = arith.muli %c7_i32_502, %c2_i32_504 : i32
    %874 = arith.index_cast %873 : i32 to index
    %c0_505 = arith.constant 0 : index
    %875 = vector.load %arg17[%874, %c0_505] : memref<16x128xf32, #tpu.memory_space<vmem>>, vector<2x128xf32>
    %c0_506 = arith.constant 0 : index
    %c0_507 = arith.constant 0 : index
    %876 = vector.load %arg21[%c0_506, %c0_507] : memref<2x32xf32, #tpu.memory_space<vmem>>, vector<2x32xf32>
    %cst_508 = arith.constant dense<0.000000e+00> : vector<2x128xf32>
    %877 = tpu.matmul %876, %485, %cst_508 {dimension_numbers = #tpu.dot_dimension_numbers<[1], [0], [0], [1], [0, 0, 1, 1], [], []>} : vector<2x32xf32>, vector<32x128xf32>, vector<2x128xf32> -> vector<2x128xf32>
    %878 = arith.addf %875, %877 : vector<2x128xf32>
    %c2_i32_509 = arith.constant 2 : i32
    %879 = arith.muli %872, %c2_i32_509 : i32
    %880 = arith.index_cast %879 : i32 to index
    %c0_510 = arith.constant 0 : index
    %881 = vector.load %arg18[%880, %c0_510] : memref<16x128xf32, #tpu.memory_space<vmem>>, vector<2x128xf32>
    %c0_511 = arith.constant 0 : index
    %c0_512 = arith.constant 0 : index
    %882 = vector.load %arg23[%c0_511, %c0_512] : memref<2x32xf32, #tpu.memory_space<vmem>>, vector<2x32xf32>
    %cst_513 = arith.constant dense<0.000000e+00> : vector<2x128xf32>
    %883 = tpu.matmul %882, %486, %cst_513 {dimension_numbers = #tpu.dot_dimension_numbers<[1], [0], [0], [1], [0, 0, 1, 1], [], []>} : vector<2x32xf32>, vector<32x128xf32>, vector<2x128xf32> -> vector<2x128xf32>
    %884 = arith.addf %881, %883 : vector<2x128xf32>
    %c0_514 = arith.constant 0 : index
    %c0_515 = arith.constant 0 : index
    %885 = vector.load %arg22[%c0_514, %c0_515] : memref<2x32xf32, #tpu.memory_space<vmem>>, vector<2x32xf32>
    %886 = arith.negf %878 : vector<2x128xf32>
    %887 = math.exp %886 : vector<2x128xf32>
    %cst_516 = arith.constant 1.000000e+00 : f32
    %888 = vector.broadcast %cst_516 : f32 to vector<2x128xf32>
    %889 = arith.addf %888, %887 : vector<2x128xf32>
    %890 = arith.divf %888, %889 : vector<2x128xf32>
    %891 = math.tanh %878 : vector<2x128xf32>
    %892 = vector.extract_strided_slice %890 {offsets = [0, 32], sizes = [2, 32], strides = [1, 1]} : vector<2x128xf32> to vector<2x32xf32>
    %893 = arith.mulf %892, %885 : vector<2x32xf32>
    %894 = vector.extract_strided_slice %890 {offsets = [0, 0], sizes = [2, 32], strides = [1, 1]} : vector<2x128xf32> to vector<2x32xf32>
    %895 = vector.extract_strided_slice %891 {offsets = [0, 64], sizes = [2, 32], strides = [1, 1]} : vector<2x128xf32> to vector<2x32xf32>
    %896 = arith.mulf %894, %895 : vector<2x32xf32>
    %897 = arith.addf %893, %896 : vector<2x32xf32>
    %898 = vector.extract_strided_slice %890 {offsets = [0, 96], sizes = [2, 32], strides = [1, 1]} : vector<2x128xf32> to vector<2x32xf32>
    %899 = math.tanh %897 : vector<2x32xf32>
    %900 = arith.mulf %898, %899 : vector<2x32xf32>
    %c0_517 = arith.constant 0 : index
    %c0_518 = arith.constant 0 : index
    %901 = vector.load %arg24[%c0_517, %c0_518] : memref<2x32xf32, #tpu.memory_space<vmem>>, vector<2x32xf32>
    %902 = arith.negf %884 : vector<2x128xf32>
    %903 = math.exp %902 : vector<2x128xf32>
    %cst_519 = arith.constant 1.000000e+00 : f32
    %904 = vector.broadcast %cst_519 : f32 to vector<2x128xf32>
    %905 = arith.addf %904, %903 : vector<2x128xf32>
    %906 = arith.divf %904, %905 : vector<2x128xf32>
    %907 = math.tanh %884 : vector<2x128xf32>
    %908 = vector.extract_strided_slice %906 {offsets = [0, 32], sizes = [2, 32], strides = [1, 1]} : vector<2x128xf32> to vector<2x32xf32>
    %909 = arith.mulf %908, %901 : vector<2x32xf32>
    %910 = vector.extract_strided_slice %906 {offsets = [0, 0], sizes = [2, 32], strides = [1, 1]} : vector<2x128xf32> to vector<2x32xf32>
    %911 = vector.extract_strided_slice %907 {offsets = [0, 64], sizes = [2, 32], strides = [1, 1]} : vector<2x128xf32> to vector<2x32xf32>
    %912 = arith.mulf %910, %911 : vector<2x32xf32>
    %913 = arith.addf %909, %912 : vector<2x32xf32>
    %914 = vector.extract_strided_slice %906 {offsets = [0, 96], sizes = [2, 32], strides = [1, 1]} : vector<2x128xf32> to vector<2x32xf32>
    %915 = math.tanh %913 : vector<2x32xf32>
    %916 = arith.mulf %914, %915 : vector<2x32xf32>
    %c0_520 = arith.constant 0 : index
    %c0_521 = arith.constant 0 : index
    %917 = vector.load %arg21[%c0_520, %c0_521] : memref<2x32xf32, #tpu.memory_space<vmem>>, vector<2x32xf32>
    tpu.vector_store %arg21[%c0_520, %c0_521], %900 {strides = array<i32>} : memref<2x32xf32, #tpu.memory_space<vmem>>, vector<2x32xf32>,
    %c0_522 = arith.constant 0 : index
    %c0_523 = arith.constant 0 : index
    %918 = vector.load %arg22[%c0_522, %c0_523] : memref<2x32xf32, #tpu.memory_space<vmem>>, vector<2x32xf32>
    tpu.vector_store %arg22[%c0_522, %c0_523], %897 {strides = array<i32>} : memref<2x32xf32, #tpu.memory_space<vmem>>, vector<2x32xf32>,
    %c0_524 = arith.constant 0 : index
    %c0_525 = arith.constant 0 : index
    %919 = vector.load %arg23[%c0_524, %c0_525] : memref<2x32xf32, #tpu.memory_space<vmem>>, vector<2x32xf32>
    tpu.vector_store %arg23[%c0_524, %c0_525], %916 {strides = array<i32>} : memref<2x32xf32, #tpu.memory_space<vmem>>, vector<2x32xf32>,
    %c0_526 = arith.constant 0 : index
    %c0_527 = arith.constant 0 : index
    %920 = vector.load %arg24[%c0_526, %c0_527] : memref<2x32xf32, #tpu.memory_space<vmem>>, vector<2x32xf32>
    tpu.vector_store %arg24[%c0_526, %c0_527], %913 {strides = array<i32>} : memref<2x32xf32, #tpu.memory_space<vmem>>, vector<2x32xf32>,
    %c2_i32_528 = arith.constant 2 : i32
    %921 = arith.muli %c7_i32_502, %c2_i32_528 : i32
    %922 = arith.index_cast %921 : i32 to index
    %c0_529 = arith.constant 0 : index
    %923 = vector.load %arg19[%922, %c0_529] : memref<16x32xf32, #tpu.memory_space<vmem>>, vector<2x32xf32>
    tpu.vector_store %arg19[%922, %c0_529], %900 {strides = array<i32>} : memref<16x32xf32, #tpu.memory_space<vmem>>, vector<2x32xf32>,
    %c2_i32_530 = arith.constant 2 : i32
    %924 = arith.muli %872, %c2_i32_530 : i32
    %925 = arith.index_cast %924 : i32 to index
    %c0_531 = arith.constant 0 : index
    %926 = vector.load %arg20[%925, %c0_531] : memref<16x32xf32, #tpu.memory_space<vmem>>, vector<2x32xf32>
    tpu.vector_store %arg20[%925, %c0_531], %916 {strides = array<i32>} : memref<16x32xf32, #tpu.memory_space<vmem>>, vector<2x32xf32>,
    %c8_i32_532 = arith.constant 8 : i32
    %c0_533 = arith.constant 0 : index
    %c0_534 = arith.constant 0 : index
    %927 = vector.load %arg19[%c0_533, %c0_534] : memref<16x32xf32, #tpu.memory_space<vmem>>, vector<16x32xf32>
    %c0_535 = arith.constant 0 : index
    %c0_536 = arith.constant 0 : index
    %928 = vector.load %arg10[%c0_535, %c0_536] : memref<64x256xf32, #tpu.memory_space<vmem>>, vector<32x256xf32>
    %cst_537 = arith.constant dense<0.000000e+00> : vector<16x256xf32>
    %929 = tpu.matmul %927, %928, %cst_537 {dimension_numbers = #tpu.dot_dimension_numbers<[1], [0], [0], [1], [0, 0, 1, 1], [], []>} : vector<16x32xf32>, vector<32x256xf32>, vector<16x256xf32> -> vector<16x256xf32>
    %c0_538 = arith.constant 0 : index
    %c0_539 = arith.constant 0 : index
    %930 = vector.load %arg20[%c0_538, %c0_539] : memref<16x32xf32, #tpu.memory_space<vmem>>, vector<16x32xf32>
    %c32_540 = arith.constant 32 : index
    %c0_541 = arith.constant 0 : index
    %931 = vector.load %arg10[%c32_540, %c0_541] : memref<64x256xf32, #tpu.memory_space<vmem>>, vector<32x256xf32>
    %cst_542 = arith.constant dense<0.000000e+00> : vector<16x256xf32>
    %932 = tpu.matmul %930, %931, %cst_542 {dimension_numbers = #tpu.dot_dimension_numbers<[1], [0], [0], [1], [0, 0, 1, 1], [], []>} : vector<16x32xf32>, vector<32x256xf32>, vector<16x256xf32> -> vector<16x256xf32>
    %933 = arith.addf %929, %932 : vector<16x256xf32>
    %c0_543 = arith.constant 0 : index
    %c0_544 = arith.constant 0 : index
    %934 = vector.load %arg13[%c0_543, %c0_544] : memref<1x256xf32, #tpu.memory_space<vmem>>, vector<1x256xf32>
    %935 = vector.broadcast %934 : vector<1x256xf32> to vector<16x256xf32>
    %936 = arith.addf %933, %935 : vector<16x256xf32>
    %937 = vector.extract_strided_slice %936 {offsets = [0, 0], sizes = [16, 128], strides = [1, 1]} : vector<16x256xf32> to vector<16x128xf32>
    %c0_545 = arith.constant 0 : index
    %c0_546 = arith.constant 0 : index
    %938 = vector.load %arg17[%c0_545, %c0_546] : memref<16x128xf32, #tpu.memory_space<vmem>>, vector<16x128xf32>
    tpu.vector_store %arg17[%c0_545, %c0_546], %937 {strides = array<i32>} : memref<16x128xf32, #tpu.memory_space<vmem>>, vector<16x128xf32>,
    %939 = vector.extract_strided_slice %936 {offsets = [0, 128], sizes = [16, 128], strides = [1, 1]} : vector<16x256xf32> to vector<16x128xf32>
    %c0_547 = arith.constant 0 : index
    %c0_548 = arith.constant 0 : index
    %940 = vector.load %arg18[%c0_547, %c0_548] : memref<16x128xf32, #tpu.memory_space<vmem>>, vector<16x128xf32>
    tpu.vector_store %arg18[%c0_547, %c0_548], %939 {strides = array<i32>} : memref<16x128xf32, #tpu.memory_space<vmem>>, vector<16x128xf32>,
    %cst_549 = arith.constant 0.000000e+00 : f32
    %941 = vector.broadcast %cst_549 : f32 to vector<2x32xf32>
    %c0_550 = arith.constant 0 : index
    %c0_551 = arith.constant 0 : index
    %942 = vector.load %arg21[%c0_550, %c0_551] : memref<2x32xf32, #tpu.memory_space<vmem>>, vector<2x32xf32>
    tpu.vector_store %arg21[%c0_550, %c0_551], %941 {strides = array<i32>} : memref<2x32xf32, #tpu.memory_space<vmem>>, vector<2x32xf32>,
    %c0_552 = arith.constant 0 : index
    %c0_553 = arith.constant 0 : index
    %943 = vector.load %arg22[%c0_552, %c0_553] : memref<2x32xf32, #tpu.memory_space<vmem>>, vector<2x32xf32>
    tpu.vector_store %arg22[%c0_552, %c0_553], %941 {strides = array<i32>} : memref<2x32xf32, #tpu.memory_space<vmem>>, vector<2x32xf32>,
    %c0_554 = arith.constant 0 : index
    %c0_555 = arith.constant 0 : index
    %944 = vector.load %arg23[%c0_554, %c0_555] : memref<2x32xf32, #tpu.memory_space<vmem>>, vector<2x32xf32>
    tpu.vector_store %arg23[%c0_554, %c0_555], %941 {strides = array<i32>} : memref<2x32xf32, #tpu.memory_space<vmem>>, vector<2x32xf32>,
    %c0_556 = arith.constant 0 : index
    %c0_557 = arith.constant 0 : index
    %945 = vector.load %arg24[%c0_556, %c0_557] : memref<2x32xf32, #tpu.memory_space<vmem>>, vector<2x32xf32>
    tpu.vector_store %arg24[%c0_556, %c0_557], %941 {strides = array<i32>} : memref<2x32xf32, #tpu.memory_space<vmem>>, vector<2x32xf32>,
    %c0_558 = arith.constant 0 : index
    %c0_559 = arith.constant 0 : index
    %946 = vector.load %arg11[%c0_558, %c0_559] : memref<32x128xf32, #tpu.memory_space<vmem>>, vector<32x128xf32>
    %c0_560 = arith.constant 0 : index
    %c0_561 = arith.constant 0 : index
    %947 = vector.load %arg12[%c0_560, %c0_561] : memref<32x128xf32, #tpu.memory_space<vmem>>, vector<32x128xf32>
    %c0_i32_562 = arith.constant 0 : i32
    %c7_i32_563 = arith.constant 7 : i32
    %948 = arith.subi %c7_i32_563, %c0_i32_562 : i32
    %c2_i32_564 = arith.constant 2 : i32
    %949 = arith.muli %c0_i32_562, %c2_i32_564 : i32
    %950 = arith.index_cast %949 : i32 to index
    %c0_565 = arith.constant 0 : index
    %951 = vector.load %arg17[%950, %c0_565] : memref<16x128xf32, #tpu.memory_space<vmem>>, vector<2x128xf32>
    %c0_566 = arith.constant 0 : index
    %c0_567 = arith.constant 0 : index
    %952 = vector.load %arg21[%c0_566, %c0_567] : memref<2x32xf32, #tpu.memory_space<vmem>>, vector<2x32xf32>
    %cst_568 = arith.constant dense<0.000000e+00> : vector<2x128xf32>
    %953 = tpu.matmul %952, %946, %cst_568 {dimension_numbers = #tpu.dot_dimension_numbers<[1], [0], [0], [1], [0, 0, 1, 1], [], []>} : vector<2x32xf32>, vector<32x128xf32>, vector<2x128xf32> -> vector<2x128xf32>
    %954 = arith.addf %951, %953 : vector<2x128xf32>
    %c2_i32_569 = arith.constant 2 : i32
    %955 = arith.muli %948, %c2_i32_569 : i32
    %956 = arith.index_cast %955 : i32 to index
    %c0_570 = arith.constant 0 : index
    %957 = vector.load %arg18[%956, %c0_570] : memref<16x128xf32, #tpu.memory_space<vmem>>, vector<2x128xf32>
    %c0_571 = arith.constant 0 : index
    %c0_572 = arith.constant 0 : index
    %958 = vector.load %arg23[%c0_571, %c0_572] : memref<2x32xf32, #tpu.memory_space<vmem>>, vector<2x32xf32>
    %cst_573 = arith.constant dense<0.000000e+00> : vector<2x128xf32>
    %959 = tpu.matmul %958, %947, %cst_573 {dimension_numbers = #tpu.dot_dimension_numbers<[1], [0], [0], [1], [0, 0, 1, 1], [], []>} : vector<2x32xf32>, vector<32x128xf32>, vector<2x128xf32> -> vector<2x128xf32>
    %960 = arith.addf %957, %959 : vector<2x128xf32>
    %c0_574 = arith.constant 0 : index
    %c0_575 = arith.constant 0 : index
    %961 = vector.load %arg22[%c0_574, %c0_575] : memref<2x32xf32, #tpu.memory_space<vmem>>, vector<2x32xf32>
    %962 = arith.negf %954 : vector<2x128xf32>
    %963 = math.exp %962 : vector<2x128xf32>
    %cst_576 = arith.constant 1.000000e+00 : f32
    %964 = vector.broadcast %cst_576 : f32 to vector<2x128xf32>
    %965 = arith.addf %964, %963 : vector<2x128xf32>
    %966 = arith.divf %964, %965 : vector<2x128xf32>
    %967 = math.tanh %954 : vector<2x128xf32>
    %968 = vector.extract_strided_slice %966 {offsets = [0, 32], sizes = [2, 32], strides = [1, 1]} : vector<2x128xf32> to vector<2x32xf32>
    %969 = arith.mulf %968, %961 : vector<2x32xf32>
    %970 = vector.extract_strided_slice %966 {offsets = [0, 0], sizes = [2, 32], strides = [1, 1]} : vector<2x128xf32> to vector<2x32xf32>
    %971 = vector.extract_strided_slice %967 {offsets = [0, 64], sizes = [2, 32], strides = [1, 1]} : vector<2x128xf32> to vector<2x32xf32>
    %972 = arith.mulf %970, %971 : vector<2x32xf32>
    %973 = arith.addf %969, %972 : vector<2x32xf32>
    %974 = vector.extract_strided_slice %966 {offsets = [0, 96], sizes = [2, 32], strides = [1, 1]} : vector<2x128xf32> to vector<2x32xf32>
    %975 = math.tanh %973 : vector<2x32xf32>
    %976 = arith.mulf %974, %975 : vector<2x32xf32>
    %c0_577 = arith.constant 0 : index
    %c0_578 = arith.constant 0 : index
    %977 = vector.load %arg24[%c0_577, %c0_578] : memref<2x32xf32, #tpu.memory_space<vmem>>, vector<2x32xf32>
    %978 = arith.negf %960 : vector<2x128xf32>
    %979 = math.exp %978 : vector<2x128xf32>
    %cst_579 = arith.constant 1.000000e+00 : f32
    %980 = vector.broadcast %cst_579 : f32 to vector<2x128xf32>
    %981 = arith.addf %980, %979 : vector<2x128xf32>
    %982 = arith.divf %980, %981 : vector<2x128xf32>
    %983 = math.tanh %960 : vector<2x128xf32>
    %984 = vector.extract_strided_slice %982 {offsets = [0, 32], sizes = [2, 32], strides = [1, 1]} : vector<2x128xf32> to vector<2x32xf32>
    %985 = arith.mulf %984, %977 : vector<2x32xf32>
    %986 = vector.extract_strided_slice %982 {offsets = [0, 0], sizes = [2, 32], strides = [1, 1]} : vector<2x128xf32> to vector<2x32xf32>
    %987 = vector.extract_strided_slice %983 {offsets = [0, 64], sizes = [2, 32], strides = [1, 1]} : vector<2x128xf32> to vector<2x32xf32>
    %988 = arith.mulf %986, %987 : vector<2x32xf32>
    %989 = arith.addf %985, %988 : vector<2x32xf32>
    %990 = vector.extract_strided_slice %982 {offsets = [0, 96], sizes = [2, 32], strides = [1, 1]} : vector<2x128xf32> to vector<2x32xf32>
    %991 = math.tanh %989 : vector<2x32xf32>
    %992 = arith.mulf %990, %991 : vector<2x32xf32>
    %c0_580 = arith.constant 0 : index
    %c0_581 = arith.constant 0 : index
    %993 = vector.load %arg21[%c0_580, %c0_581] : memref<2x32xf32, #tpu.memory_space<vmem>>, vector<2x32xf32>
    tpu.vector_store %arg21[%c0_580, %c0_581], %976 {strides = array<i32>} : memref<2x32xf32, #tpu.memory_space<vmem>>, vector<2x32xf32>,
    %c0_582 = arith.constant 0 : index
    %c0_583 = arith.constant 0 : index
    %994 = vector.load %arg22[%c0_582, %c0_583] : memref<2x32xf32, #tpu.memory_space<vmem>>, vector<2x32xf32>
    tpu.vector_store %arg22[%c0_582, %c0_583], %973 {strides = array<i32>} : memref<2x32xf32, #tpu.memory_space<vmem>>, vector<2x32xf32>,
    %c0_584 = arith.constant 0 : index
    %c0_585 = arith.constant 0 : index
    %995 = vector.load %arg23[%c0_584, %c0_585] : memref<2x32xf32, #tpu.memory_space<vmem>>, vector<2x32xf32>
    tpu.vector_store %arg23[%c0_584, %c0_585], %992 {strides = array<i32>} : memref<2x32xf32, #tpu.memory_space<vmem>>, vector<2x32xf32>,
    %c0_586 = arith.constant 0 : index
    %c0_587 = arith.constant 0 : index
    %996 = vector.load %arg24[%c0_586, %c0_587] : memref<2x32xf32, #tpu.memory_space<vmem>>, vector<2x32xf32>
    tpu.vector_store %arg24[%c0_586, %c0_587], %989 {strides = array<i32>} : memref<2x32xf32, #tpu.memory_space<vmem>>, vector<2x32xf32>,
    %c2_i32_588 = arith.constant 2 : i32
    %997 = arith.muli %c0_i32_562, %c2_i32_588 : i32
    %998 = arith.index_cast %997 : i32 to index
    %c0_589 = arith.constant 0 : index
    %999 = vector.load %arg19[%998, %c0_589] : memref<16x32xf32, #tpu.memory_space<vmem>>, vector<2x32xf32>
    tpu.vector_store %arg19[%998, %c0_589], %976 {strides = array<i32>} : memref<16x32xf32, #tpu.memory_space<vmem>>, vector<2x32xf32>,
    %c2_i32_590 = arith.constant 2 : i32
    %1000 = arith.muli %948, %c2_i32_590 : i32
    %1001 = arith.index_cast %1000 : i32 to index
    %c0_591 = arith.constant 0 : index
    %1002 = vector.load %arg20[%1001, %c0_591] : memref<16x32xf32, #tpu.memory_space<vmem>>, vector<2x32xf32>
    tpu.vector_store %arg20[%1001, %c0_591], %992 {strides = array<i32>} : memref<16x32xf32, #tpu.memory_space<vmem>>, vector<2x32xf32>,
    %c1_i32_592 = arith.constant 1 : i32
    %c7_i32_593 = arith.constant 7 : i32
    %1003 = arith.subi %c7_i32_593, %c1_i32_592 : i32
    %c2_i32_594 = arith.constant 2 : i32
    %1004 = arith.muli %c1_i32_592, %c2_i32_594 : i32
    %1005 = arith.index_cast %1004 : i32 to index
    %c0_595 = arith.constant 0 : index
    %1006 = vector.load %arg17[%1005, %c0_595] : memref<16x128xf32, #tpu.memory_space<vmem>>, vector<2x128xf32>
    %c0_596 = arith.constant 0 : index
    %c0_597 = arith.constant 0 : index
    %1007 = vector.load %arg21[%c0_596, %c0_597] : memref<2x32xf32, #tpu.memory_space<vmem>>, vector<2x32xf32>
    %cst_598 = arith.constant dense<0.000000e+00> : vector<2x128xf32>
    %1008 = tpu.matmul %1007, %946, %cst_598 {dimension_numbers = #tpu.dot_dimension_numbers<[1], [0], [0], [1], [0, 0, 1, 1], [], []>} : vector<2x32xf32>, vector<32x128xf32>, vector<2x128xf32> -> vector<2x128xf32>
    %1009 = arith.addf %1006, %1008 : vector<2x128xf32>
    %c2_i32_599 = arith.constant 2 : i32
    %1010 = arith.muli %1003, %c2_i32_599 : i32
    %1011 = arith.index_cast %1010 : i32 to index
    %c0_600 = arith.constant 0 : index
    %1012 = vector.load %arg18[%1011, %c0_600] : memref<16x128xf32, #tpu.memory_space<vmem>>, vector<2x128xf32>
    %c0_601 = arith.constant 0 : index
    %c0_602 = arith.constant 0 : index
    %1013 = vector.load %arg23[%c0_601, %c0_602] : memref<2x32xf32, #tpu.memory_space<vmem>>, vector<2x32xf32>
    %cst_603 = arith.constant dense<0.000000e+00> : vector<2x128xf32>
    %1014 = tpu.matmul %1013, %947, %cst_603 {dimension_numbers = #tpu.dot_dimension_numbers<[1], [0], [0], [1], [0, 0, 1, 1], [], []>} : vector<2x32xf32>, vector<32x128xf32>, vector<2x128xf32> -> vector<2x128xf32>
    %1015 = arith.addf %1012, %1014 : vector<2x128xf32>
    %c0_604 = arith.constant 0 : index
    %c0_605 = arith.constant 0 : index
    %1016 = vector.load %arg22[%c0_604, %c0_605] : memref<2x32xf32, #tpu.memory_space<vmem>>, vector<2x32xf32>
    %1017 = arith.negf %1009 : vector<2x128xf32>
    %1018 = math.exp %1017 : vector<2x128xf32>
    %cst_606 = arith.constant 1.000000e+00 : f32
    %1019 = vector.broadcast %cst_606 : f32 to vector<2x128xf32>
    %1020 = arith.addf %1019, %1018 : vector<2x128xf32>
    %1021 = arith.divf %1019, %1020 : vector<2x128xf32>
    %1022 = math.tanh %1009 : vector<2x128xf32>
    %1023 = vector.extract_strided_slice %1021 {offsets = [0, 32], sizes = [2, 32], strides = [1, 1]} : vector<2x128xf32> to vector<2x32xf32>
    %1024 = arith.mulf %1023, %1016 : vector<2x32xf32>
    %1025 = vector.extract_strided_slice %1021 {offsets = [0, 0], sizes = [2, 32], strides = [1, 1]} : vector<2x128xf32> to vector<2x32xf32>
    %1026 = vector.extract_strided_slice %1022 {offsets = [0, 64], sizes = [2, 32], strides = [1, 1]} : vector<2x128xf32> to vector<2x32xf32>
    %1027 = arith.mulf %1025, %1026 : vector<2x32xf32>
    %1028 = arith.addf %1024, %1027 : vector<2x32xf32>
    %1029 = vector.extract_strided_slice %1021 {offsets = [0, 96], sizes = [2, 32], strides = [1, 1]} : vector<2x128xf32> to vector<2x32xf32>
    %1030 = math.tanh %1028 : vector<2x32xf32>
    %1031 = arith.mulf %1029, %1030 : vector<2x32xf32>
    %c0_607 = arith.constant 0 : index
    %c0_608 = arith.constant 0 : index
    %1032 = vector.load %arg24[%c0_607, %c0_608] : memref<2x32xf32, #tpu.memory_space<vmem>>, vector<2x32xf32>
    %1033 = arith.negf %1015 : vector<2x128xf32>
    %1034 = math.exp %1033 : vector<2x128xf32>
    %cst_609 = arith.constant 1.000000e+00 : f32
    %1035 = vector.broadcast %cst_609 : f32 to vector<2x128xf32>
    %1036 = arith.addf %1035, %1034 : vector<2x128xf32>
    %1037 = arith.divf %1035, %1036 : vector<2x128xf32>
    %1038 = math.tanh %1015 : vector<2x128xf32>
    %1039 = vector.extract_strided_slice %1037 {offsets = [0, 32], sizes = [2, 32], strides = [1, 1]} : vector<2x128xf32> to vector<2x32xf32>
    %1040 = arith.mulf %1039, %1032 : vector<2x32xf32>
    %1041 = vector.extract_strided_slice %1037 {offsets = [0, 0], sizes = [2, 32], strides = [1, 1]} : vector<2x128xf32> to vector<2x32xf32>
    %1042 = vector.extract_strided_slice %1038 {offsets = [0, 64], sizes = [2, 32], strides = [1, 1]} : vector<2x128xf32> to vector<2x32xf32>
    %1043 = arith.mulf %1041, %1042 : vector<2x32xf32>
    %1044 = arith.addf %1040, %1043 : vector<2x32xf32>
    %1045 = vector.extract_strided_slice %1037 {offsets = [0, 96], sizes = [2, 32], strides = [1, 1]} : vector<2x128xf32> to vector<2x32xf32>
    %1046 = math.tanh %1044 : vector<2x32xf32>
    %1047 = arith.mulf %1045, %1046 : vector<2x32xf32>
    %c0_610 = arith.constant 0 : index
    %c0_611 = arith.constant 0 : index
    %1048 = vector.load %arg21[%c0_610, %c0_611] : memref<2x32xf32, #tpu.memory_space<vmem>>, vector<2x32xf32>
    tpu.vector_store %arg21[%c0_610, %c0_611], %1031 {strides = array<i32>} : memref<2x32xf32, #tpu.memory_space<vmem>>, vector<2x32xf32>,
    %c0_612 = arith.constant 0 : index
    %c0_613 = arith.constant 0 : index
    %1049 = vector.load %arg22[%c0_612, %c0_613] : memref<2x32xf32, #tpu.memory_space<vmem>>, vector<2x32xf32>
    tpu.vector_store %arg22[%c0_612, %c0_613], %1028 {strides = array<i32>} : memref<2x32xf32, #tpu.memory_space<vmem>>, vector<2x32xf32>,
    %c0_614 = arith.constant 0 : index
    %c0_615 = arith.constant 0 : index
    %1050 = vector.load %arg23[%c0_614, %c0_615] : memref<2x32xf32, #tpu.memory_space<vmem>>, vector<2x32xf32>
    tpu.vector_store %arg23[%c0_614, %c0_615], %1047 {strides = array<i32>} : memref<2x32xf32, #tpu.memory_space<vmem>>, vector<2x32xf32>,
    %c0_616 = arith.constant 0 : index
    %c0_617 = arith.constant 0 : index
    %1051 = vector.load %arg24[%c0_616, %c0_617] : memref<2x32xf32, #tpu.memory_space<vmem>>, vector<2x32xf32>
    tpu.vector_store %arg24[%c0_616, %c0_617], %1044 {strides = array<i32>} : memref<2x32xf32, #tpu.memory_space<vmem>>, vector<2x32xf32>,
    %c2_i32_618 = arith.constant 2 : i32
    %1052 = arith.muli %c1_i32_592, %c2_i32_618 : i32
    %1053 = arith.index_cast %1052 : i32 to index
    %c0_619 = arith.constant 0 : index
    %1054 = vector.load %arg19[%1053, %c0_619] : memref<16x32xf32, #tpu.memory_space<vmem>>, vector<2x32xf32>
    tpu.vector_store %arg19[%1053, %c0_619], %1031 {strides = array<i32>} : memref<16x32xf32, #tpu.memory_space<vmem>>, vector<2x32xf32>,
    %c2_i32_620 = arith.constant 2 : i32
    %1055 = arith.muli %1003, %c2_i32_620 : i32
    %1056 = arith.index_cast %1055 : i32 to index
    %c0_621 = arith.constant 0 : index
    %1057 = vector.load %arg20[%1056, %c0_621] : memref<16x32xf32, #tpu.memory_space<vmem>>, vector<2x32xf32>
    tpu.vector_store %arg20[%1056, %c0_621], %1047 {strides = array<i32>} : memref<16x32xf32, #tpu.memory_space<vmem>>, vector<2x32xf32>,
    %c2_i32_622 = arith.constant 2 : i32
    %c7_i32_623 = arith.constant 7 : i32
    %1058 = arith.subi %c7_i32_623, %c2_i32_622 : i32
    %c2_i32_624 = arith.constant 2 : i32
    %1059 = arith.muli %c2_i32_622, %c2_i32_624 : i32
    %1060 = arith.index_cast %1059 : i32 to index
    %c0_625 = arith.constant 0 : index
    %1061 = vector.load %arg17[%1060, %c0_625] : memref<16x128xf32, #tpu.memory_space<vmem>>, vector<2x128xf32>
    %c0_626 = arith.constant 0 : index
    %c0_627 = arith.constant 0 : index
    %1062 = vector.load %arg21[%c0_626, %c0_627] : memref<2x32xf32, #tpu.memory_space<vmem>>, vector<2x32xf32>
    %cst_628 = arith.constant dense<0.000000e+00> : vector<2x128xf32>
    %1063 = tpu.matmul %1062, %946, %cst_628 {dimension_numbers = #tpu.dot_dimension_numbers<[1], [0], [0], [1], [0, 0, 1, 1], [], []>} : vector<2x32xf32>, vector<32x128xf32>, vector<2x128xf32> -> vector<2x128xf32>
    %1064 = arith.addf %1061, %1063 : vector<2x128xf32>
    %c2_i32_629 = arith.constant 2 : i32
    %1065 = arith.muli %1058, %c2_i32_629 : i32
    %1066 = arith.index_cast %1065 : i32 to index
    %c0_630 = arith.constant 0 : index
    %1067 = vector.load %arg18[%1066, %c0_630] : memref<16x128xf32, #tpu.memory_space<vmem>>, vector<2x128xf32>
    %c0_631 = arith.constant 0 : index
    %c0_632 = arith.constant 0 : index
    %1068 = vector.load %arg23[%c0_631, %c0_632] : memref<2x32xf32, #tpu.memory_space<vmem>>, vector<2x32xf32>
    %cst_633 = arith.constant dense<0.000000e+00> : vector<2x128xf32>
    %1069 = tpu.matmul %1068, %947, %cst_633 {dimension_numbers = #tpu.dot_dimension_numbers<[1], [0], [0], [1], [0, 0, 1, 1], [], []>} : vector<2x32xf32>, vector<32x128xf32>, vector<2x128xf32> -> vector<2x128xf32>
    %1070 = arith.addf %1067, %1069 : vector<2x128xf32>
    %c0_634 = arith.constant 0 : index
    %c0_635 = arith.constant 0 : index
    %1071 = vector.load %arg22[%c0_634, %c0_635] : memref<2x32xf32, #tpu.memory_space<vmem>>, vector<2x32xf32>
    %1072 = arith.negf %1064 : vector<2x128xf32>
    %1073 = math.exp %1072 : vector<2x128xf32>
    %cst_636 = arith.constant 1.000000e+00 : f32
    %1074 = vector.broadcast %cst_636 : f32 to vector<2x128xf32>
    %1075 = arith.addf %1074, %1073 : vector<2x128xf32>
    %1076 = arith.divf %1074, %1075 : vector<2x128xf32>
    %1077 = math.tanh %1064 : vector<2x128xf32>
    %1078 = vector.extract_strided_slice %1076 {offsets = [0, 32], sizes = [2, 32], strides = [1, 1]} : vector<2x128xf32> to vector<2x32xf32>
    %1079 = arith.mulf %1078, %1071 : vector<2x32xf32>
    %1080 = vector.extract_strided_slice %1076 {offsets = [0, 0], sizes = [2, 32], strides = [1, 1]} : vector<2x128xf32> to vector<2x32xf32>
    %1081 = vector.extract_strided_slice %1077 {offsets = [0, 64], sizes = [2, 32], strides = [1, 1]} : vector<2x128xf32> to vector<2x32xf32>
    %1082 = arith.mulf %1080, %1081 : vector<2x32xf32>
    %1083 = arith.addf %1079, %1082 : vector<2x32xf32>
    %1084 = vector.extract_strided_slice %1076 {offsets = [0, 96], sizes = [2, 32], strides = [1, 1]} : vector<2x128xf32> to vector<2x32xf32>
    %1085 = math.tanh %1083 : vector<2x32xf32>
    %1086 = arith.mulf %1084, %1085 : vector<2x32xf32>
    %c0_637 = arith.constant 0 : index
    %c0_638 = arith.constant 0 : index
    %1087 = vector.load %arg24[%c0_637, %c0_638] : memref<2x32xf32, #tpu.memory_space<vmem>>, vector<2x32xf32>
    %1088 = arith.negf %1070 : vector<2x128xf32>
    %1089 = math.exp %1088 : vector<2x128xf32>
    %cst_639 = arith.constant 1.000000e+00 : f32
    %1090 = vector.broadcast %cst_639 : f32 to vector<2x128xf32>
    %1091 = arith.addf %1090, %1089 : vector<2x128xf32>
    %1092 = arith.divf %1090, %1091 : vector<2x128xf32>
    %1093 = math.tanh %1070 : vector<2x128xf32>
    %1094 = vector.extract_strided_slice %1092 {offsets = [0, 32], sizes = [2, 32], strides = [1, 1]} : vector<2x128xf32> to vector<2x32xf32>
    %1095 = arith.mulf %1094, %1087 : vector<2x32xf32>
    %1096 = vector.extract_strided_slice %1092 {offsets = [0, 0], sizes = [2, 32], strides = [1, 1]} : vector<2x128xf32> to vector<2x32xf32>
    %1097 = vector.extract_strided_slice %1093 {offsets = [0, 64], sizes = [2, 32], strides = [1, 1]} : vector<2x128xf32> to vector<2x32xf32>
    %1098 = arith.mulf %1096, %1097 : vector<2x32xf32>
    %1099 = arith.addf %1095, %1098 : vector<2x32xf32>
    %1100 = vector.extract_strided_slice %1092 {offsets = [0, 96], sizes = [2, 32], strides = [1, 1]} : vector<2x128xf32> to vector<2x32xf32>
    %1101 = math.tanh %1099 : vector<2x32xf32>
    %1102 = arith.mulf %1100, %1101 : vector<2x32xf32>
    %c0_640 = arith.constant 0 : index
    %c0_641 = arith.constant 0 : index
    %1103 = vector.load %arg21[%c0_640, %c0_641] : memref<2x32xf32, #tpu.memory_space<vmem>>, vector<2x32xf32>
    tpu.vector_store %arg21[%c0_640, %c0_641], %1086 {strides = array<i32>} : memref<2x32xf32, #tpu.memory_space<vmem>>, vector<2x32xf32>,
    %c0_642 = arith.constant 0 : index
    %c0_643 = arith.constant 0 : index
    %1104 = vector.load %arg22[%c0_642, %c0_643] : memref<2x32xf32, #tpu.memory_space<vmem>>, vector<2x32xf32>
    tpu.vector_store %arg22[%c0_642, %c0_643], %1083 {strides = array<i32>} : memref<2x32xf32, #tpu.memory_space<vmem>>, vector<2x32xf32>,
    %c0_644 = arith.constant 0 : index
    %c0_645 = arith.constant 0 : index
    %1105 = vector.load %arg23[%c0_644, %c0_645] : memref<2x32xf32, #tpu.memory_space<vmem>>, vector<2x32xf32>
    tpu.vector_store %arg23[%c0_644, %c0_645], %1102 {strides = array<i32>} : memref<2x32xf32, #tpu.memory_space<vmem>>, vector<2x32xf32>,
    %c0_646 = arith.constant 0 : index
    %c0_647 = arith.constant 0 : index
    %1106 = vector.load %arg24[%c0_646, %c0_647] : memref<2x32xf32, #tpu.memory_space<vmem>>, vector<2x32xf32>
    tpu.vector_store %arg24[%c0_646, %c0_647], %1099 {strides = array<i32>} : memref<2x32xf32, #tpu.memory_space<vmem>>, vector<2x32xf32>,
    %c2_i32_648 = arith.constant 2 : i32
    %1107 = arith.muli %c2_i32_622, %c2_i32_648 : i32
    %1108 = arith.index_cast %1107 : i32 to index
    %c0_649 = arith.constant 0 : index
    %1109 = vector.load %arg19[%1108, %c0_649] : memref<16x32xf32, #tpu.memory_space<vmem>>, vector<2x32xf32>
    tpu.vector_store %arg19[%1108, %c0_649], %1086 {strides = array<i32>} : memref<16x32xf32, #tpu.memory_space<vmem>>, vector<2x32xf32>,
    %c2_i32_650 = arith.constant 2 : i32
    %1110 = arith.muli %1058, %c2_i32_650 : i32
    %1111 = arith.index_cast %1110 : i32 to index
    %c0_651 = arith.constant 0 : index
    %1112 = vector.load %arg20[%1111, %c0_651] : memref<16x32xf32, #tpu.memory_space<vmem>>, vector<2x32xf32>
    tpu.vector_store %arg20[%1111, %c0_651], %1102 {strides = array<i32>} : memref<16x32xf32, #tpu.memory_space<vmem>>, vector<2x32xf32>,
    %c3_i32_652 = arith.constant 3 : i32
    %c7_i32_653 = arith.constant 7 : i32
    %1113 = arith.subi %c7_i32_653, %c3_i32_652 : i32
    %c2_i32_654 = arith.constant 2 : i32
    %1114 = arith.muli %c3_i32_652, %c2_i32_654 : i32
    %1115 = arith.index_cast %1114 : i32 to index
    %c0_655 = arith.constant 0 : index
    %1116 = vector.load %arg17[%1115, %c0_655] : memref<16x128xf32, #tpu.memory_space<vmem>>, vector<2x128xf32>
    %c0_656 = arith.constant 0 : index
    %c0_657 = arith.constant 0 : index
    %1117 = vector.load %arg21[%c0_656, %c0_657] : memref<2x32xf32, #tpu.memory_space<vmem>>, vector<2x32xf32>
    %cst_658 = arith.constant dense<0.000000e+00> : vector<2x128xf32>
    %1118 = tpu.matmul %1117, %946, %cst_658 {dimension_numbers = #tpu.dot_dimension_numbers<[1], [0], [0], [1], [0, 0, 1, 1], [], []>} : vector<2x32xf32>, vector<32x128xf32>, vector<2x128xf32> -> vector<2x128xf32>
    %1119 = arith.addf %1116, %1118 : vector<2x128xf32>
    %c2_i32_659 = arith.constant 2 : i32
    %1120 = arith.muli %1113, %c2_i32_659 : i32
    %1121 = arith.index_cast %1120 : i32 to index
    %c0_660 = arith.constant 0 : index
    %1122 = vector.load %arg18[%1121, %c0_660] : memref<16x128xf32, #tpu.memory_space<vmem>>, vector<2x128xf32>
    %c0_661 = arith.constant 0 : index
    %c0_662 = arith.constant 0 : index
    %1123 = vector.load %arg23[%c0_661, %c0_662] : memref<2x32xf32, #tpu.memory_space<vmem>>, vector<2x32xf32>
    %cst_663 = arith.constant dense<0.000000e+00> : vector<2x128xf32>
    %1124 = tpu.matmul %1123, %947, %cst_663 {dimension_numbers = #tpu.dot_dimension_numbers<[1], [0], [0], [1], [0, 0, 1, 1], [], []>} : vector<2x32xf32>, vector<32x128xf32>, vector<2x128xf32> -> vector<2x128xf32>
    %1125 = arith.addf %1122, %1124 : vector<2x128xf32>
    %c0_664 = arith.constant 0 : index
    %c0_665 = arith.constant 0 : index
    %1126 = vector.load %arg22[%c0_664, %c0_665] : memref<2x32xf32, #tpu.memory_space<vmem>>, vector<2x32xf32>
    %1127 = arith.negf %1119 : vector<2x128xf32>
    %1128 = math.exp %1127 : vector<2x128xf32>
    %cst_666 = arith.constant 1.000000e+00 : f32
    %1129 = vector.broadcast %cst_666 : f32 to vector<2x128xf32>
    %1130 = arith.addf %1129, %1128 : vector<2x128xf32>
    %1131 = arith.divf %1129, %1130 : vector<2x128xf32>
    %1132 = math.tanh %1119 : vector<2x128xf32>
    %1133 = vector.extract_strided_slice %1131 {offsets = [0, 32], sizes = [2, 32], strides = [1, 1]} : vector<2x128xf32> to vector<2x32xf32>
    %1134 = arith.mulf %1133, %1126 : vector<2x32xf32>
    %1135 = vector.extract_strided_slice %1131 {offsets = [0, 0], sizes = [2, 32], strides = [1, 1]} : vector<2x128xf32> to vector<2x32xf32>
    %1136 = vector.extract_strided_slice %1132 {offsets = [0, 64], sizes = [2, 32], strides = [1, 1]} : vector<2x128xf32> to vector<2x32xf32>
    %1137 = arith.mulf %1135, %1136 : vector<2x32xf32>
    %1138 = arith.addf %1134, %1137 : vector<2x32xf32>
    %1139 = vector.extract_strided_slice %1131 {offsets = [0, 96], sizes = [2, 32], strides = [1, 1]} : vector<2x128xf32> to vector<2x32xf32>
    %1140 = math.tanh %1138 : vector<2x32xf32>
    %1141 = arith.mulf %1139, %1140 : vector<2x32xf32>
    %c0_667 = arith.constant 0 : index
    %c0_668 = arith.constant 0 : index
    %1142 = vector.load %arg24[%c0_667, %c0_668] : memref<2x32xf32, #tpu.memory_space<vmem>>, vector<2x32xf32>
    %1143 = arith.negf %1125 : vector<2x128xf32>
    %1144 = math.exp %1143 : vector<2x128xf32>
    %cst_669 = arith.constant 1.000000e+00 : f32
    %1145 = vector.broadcast %cst_669 : f32 to vector<2x128xf32>
    %1146 = arith.addf %1145, %1144 : vector<2x128xf32>
    %1147 = arith.divf %1145, %1146 : vector<2x128xf32>
    %1148 = math.tanh %1125 : vector<2x128xf32>
    %1149 = vector.extract_strided_slice %1147 {offsets = [0, 32], sizes = [2, 32], strides = [1, 1]} : vector<2x128xf32> to vector<2x32xf32>
    %1150 = arith.mulf %1149, %1142 : vector<2x32xf32>
    %1151 = vector.extract_strided_slice %1147 {offsets = [0, 0], sizes = [2, 32], strides = [1, 1]} : vector<2x128xf32> to vector<2x32xf32>
    %1152 = vector.extract_strided_slice %1148 {offsets = [0, 64], sizes = [2, 32], strides = [1, 1]} : vector<2x128xf32> to vector<2x32xf32>
    %1153 = arith.mulf %1151, %1152 : vector<2x32xf32>
    %1154 = arith.addf %1150, %1153 : vector<2x32xf32>
    %1155 = vector.extract_strided_slice %1147 {offsets = [0, 96], sizes = [2, 32], strides = [1, 1]} : vector<2x128xf32> to vector<2x32xf32>
    %1156 = math.tanh %1154 : vector<2x32xf32>
    %1157 = arith.mulf %1155, %1156 : vector<2x32xf32>
    %c0_670 = arith.constant 0 : index
    %c0_671 = arith.constant 0 : index
    %1158 = vector.load %arg21[%c0_670, %c0_671] : memref<2x32xf32, #tpu.memory_space<vmem>>, vector<2x32xf32>
    tpu.vector_store %arg21[%c0_670, %c0_671], %1141 {strides = array<i32>} : memref<2x32xf32, #tpu.memory_space<vmem>>, vector<2x32xf32>,
    %c0_672 = arith.constant 0 : index
    %c0_673 = arith.constant 0 : index
    %1159 = vector.load %arg22[%c0_672, %c0_673] : memref<2x32xf32, #tpu.memory_space<vmem>>, vector<2x32xf32>
    tpu.vector_store %arg22[%c0_672, %c0_673], %1138 {strides = array<i32>} : memref<2x32xf32, #tpu.memory_space<vmem>>, vector<2x32xf32>,
    %c0_674 = arith.constant 0 : index
    %c0_675 = arith.constant 0 : index
    %1160 = vector.load %arg23[%c0_674, %c0_675] : memref<2x32xf32, #tpu.memory_space<vmem>>, vector<2x32xf32>
    tpu.vector_store %arg23[%c0_674, %c0_675], %1157 {strides = array<i32>} : memref<2x32xf32, #tpu.memory_space<vmem>>, vector<2x32xf32>,
    %c0_676 = arith.constant 0 : index
    %c0_677 = arith.constant 0 : index
    %1161 = vector.load %arg24[%c0_676, %c0_677] : memref<2x32xf32, #tpu.memory_space<vmem>>, vector<2x32xf32>
    tpu.vector_store %arg24[%c0_676, %c0_677], %1154 {strides = array<i32>} : memref<2x32xf32, #tpu.memory_space<vmem>>, vector<2x32xf32>,
    %c2_i32_678 = arith.constant 2 : i32
    %1162 = arith.muli %c3_i32_652, %c2_i32_678 : i32
    %1163 = arith.index_cast %1162 : i32 to index
    %c0_679 = arith.constant 0 : index
    %1164 = vector.load %arg19[%1163, %c0_679] : memref<16x32xf32, #tpu.memory_space<vmem>>, vector<2x32xf32>
    tpu.vector_store %arg19[%1163, %c0_679], %1141 {strides = array<i32>} : memref<16x32xf32, #tpu.memory_space<vmem>>, vector<2x32xf32>,
    %c2_i32_680 = arith.constant 2 : i32
    %1165 = arith.muli %1113, %c2_i32_680 : i32
    %1166 = arith.index_cast %1165 : i32 to index
    %c0_681 = arith.constant 0 : index
    %1167 = vector.load %arg20[%1166, %c0_681] : memref<16x32xf32, #tpu.memory_space<vmem>>, vector<2x32xf32>
    tpu.vector_store %arg20[%1166, %c0_681], %1157 {strides = array<i32>} : memref<16x32xf32, #tpu.memory_space<vmem>>, vector<2x32xf32>,
    %c4_i32_682 = arith.constant 4 : i32
    %c7_i32_683 = arith.constant 7 : i32
    %1168 = arith.subi %c7_i32_683, %c4_i32_682 : i32
    %c2_i32_684 = arith.constant 2 : i32
    %1169 = arith.muli %c4_i32_682, %c2_i32_684 : i32
    %1170 = arith.index_cast %1169 : i32 to index
    %c0_685 = arith.constant 0 : index
    %1171 = vector.load %arg17[%1170, %c0_685] : memref<16x128xf32, #tpu.memory_space<vmem>>, vector<2x128xf32>
    %c0_686 = arith.constant 0 : index
    %c0_687 = arith.constant 0 : index
    %1172 = vector.load %arg21[%c0_686, %c0_687] : memref<2x32xf32, #tpu.memory_space<vmem>>, vector<2x32xf32>
    %cst_688 = arith.constant dense<0.000000e+00> : vector<2x128xf32>
    %1173 = tpu.matmul %1172, %946, %cst_688 {dimension_numbers = #tpu.dot_dimension_numbers<[1], [0], [0], [1], [0, 0, 1, 1], [], []>} : vector<2x32xf32>, vector<32x128xf32>, vector<2x128xf32> -> vector<2x128xf32>
    %1174 = arith.addf %1171, %1173 : vector<2x128xf32>
    %c2_i32_689 = arith.constant 2 : i32
    %1175 = arith.muli %1168, %c2_i32_689 : i32
    %1176 = arith.index_cast %1175 : i32 to index
    %c0_690 = arith.constant 0 : index
    %1177 = vector.load %arg18[%1176, %c0_690] : memref<16x128xf32, #tpu.memory_space<vmem>>, vector<2x128xf32>
    %c0_691 = arith.constant 0 : index
    %c0_692 = arith.constant 0 : index
    %1178 = vector.load %arg23[%c0_691, %c0_692] : memref<2x32xf32, #tpu.memory_space<vmem>>, vector<2x32xf32>
    %cst_693 = arith.constant dense<0.000000e+00> : vector<2x128xf32>
    %1179 = tpu.matmul %1178, %947, %cst_693 {dimension_numbers = #tpu.dot_dimension_numbers<[1], [0], [0], [1], [0, 0, 1, 1], [], []>} : vector<2x32xf32>, vector<32x128xf32>, vector<2x128xf32> -> vector<2x128xf32>
    %1180 = arith.addf %1177, %1179 : vector<2x128xf32>
    %c0_694 = arith.constant 0 : index
    %c0_695 = arith.constant 0 : index
    %1181 = vector.load %arg22[%c0_694, %c0_695] : memref<2x32xf32, #tpu.memory_space<vmem>>, vector<2x32xf32>
    %1182 = arith.negf %1174 : vector<2x128xf32>
    %1183 = math.exp %1182 : vector<2x128xf32>
    %cst_696 = arith.constant 1.000000e+00 : f32
    %1184 = vector.broadcast %cst_696 : f32 to vector<2x128xf32>
    %1185 = arith.addf %1184, %1183 : vector<2x128xf32>
    %1186 = arith.divf %1184, %1185 : vector<2x128xf32>
    %1187 = math.tanh %1174 : vector<2x128xf32>
    %1188 = vector.extract_strided_slice %1186 {offsets = [0, 32], sizes = [2, 32], strides = [1, 1]} : vector<2x128xf32> to vector<2x32xf32>
    %1189 = arith.mulf %1188, %1181 : vector<2x32xf32>
    %1190 = vector.extract_strided_slice %1186 {offsets = [0, 0], sizes = [2, 32], strides = [1, 1]} : vector<2x128xf32> to vector<2x32xf32>
    %1191 = vector.extract_strided_slice %1187 {offsets = [0, 64], sizes = [2, 32], strides = [1, 1]} : vector<2x128xf32> to vector<2x32xf32>
    %1192 = arith.mulf %1190, %1191 : vector<2x32xf32>
    %1193 = arith.addf %1189, %1192 : vector<2x32xf32>
    %1194 = vector.extract_strided_slice %1186 {offsets = [0, 96], sizes = [2, 32], strides = [1, 1]} : vector<2x128xf32> to vector<2x32xf32>
    %1195 = math.tanh %1193 : vector<2x32xf32>
    %1196 = arith.mulf %1194, %1195 : vector<2x32xf32>
    %c0_697 = arith.constant 0 : index
    %c0_698 = arith.constant 0 : index
    %1197 = vector.load %arg24[%c0_697, %c0_698] : memref<2x32xf32, #tpu.memory_space<vmem>>, vector<2x32xf32>
    %1198 = arith.negf %1180 : vector<2x128xf32>
    %1199 = math.exp %1198 : vector<2x128xf32>
    %cst_699 = arith.constant 1.000000e+00 : f32
    %1200 = vector.broadcast %cst_699 : f32 to vector<2x128xf32>
    %1201 = arith.addf %1200, %1199 : vector<2x128xf32>
    %1202 = arith.divf %1200, %1201 : vector<2x128xf32>
    %1203 = math.tanh %1180 : vector<2x128xf32>
    %1204 = vector.extract_strided_slice %1202 {offsets = [0, 32], sizes = [2, 32], strides = [1, 1]} : vector<2x128xf32> to vector<2x32xf32>
    %1205 = arith.mulf %1204, %1197 : vector<2x32xf32>
    %1206 = vector.extract_strided_slice %1202 {offsets = [0, 0], sizes = [2, 32], strides = [1, 1]} : vector<2x128xf32> to vector<2x32xf32>
    %1207 = vector.extract_strided_slice %1203 {offsets = [0, 64], sizes = [2, 32], strides = [1, 1]} : vector<2x128xf32> to vector<2x32xf32>
    %1208 = arith.mulf %1206, %1207 : vector<2x32xf32>
    %1209 = arith.addf %1205, %1208 : vector<2x32xf32>
    %1210 = vector.extract_strided_slice %1202 {offsets = [0, 96], sizes = [2, 32], strides = [1, 1]} : vector<2x128xf32> to vector<2x32xf32>
    %1211 = math.tanh %1209 : vector<2x32xf32>
    %1212 = arith.mulf %1210, %1211 : vector<2x32xf32>
    %c0_700 = arith.constant 0 : index
    %c0_701 = arith.constant 0 : index
    %1213 = vector.load %arg21[%c0_700, %c0_701] : memref<2x32xf32, #tpu.memory_space<vmem>>, vector<2x32xf32>
    tpu.vector_store %arg21[%c0_700, %c0_701], %1196 {strides = array<i32>} : memref<2x32xf32, #tpu.memory_space<vmem>>, vector<2x32xf32>,
    %c0_702 = arith.constant 0 : index
    %c0_703 = arith.constant 0 : index
    %1214 = vector.load %arg22[%c0_702, %c0_703] : memref<2x32xf32, #tpu.memory_space<vmem>>, vector<2x32xf32>
    tpu.vector_store %arg22[%c0_702, %c0_703], %1193 {strides = array<i32>} : memref<2x32xf32, #tpu.memory_space<vmem>>, vector<2x32xf32>,
    %c0_704 = arith.constant 0 : index
    %c0_705 = arith.constant 0 : index
    %1215 = vector.load %arg23[%c0_704, %c0_705] : memref<2x32xf32, #tpu.memory_space<vmem>>, vector<2x32xf32>
    tpu.vector_store %arg23[%c0_704, %c0_705], %1212 {strides = array<i32>} : memref<2x32xf32, #tpu.memory_space<vmem>>, vector<2x32xf32>,
    %c0_706 = arith.constant 0 : index
    %c0_707 = arith.constant 0 : index
    %1216 = vector.load %arg24[%c0_706, %c0_707] : memref<2x32xf32, #tpu.memory_space<vmem>>, vector<2x32xf32>
    tpu.vector_store %arg24[%c0_706, %c0_707], %1209 {strides = array<i32>} : memref<2x32xf32, #tpu.memory_space<vmem>>, vector<2x32xf32>,
    %c2_i32_708 = arith.constant 2 : i32
    %1217 = arith.muli %c4_i32_682, %c2_i32_708 : i32
    %1218 = arith.index_cast %1217 : i32 to index
    %c0_709 = arith.constant 0 : index
    %1219 = vector.load %arg19[%1218, %c0_709] : memref<16x32xf32, #tpu.memory_space<vmem>>, vector<2x32xf32>
    tpu.vector_store %arg19[%1218, %c0_709], %1196 {strides = array<i32>} : memref<16x32xf32, #tpu.memory_space<vmem>>, vector<2x32xf32>,
    %c2_i32_710 = arith.constant 2 : i32
    %1220 = arith.muli %1168, %c2_i32_710 : i32
    %1221 = arith.index_cast %1220 : i32 to index
    %c0_711 = arith.constant 0 : index
    %1222 = vector.load %arg20[%1221, %c0_711] : memref<16x32xf32, #tpu.memory_space<vmem>>, vector<2x32xf32>
    tpu.vector_store %arg20[%1221, %c0_711], %1212 {strides = array<i32>} : memref<16x32xf32, #tpu.memory_space<vmem>>, vector<2x32xf32>,
    %c5_i32_712 = arith.constant 5 : i32
    %c7_i32_713 = arith.constant 7 : i32
    %1223 = arith.subi %c7_i32_713, %c5_i32_712 : i32
    %c2_i32_714 = arith.constant 2 : i32
    %1224 = arith.muli %c5_i32_712, %c2_i32_714 : i32
    %1225 = arith.index_cast %1224 : i32 to index
    %c0_715 = arith.constant 0 : index
    %1226 = vector.load %arg17[%1225, %c0_715] : memref<16x128xf32, #tpu.memory_space<vmem>>, vector<2x128xf32>
    %c0_716 = arith.constant 0 : index
    %c0_717 = arith.constant 0 : index
    %1227 = vector.load %arg21[%c0_716, %c0_717] : memref<2x32xf32, #tpu.memory_space<vmem>>, vector<2x32xf32>
    %cst_718 = arith.constant dense<0.000000e+00> : vector<2x128xf32>
    %1228 = tpu.matmul %1227, %946, %cst_718 {dimension_numbers = #tpu.dot_dimension_numbers<[1], [0], [0], [1], [0, 0, 1, 1], [], []>} : vector<2x32xf32>, vector<32x128xf32>, vector<2x128xf32> -> vector<2x128xf32>
    %1229 = arith.addf %1226, %1228 : vector<2x128xf32>
    %c2_i32_719 = arith.constant 2 : i32
    %1230 = arith.muli %1223, %c2_i32_719 : i32
    %1231 = arith.index_cast %1230 : i32 to index
    %c0_720 = arith.constant 0 : index
    %1232 = vector.load %arg18[%1231, %c0_720] : memref<16x128xf32, #tpu.memory_space<vmem>>, vector<2x128xf32>
    %c0_721 = arith.constant 0 : index
    %c0_722 = arith.constant 0 : index
    %1233 = vector.load %arg23[%c0_721, %c0_722] : memref<2x32xf32, #tpu.memory_space<vmem>>, vector<2x32xf32>
    %cst_723 = arith.constant dense<0.000000e+00> : vector<2x128xf32>
    %1234 = tpu.matmul %1233, %947, %cst_723 {dimension_numbers = #tpu.dot_dimension_numbers<[1], [0], [0], [1], [0, 0, 1, 1], [], []>} : vector<2x32xf32>, vector<32x128xf32>, vector<2x128xf32> -> vector<2x128xf32>
    %1235 = arith.addf %1232, %1234 : vector<2x128xf32>
    %c0_724 = arith.constant 0 : index
    %c0_725 = arith.constant 0 : index
    %1236 = vector.load %arg22[%c0_724, %c0_725] : memref<2x32xf32, #tpu.memory_space<vmem>>, vector<2x32xf32>
    %1237 = arith.negf %1229 : vector<2x128xf32>
    %1238 = math.exp %1237 : vector<2x128xf32>
    %cst_726 = arith.constant 1.000000e+00 : f32
    %1239 = vector.broadcast %cst_726 : f32 to vector<2x128xf32>
    %1240 = arith.addf %1239, %1238 : vector<2x128xf32>
    %1241 = arith.divf %1239, %1240 : vector<2x128xf32>
    %1242 = math.tanh %1229 : vector<2x128xf32>
    %1243 = vector.extract_strided_slice %1241 {offsets = [0, 32], sizes = [2, 32], strides = [1, 1]} : vector<2x128xf32> to vector<2x32xf32>
    %1244 = arith.mulf %1243, %1236 : vector<2x32xf32>
    %1245 = vector.extract_strided_slice %1241 {offsets = [0, 0], sizes = [2, 32], strides = [1, 1]} : vector<2x128xf32> to vector<2x32xf32>
    %1246 = vector.extract_strided_slice %1242 {offsets = [0, 64], sizes = [2, 32], strides = [1, 1]} : vector<2x128xf32> to vector<2x32xf32>
    %1247 = arith.mulf %1245, %1246 : vector<2x32xf32>
    %1248 = arith.addf %1244, %1247 : vector<2x32xf32>
    %1249 = vector.extract_strided_slice %1241 {offsets = [0, 96], sizes = [2, 32], strides = [1, 1]} : vector<2x128xf32> to vector<2x32xf32>
    %1250 = math.tanh %1248 : vector<2x32xf32>
    %1251 = arith.mulf %1249, %1250 : vector<2x32xf32>
    %c0_727 = arith.constant 0 : index
    %c0_728 = arith.constant 0 : index
    %1252 = vector.load %arg24[%c0_727, %c0_728] : memref<2x32xf32, #tpu.memory_space<vmem>>, vector<2x32xf32>
    %1253 = arith.negf %1235 : vector<2x128xf32>
    %1254 = math.exp %1253 : vector<2x128xf32>
    %cst_729 = arith.constant 1.000000e+00 : f32
    %1255 = vector.broadcast %cst_729 : f32 to vector<2x128xf32>
    %1256 = arith.addf %1255, %1254 : vector<2x128xf32>
    %1257 = arith.divf %1255, %1256 : vector<2x128xf32>
    %1258 = math.tanh %1235 : vector<2x128xf32>
    %1259 = vector.extract_strided_slice %1257 {offsets = [0, 32], sizes = [2, 32], strides = [1, 1]} : vector<2x128xf32> to vector<2x32xf32>
    %1260 = arith.mulf %1259, %1252 : vector<2x32xf32>
    %1261 = vector.extract_strided_slice %1257 {offsets = [0, 0], sizes = [2, 32], strides = [1, 1]} : vector<2x128xf32> to vector<2x32xf32>
    %1262 = vector.extract_strided_slice %1258 {offsets = [0, 64], sizes = [2, 32], strides = [1, 1]} : vector<2x128xf32> to vector<2x32xf32>
    %1263 = arith.mulf %1261, %1262 : vector<2x32xf32>
    %1264 = arith.addf %1260, %1263 : vector<2x32xf32>
    %1265 = vector.extract_strided_slice %1257 {offsets = [0, 96], sizes = [2, 32], strides = [1, 1]} : vector<2x128xf32> to vector<2x32xf32>
    %1266 = math.tanh %1264 : vector<2x32xf32>
    %1267 = arith.mulf %1265, %1266 : vector<2x32xf32>
    %c0_730 = arith.constant 0 : index
    %c0_731 = arith.constant 0 : index
    %1268 = vector.load %arg21[%c0_730, %c0_731] : memref<2x32xf32, #tpu.memory_space<vmem>>, vector<2x32xf32>
    tpu.vector_store %arg21[%c0_730, %c0_731], %1251 {strides = array<i32>} : memref<2x32xf32, #tpu.memory_space<vmem>>, vector<2x32xf32>,
    %c0_732 = arith.constant 0 : index
    %c0_733 = arith.constant 0 : index
    %1269 = vector.load %arg22[%c0_732, %c0_733] : memref<2x32xf32, #tpu.memory_space<vmem>>, vector<2x32xf32>
    tpu.vector_store %arg22[%c0_732, %c0_733], %1248 {strides = array<i32>} : memref<2x32xf32, #tpu.memory_space<vmem>>, vector<2x32xf32>,
    %c0_734 = arith.constant 0 : index
    %c0_735 = arith.constant 0 : index
    %1270 = vector.load %arg23[%c0_734, %c0_735] : memref<2x32xf32, #tpu.memory_space<vmem>>, vector<2x32xf32>
    tpu.vector_store %arg23[%c0_734, %c0_735], %1267 {strides = array<i32>} : memref<2x32xf32, #tpu.memory_space<vmem>>, vector<2x32xf32>,
    %c0_736 = arith.constant 0 : index
    %c0_737 = arith.constant 0 : index
    %1271 = vector.load %arg24[%c0_736, %c0_737] : memref<2x32xf32, #tpu.memory_space<vmem>>, vector<2x32xf32>
    tpu.vector_store %arg24[%c0_736, %c0_737], %1264 {strides = array<i32>} : memref<2x32xf32, #tpu.memory_space<vmem>>, vector<2x32xf32>,
    %c2_i32_738 = arith.constant 2 : i32
    %1272 = arith.muli %c5_i32_712, %c2_i32_738 : i32
    %1273 = arith.index_cast %1272 : i32 to index
    %c0_739 = arith.constant 0 : index
    %1274 = vector.load %arg19[%1273, %c0_739] : memref<16x32xf32, #tpu.memory_space<vmem>>, vector<2x32xf32>
    tpu.vector_store %arg19[%1273, %c0_739], %1251 {strides = array<i32>} : memref<16x32xf32, #tpu.memory_space<vmem>>, vector<2x32xf32>,
    %c2_i32_740 = arith.constant 2 : i32
    %1275 = arith.muli %1223, %c2_i32_740 : i32
    %1276 = arith.index_cast %1275 : i32 to index
    %c0_741 = arith.constant 0 : index
    %1277 = vector.load %arg20[%1276, %c0_741] : memref<16x32xf32, #tpu.memory_space<vmem>>, vector<2x32xf32>
    tpu.vector_store %arg20[%1276, %c0_741], %1267 {strides = array<i32>} : memref<16x32xf32, #tpu.memory_space<vmem>>, vector<2x32xf32>,
    %c6_i32_742 = arith.constant 6 : i32
    %c7_i32_743 = arith.constant 7 : i32
    %1278 = arith.subi %c7_i32_743, %c6_i32_742 : i32
    %c2_i32_744 = arith.constant 2 : i32
    %1279 = arith.muli %c6_i32_742, %c2_i32_744 : i32
    %1280 = arith.index_cast %1279 : i32 to index
    %c0_745 = arith.constant 0 : index
    %1281 = vector.load %arg17[%1280, %c0_745] : memref<16x128xf32, #tpu.memory_space<vmem>>, vector<2x128xf32>
    %c0_746 = arith.constant 0 : index
    %c0_747 = arith.constant 0 : index
    %1282 = vector.load %arg21[%c0_746, %c0_747] : memref<2x32xf32, #tpu.memory_space<vmem>>, vector<2x32xf32>
    %cst_748 = arith.constant dense<0.000000e+00> : vector<2x128xf32>
    %1283 = tpu.matmul %1282, %946, %cst_748 {dimension_numbers = #tpu.dot_dimension_numbers<[1], [0], [0], [1], [0, 0, 1, 1], [], []>} : vector<2x32xf32>, vector<32x128xf32>, vector<2x128xf32> -> vector<2x128xf32>
    %1284 = arith.addf %1281, %1283 : vector<2x128xf32>
    %c2_i32_749 = arith.constant 2 : i32
    %1285 = arith.muli %1278, %c2_i32_749 : i32
    %1286 = arith.index_cast %1285 : i32 to index
    %c0_750 = arith.constant 0 : index
    %1287 = vector.load %arg18[%1286, %c0_750] : memref<16x128xf32, #tpu.memory_space<vmem>>, vector<2x128xf32>
    %c0_751 = arith.constant 0 : index
    %c0_752 = arith.constant 0 : index
    %1288 = vector.load %arg23[%c0_751, %c0_752] : memref<2x32xf32, #tpu.memory_space<vmem>>, vector<2x32xf32>
    %cst_753 = arith.constant dense<0.000000e+00> : vector<2x128xf32>
    %1289 = tpu.matmul %1288, %947, %cst_753 {dimension_numbers = #tpu.dot_dimension_numbers<[1], [0], [0], [1], [0, 0, 1, 1], [], []>} : vector<2x32xf32>, vector<32x128xf32>, vector<2x128xf32> -> vector<2x128xf32>
    %1290 = arith.addf %1287, %1289 : vector<2x128xf32>
    %c0_754 = arith.constant 0 : index
    %c0_755 = arith.constant 0 : index
    %1291 = vector.load %arg22[%c0_754, %c0_755] : memref<2x32xf32, #tpu.memory_space<vmem>>, vector<2x32xf32>
    %1292 = arith.negf %1284 : vector<2x128xf32>
    %1293 = math.exp %1292 : vector<2x128xf32>
    %cst_756 = arith.constant 1.000000e+00 : f32
    %1294 = vector.broadcast %cst_756 : f32 to vector<2x128xf32>
    %1295 = arith.addf %1294, %1293 : vector<2x128xf32>
    %1296 = arith.divf %1294, %1295 : vector<2x128xf32>
    %1297 = math.tanh %1284 : vector<2x128xf32>
    %1298 = vector.extract_strided_slice %1296 {offsets = [0, 32], sizes = [2, 32], strides = [1, 1]} : vector<2x128xf32> to vector<2x32xf32>
    %1299 = arith.mulf %1298, %1291 : vector<2x32xf32>
    %1300 = vector.extract_strided_slice %1296 {offsets = [0, 0], sizes = [2, 32], strides = [1, 1]} : vector<2x128xf32> to vector<2x32xf32>
    %1301 = vector.extract_strided_slice %1297 {offsets = [0, 64], sizes = [2, 32], strides = [1, 1]} : vector<2x128xf32> to vector<2x32xf32>
    %1302 = arith.mulf %1300, %1301 : vector<2x32xf32>
    %1303 = arith.addf %1299, %1302 : vector<2x32xf32>
    %1304 = vector.extract_strided_slice %1296 {offsets = [0, 96], sizes = [2, 32], strides = [1, 1]} : vector<2x128xf32> to vector<2x32xf32>
    %1305 = math.tanh %1303 : vector<2x32xf32>
    %1306 = arith.mulf %1304, %1305 : vector<2x32xf32>
    %c0_757 = arith.constant 0 : index
    %c0_758 = arith.constant 0 : index
    %1307 = vector.load %arg24[%c0_757, %c0_758] : memref<2x32xf32, #tpu.memory_space<vmem>>, vector<2x32xf32>
    %1308 = arith.negf %1290 : vector<2x128xf32>
    %1309 = math.exp %1308 : vector<2x128xf32>
    %cst_759 = arith.constant 1.000000e+00 : f32
    %1310 = vector.broadcast %cst_759 : f32 to vector<2x128xf32>
    %1311 = arith.addf %1310, %1309 : vector<2x128xf32>
    %1312 = arith.divf %1310, %1311 : vector<2x128xf32>
    %1313 = math.tanh %1290 : vector<2x128xf32>
    %1314 = vector.extract_strided_slice %1312 {offsets = [0, 32], sizes = [2, 32], strides = [1, 1]} : vector<2x128xf32> to vector<2x32xf32>
    %1315 = arith.mulf %1314, %1307 : vector<2x32xf32>
    %1316 = vector.extract_strided_slice %1312 {offsets = [0, 0], sizes = [2, 32], strides = [1, 1]} : vector<2x128xf32> to vector<2x32xf32>
    %1317 = vector.extract_strided_slice %1313 {offsets = [0, 64], sizes = [2, 32], strides = [1, 1]} : vector<2x128xf32> to vector<2x32xf32>
    %1318 = arith.mulf %1316, %1317 : vector<2x32xf32>
    %1319 = arith.addf %1315, %1318 : vector<2x32xf32>
    %1320 = vector.extract_strided_slice %1312 {offsets = [0, 96], sizes = [2, 32], strides = [1, 1]} : vector<2x128xf32> to vector<2x32xf32>
    %1321 = math.tanh %1319 : vector<2x32xf32>
    %1322 = arith.mulf %1320, %1321 : vector<2x32xf32>
    %c0_760 = arith.constant 0 : index
    %c0_761 = arith.constant 0 : index
    %1323 = vector.load %arg21[%c0_760, %c0_761] : memref<2x32xf32, #tpu.memory_space<vmem>>, vector<2x32xf32>
    tpu.vector_store %arg21[%c0_760, %c0_761], %1306 {strides = array<i32>} : memref<2x32xf32, #tpu.memory_space<vmem>>, vector<2x32xf32>,
    %c0_762 = arith.constant 0 : index
    %c0_763 = arith.constant 0 : index
    %1324 = vector.load %arg22[%c0_762, %c0_763] : memref<2x32xf32, #tpu.memory_space<vmem>>, vector<2x32xf32>
    tpu.vector_store %arg22[%c0_762, %c0_763], %1303 {strides = array<i32>} : memref<2x32xf32, #tpu.memory_space<vmem>>, vector<2x32xf32>,
    %c0_764 = arith.constant 0 : index
    %c0_765 = arith.constant 0 : index
    %1325 = vector.load %arg23[%c0_764, %c0_765] : memref<2x32xf32, #tpu.memory_space<vmem>>, vector<2x32xf32>
    tpu.vector_store %arg23[%c0_764, %c0_765], %1322 {strides = array<i32>} : memref<2x32xf32, #tpu.memory_space<vmem>>, vector<2x32xf32>,
    %c0_766 = arith.constant 0 : index
    %c0_767 = arith.constant 0 : index
    %1326 = vector.load %arg24[%c0_766, %c0_767] : memref<2x32xf32, #tpu.memory_space<vmem>>, vector<2x32xf32>
    tpu.vector_store %arg24[%c0_766, %c0_767], %1319 {strides = array<i32>} : memref<2x32xf32, #tpu.memory_space<vmem>>, vector<2x32xf32>,
    %c2_i32_768 = arith.constant 2 : i32
    %1327 = arith.muli %c6_i32_742, %c2_i32_768 : i32
    %1328 = arith.index_cast %1327 : i32 to index
    %c0_769 = arith.constant 0 : index
    %1329 = vector.load %arg19[%1328, %c0_769] : memref<16x32xf32, #tpu.memory_space<vmem>>, vector<2x32xf32>
    tpu.vector_store %arg19[%1328, %c0_769], %1306 {strides = array<i32>} : memref<16x32xf32, #tpu.memory_space<vmem>>, vector<2x32xf32>,
    %c2_i32_770 = arith.constant 2 : i32
    %1330 = arith.muli %1278, %c2_i32_770 : i32
    %1331 = arith.index_cast %1330 : i32 to index
    %c0_771 = arith.constant 0 : index
    %1332 = vector.load %arg20[%1331, %c0_771] : memref<16x32xf32, #tpu.memory_space<vmem>>, vector<2x32xf32>
    tpu.vector_store %arg20[%1331, %c0_771], %1322 {strides = array<i32>} : memref<16x32xf32, #tpu.memory_space<vmem>>, vector<2x32xf32>,
    %c7_i32_772 = arith.constant 7 : i32
    %c7_i32_773 = arith.constant 7 : i32
    %1333 = arith.subi %c7_i32_773, %c7_i32_772 : i32
    %c2_i32_774 = arith.constant 2 : i32
    %1334 = arith.muli %c7_i32_772, %c2_i32_774 : i32
    %1335 = arith.index_cast %1334 : i32 to index
    %c0_775 = arith.constant 0 : index
    %1336 = vector.load %arg17[%1335, %c0_775] : memref<16x128xf32, #tpu.memory_space<vmem>>, vector<2x128xf32>
    %c0_776 = arith.constant 0 : index
    %c0_777 = arith.constant 0 : index
    %1337 = vector.load %arg21[%c0_776, %c0_777] : memref<2x32xf32, #tpu.memory_space<vmem>>, vector<2x32xf32>
    %cst_778 = arith.constant dense<0.000000e+00> : vector<2x128xf32>
    %1338 = tpu.matmul %1337, %946, %cst_778 {dimension_numbers = #tpu.dot_dimension_numbers<[1], [0], [0], [1], [0, 0, 1, 1], [], []>} : vector<2x32xf32>, vector<32x128xf32>, vector<2x128xf32> -> vector<2x128xf32>
    %1339 = arith.addf %1336, %1338 : vector<2x128xf32>
    %c2_i32_779 = arith.constant 2 : i32
    %1340 = arith.muli %1333, %c2_i32_779 : i32
    %1341 = arith.index_cast %1340 : i32 to index
    %c0_780 = arith.constant 0 : index
    %1342 = vector.load %arg18[%1341, %c0_780] : memref<16x128xf32, #tpu.memory_space<vmem>>, vector<2x128xf32>
    %c0_781 = arith.constant 0 : index
    %c0_782 = arith.constant 0 : index
    %1343 = vector.load %arg23[%c0_781, %c0_782] : memref<2x32xf32, #tpu.memory_space<vmem>>, vector<2x32xf32>
    %cst_783 = arith.constant dense<0.000000e+00> : vector<2x128xf32>
    %1344 = tpu.matmul %1343, %947, %cst_783 {dimension_numbers = #tpu.dot_dimension_numbers<[1], [0], [0], [1], [0, 0, 1, 1], [], []>} : vector<2x32xf32>, vector<32x128xf32>, vector<2x128xf32> -> vector<2x128xf32>
    %1345 = arith.addf %1342, %1344 : vector<2x128xf32>
    %c0_784 = arith.constant 0 : index
    %c0_785 = arith.constant 0 : index
    %1346 = vector.load %arg22[%c0_784, %c0_785] : memref<2x32xf32, #tpu.memory_space<vmem>>, vector<2x32xf32>
    %1347 = arith.negf %1339 : vector<2x128xf32>
    %1348 = math.exp %1347 : vector<2x128xf32>
    %cst_786 = arith.constant 1.000000e+00 : f32
    %1349 = vector.broadcast %cst_786 : f32 to vector<2x128xf32>
    %1350 = arith.addf %1349, %1348 : vector<2x128xf32>
    %1351 = arith.divf %1349, %1350 : vector<2x128xf32>
    %1352 = math.tanh %1339 : vector<2x128xf32>
    %1353 = vector.extract_strided_slice %1351 {offsets = [0, 32], sizes = [2, 32], strides = [1, 1]} : vector<2x128xf32> to vector<2x32xf32>
    %1354 = arith.mulf %1353, %1346 : vector<2x32xf32>
    %1355 = vector.extract_strided_slice %1351 {offsets = [0, 0], sizes = [2, 32], strides = [1, 1]} : vector<2x128xf32> to vector<2x32xf32>
    %1356 = vector.extract_strided_slice %1352 {offsets = [0, 64], sizes = [2, 32], strides = [1, 1]} : vector<2x128xf32> to vector<2x32xf32>
    %1357 = arith.mulf %1355, %1356 : vector<2x32xf32>
    %1358 = arith.addf %1354, %1357 : vector<2x32xf32>
    %1359 = vector.extract_strided_slice %1351 {offsets = [0, 96], sizes = [2, 32], strides = [1, 1]} : vector<2x128xf32> to vector<2x32xf32>
    %1360 = math.tanh %1358 : vector<2x32xf32>
    %1361 = arith.mulf %1359, %1360 : vector<2x32xf32>
    %c0_787 = arith.constant 0 : index
    %c0_788 = arith.constant 0 : index
    %1362 = vector.load %arg24[%c0_787, %c0_788] : memref<2x32xf32, #tpu.memory_space<vmem>>, vector<2x32xf32>
    %1363 = arith.negf %1345 : vector<2x128xf32>
    %1364 = math.exp %1363 : vector<2x128xf32>
    %cst_789 = arith.constant 1.000000e+00 : f32
    %1365 = vector.broadcast %cst_789 : f32 to vector<2x128xf32>
    %1366 = arith.addf %1365, %1364 : vector<2x128xf32>
    %1367 = arith.divf %1365, %1366 : vector<2x128xf32>
    %1368 = math.tanh %1345 : vector<2x128xf32>
    %1369 = vector.extract_strided_slice %1367 {offsets = [0, 32], sizes = [2, 32], strides = [1, 1]} : vector<2x128xf32> to vector<2x32xf32>
    %1370 = arith.mulf %1369, %1362 : vector<2x32xf32>
    %1371 = vector.extract_strided_slice %1367 {offsets = [0, 0], sizes = [2, 32], strides = [1, 1]} : vector<2x128xf32> to vector<2x32xf32>
    %1372 = vector.extract_strided_slice %1368 {offsets = [0, 64], sizes = [2, 32], strides = [1, 1]} : vector<2x128xf32> to vector<2x32xf32>
    %1373 = arith.mulf %1371, %1372 : vector<2x32xf32>
    %1374 = arith.addf %1370, %1373 : vector<2x32xf32>
    %1375 = vector.extract_strided_slice %1367 {offsets = [0, 96], sizes = [2, 32], strides = [1, 1]} : vector<2x128xf32> to vector<2x32xf32>
    %1376 = math.tanh %1374 : vector<2x32xf32>
    %1377 = arith.mulf %1375, %1376 : vector<2x32xf32>
    %c0_790 = arith.constant 0 : index
    %c0_791 = arith.constant 0 : index
    %1378 = vector.load %arg21[%c0_790, %c0_791] : memref<2x32xf32, #tpu.memory_space<vmem>>, vector<2x32xf32>
    tpu.vector_store %arg21[%c0_790, %c0_791], %1361 {strides = array<i32>} : memref<2x32xf32, #tpu.memory_space<vmem>>, vector<2x32xf32>,
    %c0_792 = arith.constant 0 : index
    %c0_793 = arith.constant 0 : index
    %1379 = vector.load %arg22[%c0_792, %c0_793] : memref<2x32xf32, #tpu.memory_space<vmem>>, vector<2x32xf32>
    tpu.vector_store %arg22[%c0_792, %c0_793], %1358 {strides = array<i32>} : memref<2x32xf32, #tpu.memory_space<vmem>>, vector<2x32xf32>,
    %c0_794 = arith.constant 0 : index
    %c0_795 = arith.constant 0 : index
    %1380 = vector.load %arg23[%c0_794, %c0_795] : memref<2x32xf32, #tpu.memory_space<vmem>>, vector<2x32xf32>
    tpu.vector_store %arg23[%c0_794, %c0_795], %1377 {strides = array<i32>} : memref<2x32xf32, #tpu.memory_space<vmem>>, vector<2x32xf32>,
    %c0_796 = arith.constant 0 : index
    %c0_797 = arith.constant 0 : index
    %1381 = vector.load %arg24[%c0_796, %c0_797] : memref<2x32xf32, #tpu.memory_space<vmem>>, vector<2x32xf32>
    tpu.vector_store %arg24[%c0_796, %c0_797], %1374 {strides = array<i32>} : memref<2x32xf32, #tpu.memory_space<vmem>>, vector<2x32xf32>,
    %c2_i32_798 = arith.constant 2 : i32
    %1382 = arith.muli %c7_i32_772, %c2_i32_798 : i32
    %1383 = arith.index_cast %1382 : i32 to index
    %c0_799 = arith.constant 0 : index
    %1384 = vector.load %arg19[%1383, %c0_799] : memref<16x32xf32, #tpu.memory_space<vmem>>, vector<2x32xf32>
    tpu.vector_store %arg19[%1383, %c0_799], %1361 {strides = array<i32>} : memref<16x32xf32, #tpu.memory_space<vmem>>, vector<2x32xf32>,
    %c2_i32_800 = arith.constant 2 : i32
    %1385 = arith.muli %1333, %c2_i32_800 : i32
    %1386 = arith.index_cast %1385 : i32 to index
    %c0_801 = arith.constant 0 : index
    %1387 = vector.load %arg20[%1386, %c0_801] : memref<16x32xf32, #tpu.memory_space<vmem>>, vector<2x32xf32>
    tpu.vector_store %arg20[%1386, %c0_801], %1377 {strides = array<i32>} : memref<16x32xf32, #tpu.memory_space<vmem>>, vector<2x32xf32>,
    %c8_i32_802 = arith.constant 8 : i32
    %c0_803 = arith.constant 0 : index
    %c0_804 = arith.constant 0 : index
    %1388 = vector.load %arg19[%c0_803, %c0_804] : memref<16x32xf32, #tpu.memory_space<vmem>>, vector<16x32xf32>
    %c0_805 = arith.constant 0 : index
    %c0_806 = arith.constant 0 : index
    %1389 = vector.load %arg14[%c0_805, %c0_806] : memref<64x128xf32, #tpu.memory_space<vmem>>, vector<32x128xf32>
    %cst_807 = arith.constant dense<0.000000e+00> : vector<16x128xf32>
    %1390 = tpu.matmul %1388, %1389, %cst_807 {dimension_numbers = #tpu.dot_dimension_numbers<[1], [0], [0], [1], [0, 0, 1, 1], [], []>} : vector<16x32xf32>, vector<32x128xf32>, vector<16x128xf32> -> vector<16x128xf32>
    %c0_808 = arith.constant 0 : index
    %c0_809 = arith.constant 0 : index
    %1391 = vector.load %arg20[%c0_808, %c0_809] : memref<16x32xf32, #tpu.memory_space<vmem>>, vector<16x32xf32>
    %c32_810 = arith.constant 32 : index
    %c0_811 = arith.constant 0 : index
    %1392 = vector.load %arg14[%c32_810, %c0_811] : memref<64x128xf32, #tpu.memory_space<vmem>>, vector<32x128xf32>
    %cst_812 = arith.constant dense<0.000000e+00> : vector<16x128xf32>
    %1393 = tpu.matmul %1391, %1392, %cst_812 {dimension_numbers = #tpu.dot_dimension_numbers<[1], [0], [0], [1], [0, 0, 1, 1], [], []>} : vector<16x32xf32>, vector<32x128xf32>, vector<16x128xf32> -> vector<16x128xf32>
    %1394 = arith.addf %1390, %1393 : vector<16x128xf32>
    %c0_813 = arith.constant 0 : index
    %c0_814 = arith.constant 0 : index
    %1395 = vector.load %arg15[%c0_813, %c0_814] : memref<1x128xf32, #tpu.memory_space<vmem>>, vector<1x128xf32>
    %1396 = vector.broadcast %1395 : vector<1x128xf32> to vector<16x128xf32>
    %1397 = arith.addf %1394, %1396 : vector<16x128xf32>
    %cst_815 = arith.constant 0.000000e+00 : f32
    %1398 = vector.broadcast %cst_815 : f32 to vector<16x128xf32>
    %1399 = arith.maximumf %1397, %1398 : vector<16x128xf32>
    %c0_816 = arith.constant 0 : index
    %c0_817 = arith.constant 0 : index
    %1400 = vector.load %arg16[%c0_816, %c0_817] : memref<16x128xf32, #tpu.memory_space<vmem>>, vector<16x128xf32>
    tpu.vector_store %arg16[%c0_816, %c0_817], %1399 {strides = array<i32>} : memref<16x128xf32, #tpu.memory_space<vmem>>, vector<16x128xf32>,
    return
  }
}

</mosaic_0001>

<bundles_post_ra>
// kernel: tpu_custom_call.1
= control target key start
LH: loop header
LB: loop body
LE: loop exit
PB: predicated region body
PF: predicated region fallthrough
CT: control target
= control target key end

     0   :  { %s9715_s0 = inlined_call_operand.hbm [shape: f32[16,16], index: 0, kind: input, shape index: {}]   ;;  %s9716_s1 = inlined_call_operand.hbm [shape: f32[16,64], index: 1, kind: input, shape index: {}]   ;;  %s9717_s2 = inlined_call_operand.hbm [shape: f32[16,256], index: 2, kind: input, shape index: {}]   ;;  %s9718_s3 = inlined_call_operand.hbm [shape: f32[32,128], index: 3, kind: input, shape index: {}]   ;;  %s9719_s4 = inlined_call_operand.hbm [shape: f32[32,128], index: 4, kind: input, shape index: {}]   ;;  %s9720_s5 = inlined_call_operand.vmem [shape: f32[1,256], index: 5, kind: input, shape index: {}]   ;;  %s9721_s6 = inlined_call_operand.hbm [shape: f32[64,256], index: 6, kind: input, shape index: {}]   ;;  %s9722_s7 = inlined_call_operand.hbm [shape: f32[32,128], index: 7, kind: input, shape index: {}]   ;;  %s9723_s8 = inlined_call_operand.hbm [shape: f32[32,128], index: 8, kind: input, shape index: {}]   ;;  %s9724_s9 = inlined_call_operand.vmem [shape: f32[1,256], index: 9, kind: input, shape index: {}]   ;;  %s9725_s10 = inlined_call_operand.hbm [shape: f32[64,256], index: 10, kind: input, shape index: {}]   ;;  %s9726_s11 = inlined_call_operand.vmem [shape: f32[32,128], index: 11, kind: input, shape index: {}]   ;;  %s9727_s12 = inlined_call_operand.hbm [shape: f32[32,128], index: 12, kind: input, shape index: {}]   ;;  %s9728_s13 = inlined_call_operand.vmem [shape: f32[1,256], index: 13, kind: input, shape index: {}]   ;;  %s9729_s14 = inlined_call_operand.hbm [shape: f32[64,128], index: 14, kind: input, shape index: {}]   ;;  %s9730_s15 = inlined_call_operand.vmem [shape: f32[1,128], index: 15, kind: input, shape index: {}]   ;;  %s9731_s16 = inlined_call_operand.hbm [shape: f32[16,128], index: 16, kind: output, shape index: {}]  }
   0x1   :  { %9733 = sst [smem:[#allocation36_spill]] %s9715_s0 }
   0x2   :  { %21 = vsyncpa [#allocation11], 0 }
   0x3   :  { %22 = vsyncpa [#allocation14], 0 }
   0x4   :  { %23 = vsyncpa [#allocation17], 0 }
   0x5   :  { %24 = vsyncpa [#allocation20], 0 }
   0x6   :  { %25 = vsyncpa [#allocation23], 0 }
   0x7   :  { %26 = vsyncpa [#allocation26], 0 }
   0x8   :  { %27 = vsyncpa [#allocation12], 0  ;;  %s8505_s21 = smov [#allocation13]   ;;  %s8506_s23 = smov [#allocation16]  }
   0x9   :  { %s45_s22 = sshll.u32 %s8505_s21, 4  ;;  %s69_s24 = sshll.u32 %s8506_s23, 4  ;;  %s46_s22 = int_to_ptr.vmem [resolvable:$true] %s45_s22  ;;  %s8612_s24 = int_to_ptr.vmem [resolvable:$true] %s69_s24 }
   0xa   :  { %s8227_s27 = scalar_lea.hbm %s9716_s1, 256 }
   0xb   :  { %p8228_p0 = scmp.ne.s32.totalorder %s9716_s1, %s8227_s27  ;;  %p8231_p1 = scmp.lt.u32.totalorder %s8227_s27, %s9716_s1 }
   0xd   :  { %p8233_p2 = pnand %p8231_p1, %p8228_p0 }
   0xf   :  { %8236 = shalt.err (!%p8233_p2)
}
  0x10   :  { %s8237_s17 = scalar_lea.vmem %s46_s22, 256  ;;  %p8242_p4 = scmp.lt.s32.totalorder %s46_s22, %s46_s22 }
  0x11   :  { %p8238_p3 = scmp.ne.s32.totalorder %s46_s22, %s8237_s17  ;;  %p8243_p5 = scmp.lt.s32.totalorder %s8237_s17, %s8237_s17 }
  0x13   :  { %p8244_p6 = por %p8243_p5, %p8242_p4 }
  0x15   :  { %p8245_p7 = pnand %p8244_p6, %p8238_p3 }
  0x17   :  { %8248 = shalt.err (!%p8245_p7)
}
  0x18   :  { %s8507_s18 = smov 128   ;;  %s8508_s19 = smov 8  }
  0x19   :  { %51 = dma.hbm_to_vmem [thread:$0]  %s9716_s1, 256, %s46_s22, [#allocation14], %s8507_s18, %s8507_s18, %s8508_s19  }
  0x1a   :  { %s8249_s26 = scalar_lea.hbm %s9718_s3, 512 }
  0x1b   :  { %p8250_p8 = scmp.ne.s32.totalorder %s9718_s3, %s8249_s26  ;;  %p8253_p9 = scmp.lt.u32.totalorder %s8249_s26, %s9718_s3 }
  0x1d   :  { %p8255_p10 = pnand %p8253_p9, %p8250_p8 }
  0x1f   :  { %8258 = shalt.err (!%p8255_p10)
}
  0x20   :  { %s8259_s0 = scalar_lea.vmem %s8612_s24, 512  ;;  %p8264_p12 = scmp.lt.s32.totalorder %s8612_s24, %s8612_s24 }
  0x21   :  { %p8260_p11 = scmp.ne.s32.totalorder %s8612_s24, %s8259_s0  ;;  %p8265_p13 = scmp.lt.s32.totalorder %s8259_s0, %s8259_s0 }
  0x23   :  { %p8266_p0 = por %p8265_p13, %p8264_p12 }
  0x25   :  { %p8267_p1 = pnand %p8266_p0, %p8260_p11 }
  0x27   :  { %8270 = shalt.err (!%p8267_p1)
}
  0x28   :  { %75 = dma.hbm_to_vmem [thread:$0]  %s9718_s3, 512, %s8612_s24, [#allocation17], %s8507_s18, %s8507_s18, %s8508_s19  }
  0x29   :  { %s8509_s17 = smov [#allocation19]   ;;  %s8510_s21 = smov [#allocation22]  }
  0x2a   :  { %s95_s20 = sshll.u32 %s8509_s17, 4  ;;  %s119_s23 = sshll.u32 %s8510_s21, 4  ;;  %s96_s20 = int_to_ptr.vmem [resolvable:$true] %s95_s20  ;;  %s8649_s23 = int_to_ptr.vmem [resolvable:$true] %s119_s23 }
  0x2b   :  { %s8271_s27 = scalar_lea.hbm %s9721_s6, 2048 }
  0x2c   :  { %p8272_p2 = scmp.ne.s32.totalorder %s9721_s6, %s8271_s27  ;;  %p8275_p3 = scmp.lt.u32.totalorder %s8271_s27, %s9721_s6 }
  0x2e   :  { %p8277_p4 = pnand %p8275_p3, %p8272_p2 }
  0x30   :  { %8280 = shalt.err (!%p8277_p4)
}
  0x31   :  { %s8281_s3 = scalar_lea.vmem %s96_s20, 2048  ;;  %p8286_p6 = scmp.lt.s32.totalorder %s96_s20, %s96_s20 }
  0x32   :  { %p8282_p5 = scmp.ne.s32.totalorder %s96_s20, %s8281_s3  ;;  %p8287_p7 = scmp.lt.s32.totalorder %s8281_s3, %s8281_s3 }
  0x34   :  { %p8288_p8 = por %p8287_p7, %p8286_p6 }
  0x36   :  { %p8289_p9 = pnand %p8288_p8, %p8282_p5 }
  0x38   :  { %8292 = shalt.err (!%p8289_p9)
}
  0x39   :  { %s8511_s24 = smov 256   ;;  %s8512_s1 = smov 16  }
  0x3a   :  { %101 = dma.hbm_to_vmem [thread:$0]  %s9721_s6, 2048, %s96_s20, [#allocation20], %s8511_s24, %s8511_s24, %s8512_s1  }
  0x3b   :  { %s8293_s26 = scalar_lea.hbm %s9723_s8, 512 }
  0x3c   :  { %p8294_p10 = scmp.ne.s32.totalorder %s9723_s8, %s8293_s26  ;;  %p8297_p11 = scmp.lt.u32.totalorder %s8293_s26, %s9723_s8 }
  0x3e   :  { %p8299_p12 = pnand %p8297_p11, %p8294_p10 }
  0x40   :  { %8302 = shalt.err (!%p8299_p12)
}
  0x41   :  { %s8303_s0 = scalar_lea.vmem %s8649_s23, 512  ;;  %p8308_p0 = scmp.lt.s32.totalorder %s8649_s23, %s8649_s23 }
  0x42   :  { %p8304_p13 = scmp.ne.s32.totalorder %s8649_s23, %s8303_s0  ;;  %p8309_p1 = scmp.lt.s32.totalorder %s8303_s0, %s8303_s0 }
  0x44   :  { %p8310_p2 = por %p8309_p1, %p8308_p0 }
  0x46   :  { %p8311_p3 = pnand %p8310_p2, %p8304_p13 }
  0x48   :  { %8314 = shalt.err (!%p8311_p3)
}
  0x49   :  { %125 = dma.hbm_to_vmem [thread:$0]  %s9723_s8, 512, %s8649_s23, [#allocation23], %s8507_s18, %s8507_s18, %s8508_s19  }
  0x4a   :  { %s8513_s3 = smov [#allocation25]   ;;  %s8514_s17 = smov [#allocation10]  }
  0x4b   :  { %s147_s22 = sshll.u32 %s8513_s3, 4  ;;  %s33_s21 = sshll.u32 %s8514_s17, 4  ;;  %s148_s22 = int_to_ptr.vmem [resolvable:$true] %s147_s22  ;;  %s8686_s21 = int_to_ptr.vmem [resolvable:$true] %s33_s21 }
  0x4c   :  { %s8315_s27 = scalar_lea.hbm %s9727_s12, 512 }
  0x4d   :  { %p8316_p4 = scmp.ne.s32.totalorder %s9727_s12, %s8315_s27  ;;  %p8319_p5 = scmp.lt.u32.totalorder %s8315_s27, %s9727_s12 }
  0x4f   :  { %p8321_p6 = pnand %p8319_p5, %p8316_p4 }
  0x51   :  { %8324 = shalt.err (!%p8321_p6)
}
  0x52   :  { %s8325_s8 = scalar_lea.vmem %s148_s22, 512  ;;  %p8330_p8 = scmp.lt.s32.totalorder %s148_s22, %s148_s22 }
  0x53   :  { %p8326_p7 = scmp.ne.s32.totalorder %s148_s22, %s8325_s8  ;;  %p8331_p9 = scmp.lt.s32.totalorder %s8325_s8, %s8325_s8 }
  0x55   :  { %p8332_p10 = por %p8331_p9, %p8330_p8 }
  0x57   :  { %p8333_p11 = pnand %p8332_p10, %p8326_p7 }
  0x59   :  { %8336 = shalt.err (!%p8333_p11)
}
  0x5a   :  { %153 = dma.hbm_to_vmem [thread:$0]  %s9727_s12, 512, %s148_s22, [#allocation26], %s8507_s18, %s8507_s18, %s8508_s19  }
  0x5b   :  { %s9734_s17 = sld [smem:[#allocation36_spill]] }
  0x61   :  { %s8337_s25 = scalar_lea.hbm %s9734_s17, 256 }
  0x62   :  { %p8338_p12 = scmp.ne.s32.totalorder %s9734_s17, %s8337_s25  ;;  %p8341_p13 = scmp.lt.u32.totalorder %s8337_s25, %s9734_s17 }
  0x64   :  { %p8343_p0 = pnand %p8341_p13, %p8338_p12 }
  0x66   :  { %8346 = shalt.err (!%p8343_p0)
}
  0x67   :  { %s8347_s30 = scalar_lea.vmem %s8686_s21, 256  ;;  %p8352_p2 = scmp.lt.s32.totalorder %s8686_s21, %s8686_s21 }
  0x68   :  { %p8348_p1 = scmp.ne.s32.totalorder %s8686_s21, %s8347_s30  ;;  %p8353_p3 = scmp.lt.s32.totalorder %s8347_s30, %s8347_s30 }
  0x6a   :  { %p8354_p4 = por %p8353_p3, %p8352_p2 }
  0x6c   :  { %p8355_p5 = pnand %p8354_p4, %p8348_p1 }
  0x6e   :  { %8358 = shalt.err (!%p8355_p5)
}
  0x6f   :  { %39 = dma.hbm_to_vmem [thread:$0]  %s9734_s17, 256, %s8686_s21, [#allocation11], %s8507_s18, %s8507_s18, %s8508_s19  }
  0x70   :  { %s8515_s0 = smov [#allocation15]   ;;  %s8516_s23 = smov [#allocation18]  }
  0x71   :  { %s57_s8 = sshll.u32 %s8515_s0, 4  ;;  %s81_s6 = sshll.u32 %s8516_s23, 4  ;;  %s58_s8 = int_to_ptr.vmem [resolvable:$true] %s57_s8  ;;  %s8723_s6 = int_to_ptr.vmem [resolvable:$true] %s81_s6 }
  0x72   :  { %s8359_s25 = scalar_lea.hbm %s9717_s2, 512 }
  0x73   :  { %p8360_p6 = scmp.ne.s32.totalorder %s9717_s2, %s8359_s25  ;;  %p8363_p7 = scmp.lt.u32.totalorder %s8359_s25, %s9717_s2 }
  0x75   :  { %p8365_p8 = pnand %p8363_p7, %p8360_p6 }
  0x77   :  { %8368 = shalt.err (!%p8365_p8)
}
  0x78   :  { %s8369_s21 = scalar_lea.vmem %s58_s8, 512  ;;  %p8374_p10 = scmp.lt.s32.totalorder %s58_s8, %s58_s8 }
  0x79   :  { %p8370_p9 = scmp.ne.s32.totalorder %s58_s8, %s8369_s21  ;;  %p8375_p11 = scmp.lt.s32.totalorder %s8369_s21, %s8369_s21 }
  0x7b   :  { %p8376_p12 = por %p8375_p11, %p8374_p10 }
  0x7d   :  { %p8377_p13 = pnand %p8376_p12, %p8370_p9 }
  0x7f   :  { %8380 = shalt.err (!%p8377_p13)
}
  0x80   :  { %63 = dma.hbm_to_vmem [thread:$0]  %s9717_s2, 512, %s58_s8, [#allocation14], %s8511_s24, %s8511_s24, %s8512_s1  }
  0x81   :  { %s8381_s0 = scalar_lea.hbm %s9719_s4, 512 }
  0x82   :  { %p8382_p0 = scmp.ne.s32.totalorder %s9719_s4, %s8381_s0  ;;  %p8385_p1 = scmp.lt.u32.totalorder %s8381_s0, %s9719_s4 }
  0x84   :  { %p8387_p2 = pnand %p8385_p1, %p8382_p0 }
  0x86   :  { %8390 = shalt.err (!%p8387_p2)
}
  0x87   :  { %s8391_s26 = scalar_lea.vmem %s8723_s6, 512  ;;  %p8396_p4 = scmp.lt.s32.totalorder %s8723_s6, %s8723_s6 }
  0x88   :  { %p8392_p3 = scmp.ne.s32.totalorder %s8723_s6, %s8391_s26  ;;  %p8397_p5 = scmp.lt.s32.totalorder %s8391_s26, %s8391_s26 }
  0x8a   :  { %p8398_p6 = por %p8397_p5, %p8396_p4 }
  0x8c   :  { %p8399_p7 = pnand %p8398_p6, %p8392_p3 }
  0x8e   :  { %8402 = shalt.err (!%p8399_p7)
}
  0x8f   :  { %87 = dma.hbm_to_vmem [thread:$0]  %s9719_s4, 512, %s8723_s6, [#allocation17], %s8507_s18, %s8507_s18, %s8508_s19  }
  0x90   :  { %s8517_s27 = smov [#allocation21]   ;;  %s8518_s29 = smov [#allocation24]  }
  0x91   :  { %s107_s28 = sshll.u32 %s8517_s27, 4  ;;  %s133_s21 = sshll.u32 %s8518_s29, 4  ;;  %s108_s28 = int_to_ptr.vmem [resolvable:$true] %s107_s28  ;;  %s8760_s21 = int_to_ptr.vmem [resolvable:$true] %s133_s21 }
  0x92   :  { %s8403_s12 = scalar_lea.hbm %s9722_s7, 512 }
  0x93   :  { %p8404_p8 = scmp.ne.s32.totalorder %s9722_s7, %s8403_s12  ;;  %p8407_p9 = scmp.lt.u32.totalorder %s8403_s12, %s9722_s7 }
  0x95   :  { %p8409_p10 = pnand %p8407_p9, %p8404_p8 }
  0x97   :  { %8412 = shalt.err (!%p8409_p10)
}
  0x98   :  { %s8413_s4 = scalar_lea.vmem %s108_s28, 512  ;;  %p8418_p12 = scmp.lt.s32.totalorder %s108_s28, %s108_s28 }
  0x99   :  { %p8414_p11 = scmp.ne.s32.totalorder %s108_s28, %s8413_s4  ;;  %p8419_p13 = scmp.lt.s32.totalorder %s8413_s4, %s8413_s4 }
  0x9b   :  { %p8420_p0 = por %p8419_p13, %p8418_p12 }
  0x9d   :  { %p8421_p1 = pnand %p8420_p0, %p8414_p11 }
  0x9f   :  { %8424 = shalt.err (!%p8421_p1)
}
  0xa0   :  { %113 = dma.hbm_to_vmem [thread:$0]  %s9722_s7, 512, %s108_s28, [#allocation20], %s8507_s18, %s8507_s18, %s8508_s19  }
  0xa1   :  { %s8425_s2 = scalar_lea.hbm %s9725_s10, 2048 }
  0xa2   :  { %p8426_p2 = scmp.ne.s32.totalorder %s9725_s10, %s8425_s2  ;;  %p8429_p3 = scmp.lt.u32.totalorder %s8425_s2, %s9725_s10 }
  0xa4   :  { %p8431_p4 = pnand %p8429_p3, %p8426_p2 }
  0xa6   :  { %8434 = shalt.err (!%p8431_p4)
}
  0xa7   :  { %s8435_s30 = scalar_lea.vmem %s8760_s21, 2048  ;;  %p8440_p6 = scmp.lt.s32.totalorder %s8760_s21, %s8760_s21 }
  0xa8   :  { %p8436_p5 = scmp.ne.s32.totalorder %s8760_s21, %s8435_s30  ;;  %p8441_p7 = scmp.lt.s32.totalorder %s8435_s30, %s8435_s30 }
  0xaa   :  { %p8442_p8 = por %p8441_p7, %p8440_p6 }
  0xac   :  { %p8443_p9 = pnand %p8442_p8, %p8436_p5 }
  0xae   :  { %8446 = shalt.err (!%p8443_p9)
}
  0xaf   :  { %139 = dma.hbm_to_vmem [thread:$0]  %s9725_s10, 2048, %s8760_s21, [#allocation23], %s8511_s24, %s8511_s24, %s8512_s1  }
  0xb0   :  { %s8519_s12 = smov [#allocation27]   ;;  %s8447_s20 = scalar_lea.hbm %s9729_s14, 1024 }
  0xb1   :  { %s161_s22 = sshll.u32 %s8519_s12, 4  ;;  %p8448_p10 = scmp.ne.s32.totalorder %s9729_s14, %s8447_s20  ;;  %s162_s22 = int_to_ptr.vmem [resolvable:$true] %s161_s22 }
  0xb2   :  { %p8451_p11 = scmp.lt.u32.totalorder %s8447_s20, %s9729_s14 }
  0xb4   :  { %p8453_p12 = pnand %p8451_p11, %p8448_p10 }
  0xb6   :  { %8456 = shalt.err (!%p8453_p12)
}
  0xb7   :  { %s8457_s26 = scalar_lea.vmem %s162_s22, 1024  ;;  %p8462_p0 = scmp.lt.s32.totalorder %s162_s22, %s162_s22 }
  0xb8   :  { %p8458_p13 = scmp.ne.s32.totalorder %s162_s22, %s8457_s26  ;;  %p8463_p1 = scmp.lt.s32.totalorder %s8457_s26, %s8457_s26 }
  0xba   :  { %p8464_p2 = por %p8463_p1, %p8462_p0 }
  0xbc   :  { %p8465_p3 = pnand %p8464_p2, %p8458_p13 }
  0xbe   :  { %8468 = shalt.err (!%p8465_p3)
}
  0xbf   :  { %167 = dma.hbm_to_vmem [thread:$0]  %s9729_s14, 1024, %s162_s22, [#allocation26], %s8507_s18, %s8507_s18, %s8508_s19  }
  0xc0   :  { %8491 = dma.done.wait [#allocation11], 256  }
  0xc1   :  { %8492 = vsyncadd [#allocation11], 4294967040 }
  0xc2   :  { %8493 = dma.done.wait [#allocation14], 768  }
  0xc3   :  { %8494 = vsyncadd [#allocation14], 4294966528 }
  0xc4   :  { %8495 = dma.done.wait [#allocation17], 1024  }
  0xc5   :  { %8496 = vsyncadd [#allocation17], 4294966272 }
  0xc6   :  { %8497 = dma.done.wait [#allocation20], 2560  }
  0xc7   :  { %8498 = vsyncadd [#allocation20], 4294964736 }
  0xc8   :  { %8499 = dma.done.wait [#allocation23], 2560  }
  0xc9   :  { %8500 = vsyncadd [#allocation23], 4294964736 }
  0xca   :  { %8501 = dma.done.wait [#allocation26], 1536  }
  0xcb   :  { %8502 = vsyncadd [#allocation26], 4294965760  ;;  %v8520_v0 = vmov 0.0   ;;  %vm309_vm0 = vcmask 254976   ;;  %v8521_v1 = vmov 0.0|0.0   ;;  %vm8522_vm1 = vmmov 0  }
  0xcc   :  { %292 = vmatprep.mubr.f32.mxu0 %v8520_v0  ;;  %7487 = vmatprep.subr.bf16.mxu1 %v8521_v1  ;;  %310 = vst.msk [vmem:[#allocation6] sm:$0x3] %vm309_vm0, %v8520_v0  ;;  %311 = vst.msk [vmem:[#allocation7] sm:$0x3] %vm309_vm0, %v8520_v0  ;;  %v206_v2 = vld [vmem:[#allocation15 + $0x8] sm:$0xff]  ;;  %v208_v3 = vld [vmem:[#allocation15 + $0x18] sm:$0xff]  ;;  %v211_v25 = vlaneseq }
  0xcd   :  { %312 = vst.msk [vmem:[#allocation8] sm:$0x3] %vm309_vm0, %v8520_v0  ;;  %313 = vst.msk [vmem:[#allocation9] sm:$0x3] %vm309_vm0, %v8520_v0  ;;  %6951 = vmatprep.mubr.msk.f32.mxu1 %vm8522_vm1, %v8520_v0  ;;  %v205_v4 = vld [vmem:[#allocation15] sm:$0xff]  ;;  %v7471_v5 = vpack.c.bf16 %v208_v3, %v206_v2  ;;  %v207_v6 = vld [vmem:[#allocation15 + $0x10] sm:$0xff] }
  0xce   :  { %v314_v7 = vld [vmem:[#allocation16] sm:$0xff]  ;;  %v7473_v8 = vpack.c.bf16 %v207_v6, %v205_v4  ;;  %v315_v9 = vld [vmem:[#allocation16 + $0x8] sm:$0xff]  ;;  %vm221_vm2 = vcmask 130048   ;;  %v316_v12 = vld [vmem:[#allocation16 + $0x10] sm:$0xff]  ;;  %s8523_s14 = smov 32   ;;  %vm324_vm3 = vcmask 261120  }
  0xcf   :  { %7472 = vmatprep.subr.bf16.mxu0 %v7471_v5  ;;  %v8824_v10 = vpack.c.bf16 %v315_v9, %v314_v7  ;;  %v203_v11 = vld [vmem:[#allocation10] sm:$0xff]  ;;  %v317_v13 = vld [vmem:[#allocation16 + $0x18] sm:$0xff]  ;;  %v204_v16 = vld [vmem:[#allocation10 + $0x8] sm:$0xff]  ;;  %v212_v26 = vshrl.u32 %v211_v25, 7  ;;  %s8525_s2 = smov 96   ;;  %s8526_s20 = smov [#allocation28]  }
  0xd0   :  { %7474 = vmatpush1.bf16.msra.mxu0 %v7473_v8  ;;  %v8831_v15 = vpack.c.bf16 %v317_v13, %v316_v12  ;;  %v318_v17 = vld [vmem:[#allocation18] sm:$0xff]  ;;  %v319_v18 = vld [vmem:[#allocation18 + $0x8] sm:$0xff]  ;;  %v320_v21 = vld [vmem:[#allocation18 + $0x10] sm:$0xff]  ;;  %s6541_s4 = sshll.u32 %s8526_s20, 4  ;;  %s6542_s4 = int_to_ptr.vmem [resolvable:$true] %s6541_s4 }
  0xd1   :  { %7475 = vmatprep.subr.bf16.mxu0 %v8521_v1  ;;  %7489 = vmatpush3.bf16.msra.mxu1 %v8824_v10  ;;  %v8842_v20 = vpack.c.bf16 %v319_v18, %v318_v17  ;;  %v321_v22 = vld [vmem:[#allocation18 + $0x18] sm:$0xff]  ;;  %v8861_v27 = vsub.s32 0, %v212_v26  ;;  %v8866_v29 = vsub.s32 1, %v212_v26  ;;  %s8469_s6 = scalar_lea.vmem %s6542_s4, 256  ;;  %p8474_p5 = scmp.lt.s32.totalorder %s6542_s4, %s6542_s4 }
  0xd2   :  { %7490 = vmatprep.subr.bf16.mxu1 %v8521_v1  ;;  %v8847_v23 = vpack.c.bf16 %v321_v22, %v320_v21  ;;  %v209_v28 = vld [vmem:[%s9720_s5] sm:$0x3]  ;;  %s8524_s5 = smov 64   ;;  %p8470_p4 = scmp.ne.s32.totalorder %s6542_s4, %s8469_s6 }
  0xd3   :  { %6558 = vmatmul.mubr.msk.f32.vlgmr.msra.gmra.mrb[0].mxu0 %vm221_vm2, %v203_v11  ;;  %v323_v19 = vld [vmem:[#allocation6] sm:$0x3]  ;;  %v214_v30 = vrot.slane %v209_v28, %v8861_v27  ;;  %v218_v31 = vrot.slane %v209_v28, %v8866_v29  ;;  %v475_v50 = vld [vmem:[#allocation7] sm:$0x3]  ;;  %p8475_p6 = scmp.lt.s32.totalorder %s8469_s6, %s8469_s6 }
  0xd4   :  { %v504_v14 = vld [vmem:[#allocation9] sm:$0x3]  ;;  %7477 = vmatpush3.bf16.msra.mxu0 %v8824_v10  ;;  %298 = vmatprep.mubr.f32.mxu0 %v8520_v0  ;;  %v400_v24 = vld [vmem:[#allocation8] sm:$0x3] }
  0xd5   :  { %513 = vrot.lane.b32.xlu1 %v504_v14, %s8523_s14  ;;  %7478 = vmatprep.subr.bf16.mxu0 %v8521_v1  ;;  %p8476_p7 = por %p8475_p6, %p8474_p5 }
  0xd6   :  { %7492 = vmatpush3.bf16.msra.mxu1 %v8831_v15 }
  0xd7   :  { %7499 = vmatprep.subr.bf16.mxu1 %v8521_v1  ;;  %6559 = vmatmul.mubr.msk.f32.gmra.mrb[2].mxu0 %vm221_vm2, %v204_v16  ;;  %p8477_p8 = pnand %p8476_p7, %p8470_p4 }
  0xd8   :  { %7480 = vmatpush3.bf16.msra.mxu0 %v8831_v15  ;;  %6929 = vmatprep.mubr.msk.f32.mxu0 %vm8522_vm1, %v8520_v0 }
  0xd9   :  { %7481 = vmatprep.subr.bf16.mxu0 %v8521_v1 }
  0xdb   :  { %6930 = vmatmul.mubr.msk.f32.vlgmr.msra.gmra.mrb[4].mxu0 %vm324_vm3, %v323_v19 }
  0xdc   :  { %7483 = vmatpush3.bf16.msra.mxu0 %v8842_v20  ;;  %6940 = vmatprep.mubr.msk.f32.mxu0 %vm8522_vm1, %v8520_v0 }
  0xdd   :  { %7484 = vmatprep.subr.bf16.mxu0 %v8521_v1 }
  0xe0   :  { %7486 = vmatpush3.bf16.msra.mxu0 %v8847_v23 }
  0xe1   :  { %7493 = vmatprep.subr.bf16.mxu0 %v8521_v1 }
  0xe3   :  { %6941 = vmatmul.mubr.msk.f32.vlgmr.msra.gmra.mrb[6].mxu0 %vm324_vm3, %v400_v24 }
  0xe4   :  { %7495 = vmatpush3.bf16.msra.mxu0 %v8842_v20  ;;  %6962 = vmatprep.mubr.msk.f32.mxu0 %vm8522_vm1, %v8520_v0 }
  0xe5   :  { %7496 = vmatprep.subr.bf16.mxu0 %v8521_v1 }
  0xe8   :  { %7498 = vmatpush3.bf16.msra.mxu0 %v8847_v23 }
  0xe9   :  { %7505 = vmatprep.subr.bf16.mxu0 %v8521_v1 }
 0x147   :  { %v514_v63 = vpop.permute.xlu1 %513 }
 0x1a6   :  { %v294_v32 = vpop.f32.mrb[0].mxu0 }
 0x1a7   :  { %v295_v33 = vadd.f32 %v294_v32, %v214_v30  ;;  %v296_v34 = vpop.f32.mrb[1].mxu0 }
 0x1a8   :  { %v297_v35 = vadd.f32 %v296_v34, %v218_v31 }
 0x1a9   :  { %305 = vst [vmem:[#allocation2] sm:$0xff] %v295_v33 }
 0x1aa   :  { %307 = vst [vmem:[#allocation3] sm:$0xff] %v297_v35  ;;  %v300_v36 = vpop.f32.mrb[2].mxu0 }
 0x1ab   :  { %v301_v37 = vadd.f32 %v300_v36, %v214_v30  ;;  %v302_v38 = vpop.f32.mrb[3].mxu0 }
 0x1ac   :  { %v303_v39 = vadd.f32 %v302_v38, %v218_v31 }
 0x1ad   :  { %306 = vst [vmem:[#allocation2 + $0x8] sm:$0xff] %v301_v37 }
 0x1ae   :  { %308 = vst [vmem:[#allocation3 + $0x8] sm:$0xff] %v303_v39  ;;  %v394_v40 = vpop.f32.mrb[4].mxu0 }
 0x1af   :  { %v6931_v41 = vpop.f32.mrb[5].mxu0 }
 0x1b0   :  { %v322_v43 = vld [vmem:[#allocation2] sm:$0x3]  ;;  %v555_v33 = vld [vmem:[#allocation2 + $0x2] sm:$0x3] }
 0x1b1   :  { %v398_v47 = vadd.f32 %v394_v40, %v322_v43 }
 0x1b3   :  { %v6562_v52 = vmul.f32 -1.442695, %v398_v47 }
 0x1b5   :  { %v399_v42 = vld [vmem:[#allocation3 + $0xe] sm:$0x3]  ;;  %v631_v28 = vld [vmem:[#allocation3 + $0xc] sm:$0x3] }
 0x1b6   :  { %v470_v44 = vpop.f32.mrb[6].mxu0 }
 0x1b7   :  { %v474_v45 = vadd.f32 %v470_v44, %v399_v42  ;;  %v6942_v46 = vpop.f32.mrb[7].mxu0 }
 0x1b9   :  { %7843 = vtanh.f32 %v474_v45  ;;  %v6563_v51 = vmul.f32 -1.442695, %v474_v45 }
 0x1ba   :  { %7845 = vtanh.f32 %v398_v47 }
 0x1bb   :  { %7847 = vpow2.f32 %v6563_v51 }
 0x1bc   :  { %7849 = vpow2.f32 %v6562_v52 }
 0x1c3   :  { %v7844_v48 = vpop.eup %7843 }
 0x1c4   :  { %518 = vrot.lane.b32.xlu0 %v7844_v48, %s8524_s5  ;;  %v7846_v49 = vpop.eup %7845 }
 0x1c5   :  { %v7848_v53 = vpop.eup %7847 }
 0x1c6   :  { %v508_v54 = vadd.f32 1.0, %v7848_v53  ;;  %v7850_v55 = vpop.eup %7849 }
 0x1c7   :  { %v479_v56 = vadd.f32 1.0, %v7850_v55 }
 0x1c8   :  { %489 = vrot.lane.b32.xlu0 %v7846_v49, %s8524_s5  ;;  %7851 = vrcp.f32 %v508_v54 }
 0x1c9   :  { %7853 = vrcp.f32 %v479_v56 }
 0x1cc   :  { %484 = vrot.lane.b32.xlu0 %v475_v50, %s8523_s14 }
 0x1d2   :  { %v7852_v57 = vpop.eup %7851 }
 0x1d3   :  { %v7854_v60 = vpop.eup %7853  ;;  %v516_v2 = vmul.f32 %v7852_v57, %v514_v63 }
 0x236   :  { %v519_v58 = vpop.permute.xlu0 %518 }
 0x237   :  { %v521_v59 = vmul.f32 %v7852_v57, %v519_v58 }
 0x239   :  { %523 = vrot.lane.b32.xlu1 %v521_v59, %s8523_s14 }
 0x23a   :  { %v490_v61 = vpop.permute.xlu0 %489 }
 0x23b   :  { %v492_v62 = vmul.f32 %v7854_v60, %v490_v61 }
 0x23d   :  { %494 = vrot.lane.b32.xlu1 %v492_v62, %s8523_s14 }
 0x23e   :  { %v485_v3 = vpop.permute.xlu0 %484 }
 0x23f   :  { %v487_v6 = vmul.f32 %v7854_v60, %v485_v3 }
 0x2ab   :  { %v524_v4 = vpop.permute.xlu1 %523 }
 0x2ac   :  { %v526_v5 = vadd.f32 %v524_v4, %v516_v2 }
 0x2ae   :  { %7855 = vtanh.f32 %v526_v5 }
 0x2af   :  { %v495_v7 = vpop.permute.xlu1 %494 }
 0x2b0   :  { %v497_v8 = vadd.f32 %v495_v7, %v487_v6 }
 0x2b2   :  { %7857 = vtanh.f32 %v497_v8 }
 0x2b8   :  { %v7856_v9 = vpop.eup %7855 }
 0x2b9   :  { %529 = vrot.lane.b32.xlu0 %v7856_v9, %s8524_s5 }
 0x2bc   :  { %v7858_v11 = vpop.eup %7857 }
 0x2bd   :  { %500 = vrot.lane.b32.xlu1 %v7858_v11, %s8524_s5 }
 0x32b   :  { %v530_v12 = vpop.permute.xlu0 %529 }
 0x32c   :  { %v532_v13 = vmul.f32 %v7852_v57, %v530_v12  ;;  %v863_v12 = vld [vmem:[#allocation3 + $0xa] sm:$0x3] }
 0x32e   :  { %544 = vrot.lane.b32.xlu0 %v532_v13, %s8523_s14 }
 0x32f   :  { %v501_v14 = vpop.permute.xlu1 %500 }
 0x330   :  { %v503_v16 = vmul.f32 %v7854_v60, %v501_v14 }
 0x332   :  { %549 = vrot.lane.b32.xlu0 %v526_v5, %s8525_s2  ;;  %534 = vrot.lane.b32.xlu1 %v503_v16, %s8523_s14 }
 0x336   :  { %539 = vrot.lane.b32.xlu0 %v497_v8, %s8525_s2 }
 0x3a0   :  { %v545_v17 = vpop.permute.xlu0 %544 }
 0x3a1   :  { %547 = vst.msk [vmem:[#allocation8] sm:$0x3] %vm309_vm0, %v545_v17  ;;  %554 = vst.msk [vmem:[#allocation5 + $0xe] sm:$0x3] %vm309_vm0, %v545_v17  ;;  %v787_v17 = vld [vmem:[#allocation2 + $0x4] sm:$0x3] }
 0x3a4   :  { %v550_v18 = vpop.permute.xlu0 %549  ;;  %v535_v19 = vpop.permute.xlu1 %534 }
 0x3a5   :  { %552 = vst.msk [vmem:[#allocation9] sm:$0x3] %vm309_vm0, %v550_v18  ;;  %537 = vst.msk [vmem:[#allocation6] sm:$0x3] %vm309_vm0, %v535_v19 }
 0x3a6   :  { %553 = vst.msk [vmem:[#allocation4] sm:$0x3] %vm309_vm0, %v535_v19 }
 0x3a8   :  { %v632_v21 = vld [vmem:[#allocation8] sm:$0x3]  ;;  %v540_v22 = vpop.permute.xlu0 %539 }
 0x3a9   :  { %542 = vst.msk [vmem:[#allocation7] sm:$0x3] %vm309_vm0, %v540_v22  ;;  %6963 = vmatmul.mubr.msk.f32.vlgmr.msra.gmra.mrb[8].mxu0 %vm324_vm3, %v632_v21 }
 0x3aa   :  { %7507 = vmatpush3.bf16.msra.mxu0 %v8842_v20  ;;  %6984 = vmatprep.mubr.msk.f32.mxu0 %vm8522_vm1, %v8520_v0 }
 0x3ab   :  { %7508 = vmatprep.subr.bf16.mxu0 %v8521_v1 }
 0x3ac   :  { %v736_v24 = vld [vmem:[#allocation9] sm:$0x3]  ;;  %v556_v25 = vld [vmem:[#allocation6] sm:$0x3] }
 0x3ad   :  { %745 = vrot.lane.b32.xlu0 %v736_v24, %s8523_s14  ;;  %6952 = vmatmul.mubr.msk.f32.vlgmr.msra.gmra.mrb[0].mxu1 %vm324_vm3, %v556_v25 }
 0x3ae   :  { %7501 = vmatpush3.bf16.msra.mxu1 %v8824_v10  ;;  %7510 = vmatpush3.bf16.msra.mxu0 %v8847_v23 }
 0x3af   :  { %7502 = vmatprep.subr.bf16.mxu1 %v8521_v1  ;;  %6973 = vmatprep.mubr.msk.f32.mxu1 %vm8522_vm1, %v8520_v0 }
 0x3b0   :  { %v707_v26 = vld [vmem:[#allocation7] sm:$0x3]  ;;  %7517 = vmatprep.subr.bf16.mxu0 %v8521_v1 }
 0x3b1   :  { %716 = vrot.lane.b32.xlu0 %v707_v26, %s8523_s14 }
 0x3b2   :  { %7504 = vmatpush3.bf16.msra.mxu1 %v8831_v15 }
 0x3b3   :  { %7511 = vmatprep.subr.bf16.mxu1 %v8521_v1 }
 0x41f   :  { %v746_v51 = vpop.permute.xlu0 %745 }
 0x423   :  { %v717_v55 = vpop.permute.xlu0 %716 }
 0x47c   :  { %v702_v30 = vpop.f32.mrb[8].mxu0 }
 0x47d   :  { %v706_v31 = vadd.f32 %v702_v30, %v631_v28  ;;  %v6964_v32 = vpop.f32.mrb[9].mxu0 }
 0x47f   :  { %7859 = vtanh.f32 %v706_v31  ;;  %v6567_v39 = vmul.f32 -1.442695, %v706_v31 }
 0x480   :  { %v626_v34 = vpop.f32.mrb[0].mxu1 }
 0x481   :  { %v630_v35 = vadd.f32 %v626_v34, %v555_v33  ;;  %v6953_v36 = vpop.f32.mrb[1].mxu1 }
 0x483   :  { %7861 = vtanh.f32 %v630_v35  ;;  %v6566_v40 = vmul.f32 -1.442695, %v630_v35 }
 0x484   :  { %7863 = vpow2.f32 %v6567_v39 }
 0x485   :  { %7865 = vpow2.f32 %v6566_v40 }
 0x489   :  { %v7860_v37 = vpop.eup %7859 }
 0x48a   :  { %750 = vrot.lane.b32.xlu1 %v7860_v37, %s8524_s5 }
 0x48d   :  { %v7862_v38 = vpop.eup %7861 }
 0x48e   :  { %721 = vrot.lane.b32.xlu1 %v7862_v38, %s8524_s5  ;;  %v7864_v41 = vpop.eup %7863 }
 0x48f   :  { %v740_v42 = vadd.f32 1.0, %v7864_v41  ;;  %v7866_v43 = vpop.eup %7865 }
 0x490   :  { %v711_v44 = vadd.f32 1.0, %v7866_v43 }
 0x491   :  { %7867 = vrcp.f32 %v740_v42 }
 0x492   :  { %7869 = vrcp.f32 %v711_v44 }
 0x49b   :  { %v7868_v45 = vpop.eup %7867 }
 0x49c   :  { %v7870_v48 = vpop.eup %7869  ;;  %v748_v52 = vmul.f32 %v7868_v45, %v746_v51 }
 0x49d   :  { %v719_v56 = vmul.f32 %v7870_v48, %v717_v55 }
 0x4fc   :  { %v751_v46 = vpop.permute.xlu1 %750 }
 0x4fd   :  { %v753_v47 = vmul.f32 %v7868_v45, %v751_v46 }
 0x4ff   :  { %755 = vrot.lane.b32.xlu1 %v753_v47, %s8523_s14 }
 0x500   :  { %v722_v49 = vpop.permute.xlu1 %721 }
 0x501   :  { %v724_v50 = vmul.f32 %v7870_v48, %v722_v49 }
 0x503   :  { %726 = vrot.lane.b32.xlu1 %v724_v50, %s8523_s14 }
 0x571   :  { %v756_v53 = vpop.permute.xlu1 %755 }
 0x572   :  { %v758_v54 = vadd.f32 %v756_v53, %v748_v52 }
 0x574   :  { %7871 = vtanh.f32 %v758_v54 }
 0x575   :  { %v727_v57 = vpop.permute.xlu1 %726 }
 0x576   :  { %v729_v58 = vadd.f32 %v727_v57, %v719_v56 }
 0x578   :  { %7873 = vtanh.f32 %v729_v58 }
 0x57e   :  { %v7872_v59 = vpop.eup %7871 }
 0x57f   :  { %761 = vrot.lane.b32.xlu0 %v7872_v59, %s8524_s5 }
 0x582   :  { %v7874_v60 = vpop.eup %7873 }
 0x583   :  { %732 = vrot.lane.b32.xlu1 %v7874_v60, %s8524_s5 }
 0x5f1   :  { %v762_v61 = vpop.permute.xlu0 %761 }
 0x5f2   :  { %v764_v62 = vmul.f32 %v7868_v45, %v762_v61  ;;  %v1095_v61 = vld [vmem:[#allocation3 + $0x8] sm:$0x3] }
 0x5f4   :  { %776 = vrot.lane.b32.xlu0 %v764_v62, %s8523_s14 }
 0x5f5   :  { %v733_v63 = vpop.permute.xlu1 %732 }
 0x5f6   :  { %v735_v2 = vmul.f32 %v7870_v48, %v733_v63 }
 0x5f8   :  { %781 = vrot.lane.b32.xlu0 %v758_v54, %s8525_s2  ;;  %766 = vrot.lane.b32.xlu1 %v735_v2, %s8523_s14 }
 0x5fc   :  { %771 = vrot.lane.b32.xlu0 %v729_v58, %s8525_s2 }
 0x666   :  { %v777_v3 = vpop.permute.xlu0 %776 }
 0x667   :  { %779 = vst.msk [vmem:[#allocation8] sm:$0x3] %vm309_vm0, %v777_v3  ;;  %786 = vst.msk [vmem:[#allocation5 + $0xc] sm:$0x3] %vm309_vm0, %v777_v3  ;;  %v1019_v3 = vld [vmem:[#allocation2 + $0x6] sm:$0x3] }
 0x66a   :  { %v782_v4 = vpop.permute.xlu0 %781  ;;  %v767_v5 = vpop.permute.xlu1 %766 }
 0x66b   :  { %784 = vst.msk [vmem:[#allocation9] sm:$0x3] %vm309_vm0, %v782_v4  ;;  %769 = vst.msk [vmem:[#allocation6] sm:$0x3] %vm309_vm0, %v767_v5 }
 0x66c   :  { %785 = vst.msk [vmem:[#allocation4 + $0x2] sm:$0x3] %vm309_vm0, %v767_v5 }
 0x66e   :  { %v864_v6 = vld [vmem:[#allocation8] sm:$0x3]  ;;  %v772_v7 = vpop.permute.xlu0 %771 }
 0x66f   :  { %774 = vst.msk [vmem:[#allocation7] sm:$0x3] %vm309_vm0, %v772_v7  ;;  %6985 = vmatmul.mubr.msk.f32.vlgmr.msra.gmra.mrb[10].mxu0 %vm324_vm3, %v864_v6 }
 0x670   :  { %7519 = vmatpush3.bf16.msra.mxu0 %v8842_v20  ;;  %7006 = vmatprep.mubr.msk.f32.mxu0 %vm8522_vm1, %v8520_v0 }
 0x671   :  { %7520 = vmatprep.subr.bf16.mxu0 %v8521_v1 }
 0x672   :  { %v968_v8 = vld [vmem:[#allocation9] sm:$0x3]  ;;  %v788_v9 = vld [vmem:[#allocation6] sm:$0x3] }
 0x673   :  { %977 = vrot.lane.b32.xlu0 %v968_v8, %s8523_s14  ;;  %6974 = vmatmul.mubr.msk.f32.vlgmr.msra.gmra.mrb[2].mxu1 %vm324_vm3, %v788_v9 }
 0x674   :  { %7513 = vmatpush3.bf16.msra.mxu1 %v8824_v10  ;;  %7522 = vmatpush3.bf16.msra.mxu0 %v8847_v23 }
 0x675   :  { %7514 = vmatprep.subr.bf16.mxu1 %v8521_v1  ;;  %6995 = vmatprep.mubr.msk.f32.mxu1 %vm8522_vm1, %v8520_v0 }
 0x676   :  { %v939_v11 = vld [vmem:[#allocation7] sm:$0x3]  ;;  %7529 = vmatprep.subr.bf16.mxu0 %v8521_v1 }
 0x677   :  { %948 = vrot.lane.b32.xlu0 %v939_v11, %s8523_s14 }
 0x678   :  { %7516 = vmatpush3.bf16.msra.mxu1 %v8831_v15 }
 0x679   :  { %7523 = vmatprep.subr.bf16.mxu1 %v8521_v1 }
 0x6e5   :  { %v978_v39 = vpop.permute.xlu0 %977 }
 0x6e9   :  { %v949_v43 = vpop.permute.xlu0 %948 }
 0x742   :  { %v934_v13 = vpop.f32.mrb[10].mxu0 }
 0x743   :  { %v938_v14 = vadd.f32 %v934_v13, %v863_v12  ;;  %v6986_v16 = vpop.f32.mrb[11].mxu0 }
 0x745   :  { %7875 = vtanh.f32 %v938_v14  ;;  %v6571_v25 = vmul.f32 -1.442695, %v938_v14 }
 0x746   :  { %v858_v18 = vpop.f32.mrb[2].mxu1 }
 0x747   :  { %v862_v19 = vadd.f32 %v858_v18, %v787_v17  ;;  %v6975_v21 = vpop.f32.mrb[3].mxu1 }
 0x749   :  { %7877 = vtanh.f32 %v862_v19  ;;  %v6570_v26 = vmul.f32 -1.442695, %v862_v19 }
 0x74a   :  { %7879 = vpow2.f32 %v6571_v25 }
 0x74b   :  { %7881 = vpow2.f32 %v6570_v26 }
 0x74f   :  { %v7876_v22 = vpop.eup %7875 }
 0x750   :  { %982 = vrot.lane.b32.xlu1 %v7876_v22, %s8524_s5 }
 0x753   :  { %v7878_v24 = vpop.eup %7877 }
 0x754   :  { %953 = vrot.lane.b32.xlu1 %v7878_v24, %s8524_s5  ;;  %v7880_v28 = vpop.eup %7879 }
 0x755   :  { %v972_v30 = vadd.f32 1.0, %v7880_v28  ;;  %v7882_v31 = vpop.eup %7881 }
 0x756   :  { %v943_v32 = vadd.f32 1.0, %v7882_v31 }
 0x757   :  { %7883 = vrcp.f32 %v972_v30 }
 0x758   :  { %7885 = vrcp.f32 %v943_v32 }
 0x761   :  { %v7884_v33 = vpop.eup %7883 }
 0x762   :  { %v7886_v36 = vpop.eup %7885  ;;  %v980_v40 = vmul.f32 %v7884_v33, %v978_v39 }
 0x763   :  { %v951_v44 = vmul.f32 %v7886_v36, %v949_v43 }
 0x7c2   :  { %v983_v34 = vpop.permute.xlu1 %982 }
 0x7c3   :  { %v985_v35 = vmul.f32 %v7884_v33, %v983_v34 }
 0x7c5   :  { %987 = vrot.lane.b32.xlu1 %v985_v35, %s8523_s14 }
 0x7c6   :  { %v954_v37 = vpop.permute.xlu1 %953 }
 0x7c7   :  { %v956_v38 = vmul.f32 %v7886_v36, %v954_v37 }
 0x7c9   :  { %958 = vrot.lane.b32.xlu1 %v956_v38, %s8523_s14 }
 0x837   :  { %v988_v41 = vpop.permute.xlu1 %987 }
 0x838   :  { %v990_v42 = vadd.f32 %v988_v41, %v980_v40 }
 0x83a   :  { %7887 = vtanh.f32 %v990_v42 }
 0x83b   :  { %v959_v45 = vpop.permute.xlu1 %958 }
 0x83c   :  { %v961_v46 = vadd.f32 %v959_v45, %v951_v44 }
 0x83e   :  { %7889 = vtanh.f32 %v961_v46 }
 0x844   :  { %v7888_v47 = vpop.eup %7887 }
 0x845   :  { %993 = vrot.lane.b32.xlu0 %v7888_v47, %s8524_s5 }
 0x848   :  { %v7890_v48 = vpop.eup %7889 }
 0x849   :  { %964 = vrot.lane.b32.xlu1 %v7890_v48, %s8524_s5 }
 0x8b7   :  { %v994_v49 = vpop.permute.xlu0 %993 }
 0x8b8   :  { %v996_v50 = vmul.f32 %v7884_v33, %v994_v49 }
 0x8ba   :  { %1008 = vrot.lane.b32.xlu0 %v996_v50, %s8523_s14 }
 0x8bb   :  { %v965_v51 = vpop.permute.xlu1 %964 }
 0x8bc   :  { %v967_v52 = vmul.f32 %v7886_v36, %v965_v51 }
 0x8be   :  { %1013 = vrot.lane.b32.xlu0 %v990_v42, %s8525_s2  ;;  %998 = vrot.lane.b32.xlu1 %v967_v52, %s8523_s14  ;;  %v1327_v52 = vld [vmem:[#allocation3 + $0x6] sm:$0x3] }
 0x8c2   :  { %1003 = vrot.lane.b32.xlu0 %v961_v46, %s8525_s2  ;;  %v8987_v46 = vld [vmem:[#allocation13] sm:$0xff] }
 0x92c   :  { %v1009_v53 = vpop.permute.xlu0 %1008 }
 0x92d   :  { %1011 = vst.msk [vmem:[#allocation8] sm:$0x3] %vm309_vm0, %v1009_v53  ;;  %1018 = vst.msk [vmem:[#allocation5 + $0xa] sm:$0x3] %vm309_vm0, %v1009_v53 }
 0x930   :  { %v1014_v54 = vpop.permute.xlu0 %1013  ;;  %v999_v55 = vpop.permute.xlu1 %998 }
 0x931   :  { %1016 = vst.msk [vmem:[#allocation9] sm:$0x3] %vm309_vm0, %v1014_v54  ;;  %1001 = vst.msk [vmem:[#allocation6] sm:$0x3] %vm309_vm0, %v999_v55 }
 0x932   :  { %1017 = vst.msk [vmem:[#allocation4 + $0x4] sm:$0x3] %vm309_vm0, %v999_v55 }
 0x934   :  { %v1096_v56 = vld [vmem:[#allocation8] sm:$0x3]  ;;  %v1004_v57 = vpop.permute.xlu0 %1003 }
 0x935   :  { %1006 = vst.msk [vmem:[#allocation7] sm:$0x3] %vm309_vm0, %v1004_v57  ;;  %7007 = vmatmul.mubr.msk.f32.vlgmr.msra.gmra.mrb[12].mxu0 %vm324_vm3, %v1096_v56  ;;  %v1251_v56 = vld [vmem:[#allocation2 + $0x8] sm:$0x3] }
 0x936   :  { %7531 = vmatpush3.bf16.msra.mxu0 %v8842_v20  ;;  %7028 = vmatprep.mubr.msk.f32.mxu0 %vm8522_vm1, %v8520_v0 }
 0x937   :  { %7532 = vmatprep.subr.bf16.mxu0 %v8521_v1 }
 0x938   :  { %v1200_v58 = vld [vmem:[#allocation9] sm:$0x3]  ;;  %v1020_v59 = vld [vmem:[#allocation6] sm:$0x3] }
 0x939   :  { %1209 = vrot.lane.b32.xlu0 %v1200_v58, %s8523_s14  ;;  %6996 = vmatmul.mubr.msk.f32.vlgmr.msra.gmra.mrb[4].mxu1 %vm324_vm3, %v1020_v59 }
 0x93a   :  { %7525 = vmatpush3.bf16.msra.mxu1 %v8824_v10  ;;  %7534 = vmatpush3.bf16.msra.mxu0 %v8847_v23 }
 0x93b   :  { %7526 = vmatprep.subr.bf16.mxu1 %v8521_v1  ;;  %7017 = vmatprep.mubr.msk.f32.mxu1 %vm8522_vm1, %v8520_v0 }
 0x93c   :  { %v1171_v60 = vld [vmem:[#allocation7] sm:$0x3]  ;;  %7541 = vmatprep.subr.bf16.mxu0 %v8521_v1 }
 0x93d   :  { %1180 = vrot.lane.b32.xlu0 %v1171_v60, %s8523_s14 }
 0x93e   :  { %7528 = vmatpush3.bf16.msra.mxu1 %v8831_v15 }
 0x93f   :  { %7535 = vmatprep.subr.bf16.mxu1 %v8521_v1 }
 0x9ab   :  { %v1210_v25 = vpop.permute.xlu0 %1209 }
 0x9af   :  { %v1181_v31 = vpop.permute.xlu0 %1180 }
 0xa08   :  { %v1166_v62 = vpop.f32.mrb[12].mxu0 }
 0xa09   :  { %v1170_v63 = vadd.f32 %v1166_v62, %v1095_v61  ;;  %v7008_v2 = vpop.f32.mrb[13].mxu0 }
 0xa0b   :  { %7891 = vtanh.f32 %v1170_v63  ;;  %v6575_v9 = vmul.f32 -1.442695, %v1170_v63 }
 0xa0c   :  { %v1090_v4 = vpop.f32.mrb[4].mxu1 }
 0xa0d   :  { %v1094_v5 = vadd.f32 %v1090_v4, %v1019_v3  ;;  %v6997_v6 = vpop.f32.mrb[5].mxu1 }
 0xa0f   :  { %7893 = vtanh.f32 %v1094_v5  ;;  %v6574_v11 = vmul.f32 -1.442695, %v1094_v5 }
 0xa10   :  { %7895 = vpow2.f32 %v6575_v9 }
 0xa11   :  { %7897 = vpow2.f32 %v6574_v11 }
 0xa15   :  { %v7892_v7 = vpop.eup %7891 }
 0xa16   :  { %1214 = vrot.lane.b32.xlu1 %v7892_v7, %s8524_s5 }
 0xa19   :  { %v7894_v8 = vpop.eup %7893 }
 0xa1a   :  { %1185 = vrot.lane.b32.xlu1 %v7894_v8, %s8524_s5  ;;  %v7896_v12 = vpop.eup %7895 }
 0xa1b   :  { %v1204_v13 = vadd.f32 1.0, %v7896_v12  ;;  %v7898_v14 = vpop.eup %7897 }
 0xa1c   :  { %v1175_v16 = vadd.f32 1.0, %v7898_v14 }
 0xa1d   :  { %7899 = vrcp.f32 %v1204_v13 }
 0xa1e   :  { %7901 = vrcp.f32 %v1175_v16 }
 0xa27   :  { %v7900_v17 = vpop.eup %7899 }
 0xa28   :  { %v7902_v21 = vpop.eup %7901  ;;  %v1212_v26 = vmul.f32 %v7900_v17, %v1210_v25 }
 0xa29   :  { %v1183_v32 = vmul.f32 %v7902_v21, %v1181_v31 }
 0xa88   :  { %v1215_v18 = vpop.permute.xlu1 %1214 }
 0xa89   :  { %v1217_v19 = vmul.f32 %v7900_v17, %v1215_v18 }
 0xa8b   :  { %1219 = vrot.lane.b32.xlu1 %v1217_v19, %s8523_s14 }
 0xa8c   :  { %v1186_v22 = vpop.permute.xlu1 %1185 }
 0xa8d   :  { %v1188_v24 = vmul.f32 %v7902_v21, %v1186_v22 }
 0xa8f   :  { %1190 = vrot.lane.b32.xlu1 %v1188_v24, %s8523_s14 }
 0xafd   :  { %v1220_v28 = vpop.permute.xlu1 %1219 }
 0xafe   :  { %v1222_v30 = vadd.f32 %v1220_v28, %v1212_v26 }
 0xb00   :  { %7903 = vtanh.f32 %v1222_v30 }
 0xb01   :  { %v1191_v33 = vpop.permute.xlu1 %1190 }
 0xb02   :  { %v1193_v34 = vadd.f32 %v1191_v33, %v1183_v32 }
 0xb04   :  { %7905 = vtanh.f32 %v1193_v34 }
 0xb0a   :  { %v7904_v35 = vpop.eup %7903 }
 0xb0b   :  { %1225 = vrot.lane.b32.xlu0 %v7904_v35, %s8524_s5 }
 0xb0e   :  { %v7906_v36 = vpop.eup %7905 }
 0xb0f   :  { %1196 = vrot.lane.b32.xlu1 %v7906_v36, %s8524_s5 }
 0xb7d   :  { %v1226_v37 = vpop.permute.xlu0 %1225 }
 0xb7e   :  { %v1228_v38 = vmul.f32 %v7900_v17, %v1226_v37 }
 0xb80   :  { %1240 = vrot.lane.b32.xlu0 %v1228_v38, %s8523_s14 }
 0xb81   :  { %v1197_v39 = vpop.permute.xlu1 %1196 }
 0xb82   :  { %v1199_v40 = vmul.f32 %v7902_v21, %v1197_v39 }
 0xb84   :  { %1245 = vrot.lane.b32.xlu0 %v1222_v30, %s8525_s2  ;;  %1230 = vrot.lane.b32.xlu1 %v1199_v40, %s8523_s14  ;;  %v1559_v40 = vld [vmem:[#allocation3 + $0x4] sm:$0x3] }
 0xb88   :  { %1235 = vrot.lane.b32.xlu0 %v1193_v34, %s8525_s2 }
 0xbf2   :  { %v1241_v41 = vpop.permute.xlu0 %1240 }
 0xbf3   :  { %1243 = vst.msk [vmem:[#allocation8] sm:$0x3] %vm309_vm0, %v1241_v41  ;;  %1250 = vst.msk [vmem:[#allocation5 + $0x8] sm:$0x3] %vm309_vm0, %v1241_v41 }
 0xbf6   :  { %v1246_v42 = vpop.permute.xlu0 %1245  ;;  %v1231_v43 = vpop.permute.xlu1 %1230 }
 0xbf7   :  { %1248 = vst.msk [vmem:[#allocation9] sm:$0x3] %vm309_vm0, %v1246_v42  ;;  %1233 = vst.msk [vmem:[#allocation6] sm:$0x3] %vm309_vm0, %v1231_v43 }
 0xbf8   :  { %1249 = vst.msk [vmem:[#allocation4 + $0x6] sm:$0x3] %vm309_vm0, %v1231_v43 }
 0xbfa   :  { %v1328_v44 = vld [vmem:[#allocation8] sm:$0x3]  ;;  %v1236_v45 = vpop.permute.xlu0 %1235 }
 0xbfb   :  { %1238 = vst.msk [vmem:[#allocation7] sm:$0x3] %vm309_vm0, %v1236_v45  ;;  %7029 = vmatmul.mubr.msk.f32.vlgmr.msra.gmra.mrb[14].mxu0 %vm324_vm3, %v1328_v44  ;;  %v1483_v44 = vld [vmem:[#allocation2 + $0xa] sm:$0x3] }
 0xbfc   :  { %7543 = vmatpush3.bf16.msra.mxu0 %v8842_v20  ;;  %7050 = vmatprep.mubr.msk.f32.mxu0 %vm8522_vm1, %v8520_v0 }
 0xbfd   :  { %7544 = vmatprep.subr.bf16.mxu0 %v8521_v1 }
 0xbfe   :  { %v1432_v47 = vld [vmem:[#allocation9] sm:$0x3]  ;;  %v1252_v48 = vld [vmem:[#allocation6] sm:$0x3] }
 0xbff   :  { %v2181_v49 = vld [vmem:[#allocation4] sm:$0xff]  ;;  %1441 = vrot.lane.b32.xlu0 %v1432_v47, %s8523_s14  ;;  %7018 = vmatmul.mubr.msk.f32.vlgmr.msra.gmra.mrb[6].mxu1 %vm324_vm3, %v1252_v48 }
 0xc00   :  { %v2183_v50 = vmul.f32 %v2181_v49, %v8987_v46  ;;  %7537 = vmatpush3.bf16.msra.mxu1 %v8824_v10  ;;  %7546 = vmatpush3.bf16.msra.mxu0 %v8847_v23 }
 0xc01   :  { %7538 = vmatprep.subr.bf16.mxu1 %v8521_v1  ;;  %7039 = vmatprep.mubr.msk.f32.mxu1 %vm8522_vm1, %v8520_v0 }
 0xc02   :  { %2185 = vst.msk [vmem:[#allocation4] sm:$0xff] %vm324_vm3, %v2183_v50  ;;  %v1403_v51 = vld [vmem:[#allocation7] sm:$0x3]  ;;  %7553 = vmatprep.subr.bf16.mxu0 %v8521_v1 }
 0xc03   :  { %1412 = vrot.lane.b32.xlu0 %v1403_v51, %s8523_s14 }
 0xc04   :  { %7540 = vmatpush3.bf16.msra.mxu1 %v8831_v15 }
 0xc05   :  { %7547 = vmatprep.subr.bf16.mxu1 %v8521_v1 }
 0xc71   :  { %v1442_v13 = vpop.permute.xlu0 %1441 }
 0xc75   :  { %v1413_v18 = vpop.permute.xlu0 %1412 }
 0xcce   :  { %v1398_v53 = vpop.f32.mrb[14].mxu0 }
 0xccf   :  { %v1402_v54 = vadd.f32 %v1398_v53, %v1327_v52  ;;  %v7030_v55 = vpop.f32.mrb[15].mxu0 }
 0xcd1   :  { %7907 = vtanh.f32 %v1402_v54  ;;  %v6579_v62 = vmul.f32 -1.442695, %v1402_v54 }
 0xcd2   :  { %v1322_v57 = vpop.f32.mrb[6].mxu1 }
 0xcd3   :  { %v1326_v58 = vadd.f32 %v1322_v57, %v1251_v56  ;;  %v7019_v59 = vpop.f32.mrb[7].mxu1 }
 0xcd5   :  { %7909 = vtanh.f32 %v1326_v58  ;;  %v6578_v63 = vmul.f32 -1.442695, %v1326_v58 }
 0xcd6   :  { %7911 = vpow2.f32 %v6579_v62 }
 0xcd7   :  { %7913 = vpow2.f32 %v6578_v63 }
 0xcdb   :  { %v7908_v60 = vpop.eup %7907 }
 0xcdc   :  { %1446 = vrot.lane.b32.xlu1 %v7908_v60, %s8524_s5 }
 0xcdf   :  { %v7910_v61 = vpop.eup %7909 }
 0xce0   :  { %1417 = vrot.lane.b32.xlu1 %v7910_v61, %s8524_s5  ;;  %v7912_v2 = vpop.eup %7911 }
 0xce1   :  { %v1436_v3 = vadd.f32 1.0, %v7912_v2  ;;  %v7914_v4 = vpop.eup %7913 }
 0xce2   :  { %v1407_v5 = vadd.f32 1.0, %v7914_v4 }
 0xce3   :  { %7915 = vrcp.f32 %v1436_v3 }
 0xce4   :  { %7917 = vrcp.f32 %v1407_v5 }
 0xced   :  { %v7916_v6 = vpop.eup %7915 }
 0xcee   :  { %v7918_v9 = vpop.eup %7917  ;;  %v1444_v14 = vmul.f32 %v7916_v6, %v1442_v13 }
 0xcef   :  { %v1415_v19 = vmul.f32 %v7918_v9, %v1413_v18 }
 0xd4e   :  { %v1447_v7 = vpop.permute.xlu1 %1446 }
 0xd4f   :  { %v1449_v8 = vmul.f32 %v7916_v6, %v1447_v7 }
 0xd51   :  { %1451 = vrot.lane.b32.xlu1 %v1449_v8, %s8523_s14 }
 0xd52   :  { %v1418_v11 = vpop.permute.xlu1 %1417 }
 0xd53   :  { %v1420_v12 = vmul.f32 %v7918_v9, %v1418_v11 }
 0xd55   :  { %1422 = vrot.lane.b32.xlu1 %v1420_v12, %s8523_s14 }
 0xdc3   :  { %v1452_v16 = vpop.permute.xlu1 %1451 }
 0xdc4   :  { %v1454_v17 = vadd.f32 %v1452_v16, %v1444_v14 }
 0xdc6   :  { %7919 = vtanh.f32 %v1454_v17 }
 0xdc7   :  { %v1423_v21 = vpop.permute.xlu1 %1422 }
 0xdc8   :  { %v1425_v22 = vadd.f32 %v1423_v21, %v1415_v19 }
 0xdca   :  { %7921 = vtanh.f32 %v1425_v22 }
 0xdd0   :  { %v7920_v24 = vpop.eup %7919 }
 0xdd1   :  { %1457 = vrot.lane.b32.xlu0 %v7920_v24, %s8524_s5 }
 0xdd4   :  { %v7922_v25 = vpop.eup %7921 }
 0xdd5   :  { %1428 = vrot.lane.b32.xlu1 %v7922_v25, %s8524_s5 }
 0xe43   :  { %v1458_v26 = vpop.permute.xlu0 %1457 }
 0xe44   :  { %v1460_v28 = vmul.f32 %v7916_v6, %v1458_v26  ;;  %v1791_v26 = vld [vmem:[#allocation3 + $0x2] sm:$0x3] }
 0xe46   :  { %1472 = vrot.lane.b32.xlu0 %v1460_v28, %s8523_s14 }
 0xe47   :  { %v1429_v30 = vpop.permute.xlu1 %1428 }
 0xe48   :  { %v1431_v31 = vmul.f32 %v7918_v9, %v1429_v30 }
 0xe4a   :  { %1477 = vrot.lane.b32.xlu0 %v1454_v17, %s8525_s2  ;;  %1462 = vrot.lane.b32.xlu1 %v1431_v31, %s8523_s14 }
 0xe4e   :  { %1467 = vrot.lane.b32.xlu0 %v1425_v22, %s8525_s2 }
 0xeb8   :  { %v1473_v32 = vpop.permute.xlu0 %1472 }
 0xeb9   :  { %1475 = vst.msk [vmem:[#allocation8] sm:$0x3] %vm309_vm0, %v1473_v32  ;;  %1482 = vst.msk [vmem:[#allocation5 + $0x6] sm:$0x3] %vm309_vm0, %v1473_v32 }
 0xebc   :  { %v1478_v33 = vpop.permute.xlu0 %1477  ;;  %v1463_v34 = vpop.permute.xlu1 %1462 }
 0xebd   :  { %1480 = vst.msk [vmem:[#allocation9] sm:$0x3] %vm309_vm0, %v1478_v33  ;;  %1465 = vst.msk [vmem:[#allocation6] sm:$0x3] %vm309_vm0, %v1463_v34 }
 0xebe   :  { %1481 = vst.msk [vmem:[#allocation4 + $0x8] sm:$0x3] %vm309_vm0, %v1463_v34 }
 0xec0   :  { %v1560_v35 = vld [vmem:[#allocation8] sm:$0x3]  ;;  %v1468_v36 = vpop.permute.xlu0 %1467 }
 0xec1   :  { %1470 = vst.msk [vmem:[#allocation7] sm:$0x3] %vm309_vm0, %v1468_v36  ;;  %7051 = vmatmul.mubr.msk.f32.vlgmr.msra.gmra.mrb[16].mxu0 %vm324_vm3, %v1560_v35 }
 0xec2   :  { %7555 = vmatpush3.bf16.msra.mxu0 %v8842_v20  ;;  %7072 = vmatprep.mubr.msk.f32.mxu0 %vm8522_vm1, %v8520_v0 }
 0xec3   :  { %7556 = vmatprep.subr.bf16.mxu0 %v8521_v1 }
 0xec4   :  { %v1664_v37 = vld [vmem:[#allocation9] sm:$0x3]  ;;  %v1484_v38 = vld [vmem:[#allocation6] sm:$0x3] }
 0xec5   :  { %1673 = vrot.lane.b32.xlu0 %v1664_v37, %s8523_s14  ;;  %7040 = vmatmul.mubr.msk.f32.vlgmr.msra.gmra.mrb[8].mxu1 %vm324_vm3, %v1484_v38 }
 0xec6   :  { %7549 = vmatpush3.bf16.msra.mxu1 %v8824_v10  ;;  %7558 = vmatpush3.bf16.msra.mxu0 %v8847_v23 }
 0xec7   :  { %7550 = vmatprep.subr.bf16.mxu1 %v8521_v1  ;;  %7061 = vmatprep.mubr.msk.f32.mxu1 %vm8522_vm1, %v8520_v0 }
 0xec8   :  { %v1635_v39 = vld [vmem:[#allocation7] sm:$0x3]  ;;  %7565 = vmatprep.subr.bf16.mxu0 %v8521_v1 }
 0xec9   :  { %1644 = vrot.lane.b32.xlu0 %v1635_v39, %s8523_s14 }
 0xeca   :  { %7552 = vmatpush3.bf16.msra.mxu1 %v8831_v15 }
 0xecb   :  { %7559 = vmatprep.subr.bf16.mxu1 %v8521_v1 }
 0xf37   :  { %v1674_v63 = vpop.permute.xlu0 %1673 }
 0xf3b   :  { %v1645_v5 = vpop.permute.xlu0 %1644 }
 0xf94   :  { %v1630_v41 = vpop.f32.mrb[16].mxu0 }
 0xf95   :  { %v1634_v42 = vadd.f32 %v1630_v41, %v1559_v40  ;;  %v7052_v43 = vpop.f32.mrb[17].mxu0 }
 0xf97   :  { %7923 = vtanh.f32 %v1634_v42  ;;  %v6583_v51 = vmul.f32 -1.442695, %v1634_v42 }
 0xf98   :  { %v1554_v45 = vpop.f32.mrb[8].mxu1 }
 0xf99   :  { %v1558_v47 = vadd.f32 %v1554_v45, %v1483_v44  ;;  %v7041_v48 = vpop.f32.mrb[9].mxu1 }
 0xf9b   :  { %7925 = vtanh.f32 %v1558_v47  ;;  %v6582_v52 = vmul.f32 -1.442695, %v1558_v47 }
 0xf9c   :  { %7927 = vpow2.f32 %v6583_v51 }
 0xf9d   :  { %7929 = vpow2.f32 %v6582_v52 }
 0xfa1   :  { %v7924_v49 = vpop.eup %7923 }
 0xfa2   :  { %1678 = vrot.lane.b32.xlu1 %v7924_v49, %s8524_s5 }
 0xfa5   :  { %v7926_v50 = vpop.eup %7925 }
 0xfa6   :  { %1649 = vrot.lane.b32.xlu1 %v7926_v50, %s8524_s5  ;;  %v7928_v53 = vpop.eup %7927 }
 0xfa7   :  { %v1668_v54 = vadd.f32 1.0, %v7928_v53  ;;  %v7930_v55 = vpop.eup %7929 }
 0xfa8   :  { %v1639_v56 = vadd.f32 1.0, %v7930_v55 }
 0xfa9   :  { %7931 = vrcp.f32 %v1668_v54 }
 0xfaa   :  { %7933 = vrcp.f32 %v1639_v56 }
 0xfb3   :  { %v7932_v57 = vpop.eup %7931 }
 0xfb4   :  { %v7934_v60 = vpop.eup %7933  ;;  %v1676_v2 = vmul.f32 %v7932_v57, %v1674_v63 }
 0xfb5   :  { %v1647_v6 = vmul.f32 %v7934_v60, %v1645_v5 }
0x1014   :  { %v1679_v58 = vpop.permute.xlu1 %1678 }
0x1015   :  { %v1681_v59 = vmul.f32 %v7932_v57, %v1679_v58 }
0x1017   :  { %1683 = vrot.lane.b32.xlu1 %v1681_v59, %s8523_s14 }
0x1018   :  { %v1650_v61 = vpop.permute.xlu1 %1649 }
0x1019   :  { %v1652_v62 = vmul.f32 %v7934_v60, %v1650_v61 }
0x101b   :  { %1654 = vrot.lane.b32.xlu1 %v1652_v62, %s8523_s14 }
0x1089   :  { %v1684_v3 = vpop.permute.xlu1 %1683 }
0x108a   :  { %v1686_v4 = vadd.f32 %v1684_v3, %v1676_v2 }
0x108c   :  { %7935 = vtanh.f32 %v1686_v4 }
0x108d   :  { %v1655_v7 = vpop.permute.xlu1 %1654 }
0x108e   :  { %v1657_v8 = vadd.f32 %v1655_v7, %v1647_v6 }
0x1090   :  { %7937 = vtanh.f32 %v1657_v8 }
0x1096   :  { %v7936_v9 = vpop.eup %7935 }
0x1097   :  { %1689 = vrot.lane.b32.xlu0 %v7936_v9, %s8524_s5 }
0x109a   :  { %v7938_v11 = vpop.eup %7937 }
0x109b   :  { %1660 = vrot.lane.b32.xlu1 %v7938_v11, %s8524_s5 }
0x1109   :  { %v1690_v12 = vpop.permute.xlu0 %1689 }
0x110a   :  { %v1692_v13 = vmul.f32 %v7932_v57, %v1690_v12 }
0x110c   :  { %1704 = vrot.lane.b32.xlu0 %v1692_v13, %s8523_s14  ;;  %v1947_v13 = vld [vmem:[#allocation2 + $0xe] sm:$0x3] }
0x110d   :  { %v1661_v14 = vpop.permute.xlu1 %1660 }
0x110e   :  { %v1663_v16 = vmul.f32 %v7934_v60, %v1661_v14 }
0x1110   :  { %1709 = vrot.lane.b32.xlu0 %v1686_v4, %s8525_s2  ;;  %1694 = vrot.lane.b32.xlu1 %v1663_v16, %s8523_s14 }
0x1114   :  { %1699 = vrot.lane.b32.xlu0 %v1657_v8, %s8525_s2  ;;  %v2023_v8 = vld [vmem:[#allocation3] sm:$0x3] }
0x117e   :  { %v1705_v17 = vpop.permute.xlu0 %1704 }
0x117f   :  { %1707 = vst.msk [vmem:[#allocation8] sm:$0x3] %vm309_vm0, %v1705_v17  ;;  %1714 = vst.msk [vmem:[#allocation5 + $0x4] sm:$0x3] %vm309_vm0, %v1705_v17 }
0x1182   :  { %v1710_v18 = vpop.permute.xlu0 %1709  ;;  %v1695_v19 = vpop.permute.xlu1 %1694 }
0x1183   :  { %1712 = vst.msk [vmem:[#allocation9] sm:$0x3] %vm309_vm0, %v1710_v18  ;;  %1697 = vst.msk [vmem:[#allocation6] sm:$0x3] %vm309_vm0, %v1695_v19 }
0x1184   :  { %1713 = vst.msk [vmem:[#allocation4 + $0xa] sm:$0x3] %vm309_vm0, %v1695_v19 }
0x1186   :  { %v1792_v21 = vld [vmem:[#allocation8] sm:$0x3]  ;;  %v1700_v22 = vpop.permute.xlu0 %1699 }
0x1187   :  { %1702 = vst.msk [vmem:[#allocation7] sm:$0x3] %vm309_vm0, %v1700_v22  ;;  %7073 = vmatmul.mubr.msk.f32.vlgmr.msra.gmra.mrb[18].mxu0 %vm324_vm3, %v1792_v21 }
0x1188   :  { %7567 = vmatpush3.bf16.msra.mxu0 %v8842_v20  ;;  %7094 = vmatprep.mubr.msk.f32.mxu0 %vm8522_vm1, %v8520_v0 }
0x1189   :  { %7568 = vmatprep.subr.bf16.mxu0 %v8521_v1 }
0x118a   :  { %v1896_v24 = vld [vmem:[#allocation9] sm:$0x3]  ;;  %v1716_v25 = vld [vmem:[#allocation6] sm:$0x3] }
0x118b   :  { %1905 = vrot.lane.b32.xlu0 %v1896_v24, %s8523_s14  ;;  %7062 = vmatmul.mubr.msk.f32.vlgmr.msra.gmra.mrb[10].mxu1 %vm324_vm3, %v1716_v25 }
0x118c   :  { %7561 = vmatpush3.bf16.msra.mxu1 %v8824_v10  ;;  %7570 = vmatpush3.bf16.msra.mxu0 %v8847_v23  ;;  %v1715_v10 = vld [vmem:[#allocation2 + $0xc] sm:$0x3] }
0x118d   :  { %7562 = vmatprep.subr.bf16.mxu1 %v8521_v1  ;;  %7083 = vmatprep.mubr.msk.f32.mxu1 %vm8522_vm1, %v8520_v0 }
0x118e   :  { %v1867_v20 = vld [vmem:[#allocation7] sm:$0x3]  ;;  %7587 = vmatprep.subr.bf16.mxu0 %v8521_v1 }
0x118f   :  { %1876 = vrot.lane.b32.xlu0 %v1867_v20, %s8523_s14 }
0x1190   :  { %7564 = vmatpush3.bf16.msra.mxu1 %v8831_v15 }
0x11fd   :  { %v1906_v48 = vpop.permute.xlu0 %1905 }
0x1201   :  { %v1877_v52 = vpop.permute.xlu0 %1876 }
0x125a   :  { %v1862_v28 = vpop.f32.mrb[18].mxu0 }
0x125b   :  { %v1866_v30 = vadd.f32 %v1862_v28, %v1791_v26  ;;  %v7074_v31 = vpop.f32.mrb[19].mxu0 }
0x125d   :  { %7939 = vtanh.f32 %v1866_v30  ;;  %v6587_v36 = vmul.f32 -1.442695, %v1866_v30 }
0x125e   :  { %v1786_v32 = vpop.f32.mrb[10].mxu1 }
0x125f   :  { %v1790_v23 = vadd.f32 %v1786_v32, %v1715_v10  ;;  %v7063_v33 = vpop.f32.mrb[11].mxu1 }
0x1261   :  { %7941 = vtanh.f32 %v1790_v23  ;;  %v6586_v37 = vmul.f32 -1.442695, %v1790_v23 }
0x1262   :  { %7943 = vpow2.f32 %v6587_v36 }
0x1263   :  { %7945 = vpow2.f32 %v6586_v37 }
0x1267   :  { %v7940_v34 = vpop.eup %7939 }
0x1268   :  { %1910 = vrot.lane.b32.xlu1 %v7940_v34, %s8524_s5 }
0x126b   :  { %v7942_v35 = vpop.eup %7941 }
0x126c   :  { %1881 = vrot.lane.b32.xlu1 %v7942_v35, %s8524_s5  ;;  %v7944_v15 = vpop.eup %7943 }
0x126d   :  { %v1900_v38 = vadd.f32 1.0, %v7944_v15  ;;  %v7946_v39 = vpop.eup %7945 }
0x126e   :  { %v1871_v40 = vadd.f32 1.0, %v7946_v39 }
0x126f   :  { %7947 = vrcp.f32 %v1900_v38 }
0x1270   :  { %7949 = vrcp.f32 %v1871_v40 }
0x1279   :  { %v7948_v41 = vpop.eup %7947 }
0x127a   :  { %v7950_v44 = vpop.eup %7949  ;;  %v1908_v49 = vmul.f32 %v7948_v41, %v1906_v48  ;;  %v2215_v48 = vld [vmem:[#allocation19 + $0x50] sm:$0xff] }
0x127b   :  { %v1879_v53 = vmul.f32 %v7950_v44, %v1877_v52  ;;  %v2218_v52 = vld [vmem:[#allocation19 + $0x68] sm:$0xff] }
0x12da   :  { %v1911_v42 = vpop.permute.xlu1 %1910 }
0x12db   :  { %v1913_v43 = vmul.f32 %v7948_v41, %v1911_v42  ;;  %v9097_v42 = vld [vmem:[#allocation13 + $0x8] sm:$0xff] }
0x12dd   :  { %1915 = vrot.lane.b32.xlu1 %v1913_v43, %s8523_s14  ;;  %v2214_v43 = vld [vmem:[#allocation19 + $0x48] sm:$0xff] }
0x12de   :  { %v1882_v45 = vpop.permute.xlu1 %1881 }
0x12df   :  { %v1884_v47 = vmul.f32 %v7950_v44, %v1882_v45 }
0x12e1   :  { %1886 = vrot.lane.b32.xlu1 %v1884_v47, %s8523_s14  ;;  %v2213_v47 = vld [vmem:[#allocation19 + $0x40] sm:$0xff] }
0x134f   :  { %v1916_v50 = vpop.permute.xlu1 %1915 }
0x1350   :  { %v1918_v51 = vadd.f32 %v1916_v50, %v1908_v49  ;;  %v7573_v50 = vpack.c.bf16 %v2215_v48, %v2213_v47 }
0x1352   :  { %7951 = vtanh.f32 %v1918_v51 }
0x1353   :  { %v1887_v54 = vpop.permute.xlu1 %1886 }
0x1354   :  { %v1889_v55 = vadd.f32 %v1887_v54, %v1879_v53  ;;  %v2220_v53 = vld [vmem:[#allocation19 + $0x78] sm:$0xff]  ;;  %v2217_v54 = vld [vmem:[#allocation19 + $0x60] sm:$0xff] }
0x1356   :  { %7953 = vtanh.f32 %v1889_v55 }
0x135c   :  { %v7952_v56 = vpop.eup %7951 }
0x135d   :  { %1921 = vrot.lane.b32.xlu0 %v7952_v56, %s8524_s5 }
0x1360   :  { %v7954_v57 = vpop.eup %7953 }
0x1361   :  { %1892 = vrot.lane.b32.xlu1 %v7954_v57, %s8524_s5 }
0x13cf   :  { %v1922_v58 = vpop.permute.xlu0 %1921 }
0x13d0   :  { %v1924_v59 = vmul.f32 %v7948_v41, %v1922_v58  ;;  %v2204_v58 = vld [vmem:[#allocation19 + $0x8] sm:$0xff] }
0x13d2   :  { %1936 = vrot.lane.b32.xlu0 %v1924_v59, %s8523_s14  ;;  %v2206_v59 = vld [vmem:[#allocation19 + $0x18] sm:$0xff] }
0x13d3   :  { %v1893_v60 = vpop.permute.xlu1 %1892 }
0x13d4   :  { %v1895_v61 = vmul.f32 %v7950_v44, %v1893_v60  ;;  %v2216_v44 = vld [vmem:[#allocation19 + $0x58] sm:$0xff] }
0x13d5   :  { %v7571_v45 = vpack.c.bf16 %v2216_v44, %v2214_v43 }
0x13d6   :  { %1941 = vrot.lane.b32.xlu0 %v1918_v51, %s8525_s2  ;;  %1926 = vrot.lane.b32.xlu1 %v1895_v61, %s8523_s14  ;;  %v7579_v61 = vpack.c.bf16 %v2206_v59, %v2204_v58 }
0x13d7   :  { %7572 = vmatprep.subr.bf16.mxu1 %v7571_v45  ;;  %v2387_v45 = vld [vmem:[%s9724_s9] sm:$0x3] }
0x13da   :  { %1931 = vrot.lane.b32.xlu0 %v1889_v55, %s8525_s2  ;;  %v2219_v55 = vld [vmem:[#allocation19 + $0x70] sm:$0xff] }
0x13db   :  { %v7577_v57 = vpack.c.bf16 %v2219_v55, %v2217_v54 }
0x1444   :  { %v1937_v62 = vpop.permute.xlu0 %1936 }
0x1445   :  { %1939 = vst.msk [vmem:[#allocation8] sm:$0x3] %vm309_vm0, %v1937_v62  ;;  %1946 = vst.msk [vmem:[#allocation5 + $0x2] sm:$0x3] %vm309_vm0, %v1937_v62 }
0x1448   :  { %v1942_v63 = vpop.permute.xlu0 %1941  ;;  %v1927_v2 = vpop.permute.xlu1 %1926 }
0x1449   :  { %1944 = vst.msk [vmem:[#allocation9] sm:$0x3] %vm309_vm0, %v1942_v63  ;;  %1929 = vst.msk [vmem:[#allocation6] sm:$0x3] %vm309_vm0, %v1927_v2  ;;  %v2188_v63 = vld [vmem:[#allocation5 + $0x8] sm:$0xff] }
0x144a   :  { %1945 = vst.msk [vmem:[#allocation4 + $0xc] sm:$0x3] %vm309_vm0, %v1927_v2 }
0x144c   :  { %v2024_v3 = vld [vmem:[#allocation8] sm:$0x3]  ;;  %v1932_v4 = vpop.permute.xlu0 %1931 }
0x144d   :  { %1934 = vst.msk [vmem:[#allocation7] sm:$0x3] %vm309_vm0, %v1932_v4  ;;  %7095 = vmatmul.mubr.msk.f32.vlgmr.msra.gmra.mrb[20].mxu0 %vm324_vm3, %v2024_v3  ;;  %v2411_v4 = vld [vmem:[#allocation21] sm:$0xff] }
0x144e   :  { %7105 = vmatprep.mubr.msk.f32.mxu0 %vm8522_vm1, %v8520_v0 }
0x1450   :  { %v2128_v5 = vld [vmem:[#allocation9] sm:$0x3]  ;;  %v1948_v6 = vld [vmem:[#allocation6] sm:$0x3] }
0x1451   :  { %2137 = vrot.lane.b32.xlu0 %v2128_v5, %s8523_s14  ;;  %7084 = vmatmul.mubr.msk.f32.vlgmr.msra.gmra.mrb[12].mxu1 %vm324_vm3, %v1948_v6  ;;  %v2412_v5 = vld [vmem:[#allocation21 + $0x8] sm:$0xff] }
0x1452   :  { %2291 = vmatprep.mubr.f32.mxu1 %v8520_v0  ;;  %7574 = vmatpush1.bf16.msra.mxu1 %v7573_v50  ;;  %v9104_v6 = vpack.c.bf16 %v2412_v5, %v2411_v4  ;;  %v2396_v50 = vrot.slane %v2387_v45, %v8866_v29 }
0x1454   :  { %v2099_v7 = vld [vmem:[#allocation7] sm:$0x3]  ;;  %7589 = vmatpush3.bf16.msra.mxu0 %v9104_v6 }
0x1455   :  { %2108 = vrot.lane.b32.xlu0 %v2099_v7, %s8523_s14  ;;  %7590 = vmatprep.subr.bf16.mxu0 %v8521_v1  ;;  %v2413_v7 = vld [vmem:[#allocation21 + $0x10] sm:$0xff] }
0x14c3   :  { %v2138_v33 = vpop.permute.xlu0 %2137 }
0x14c7   :  { %v2109_v37 = vpop.permute.xlu0 %2108 }
0x1520   :  { %v2094_v9 = vpop.f32.mrb[20].mxu0 }
0x1521   :  { %v2098_v11 = vadd.f32 %v2094_v9, %v2023_v8  ;;  %v7096_v12 = vpop.f32.mrb[21].mxu0  ;;  %v2414_v8 = vld [vmem:[#allocation21 + $0x18] sm:$0xff] }
0x1522   :  { %v9110_v9 = vpack.c.bf16 %v2414_v8, %v2413_v7 }
0x1523   :  { %7955 = vtanh.f32 %v2098_v11  ;;  %v6591_v21 = vmul.f32 -1.442695, %v2098_v11 }
0x1524   :  { %v2018_v14 = vpop.f32.mrb[12].mxu1  ;;  %7592 = vmatpush3.bf16.msra.mxu0 %v9110_v9 }
0x1525   :  { %v2022_v16 = vadd.f32 %v2018_v14, %v1947_v13  ;;  %v7085_v17 = vpop.f32.mrb[13].mxu1  ;;  %7593 = vmatprep.subr.bf16.mxu0 %v8521_v1 }
0x1526   :  { %v2416_v17 = vld [vmem:[#allocation22 + $0x8] sm:$0xff] }
0x1527   :  { %7957 = vtanh.f32 %v2022_v16  ;;  %v6590_v22 = vmul.f32 -1.442695, %v2022_v16  ;;  %v2415_v16 = vld [vmem:[#allocation22] sm:$0xff] }
0x1528   :  { %7959 = vpow2.f32 %v6591_v21 }
0x1529   :  { %7961 = vpow2.f32 %v6590_v22 }
0x152d   :  { %v7956_v18 = vpop.eup %7955 }
0x152e   :  { %2142 = vrot.lane.b32.xlu1 %v7956_v18, %s8524_s5 }
0x1531   :  { %v7958_v19 = vpop.eup %7957 }
0x1532   :  { %2113 = vrot.lane.b32.xlu1 %v7958_v19, %s8524_s5  ;;  %v7960_v24 = vpop.eup %7959  ;;  %v9126_v19 = vpack.c.bf16 %v2416_v17, %v2415_v16 }
0x1533   :  { %v2132_v25 = vadd.f32 1.0, %v7960_v24  ;;  %v7962_v20 = vpop.eup %7961  ;;  %v2417_v24 = vld [vmem:[#allocation22 + $0x10] sm:$0xff] }
0x1534   :  { %v2103_v26 = vadd.f32 1.0, %v7962_v20 }
0x1535   :  { %7963 = vrcp.f32 %v2132_v25  ;;  %v2418_v25 = vld [vmem:[#allocation22 + $0x18] sm:$0xff] }
0x1536   :  { %7965 = vrcp.f32 %v2103_v26  ;;  %v2203_v26 = vld [vmem:[#allocation19] sm:$0xff] }
0x153f   :  { %v7964_v28 = vpop.eup %7963 }
0x1540   :  { %v7966_v10 = vpop.eup %7965  ;;  %v2140_v34 = vmul.f32 %v7964_v28, %v2138_v33 }
0x1541   :  { %v2111_v15 = vmul.f32 %v7966_v10, %v2109_v37 }
0x15a0   :  { %v2143_v30 = vpop.permute.xlu1 %2142 }
0x15a1   :  { %v2145_v31 = vmul.f32 %v7964_v28, %v2143_v30 }
0x15a3   :  { %2147 = vrot.lane.b32.xlu1 %v2145_v31, %s8523_s14  ;;  %v2208_v31 = vld [vmem:[#allocation19 + $0x28] sm:$0xff] }
0x15a4   :  { %v2114_v32 = vpop.permute.xlu1 %2113 }
0x15a5   :  { %v2116_v23 = vmul.f32 %v7966_v10, %v2114_v32  ;;  %v9135_v32 = vpack.c.bf16 %v2418_v25, %v2417_v24 }
0x15a7   :  { %2118 = vrot.lane.b32.xlu1 %v2116_v23, %s8523_s14 }
0x1615   :  { %v2148_v35 = vpop.permute.xlu1 %2147 }
0x1616   :  { %v2150_v36 = vadd.f32 %v2148_v35, %v2140_v34  ;;  %v2207_v34 = vld [vmem:[#allocation19 + $0x20] sm:$0xff]  ;;  %v2209_v35 = vld [vmem:[#allocation19 + $0x30] sm:$0xff] }
0x1618   :  { %7967 = vtanh.f32 %v2150_v36 }
0x1619   :  { %v2119_v38 = vpop.permute.xlu1 %2118 }
0x161a   :  { %v2121_v39 = vadd.f32 %v2119_v38, %v2111_v15  ;;  %v7585_v38 = vpack.c.bf16 %v2209_v35, %v2207_v34 }
0x161c   :  { %7969 = vtanh.f32 %v2121_v39 }
0x1622   :  { %v7968_v40 = vpop.eup %7967 }
0x1623   :  { %2153 = vrot.lane.b32.xlu0 %v7968_v40, %s8524_s5 }
0x1626   :  { %v7970_v41 = vpop.eup %7969 }
0x1627   :  { %2124 = vrot.lane.b32.xlu1 %v7970_v41, %s8524_s5  ;;  %v2201_v41 = vld [vmem:[#allocation4] sm:$0xff] }
0x162b   :  { %2191 = vrot.lane.b32.xlu1 %v8987_v46, %s8525_s2  ;;  %v7575_v46 = vpack.c.bf16 %v2220_v53, %v2218_v52 }
0x162d   :  { %7576 = vmatprep.subr.bf16.mxu1 %v7575_v46 }
0x162e   :  { %7578 = vmatpush1.bf16.msra.mxu1 %v7577_v57 }
0x162f   :  { %2193 = vrot.lane.b32.xlu1 %v9097_v42, %s8525_s2  ;;  %7580 = vmatprep.subr.bf16.mxu1 %v7579_v61 }
0x1695   :  { %v2154_v49 = vpop.permute.xlu0 %2153 }
0x1696   :  { %v2156_v51 = vmul.f32 %v7964_v28, %v2154_v49  ;;  %v2205_v28 = vld [vmem:[#allocation19 + $0x10] sm:$0xff]  ;;  %v2392_v49 = vrot.slane %v2387_v45, %v8861_v27 }
0x1697   :  { %v7581_v23 = vpack.c.bf16 %v2205_v28, %v2203_v26 }
0x1698   :  { %2168 = vrot.lane.b32.xlu0 %v2156_v51, %s8523_s14 }
0x1699   :  { %v2125_v56 = vpop.permute.xlu1 %2124 }
0x169a   :  { %v2127_v60 = vmul.f32 %v7966_v10, %v2125_v56  ;;  %v2210_v10 = vld [vmem:[#allocation19 + $0x38] sm:$0xff] }
0x169b   :  { %v7583_v33 = vpack.c.bf16 %v2210_v10, %v2208_v31 }
0x169c   :  { %2158 = vrot.lane.b32.xlu0 %v2127_v60, %s8523_s14 }
0x169d   :  { %v2192_v62 = vpop.permute.xlu1 %2191 }
0x16a0   :  { %2173 = vrot.lane.b32.xlu0 %v2150_v36, %s8525_s2 }
0x16a1   :  { %v2194_v2 = vpop.permute.xlu1 %2193 }
0x16a2   :  { %v2198_v3 = vmul.f32 %v2194_v2, %v2188_v63 }
0x16a4   :  { %2200 = vst.msk [vmem:[#allocation5 + $0x8] sm:$0xff] %vm324_vm3, %v2198_v3  ;;  %2163 = vrot.lane.b32.xlu0 %v2121_v39, %s8525_s2 }
0x16ab   :  { %v2212_v40 = vld [vmem:[#allocation5 + $0x8] sm:$0xff] }
0x170a   :  { %v2169_v11 = vpop.permute.xlu0 %2168 }
0x170b   :  { %2171 = vst.msk [vmem:[#allocation8] sm:$0x3] %vm309_vm0, %v2169_v11  ;;  %2178 = vst.msk [vmem:[#allocation5] sm:$0x3] %vm309_vm0, %v2169_v11 }
0x170c   :  { %2409 = vst.msk [vmem:[#allocation8] sm:$0x3] %vm309_vm0, %v8520_v0 }
0x170e   :  { %v2159_v12 = vpop.permute.xlu0 %2158 }
0x170f   :  { %2161 = vst.msk [vmem:[#allocation6] sm:$0x3] %vm309_vm0, %v2159_v12  ;;  %2177 = vst.msk [vmem:[#allocation4 + $0xe] sm:$0x3] %vm309_vm0, %v2159_v12 }
0x1710   :  { %2407 = vst.msk [vmem:[#allocation6] sm:$0x3] %vm309_vm0, %v8520_v0 }
0x1712   :  { %v2187_v13 = vld [vmem:[#allocation5] sm:$0xff]  ;;  %v2174_v14 = vpop.permute.xlu0 %2173 }
0x1713   :  { %v2197_v18 = vmul.f32 %v2192_v62, %v2187_v13  ;;  %2176 = vst.msk [vmem:[#allocation9] sm:$0x3] %vm309_vm0, %v2174_v14  ;;  %v2496_v15 = vld [vmem:[#allocation8] sm:$0x3] }
0x1714   :  { %2410 = vst.msk [vmem:[#allocation9] sm:$0x3] %vm309_vm0, %v8520_v0 }
0x1715   :  { %2199 = vst.msk [vmem:[#allocation5] sm:$0xff] %vm324_vm3, %v2197_v18 }
0x1716   :  { %v2182_v21 = vld [vmem:[#allocation4 + $0x8] sm:$0xff]  ;;  %v2164_v22 = vpop.permute.xlu0 %2163 }
0x1717   :  { %v2184_v20 = vmul.f32 %v2182_v21, %v9097_v42  ;;  %2166 = vst.msk [vmem:[#allocation7] sm:$0x3] %vm309_vm0, %v2164_v22  ;;  %v2420_v30 = vld [vmem:[#allocation6] sm:$0x3] }
0x1718   :  { %2408 = vst.msk [vmem:[#allocation7] sm:$0x3] %vm309_vm0, %v8520_v0  ;;  %7106 = vmatmul.mubr.msk.f32.vlgmr.msra.gmra.mrb[22].mxu0 %vm324_vm3, %v2420_v30 }
0x1719   :  { %2186 = vst.msk [vmem:[#allocation4 + $0x8] sm:$0xff] %vm324_vm3, %v2184_v20  ;;  %7595 = vmatpush3.bf16.msra.mxu0 %v9126_v19  ;;  %7116 = vmatprep.mubr.msk.f32.mxu0 %vm8522_vm1, %v8520_v0 }
0x171a   :  { %7596 = vmatprep.subr.bf16.mxu0 %v8521_v1 }
0x171b   :  { %v2600_v36 = vld [vmem:[#allocation9] sm:$0x3] }
0x171c   :  { %v2211_v37 = vld [vmem:[#allocation5] sm:$0xff]  ;;  %2609 = vrot.lane.b32.xlu0 %v2600_v36, %s8523_s14 }
0x171d   :  { %6592 = vmatmul.mubr.msk.f32.vlgmr.msra.gmra.mrb[14].mxu1 %vm324_vm3, %v2211_v37  ;;  %7598 = vmatpush3.bf16.msra.mxu0 %v9135_v32 }
0x171e   :  { %7582 = vmatpush1.bf16.msra.mxu1 %v7581_v23  ;;  %2297 = vmatprep.mubr.f32.mxu1 %v8520_v0 }
0x171f   :  { %7584 = vmatprep.subr.bf16.mxu1 %v7583_v33  ;;  %v2571_v39 = vld [vmem:[#allocation7] sm:$0x3]  ;;  %7605 = vmatprep.subr.bf16.mxu0 %v8521_v1 }
0x1720   :  { %7117 = vmatmul.mubr.msk.f32.vlgmr.msra.gmra.mrb[24].mxu0 %vm324_vm3, %v2496_v15  ;;  %2580 = vrot.lane.b32.xlu0 %v2571_v39, %s8523_s14  ;;  %v2202_v42 = vld [vmem:[#allocation4 + $0x8] sm:$0xff] }
0x1721   :  { %6593 = vmatmul.mubr.msk.f32.gmra.mrb[16].mxu1 %vm324_vm3, %v2212_v40  ;;  %7607 = vmatpush3.bf16.msra.mxu0 %v9126_v19 }
0x1722   :  { %7586 = vmatpush1.bf16.msra.mxu1 %v7585_v38  ;;  %2374 = vmatprep.mubr.f32.mxu1 %v8520_v0 }
0x1723   :  { %7599 = vmatprep.subr.bf16.mxu1 %v8521_v1  ;;  %7608 = vmatprep.subr.bf16.mxu0 %v8521_v1 }
0x1724   :  { %7138 = vmatprep.mubr.msk.f32.mxu0 %vm8522_vm1, %v8520_v0 }
0x1725   :  { %6594 = vmatmul.mubr.msk.f32.vlgmr.msra.gmra.mrb[14].mxu1 %vm324_vm3, %v2201_v41  ;;  %7610 = vmatpush3.bf16.msra.mxu0 %v9135_v32 }
0x1726   :  { %2380 = vmatprep.mubr.f32.mxu1 %v8520_v0  ;;  %7601 = vmatpush3.bf16.msra.mxu1 %v9104_v6 }
0x1727   :  { %7602 = vmatprep.subr.bf16.mxu1 %v8521_v1  ;;  %7617 = vmatprep.subr.bf16.mxu0 %v8521_v1 }
0x1729   :  { %6595 = vmatmul.mubr.msk.f32.gmra.mrb[16].mxu1 %vm324_vm3, %v2202_v42 }
0x172a   :  { %7604 = vmatpush3.bf16.msra.mxu1 %v9110_v9  ;;  %7127 = vmatprep.mubr.msk.f32.mxu1 %vm8522_vm1, %v8520_v0 }
0x172b   :  { %7611 = vmatprep.subr.bf16.mxu1 %v8521_v1 }
0x178e   :  { %v2610_v18 = vpop.permute.xlu0 %2609 }
0x1792   :  { %v2581_v22 = vpop.permute.xlu0 %2580 }
0x17eb   :  { %v2490_v43 = vpop.f32.mrb[22].mxu0 }
0x17ec   :  { %v7107_v44 = vpop.f32.mrb[23].mxu0 }
0x17f3   :  { %v2566_v47 = vpop.f32.mrb[24].mxu0 }
0x17f4   :  { %v7118_v48 = vpop.f32.mrb[25].mxu0 }
0x17f8   :  { %v2376_v51 = vpop.f32.mrb[14].mxu1 }
0x17f9   :  { %v2399_v52 = vadd.f32 %v2392_v49, %v2376_v51  ;;  %v2378_v53 = vpop.f32.mrb[15].mxu1 }
0x17fa   :  { %v2400_v46 = vadd.f32 %v2396_v50, %v2378_v53 }
0x17fb   :  { %2403 = vst [vmem:[#allocation2] sm:$0xff] %v2399_v52 }
0x17fc   :  { %2405 = vst [vmem:[#allocation3] sm:$0xff] %v2400_v46  ;;  %v2382_v54 = vpop.f32.mrb[16].mxu1 }
0x17fd   :  { %v2401_v55 = vadd.f32 %v2392_v49, %v2382_v54  ;;  %v2384_v56 = vpop.f32.mrb[17].mxu1 }
0x17fe   :  { %v2402_v57 = vadd.f32 %v2396_v50, %v2384_v56 }
0x17ff   :  { %2404 = vst [vmem:[#allocation2 + $0x8] sm:$0xff] %v2401_v55 }
0x1800   :  { %2406 = vst [vmem:[#allocation3 + $0x8] sm:$0xff] %v2402_v57 }
0x1802   :  { %v2419_v58 = vld [vmem:[#allocation2] sm:$0x3] }
0x1803   :  { %v2494_v61 = vadd.f32 %v2490_v43, %v2419_v58 }
0x1805   :  { %v6598_v3 = vmul.f32 -1.442695, %v2494_v61 }
0x1807   :  { %v2495_v59 = vld [vmem:[#allocation3 + $0xe] sm:$0x3]  ;;  %v2727_v42 = vld [vmem:[#allocation3 + $0xc] sm:$0x3] }
0x1808   :  { %v2570_v60 = vadd.f32 %v2566_v47, %v2495_v59  ;;  %v2651_v47 = vld [vmem:[#allocation2 + $0x2] sm:$0x3] }
0x180a   :  { %7971 = vtanh.f32 %v2570_v60  ;;  %v6599_v2 = vmul.f32 -1.442695, %v2570_v60 }
0x180b   :  { %7973 = vtanh.f32 %v2494_v61 }
0x180c   :  { %7975 = vpow2.f32 %v6599_v2 }
0x180d   :  { %7977 = vpow2.f32 %v6598_v3 }
0x1814   :  { %v7972_v62 = vpop.eup %7971 }
0x1815   :  { %2614 = vrot.lane.b32.xlu1 %v7972_v62, %s8524_s5  ;;  %v7974_v63 = vpop.eup %7973 }
0x1816   :  { %v7976_v4 = vpop.eup %7975 }
0x1817   :  { %v2604_v5 = vadd.f32 1.0, %v7976_v4  ;;  %v7978_v7 = vpop.eup %7977 }
0x1818   :  { %v2575_v8 = vadd.f32 1.0, %v7978_v7 }
0x1819   :  { %2585 = vrot.lane.b32.xlu1 %v7974_v63, %s8524_s5  ;;  %7979 = vrcp.f32 %v2604_v5 }
0x181a   :  { %7981 = vrcp.f32 %v2575_v8 }
0x1823   :  { %v7980_v11 = vpop.eup %7979 }
0x1824   :  { %v7982_v14 = vpop.eup %7981  ;;  %v2612_v21 = vmul.f32 %v7980_v11, %v2610_v18 }
0x1825   :  { %v2583_v20 = vmul.f32 %v7982_v14, %v2581_v22 }
0x1887   :  { %v2615_v12 = vpop.permute.xlu1 %2614 }
0x1888   :  { %v2617_v13 = vmul.f32 %v7980_v11, %v2615_v12 }
0x188a   :  { %2619 = vrot.lane.b32.xlu1 %v2617_v13, %s8523_s14 }
0x188b   :  { %v2586_v16 = vpop.permute.xlu1 %2585 }
0x188c   :  { %v2588_v17 = vmul.f32 %v7982_v14, %v2586_v16 }
0x188e   :  { %2590 = vrot.lane.b32.xlu1 %v2588_v17, %s8523_s14 }
0x18fc   :  { %v2620_v24 = vpop.permute.xlu1 %2619 }
0x18fd   :  { %v2622_v25 = vadd.f32 %v2620_v24, %v2612_v21 }
0x18ff   :  { %7983 = vtanh.f32 %v2622_v25 }
0x1900   :  { %v2591_v26 = vpop.permute.xlu1 %2590 }
0x1901   :  { %v2593_v28 = vadd.f32 %v2591_v26, %v2583_v20 }
0x1903   :  { %7985 = vtanh.f32 %v2593_v28 }
0x1909   :  { %v7984_v30 = vpop.eup %7983 }
0x190a   :  { %2625 = vrot.lane.b32.xlu0 %v7984_v30, %s8524_s5 }
0x190d   :  { %v7986_v31 = vpop.eup %7985 }
0x190e   :  { %2596 = vrot.lane.b32.xlu1 %v7986_v31, %s8524_s5 }
0x197c   :  { %v2626_v10 = vpop.permute.xlu0 %2625 }
0x197d   :  { %v2628_v23 = vmul.f32 %v7980_v11, %v2626_v10  ;;  %v2959_v10 = vld [vmem:[#allocation3 + $0xa] sm:$0x3] }
0x197f   :  { %2640 = vrot.lane.b32.xlu0 %v2628_v23, %s8523_s14 }
0x1980   :  { %v2597_v33 = vpop.permute.xlu1 %2596 }
0x1981   :  { %v2599_v34 = vmul.f32 %v7982_v14, %v2597_v33 }
0x1983   :  { %2630 = vrot.lane.b32.xlu1 %v2599_v34, %s8523_s14  ;;  %2645 = vrot.lane.b32.xlu0 %v2622_v25, %s8525_s2 }
0x1987   :  { %2635 = vrot.lane.b32.xlu0 %v2593_v28, %s8525_s2 }
0x19f1   :  { %v2641_v35 = vpop.permute.xlu0 %2640 }
0x19f2   :  { %2643 = vst.msk [vmem:[#allocation8] sm:$0x3] %vm309_vm0, %v2641_v35  ;;  %2650 = vst.msk [vmem:[#allocation5 + $0xe] sm:$0x3] %vm309_vm0, %v2641_v35  ;;  %v2883_v35 = vld [vmem:[#allocation2 + $0x4] sm:$0x3] }
0x19f5   :  { %v2631_v36 = vpop.permute.xlu1 %2630  ;;  %v2646_v37 = vpop.permute.xlu0 %2645 }
0x19f6   :  { %2633 = vst.msk [vmem:[#allocation6] sm:$0x3] %vm309_vm0, %v2631_v36  ;;  %2649 = vst.msk [vmem:[#allocation4] sm:$0x3] %vm309_vm0, %v2631_v36 }
0x19f7   :  { %2648 = vst.msk [vmem:[#allocation9] sm:$0x3] %vm309_vm0, %v2646_v37 }
0x19f9   :  { %v2636_v15 = vpop.permute.xlu0 %2635  ;;  %v2728_v38 = vld [vmem:[#allocation8] sm:$0x3] }
0x19fa   :  { %2638 = vst.msk [vmem:[#allocation7] sm:$0x3] %vm309_vm0, %v2636_v15  ;;  %7139 = vmatmul.mubr.msk.f32.vlgmr.msra.gmra.mrb[26].mxu0 %vm324_vm3, %v2728_v38 }
0x19fb   :  { %7619 = vmatpush3.bf16.msra.mxu0 %v9126_v19  ;;  %7160 = vmatprep.mubr.msk.f32.mxu0 %vm8522_vm1, %v8520_v0 }
0x19fc   :  { %7620 = vmatprep.subr.bf16.mxu0 %v8521_v1 }
0x19fd   :  { %v2652_v39 = vld [vmem:[#allocation6] sm:$0x3] }
0x19fe   :  { %v2832_v40 = vld [vmem:[#allocation9] sm:$0x3]  ;;  %7128 = vmatmul.mubr.msk.f32.vlgmr.msra.gmra.mrb[18].mxu1 %vm324_vm3, %v2652_v39 }
0x19ff   :  { %2841 = vrot.lane.b32.xlu0 %v2832_v40, %s8523_s14  ;;  %7613 = vmatpush3.bf16.msra.mxu1 %v9104_v6 }
0x1a00   :  { %7622 = vmatpush3.bf16.msra.mxu0 %v9135_v32  ;;  %7614 = vmatprep.subr.bf16.mxu1 %v8521_v1 }
0x1a01   :  { %7149 = vmatprep.mubr.msk.f32.mxu1 %vm8522_vm1, %v8520_v0  ;;  %v2803_v41 = vld [vmem:[#allocation7] sm:$0x3]  ;;  %7629 = vmatprep.subr.bf16.mxu0 %v8521_v1 }
0x1a03   :  { %2812 = vrot.lane.b32.xlu0 %v2803_v41, %s8523_s14  ;;  %7616 = vmatpush3.bf16.msra.mxu1 %v9110_v9 }
0x1a04   :  { %7623 = vmatprep.subr.bf16.mxu1 %v8521_v1 }
0x1a71   :  { %v2842_v2 = vpop.permute.xlu0 %2841 }
0x1a75   :  { %v2813_v7 = vpop.permute.xlu0 %2812 }
0x1acd   :  { %v2798_v43 = vpop.f32.mrb[26].mxu0 }
0x1ace   :  { %v2802_v44 = vadd.f32 %v2798_v43, %v2727_v42  ;;  %v7140_v45 = vpop.f32.mrb[27].mxu0 }
0x1ad0   :  { %7987 = vtanh.f32 %v2802_v44  ;;  %v6603_v53 = vmul.f32 -1.442695, %v2802_v44 }
0x1ad1   :  { %v2722_v48 = vpop.f32.mrb[18].mxu1 }
0x1ad2   :  { %v2726_v49 = vadd.f32 %v2722_v48, %v2651_v47  ;;  %v7129_v50 = vpop.f32.mrb[19].mxu1 }
0x1ad4   :  { %7989 = vtanh.f32 %v2726_v49  ;;  %v6602_v46 = vmul.f32 -1.442695, %v2726_v49 }
0x1ad5   :  { %7991 = vpow2.f32 %v6603_v53 }
0x1ad6   :  { %7993 = vpow2.f32 %v6602_v46 }
0x1ada   :  { %v7988_v51 = vpop.eup %7987 }
0x1adb   :  { %2846 = vrot.lane.b32.xlu1 %v7988_v51, %s8524_s5 }
0x1ade   :  { %v7990_v52 = vpop.eup %7989 }
0x1adf   :  { %2817 = vrot.lane.b32.xlu1 %v7990_v52, %s8524_s5  ;;  %v7992_v54 = vpop.eup %7991 }
0x1ae0   :  { %v2836_v55 = vadd.f32 1.0, %v7992_v54  ;;  %v7994_v56 = vpop.eup %7993 }
0x1ae1   :  { %v2807_v57 = vadd.f32 1.0, %v7994_v56 }
0x1ae2   :  { %7995 = vrcp.f32 %v2836_v55 }
0x1ae3   :  { %7997 = vrcp.f32 %v2807_v57 }
0x1aec   :  { %v7996_v58 = vpop.eup %7995 }
0x1aed   :  { %v7998_v61 = vpop.eup %7997  ;;  %v2844_v3 = vmul.f32 %v7996_v58, %v2842_v2 }
0x1aee   :  { %v2815_v8 = vmul.f32 %v7998_v61, %v2813_v7 }
0x1b4d   :  { %v2847_v59 = vpop.permute.xlu1 %2846 }
0x1b4e   :  { %v2849_v60 = vmul.f32 %v7996_v58, %v2847_v59 }
0x1b50   :  { %2851 = vrot.lane.b32.xlu1 %v2849_v60, %s8523_s14 }
0x1b51   :  { %v2818_v62 = vpop.permute.xlu1 %2817 }
0x1b52   :  { %v2820_v63 = vmul.f32 %v7998_v61, %v2818_v62 }
0x1b54   :  { %2822 = vrot.lane.b32.xlu1 %v2820_v63, %s8523_s14 }
0x1bc2   :  { %v2852_v4 = vpop.permute.xlu1 %2851 }
0x1bc3   :  { %v2854_v5 = vadd.f32 %v2852_v4, %v2844_v3 }
0x1bc5   :  { %7999 = vtanh.f32 %v2854_v5 }
0x1bc6   :  { %v2823_v11 = vpop.permute.xlu1 %2822 }
0x1bc7   :  { %v2825_v12 = vadd.f32 %v2823_v11, %v2815_v8 }
0x1bc9   :  { %8001 = vtanh.f32 %v2825_v12 }
0x1bcf   :  { %v8000_v13 = vpop.eup %7999 }
0x1bd0   :  { %2857 = vrot.lane.b32.xlu0 %v8000_v13, %s8524_s5 }
0x1bd3   :  { %v8002_v14 = vpop.eup %8001 }
0x1bd4   :  { %2828 = vrot.lane.b32.xlu1 %v8002_v14, %s8524_s5 }
0x1c42   :  { %v2858_v16 = vpop.permute.xlu0 %2857 }
0x1c43   :  { %v2860_v17 = vmul.f32 %v7996_v58, %v2858_v16  ;;  %v3191_v16 = vld [vmem:[#allocation3 + $0x8] sm:$0x3] }
0x1c45   :  { %2872 = vrot.lane.b32.xlu0 %v2860_v17, %s8523_s14 }
0x1c46   :  { %v2829_v18 = vpop.permute.xlu1 %2828 }
0x1c47   :  { %v2831_v21 = vmul.f32 %v7998_v61, %v2829_v18 }
0x1c49   :  { %2862 = vrot.lane.b32.xlu1 %v2831_v21, %s8523_s14  ;;  %2877 = vrot.lane.b32.xlu0 %v2854_v5, %s8525_s2 }
0x1c4d   :  { %2867 = vrot.lane.b32.xlu0 %v2825_v12, %s8525_s2 }
0x1cb7   :  { %v2873_v22 = vpop.permute.xlu0 %2872 }
0x1cb8   :  { %2875 = vst.msk [vmem:[#allocation8] sm:$0x3] %vm309_vm0, %v2873_v22  ;;  %2882 = vst.msk [vmem:[#allocation5 + $0xc] sm:$0x3] %vm309_vm0, %v2873_v22  ;;  %v3115_v22 = vld [vmem:[#allocation2 + $0x6] sm:$0x3] }
0x1cbb   :  { %v2863_v24 = vpop.permute.xlu1 %2862  ;;  %v2878_v25 = vpop.permute.xlu0 %2877 }
0x1cbc   :  { %2865 = vst.msk [vmem:[#allocation6] sm:$0x3] %vm309_vm0, %v2863_v24  ;;  %2881 = vst.msk [vmem:[#allocation4 + $0x2] sm:$0x3] %vm309_vm0, %v2863_v24 }
0x1cbd   :  { %2880 = vst.msk [vmem:[#allocation9] sm:$0x3] %vm309_vm0, %v2878_v25 }
0x1cbf   :  { %v2868_v20 = vpop.permute.xlu0 %2867  ;;  %v2960_v26 = vld [vmem:[#allocation8] sm:$0x3] }
0x1cc0   :  { %2870 = vst.msk [vmem:[#allocation7] sm:$0x3] %vm309_vm0, %v2868_v20  ;;  %7161 = vmatmul.mubr.msk.f32.vlgmr.msra.gmra.mrb[28].mxu0 %vm324_vm3, %v2960_v26 }
0x1cc1   :  { %7631 = vmatpush3.bf16.msra.mxu0 %v9126_v19  ;;  %7182 = vmatprep.mubr.msk.f32.mxu0 %vm8522_vm1, %v8520_v0 }
0x1cc2   :  { %7632 = vmatprep.subr.bf16.mxu0 %v8521_v1 }
0x1cc3   :  { %v2884_v28 = vld [vmem:[#allocation6] sm:$0x3] }
0x1cc4   :  { %v3064_v30 = vld [vmem:[#allocation9] sm:$0x3]  ;;  %7150 = vmatmul.mubr.msk.f32.vlgmr.msra.gmra.mrb[20].mxu1 %vm324_vm3, %v2884_v28 }
0x1cc5   :  { %3073 = vrot.lane.b32.xlu0 %v3064_v30, %s8523_s14  ;;  %7625 = vmatpush3.bf16.msra.mxu1 %v9104_v6 }
0x1cc6   :  { %7634 = vmatpush3.bf16.msra.mxu0 %v9135_v32  ;;  %7626 = vmatprep.subr.bf16.mxu1 %v8521_v1 }
0x1cc7   :  { %7171 = vmatprep.mubr.msk.f32.mxu1 %vm8522_vm1, %v8520_v0  ;;  %v3035_v31 = vld [vmem:[#allocation7] sm:$0x3]  ;;  %7641 = vmatprep.subr.bf16.mxu0 %v8521_v1 }
0x1cc9   :  { %3044 = vrot.lane.b32.xlu0 %v3035_v31, %s8523_s14  ;;  %7628 = vmatpush3.bf16.msra.mxu1 %v9110_v9 }
0x1cca   :  { %7635 = vmatprep.subr.bf16.mxu1 %v8521_v1 }
0x1d37   :  { %v3074_v53 = vpop.permute.xlu0 %3073 }
0x1d3b   :  { %v3045_v56 = vpop.permute.xlu0 %3044 }
0x1d93   :  { %v3030_v23 = vpop.f32.mrb[28].mxu0 }
0x1d94   :  { %v3034_v33 = vadd.f32 %v3030_v23, %v2959_v10  ;;  %v7162_v34 = vpop.f32.mrb[29].mxu0 }
0x1d96   :  { %8003 = vtanh.f32 %v3034_v33  ;;  %v6607_v40 = vmul.f32 -1.442695, %v3034_v33 }
0x1d97   :  { %v2954_v36 = vpop.f32.mrb[20].mxu1 }
0x1d98   :  { %v2958_v37 = vadd.f32 %v2954_v36, %v2883_v35  ;;  %v7151_v15 = vpop.f32.mrb[21].mxu1 }
0x1d9a   :  { %8005 = vtanh.f32 %v2958_v37  ;;  %v6606_v41 = vmul.f32 -1.442695, %v2958_v37 }
0x1d9b   :  { %8007 = vpow2.f32 %v6607_v40 }
0x1d9c   :  { %8009 = vpow2.f32 %v6606_v41 }
0x1da0   :  { %v8004_v38 = vpop.eup %8003 }
0x1da1   :  { %3078 = vrot.lane.b32.xlu1 %v8004_v38, %s8524_s5 }
0x1da4   :  { %v8006_v39 = vpop.eup %8005 }
0x1da5   :  { %3049 = vrot.lane.b32.xlu1 %v8006_v39, %s8524_s5  ;;  %v8008_v42 = vpop.eup %8007 }
0x1da6   :  { %v3068_v43 = vadd.f32 1.0, %v8008_v42  ;;  %v8010_v44 = vpop.eup %8009 }
0x1da7   :  { %v3039_v45 = vadd.f32 1.0, %v8010_v44 }
0x1da8   :  { %8011 = vrcp.f32 %v3068_v43 }
0x1da9   :  { %8013 = vrcp.f32 %v3039_v45 }
0x1db2   :  { %v8012_v47 = vpop.eup %8011 }
0x1db3   :  { %v8014_v50 = vpop.eup %8013  ;;  %v3076_v46 = vmul.f32 %v8012_v47, %v3074_v53 }
0x1db4   :  { %v3047_v57 = vmul.f32 %v8014_v50, %v3045_v56 }
0x1e13   :  { %v3079_v48 = vpop.permute.xlu1 %3078 }
0x1e14   :  { %v3081_v49 = vmul.f32 %v8012_v47, %v3079_v48 }
0x1e16   :  { %3083 = vrot.lane.b32.xlu1 %v3081_v49, %s8523_s14 }
0x1e17   :  { %v3050_v51 = vpop.permute.xlu1 %3049 }
0x1e18   :  { %v3052_v52 = vmul.f32 %v8014_v50, %v3050_v51 }
0x1e1a   :  { %3054 = vrot.lane.b32.xlu1 %v3052_v52, %s8523_s14 }
0x1e88   :  { %v3084_v54 = vpop.permute.xlu1 %3083 }
0x1e89   :  { %v3086_v55 = vadd.f32 %v3084_v54, %v3076_v46 }
0x1e8b   :  { %8015 = vtanh.f32 %v3086_v55 }
0x1e8c   :  { %v3055_v58 = vpop.permute.xlu1 %3054 }
0x1e8d   :  { %v3057_v59 = vadd.f32 %v3055_v58, %v3047_v57 }
0x1e8f   :  { %8017 = vtanh.f32 %v3057_v59 }
0x1e95   :  { %v8016_v60 = vpop.eup %8015 }
0x1e96   :  { %3089 = vrot.lane.b32.xlu0 %v8016_v60, %s8524_s5 }
0x1e99   :  { %v8018_v61 = vpop.eup %8017 }
0x1e9a   :  { %3060 = vrot.lane.b32.xlu1 %v8018_v61, %s8524_s5 }
0x1f08   :  { %v3090_v62 = vpop.permute.xlu0 %3089 }
0x1f09   :  { %v3092_v63 = vmul.f32 %v8012_v47, %v3090_v62  ;;  %v3423_v62 = vld [vmem:[#allocation3 + $0x6] sm:$0x3] }
0x1f0b   :  { %3104 = vrot.lane.b32.xlu0 %v3092_v63, %s8523_s14 }
0x1f0c   :  { %v3061_v2 = vpop.permute.xlu1 %3060 }
0x1f0d   :  { %v3063_v3 = vmul.f32 %v8014_v50, %v3061_v2 }
0x1f0f   :  { %3094 = vrot.lane.b32.xlu1 %v3063_v3, %s8523_s14  ;;  %3109 = vrot.lane.b32.xlu0 %v3086_v55, %s8525_s2 }
0x1f13   :  { %3099 = vrot.lane.b32.xlu0 %v3057_v59, %s8525_s2 }
0x1f7d   :  { %v3105_v4 = vpop.permute.xlu0 %3104 }
0x1f7e   :  { %3107 = vst.msk [vmem:[#allocation8] sm:$0x3] %vm309_vm0, %v3105_v4  ;;  %3114 = vst.msk [vmem:[#allocation5 + $0xa] sm:$0x3] %vm309_vm0, %v3105_v4  ;;  %v3347_v4 = vld [vmem:[#allocation2 + $0x8] sm:$0x3] }
0x1f81   :  { %v3095_v5 = vpop.permute.xlu1 %3094  ;;  %v3110_v7 = vpop.permute.xlu0 %3109 }
0x1f82   :  { %3097 = vst.msk [vmem:[#allocation6] sm:$0x3] %vm309_vm0, %v3095_v5  ;;  %3113 = vst.msk [vmem:[#allocation4 + $0x4] sm:$0x3] %vm309_vm0, %v3095_v5 }
0x1f83   :  { %3112 = vst.msk [vmem:[#allocation9] sm:$0x3] %vm309_vm0, %v3110_v7 }
0x1f85   :  { %v3100_v8 = vpop.permute.xlu0 %3099  ;;  %v3192_v11 = vld [vmem:[#allocation8] sm:$0x3] }
0x1f86   :  { %3102 = vst.msk [vmem:[#allocation7] sm:$0x3] %vm309_vm0, %v3100_v8  ;;  %7183 = vmatmul.mubr.msk.f32.vlgmr.msra.gmra.mrb[30].mxu0 %vm324_vm3, %v3192_v11 }
0x1f87   :  { %7643 = vmatpush3.bf16.msra.mxu0 %v9126_v19  ;;  %7204 = vmatprep.mubr.msk.f32.mxu0 %vm8522_vm1, %v8520_v0 }
0x1f88   :  { %7644 = vmatprep.subr.bf16.mxu0 %v8521_v1 }
0x1f89   :  { %v3116_v12 = vld [vmem:[#allocation6] sm:$0x3] }
0x1f8a   :  { %v3296_v13 = vld [vmem:[#allocation9] sm:$0x3]  ;;  %7172 = vmatmul.mubr.msk.f32.vlgmr.msra.gmra.mrb[22].mxu1 %vm324_vm3, %v3116_v12 }
0x1f8b   :  { %3305 = vrot.lane.b32.xlu0 %v3296_v13, %s8523_s14  ;;  %7637 = vmatpush3.bf16.msra.mxu1 %v9104_v6 }
0x1f8c   :  { %7646 = vmatpush3.bf16.msra.mxu0 %v9135_v32  ;;  %7638 = vmatprep.subr.bf16.mxu1 %v8521_v1 }
0x1f8d   :  { %7193 = vmatprep.mubr.msk.f32.mxu1 %vm8522_vm1, %v8520_v0  ;;  %v3267_v14 = vld [vmem:[#allocation7] sm:$0x3]  ;;  %7653 = vmatprep.subr.bf16.mxu0 %v8521_v1 }
0x1f8f   :  { %3276 = vrot.lane.b32.xlu0 %v3267_v14, %s8523_s14  ;;  %7640 = vmatpush3.bf16.msra.mxu1 %v9110_v9 }
0x1f90   :  { %7647 = vmatprep.subr.bf16.mxu1 %v8521_v1 }
0x1ffd   :  { %v3306_v40 = vpop.permute.xlu0 %3305 }
0x2001   :  { %v3277_v44 = vpop.permute.xlu0 %3276 }
0x2059   :  { %v3262_v17 = vpop.f32.mrb[30].mxu0 }
0x205a   :  { %v3266_v18 = vadd.f32 %v3262_v17, %v3191_v16  ;;  %v7184_v21 = vpop.f32.mrb[31].mxu0 }
0x205c   :  { %8019 = vtanh.f32 %v3266_v18  ;;  %v6611_v30 = vmul.f32 -1.442695, %v3266_v18 }
0x205d   :  { %v3186_v24 = vpop.f32.mrb[22].mxu1 }
0x205e   :  { %v3190_v25 = vadd.f32 %v3186_v24, %v3115_v22  ;;  %v7173_v20 = vpop.f32.mrb[23].mxu1 }
0x2060   :  { %8021 = vtanh.f32 %v3190_v25  ;;  %v6610_v31 = vmul.f32 -1.442695, %v3190_v25 }
0x2061   :  { %8023 = vpow2.f32 %v6611_v30 }
0x2062   :  { %8025 = vpow2.f32 %v6610_v31 }
0x2066   :  { %v8020_v26 = vpop.eup %8019 }
0x2067   :  { %3310 = vrot.lane.b32.xlu1 %v8020_v26, %s8524_s5 }
0x206a   :  { %v8022_v28 = vpop.eup %8021 }
0x206b   :  { %3281 = vrot.lane.b32.xlu1 %v8022_v28, %s8524_s5  ;;  %v8024_v10 = vpop.eup %8023 }
0x206c   :  { %v3300_v23 = vadd.f32 1.0, %v8024_v10  ;;  %v8026_v33 = vpop.eup %8025 }
0x206d   :  { %v3271_v34 = vadd.f32 1.0, %v8026_v33 }
0x206e   :  { %8027 = vrcp.f32 %v3300_v23 }
0x206f   :  { %8029 = vrcp.f32 %v3271_v34 }
0x2078   :  { %v8028_v35 = vpop.eup %8027 }
0x2079   :  { %v8030_v15 = vpop.eup %8029  ;;  %v3308_v41 = vmul.f32 %v8028_v35, %v3306_v40 }
0x207a   :  { %v3279_v45 = vmul.f32 %v8030_v15, %v3277_v44 }
0x20d9   :  { %v3311_v36 = vpop.permute.xlu1 %3310 }
0x20da   :  { %v3313_v37 = vmul.f32 %v8028_v35, %v3311_v36 }
0x20dc   :  { %3315 = vrot.lane.b32.xlu1 %v3313_v37, %s8523_s14 }
0x20dd   :  { %v3282_v38 = vpop.permute.xlu1 %3281 }
0x20de   :  { %v3284_v39 = vmul.f32 %v8030_v15, %v3282_v38 }
0x20e0   :  { %3286 = vrot.lane.b32.xlu1 %v3284_v39, %s8523_s14 }
0x214e   :  { %v3316_v42 = vpop.permute.xlu1 %3315 }
0x214f   :  { %v3318_v43 = vadd.f32 %v3316_v42, %v3308_v41 }
0x2151   :  { %8031 = vtanh.f32 %v3318_v43 }
0x2152   :  { %v3287_v47 = vpop.permute.xlu1 %3286 }
0x2153   :  { %v3289_v48 = vadd.f32 %v3287_v47, %v3279_v45 }
0x2155   :  { %8033 = vtanh.f32 %v3289_v48 }
0x215b   :  { %v8032_v49 = vpop.eup %8031 }
0x215c   :  { %3321 = vrot.lane.b32.xlu0 %v8032_v49, %s8524_s5 }
0x215f   :  { %v8034_v50 = vpop.eup %8033 }
0x2160   :  { %3292 = vrot.lane.b32.xlu1 %v8034_v50, %s8524_s5 }
0x21ce   :  { %v3322_v51 = vpop.permute.xlu0 %3321 }
0x21cf   :  { %v3324_v52 = vmul.f32 %v8028_v35, %v3322_v51  ;;  %v3655_v51 = vld [vmem:[#allocation3 + $0x4] sm:$0x3] }
0x21d1   :  { %3336 = vrot.lane.b32.xlu0 %v3324_v52, %s8523_s14 }
0x21d2   :  { %v3293_v53 = vpop.permute.xlu1 %3292 }
0x21d3   :  { %v3295_v46 = vmul.f32 %v8030_v15, %v3293_v53 }
0x21d5   :  { %3326 = vrot.lane.b32.xlu1 %v3295_v46, %s8523_s14  ;;  %3341 = vrot.lane.b32.xlu0 %v3318_v43, %s8525_s2 }
0x21d9   :  { %3331 = vrot.lane.b32.xlu0 %v3289_v48, %s8525_s2 }
0x2243   :  { %v3337_v54 = vpop.permute.xlu0 %3336 }
0x2244   :  { %3339 = vst.msk [vmem:[#allocation8] sm:$0x3] %vm309_vm0, %v3337_v54  ;;  %3346 = vst.msk [vmem:[#allocation5 + $0x8] sm:$0x3] %vm309_vm0, %v3337_v54  ;;  %v3579_v54 = vld [vmem:[#allocation2 + $0xa] sm:$0x3] }
0x2247   :  { %v3327_v55 = vpop.permute.xlu1 %3326  ;;  %v3342_v56 = vpop.permute.xlu0 %3341 }
0x2248   :  { %3329 = vst.msk [vmem:[#allocation6] sm:$0x3] %vm309_vm0, %v3327_v55  ;;  %3345 = vst.msk [vmem:[#allocation4 + $0x6] sm:$0x3] %vm309_vm0, %v3327_v55 }
0x2249   :  { %3344 = vst.msk [vmem:[#allocation9] sm:$0x3] %vm309_vm0, %v3342_v56 }
0x224b   :  { %v3332_v57 = vpop.permute.xlu0 %3331  ;;  %v3424_v58 = vld [vmem:[#allocation8] sm:$0x3] }
0x224c   :  { %3334 = vst.msk [vmem:[#allocation7] sm:$0x3] %vm309_vm0, %v3332_v57  ;;  %7205 = vmatmul.mubr.msk.f32.vlgmr.msra.gmra.mrb[32].mxu0 %vm324_vm3, %v3424_v58 }
0x224d   :  { %7655 = vmatpush3.bf16.msra.mxu0 %v9126_v19  ;;  %7226 = vmatprep.mubr.msk.f32.mxu0 %vm8522_vm1, %v8520_v0 }
0x224e   :  { %7656 = vmatprep.subr.bf16.mxu0 %v8521_v1 }
0x224f   :  { %v3348_v59 = vld [vmem:[#allocation6] sm:$0x3] }
0x2250   :  { %v3528_v60 = vld [vmem:[#allocation9] sm:$0x3]  ;;  %7194 = vmatmul.mubr.msk.f32.vlgmr.msra.gmra.mrb[24].mxu1 %vm324_vm3, %v3348_v59 }
0x2251   :  { %3537 = vrot.lane.b32.xlu0 %v3528_v60, %s8523_s14  ;;  %7649 = vmatpush3.bf16.msra.mxu1 %v9104_v6 }
0x2252   :  { %7658 = vmatpush3.bf16.msra.mxu0 %v9135_v32  ;;  %7650 = vmatprep.subr.bf16.mxu1 %v8521_v1 }
0x2253   :  { %7215 = vmatprep.mubr.msk.f32.mxu1 %vm8522_vm1, %v8520_v0  ;;  %v3499_v61 = vld [vmem:[#allocation7] sm:$0x3]  ;;  %7665 = vmatprep.subr.bf16.mxu0 %v8521_v1 }
0x2255   :  { %3508 = vrot.lane.b32.xlu0 %v3499_v61, %s8523_s14  ;;  %7652 = vmatpush3.bf16.msra.mxu1 %v9110_v9 }
0x2256   :  { %7659 = vmatprep.subr.bf16.mxu1 %v8521_v1 }
0x22c3   :  { %v3538_v30 = vpop.permute.xlu0 %3537 }
0x22c7   :  { %v3509_v33 = vpop.permute.xlu0 %3508 }
0x231f   :  { %v3494_v63 = vpop.f32.mrb[32].mxu0 }
0x2320   :  { %v3498_v2 = vadd.f32 %v3494_v63, %v3423_v62  ;;  %v7206_v3 = vpop.f32.mrb[33].mxu0 }
0x2322   :  { %8035 = vtanh.f32 %v3498_v2  ;;  %v6615_v13 = vmul.f32 -1.442695, %v3498_v2 }
0x2323   :  { %v3418_v5 = vpop.f32.mrb[24].mxu1 }
0x2324   :  { %v3422_v7 = vadd.f32 %v3418_v5, %v3347_v4  ;;  %v7195_v8 = vpop.f32.mrb[25].mxu1 }
0x2326   :  { %8037 = vtanh.f32 %v3422_v7  ;;  %v6614_v14 = vmul.f32 -1.442695, %v3422_v7 }
0x2327   :  { %8039 = vpow2.f32 %v6615_v13 }
0x2328   :  { %8041 = vpow2.f32 %v6614_v14 }
0x232c   :  { %v8036_v11 = vpop.eup %8035 }
0x232d   :  { %3542 = vrot.lane.b32.xlu1 %v8036_v11, %s8524_s5 }
0x2330   :  { %v8038_v12 = vpop.eup %8037 }
0x2331   :  { %3513 = vrot.lane.b32.xlu1 %v8038_v12, %s8524_s5  ;;  %v8040_v16 = vpop.eup %8039 }
0x2332   :  { %v3532_v17 = vadd.f32 1.0, %v8040_v16  ;;  %v8042_v18 = vpop.eup %8041 }
0x2333   :  { %v3503_v21 = vadd.f32 1.0, %v8042_v18 }
0x2334   :  { %8043 = vrcp.f32 %v3532_v17 }
0x2335   :  { %8045 = vrcp.f32 %v3503_v21 }
0x233e   :  { %v8044_v22 = vpop.eup %8043 }
0x233f   :  { %v8046_v20 = vpop.eup %8045  ;;  %v3540_v31 = vmul.f32 %v8044_v22, %v3538_v30 }
0x2340   :  { %v3511_v34 = vmul.f32 %v8046_v20, %v3509_v33 }
0x239f   :  { %v3543_v24 = vpop.permute.xlu1 %3542 }
0x23a0   :  { %v3545_v25 = vmul.f32 %v8044_v22, %v3543_v24 }
0x23a2   :  { %3547 = vrot.lane.b32.xlu1 %v3545_v25, %s8523_s14 }
0x23a3   :  { %v3514_v26 = vpop.permute.xlu1 %3513 }
0x23a4   :  { %v3516_v28 = vmul.f32 %v8046_v20, %v3514_v26 }
0x23a6   :  { %3518 = vrot.lane.b32.xlu1 %v3516_v28, %s8523_s14 }
0x2414   :  { %v3548_v10 = vpop.permute.xlu1 %3547 }
0x2415   :  { %v3550_v23 = vadd.f32 %v3548_v10, %v3540_v31 }
0x2417   :  { %8047 = vtanh.f32 %v3550_v23 }
0x2418   :  { %v3519_v35 = vpop.permute.xlu1 %3518 }
0x2419   :  { %v3521_v36 = vadd.f32 %v3519_v35, %v3511_v34 }
0x241b   :  { %8049 = vtanh.f32 %v3521_v36 }
0x2421   :  { %v8048_v37 = vpop.eup %8047 }
0x2422   :  { %3553 = vrot.lane.b32.xlu0 %v8048_v37, %s8524_s5 }
0x2425   :  { %v8050_v15 = vpop.eup %8049 }
0x2426   :  { %3524 = vrot.lane.b32.xlu1 %v8050_v15, %s8524_s5  ;;  %v3887_v15 = vld [vmem:[#allocation3 + $0x2] sm:$0x3] }
0x2494   :  { %v3554_v38 = vpop.permute.xlu0 %3553 }
0x2495   :  { %v3556_v39 = vmul.f32 %v8044_v22, %v3554_v38 }
0x2497   :  { %3568 = vrot.lane.b32.xlu0 %v3556_v39, %s8523_s14 }
0x2498   :  { %v3525_v40 = vpop.permute.xlu1 %3524 }
0x2499   :  { %v3527_v41 = vmul.f32 %v8046_v20, %v3525_v40 }
0x249b   :  { %3558 = vrot.lane.b32.xlu1 %v3527_v41, %s8523_s14  ;;  %3573 = vrot.lane.b32.xlu0 %v3550_v23, %s8525_s2 }
0x249f   :  { %3563 = vrot.lane.b32.xlu0 %v3521_v36, %s8525_s2 }
0x2509   :  { %v3569_v42 = vpop.permute.xlu0 %3568 }
0x250a   :  { %3571 = vst.msk [vmem:[#allocation8] sm:$0x3] %vm309_vm0, %v3569_v42  ;;  %3578 = vst.msk [vmem:[#allocation5 + $0x6] sm:$0x3] %vm309_vm0, %v3569_v42 }
0x250d   :  { %v3559_v43 = vpop.permute.xlu1 %3558  ;;  %v3574_v44 = vpop.permute.xlu0 %3573 }
0x250e   :  { %3561 = vst.msk [vmem:[#allocation6] sm:$0x3] %vm309_vm0, %v3559_v43  ;;  %3577 = vst.msk [vmem:[#allocation4 + $0x8] sm:$0x3] %vm309_vm0, %v3559_v43 }
0x250f   :  { %3576 = vst.msk [vmem:[#allocation9] sm:$0x3] %vm309_vm0, %v3574_v44 }
0x2511   :  { %v3564_v45 = vpop.permute.xlu0 %3563  ;;  %v3656_v47 = vld [vmem:[#allocation8] sm:$0x3] }
0x2512   :  { %3566 = vst.msk [vmem:[#allocation7] sm:$0x3] %vm309_vm0, %v3564_v45  ;;  %7227 = vmatmul.mubr.msk.f32.vlgmr.msra.gmra.mrb[34].mxu0 %vm324_vm3, %v3656_v47 }
0x2513   :  { %7667 = vmatpush3.bf16.msra.mxu0 %v9126_v19  ;;  %7248 = vmatprep.mubr.msk.f32.mxu0 %vm8522_vm1, %v8520_v0 }
0x2514   :  { %7668 = vmatprep.subr.bf16.mxu0 %v8521_v1 }
0x2515   :  { %v3580_v48 = vld [vmem:[#allocation6] sm:$0x3] }
0x2516   :  { %v3760_v49 = vld [vmem:[#allocation9] sm:$0x3]  ;;  %7216 = vmatmul.mubr.msk.f32.vlgmr.msra.gmra.mrb[26].mxu1 %vm324_vm3, %v3580_v48 }
0x2517   :  { %3769 = vrot.lane.b32.xlu0 %v3760_v49, %s8523_s14  ;;  %7661 = vmatpush3.bf16.msra.mxu1 %v9104_v6 }
0x2518   :  { %7670 = vmatpush3.bf16.msra.mxu0 %v9135_v32  ;;  %7662 = vmatprep.subr.bf16.mxu1 %v8521_v1 }
0x2519   :  { %7237 = vmatprep.mubr.msk.f32.mxu1 %vm8522_vm1, %v8520_v0  ;;  %v3731_v50 = vld [vmem:[#allocation7] sm:$0x3]  ;;  %7677 = vmatprep.subr.bf16.mxu0 %v8521_v1 }
0x251b   :  { %3740 = vrot.lane.b32.xlu0 %v3731_v50, %s8523_s14  ;;  %7664 = vmatpush3.bf16.msra.mxu1 %v9110_v9 }
0x251c   :  { %7671 = vmatprep.subr.bf16.mxu1 %v8521_v1 }
0x2589   :  { %v3770_v13 = vpop.permute.xlu0 %3769 }
0x258d   :  { %v3741_v18 = vpop.permute.xlu0 %3740 }
0x25e5   :  { %v3726_v52 = vpop.f32.mrb[34].mxu0 }
0x25e6   :  { %v3730_v53 = vadd.f32 %v3726_v52, %v3655_v51  ;;  %v7228_v46 = vpop.f32.mrb[35].mxu0 }
0x25e8   :  { %8051 = vtanh.f32 %v3730_v53  ;;  %v6619_v60 = vmul.f32 -1.442695, %v3730_v53 }
0x25e9   :  { %v3650_v55 = vpop.f32.mrb[26].mxu1 }
0x25ea   :  { %v3654_v56 = vadd.f32 %v3650_v55, %v3579_v54  ;;  %v7217_v57 = vpop.f32.mrb[27].mxu1 }
0x25ec   :  { %8053 = vtanh.f32 %v3654_v56  ;;  %v6618_v61 = vmul.f32 -1.442695, %v3654_v56 }
0x25ed   :  { %8055 = vpow2.f32 %v6619_v60 }
0x25ee   :  { %8057 = vpow2.f32 %v6618_v61 }
0x25f2   :  { %v8052_v58 = vpop.eup %8051 }
0x25f3   :  { %3774 = vrot.lane.b32.xlu1 %v8052_v58, %s8524_s5 }
0x25f6   :  { %v8054_v59 = vpop.eup %8053 }
0x25f7   :  { %3745 = vrot.lane.b32.xlu1 %v8054_v59, %s8524_s5  ;;  %v8056_v62 = vpop.eup %8055 }
0x25f8   :  { %v3764_v63 = vadd.f32 1.0, %v8056_v62  ;;  %v8058_v2 = vpop.eup %8057 }
0x25f9   :  { %v3735_v3 = vadd.f32 1.0, %v8058_v2 }
0x25fa   :  { %8059 = vrcp.f32 %v3764_v63 }
0x25fb   :  { %8061 = vrcp.f32 %v3735_v3 }
0x2604   :  { %v8060_v4 = vpop.eup %8059 }
0x2605   :  { %v8062_v8 = vpop.eup %8061  ;;  %v3772_v14 = vmul.f32 %v8060_v4, %v3770_v13 }
0x2606   :  { %v3743_v21 = vmul.f32 %v8062_v8, %v3741_v18 }
0x2665   :  { %v3775_v5 = vpop.permute.xlu1 %3774 }
0x2666   :  { %v3777_v7 = vmul.f32 %v8060_v4, %v3775_v5 }
0x2668   :  { %3779 = vrot.lane.b32.xlu1 %v3777_v7, %s8523_s14 }
0x2669   :  { %v3746_v11 = vpop.permute.xlu1 %3745 }
0x266a   :  { %v3748_v12 = vmul.f32 %v8062_v8, %v3746_v11 }
0x266c   :  { %3750 = vrot.lane.b32.xlu1 %v3748_v12, %s8523_s14 }
0x26da   :  { %v3780_v16 = vpop.permute.xlu1 %3779 }
0x26db   :  { %v3782_v17 = vadd.f32 %v3780_v16, %v3772_v14 }
0x26dd   :  { %8063 = vtanh.f32 %v3782_v17 }
0x26de   :  { %v3751_v22 = vpop.permute.xlu1 %3750 }
0x26df   :  { %v3753_v24 = vadd.f32 %v3751_v22, %v3743_v21  ;;  %v4119_v22 = vld [vmem:[#allocation3] sm:$0x3] }
0x26e1   :  { %8065 = vtanh.f32 %v3753_v24 }
0x26e7   :  { %v8064_v25 = vpop.eup %8063 }
0x26e8   :  { %3785 = vrot.lane.b32.xlu0 %v8064_v25, %s8524_s5 }
0x26eb   :  { %v8066_v20 = vpop.eup %8065 }
0x26ec   :  { %3756 = vrot.lane.b32.xlu1 %v8066_v20, %s8524_s5 }
0x275a   :  { %v3786_v26 = vpop.permute.xlu0 %3785 }
0x275b   :  { %v3788_v28 = vmul.f32 %v8060_v4, %v3786_v26  ;;  %v4043_v26 = vld [vmem:[#allocation2 + $0xe] sm:$0x3] }
0x275d   :  { %3800 = vrot.lane.b32.xlu0 %v3788_v28, %s8523_s14 }
0x275e   :  { %v3757_v30 = vpop.permute.xlu1 %3756 }
0x275f   :  { %v3759_v31 = vmul.f32 %v8062_v8, %v3757_v30 }
0x2761   :  { %3790 = vrot.lane.b32.xlu1 %v3759_v31, %s8523_s14  ;;  %3805 = vrot.lane.b32.xlu0 %v3782_v17, %s8525_s2 }
0x2765   :  { %3795 = vrot.lane.b32.xlu0 %v3753_v24, %s8525_s2 }
0x27cf   :  { %v3801_v10 = vpop.permute.xlu0 %3800 }
0x27d0   :  { %3810 = vst.msk [vmem:[#allocation5 + $0x4] sm:$0x3] %vm309_vm0, %v3801_v10  ;;  %3803 = vst.msk [vmem:[#allocation8] sm:$0x3] %vm309_vm0, %v3801_v10 }
0x27d3   :  { %v3791_v23 = vpop.permute.xlu1 %3790  ;;  %v3806_v33 = vpop.permute.xlu0 %3805 }
0x27d4   :  { %3809 = vst.msk [vmem:[#allocation4 + $0xa] sm:$0x3] %vm309_vm0, %v3791_v23  ;;  %3793 = vst.msk [vmem:[#allocation6] sm:$0x3] %vm309_vm0, %v3791_v23 }
0x27d5   :  { %3808 = vst.msk [vmem:[#allocation9] sm:$0x3] %vm309_vm0, %v3806_v33 }
0x27d7   :  { %v3796_v34 = vpop.permute.xlu0 %3795  ;;  %v3888_v35 = vld [vmem:[#allocation8] sm:$0x3] }
0x27d8   :  { %3798 = vst.msk [vmem:[#allocation7] sm:$0x3] %vm309_vm0, %v3796_v34  ;;  %7249 = vmatmul.mubr.msk.f32.vlgmr.msra.gmra.mrb[36].mxu0 %vm324_vm3, %v3888_v35 }
0x27d9   :  { %7679 = vmatpush3.bf16.msra.mxu0 %v9126_v19  ;;  %7270 = vmatprep.mubr.msk.f32.mxu0 %vm8522_vm1, %v8520_v0 }
0x27da   :  { %7680 = vmatprep.subr.bf16.mxu0 %v8521_v1 }
0x27db   :  { %v3812_v36 = vld [vmem:[#allocation6] sm:$0x3] }
0x27dc   :  { %v3992_v37 = vld [vmem:[#allocation9] sm:$0x3]  ;;  %7238 = vmatmul.mubr.msk.f32.vlgmr.msra.gmra.mrb[28].mxu1 %vm324_vm3, %v3812_v36 }
0x27dd   :  { %4001 = vrot.lane.b32.xlu0 %v3992_v37, %s8523_s14  ;;  %7673 = vmatpush3.bf16.msra.mxu1 %v9104_v6  ;;  %v3811_v6 = vld [vmem:[#allocation2 + $0xc] sm:$0x3] }
0x27de   :  { %7682 = vmatpush3.bf16.msra.mxu0 %v9135_v32  ;;  %7674 = vmatprep.subr.bf16.mxu1 %v8521_v1 }
0x27df   :  { %7259 = vmatprep.mubr.msk.f32.mxu1 %vm8522_vm1, %v8520_v0  ;;  %v3963_v19 = vld [vmem:[#allocation7] sm:$0x3]  ;;  %7699 = vmatprep.subr.bf16.mxu0 %v8521_v1 }
0x27e1   :  { %3972 = vrot.lane.b32.xlu0 %v3963_v19, %s8523_s14  ;;  %7676 = vmatpush3.bf16.msra.mxu1 %v9110_v9 }
0x284f   :  { %v4002_v56 = vpop.permute.xlu0 %4001 }
0x2853   :  { %v3973_v60 = vpop.permute.xlu0 %3972 }
0x28ab   :  { %v3958_v38 = vpop.f32.mrb[36].mxu0 }
0x28ac   :  { %v3962_v39 = vadd.f32 %v3958_v38, %v3887_v15  ;;  %v7250_v40 = vpop.f32.mrb[37].mxu0 }
0x28ae   :  { %8067 = vtanh.f32 %v3962_v39  ;;  %v6623_v45 = vmul.f32 -1.442695, %v3962_v39 }
0x28af   :  { %v3882_v41 = vpop.f32.mrb[28].mxu1 }
0x28b0   :  { %v3886_v32 = vadd.f32 %v3882_v41, %v3811_v6  ;;  %v7239_v42 = vpop.f32.mrb[29].mxu1 }
0x28b2   :  { %8069 = vtanh.f32 %v3886_v32  ;;  %v6622_v47 = vmul.f32 -1.442695, %v3886_v32 }
0x28b3   :  { %8071 = vpow2.f32 %v6623_v45 }
0x28b4   :  { %8073 = vpow2.f32 %v6622_v47 }
0x28b8   :  { %v8068_v43 = vpop.eup %8067 }
0x28b9   :  { %4006 = vrot.lane.b32.xlu1 %v8068_v43, %s8524_s5 }
0x28bc   :  { %v8070_v44 = vpop.eup %8069 }
0x28bd   :  { %3977 = vrot.lane.b32.xlu1 %v8070_v44, %s8524_s5  ;;  %v8072_v9 = vpop.eup %8071 }
0x28be   :  { %v3996_v48 = vadd.f32 1.0, %v8072_v9  ;;  %v8074_v49 = vpop.eup %8073 }
0x28bf   :  { %v3967_v50 = vadd.f32 1.0, %v8074_v49  ;;  %v4288_v49 = vld [vmem:[#allocation24 + $0x48] sm:$0xff] }
0x28c0   :  { %8075 = vrcp.f32 %v3996_v48 }
0x28c1   :  { %8077 = vrcp.f32 %v3967_v50  ;;  %v4290_v50 = vld [vmem:[#allocation24 + $0x58] sm:$0xff] }
0x28ca   :  { %v8076_v51 = vpop.eup %8075 }
0x28cb   :  { %v8078_v46 = vpop.eup %8077  ;;  %v4004_v57 = vmul.f32 %v8076_v51, %v4002_v56  ;;  %v4292_v56 = vld [vmem:[#allocation24 + $0x68] sm:$0xff] }
0x28cc   :  { %v3975_v61 = vmul.f32 %v8078_v46, %v3973_v60  ;;  %v4293_v60 = vld [vmem:[#allocation24 + $0x70] sm:$0xff] }
0x292b   :  { %v4007_v52 = vpop.permute.xlu1 %4006 }
0x292c   :  { %v4009_v53 = vmul.f32 %v8076_v51, %v4007_v52 }
0x292e   :  { %4011 = vrot.lane.b32.xlu1 %v4009_v53, %s8523_s14 }
0x292f   :  { %v3978_v54 = vpop.permute.xlu1 %3977 }
0x2930   :  { %v3980_v55 = vmul.f32 %v8078_v46, %v3978_v54  ;;  %v4289_v54 = vld [vmem:[#allocation24 + $0x50] sm:$0xff] }
0x2932   :  { %3982 = vrot.lane.b32.xlu1 %v3980_v55, %s8523_s14 }
0x29a0   :  { %v4012_v58 = vpop.permute.xlu1 %4011 }
0x29a1   :  { %v4014_v59 = vadd.f32 %v4012_v58, %v4004_v57  ;;  %v4294_v57 = vld [vmem:[#allocation24 + $0x78] sm:$0xff] }
0x29a2   :  { %v7687_v58 = vpack.c.bf16 %v4294_v57, %v4292_v56 }
0x29a3   :  { %8079 = vtanh.f32 %v4014_v59 }
0x29a4   :  { %v3983_v62 = vpop.permute.xlu1 %3982 }
0x29a5   :  { %v3985_v63 = vadd.f32 %v3983_v62, %v3975_v61  ;;  %v4278_v62 = vld [vmem:[#allocation24 + $0x8] sm:$0xff] }
0x29a7   :  { %8081 = vtanh.f32 %v3985_v63 }
0x29ad   :  { %v8080_v2 = vpop.eup %8079 }
0x29ae   :  { %4017 = vrot.lane.b32.xlu0 %v8080_v2, %s8524_s5 }
0x29b1   :  { %v8082_v3 = vpop.eup %8081 }
0x29b2   :  { %3988 = vrot.lane.b32.xlu1 %v8082_v3, %s8524_s5 }
0x2a20   :  { %v4018_v4 = vpop.permute.xlu0 %4017 }
0x2a21   :  { %v4020_v5 = vmul.f32 %v8076_v51, %v4018_v4  ;;  %v7683_v51 = vpack.c.bf16 %v4290_v50, %v4288_v49 }
0x2a23   :  { %4032 = vrot.lane.b32.xlu0 %v4020_v5, %s8523_s14  ;;  %7684 = vmatprep.subr.bf16.mxu1 %v7683_v51  ;;  %v4485_v5 = vld [vmem:[%s9726_s11] sm:$0xff] }
0x2a24   :  { %v3989_v7 = vpop.permute.xlu1 %3988 }
0x2a25   :  { %v3991_v8 = vmul.f32 %v8078_v46, %v3989_v7  ;;  %v4287_v46 = vld [vmem:[#allocation24 + $0x40] sm:$0xff] }
0x2a26   :  { %v7685_v55 = vpack.c.bf16 %v4289_v54, %v4287_v46  ;;  %v4486_v7 = vld [vmem:[%s9726_s11 + $0x8] sm:$0xff] }
0x2a27   :  { %4022 = vrot.lane.b32.xlu1 %v3991_v8, %s8523_s14  ;;  %4037 = vrot.lane.b32.xlu0 %v4014_v59, %s8525_s2  ;;  %v4291_v59 = vld [vmem:[#allocation24 + $0x60] sm:$0xff] }
0x2a28   :  { %v7689_v61 = vpack.c.bf16 %v4293_v60, %v4291_v59 }
0x2a2b   :  { %4027 = vrot.lane.b32.xlu0 %v3985_v63, %s8525_s2  ;;  %v4280_v63 = vld [vmem:[#allocation24 + $0x18] sm:$0xff] }
0x2a2c   :  { %v7691_v2 = vpack.c.bf16 %v4280_v63, %v4278_v62 }
0x2a95   :  { %v4033_v11 = vpop.permute.xlu0 %4032 }
0x2a96   :  { %4042 = vst.msk [vmem:[#allocation5 + $0x2] sm:$0x3] %vm309_vm0, %v4033_v11  ;;  %4035 = vst.msk [vmem:[#allocation8] sm:$0x3] %vm309_vm0, %v4033_v11  ;;  %v9397_v11 = vpack.c.bf16 %v4486_v7, %v4485_v5 }
0x2a99   :  { %v4023_v12 = vpop.permute.xlu1 %4022  ;;  %v4038_v13 = vpop.permute.xlu0 %4037 }
0x2a9a   :  { %4041 = vst.msk [vmem:[#allocation4 + $0xc] sm:$0x3] %vm309_vm0, %v4023_v12  ;;  %4025 = vst.msk [vmem:[#allocation6] sm:$0x3] %vm309_vm0, %v4023_v12 }
0x2a9b   :  { %4040 = vst.msk [vmem:[#allocation9] sm:$0x3] %vm309_vm0, %v4038_v13  ;;  %v4487_v13 = vld [vmem:[%s9726_s11 + $0x10] sm:$0xff] }
0x2a9d   :  { %v4028_v14 = vpop.permute.xlu0 %4027  ;;  %v4120_v16 = vld [vmem:[#allocation8] sm:$0x3] }
0x2a9e   :  { %4030 = vst.msk [vmem:[#allocation7] sm:$0x3] %vm309_vm0, %v4028_v14  ;;  %7271 = vmatmul.mubr.msk.f32.vlgmr.msra.gmra.mrb[38].mxu0 %vm324_vm3, %v4120_v16  ;;  %v4488_v14 = vld [vmem:[%s9726_s11 + $0x18] sm:$0xff] }
0x2a9f   :  { %7281 = vmatprep.mubr.msk.f32.mxu0 %vm8522_vm1, %v8520_v0  ;;  %7701 = vmatpush3.bf16.msra.mxu0 %v9397_v11  ;;  %v9409_v16 = vpack.c.bf16 %v4488_v14, %v4487_v13 }
0x2aa0   :  { %7702 = vmatprep.subr.bf16.mxu0 %v8521_v1 }
0x2aa1   :  { %v4044_v17 = vld [vmem:[#allocation6] sm:$0x3] }
0x2aa2   :  { %v4224_v18 = vld [vmem:[#allocation9] sm:$0x3]  ;;  %7260 = vmatmul.mubr.msk.f32.vlgmr.msra.gmra.mrb[30].mxu1 %vm324_vm3, %v4044_v17 }
0x2aa3   :  { %4233 = vrot.lane.b32.xlu0 %v4224_v18, %s8523_s14  ;;  %4365 = vmatprep.mubr.f32.mxu1 %v8520_v0  ;;  %v4277_v18 = vld [vmem:[#allocation24] sm:$0xff] }
0x2aa4   :  { %7686 = vmatpush1.bf16.msra.mxu1 %v7685_v55  ;;  %7704 = vmatpush3.bf16.msra.mxu0 %v9409_v16 }
0x2aa5   :  { %v4195_v21 = vld [vmem:[#allocation7] sm:$0x3]  ;;  %7688 = vmatprep.subr.bf16.mxu1 %v7687_v58  ;;  %7705 = vmatprep.subr.bf16.mxu0 %v8521_v1 }
0x2aa7   :  { %4204 = vrot.lane.b32.xlu0 %v4195_v21, %s8523_s14  ;;  %v4279_v21 = vld [vmem:[#allocation24 + $0x10] sm:$0xff] }
0x2aa8   :  { %7690 = vmatpush1.bf16.msra.mxu1 %v7689_v61 }
0x2aa9   :  { %7692 = vmatprep.subr.bf16.mxu1 %v7691_v2 }
0x2b15   :  { %v4234_v32 = vpop.permute.xlu0 %4233 }
0x2b19   :  { %v4205_v45 = vpop.permute.xlu0 %4204 }
0x2b71   :  { %v4190_v24 = vpop.f32.mrb[38].mxu0 }
0x2b72   :  { %v4194_v25 = vadd.f32 %v4190_v24, %v4119_v22  ;;  %v7272_v20 = vpop.f32.mrb[39].mxu0 }
0x2b73   :  { %v4284_v20 = vld [vmem:[#allocation24 + $0x38] sm:$0xff] }
0x2b74   :  { %8083 = vtanh.f32 %v4194_v25  ;;  %v6627_v33 = vmul.f32 -1.442695, %v4194_v25  ;;  %v4282_v25 = vld [vmem:[#allocation24 + $0x28] sm:$0xff] }
0x2b75   :  { %v4114_v28 = vpop.f32.mrb[30].mxu1 }
0x2b76   :  { %v4118_v30 = vadd.f32 %v4114_v28, %v4043_v26  ;;  %v7261_v31 = vpop.f32.mrb[31].mxu1  ;;  %v7693_v26 = vpack.c.bf16 %v4279_v21, %v4277_v18  ;;  %v7695_v28 = vpack.c.bf16 %v4284_v20, %v4282_v25 }
0x2b77   :  { %v4283_v31 = vld [vmem:[#allocation24 + $0x30] sm:$0xff] }
0x2b78   :  { %8085 = vtanh.f32 %v4118_v30  ;;  %v6626_v34 = vmul.f32 -1.442695, %v4118_v30  ;;  %v4281_v30 = vld [vmem:[#allocation24 + $0x20] sm:$0xff] }
0x2b79   :  { %8087 = vpow2.f32 %v6627_v33  ;;  %v4489_v33 = vld [vmem:[#allocation25] sm:$0xff] }
0x2b7a   :  { %8089 = vpow2.f32 %v6626_v34  ;;  %v4490_v34 = vld [vmem:[#allocation25 + $0x8] sm:$0xff] }
0x2b7e   :  { %v8084_v10 = vpop.eup %8083 }
0x2b7f   :  { %4238 = vrot.lane.b32.xlu1 %v8084_v10, %s8524_s5 }
0x2b82   :  { %v8086_v23 = vpop.eup %8085 }
0x2b83   :  { %4209 = vrot.lane.b32.xlu1 %v8086_v23, %s8524_s5  ;;  %v8088_v35 = vpop.eup %8087 }
0x2b84   :  { %v4228_v36 = vadd.f32 1.0, %v8088_v35  ;;  %v8090_v37 = vpop.eup %8089  ;;  %v7697_v35 = vpack.c.bf16 %v4283_v31, %v4281_v30 }
0x2b85   :  { %v4199_v19 = vadd.f32 1.0, %v8090_v37  ;;  %v9430_v37 = vpack.c.bf16 %v4490_v34, %v4489_v33 }
0x2b86   :  { %8091 = vrcp.f32 %v4228_v36  ;;  %v4286_v36 = vld [vmem:[#allocation5 + $0x8] sm:$0xff] }
0x2b87   :  { %8093 = vrcp.f32 %v4199_v19 }
0x2b90   :  { %v8092_v15 = vpop.eup %8091 }
0x2b91   :  { %v8094_v40 = vpop.eup %8093  ;;  %v4236_v42 = vmul.f32 %v8092_v15, %v4234_v32  ;;  %v4461_v32 = vld [vmem:[%s9728_s13] sm:$0x3] }
0x2b92   :  { %v4207_v47 = vmul.f32 %v8094_v40, %v4205_v45 }
0x2bf1   :  { %v4239_v38 = vpop.permute.xlu1 %4238 }
0x2bf2   :  { %v4241_v39 = vmul.f32 %v8092_v15, %v4239_v38  ;;  %v4492_v38 = vld [vmem:[#allocation25 + $0x18] sm:$0xff] }
0x2bf4   :  { %4243 = vrot.lane.b32.xlu1 %v4241_v39, %s8523_s14  ;;  %v4275_v39 = vld [vmem:[#allocation4] sm:$0xff] }
0x2bf5   :  { %v4210_v6 = vpop.permute.xlu1 %4209 }
0x2bf6   :  { %v4212_v41 = vmul.f32 %v8094_v40, %v4210_v6 }
0x2bf8   :  { %4214 = vrot.lane.b32.xlu1 %v4212_v41, %s8523_s14 }
0x2c66   :  { %v4244_v43 = vpop.permute.xlu1 %4243 }
0x2c67   :  { %v4246_v44 = vadd.f32 %v4244_v43, %v4236_v42  ;;  %v4466_v42 = vrot.slane %v4461_v32, %v8861_v27  ;;  %v4470_v43 = vrot.slane %v4461_v32, %v8866_v29 }
0x2c69   :  { %8095 = vtanh.f32 %v4246_v44 }
0x2c6a   :  { %v4215_v9 = vpop.permute.xlu1 %4214 }
0x2c6b   :  { %v4217_v48 = vadd.f32 %v4215_v9, %v4207_v47 }
0x2c6d   :  { %8097 = vtanh.f32 %v4217_v48 }
0x2c73   :  { %v8096_v52 = vpop.eup %8095 }
0x2c74   :  { %4249 = vrot.lane.b32.xlu0 %v8096_v52, %s8524_s5 }
0x2c77   :  { %v8098_v53 = vpop.eup %8097 }
0x2c78   :  { %4220 = vrot.lane.b32.xlu1 %v8098_v53, %s8524_s5 }
0x2ce6   :  { %v4250_v3 = vpop.permute.xlu0 %4249 }
0x2ce7   :  { %v4252_v4 = vmul.f32 %v8092_v15, %v4250_v3  ;;  %v4491_v15 = vld [vmem:[#allocation25 + $0x10] sm:$0xff] }
0x2ce9   :  { %4264 = vrot.lane.b32.xlu0 %v4252_v4, %s8523_s14 }
0x2cea   :  { %v4221_v8 = vpop.permute.xlu1 %4220 }
0x2ceb   :  { %v4223_v12 = vmul.f32 %v8094_v40, %v4221_v8  ;;  %v9437_v40 = vpack.c.bf16 %v4492_v38, %v4491_v15 }
0x2ced   :  { %4254 = vrot.lane.b32.xlu1 %v4223_v12, %s8523_s14  ;;  %4269 = vrot.lane.b32.xlu0 %v4246_v44, %s8525_s2 }
0x2cf1   :  { %4259 = vrot.lane.b32.xlu1 %v4217_v48, %s8525_s2 }
0x2d5b   :  { %v4265_v17 = vpop.permute.xlu0 %4264 }
0x2d5c   :  { %4267 = vst.msk [vmem:[#allocation8] sm:$0x3] %vm309_vm0, %v4265_v17  ;;  %4274 = vst.msk [vmem:[#allocation5] sm:$0x3] %vm309_vm0, %v4265_v17 }
0x2d5d   :  { %4483 = vst.msk [vmem:[#allocation8] sm:$0x3] %vm309_vm0, %v8520_v0 }
0x2d5f   :  { %v4255_v22 = vpop.permute.xlu1 %4254  ;;  %v4270_v24 = vpop.permute.xlu0 %4269 }
0x2d60   :  { %4257 = vst.msk [vmem:[#allocation6] sm:$0x3] %vm309_vm0, %v4255_v22  ;;  %4273 = vst.msk [vmem:[#allocation4 + $0xe] sm:$0x3] %vm309_vm0, %v4255_v22 }
0x2d61   :  { %4272 = vst.msk [vmem:[#allocation9] sm:$0x3] %vm309_vm0, %v4270_v24  ;;  %4481 = vst.msk [vmem:[#allocation6] sm:$0x3] %vm309_vm0, %v8520_v0 }
0x2d62   :  { %4484 = vst.msk [vmem:[#allocation9] sm:$0x3] %vm309_vm0, %v8520_v0 }
0x2d63   :  { %v4260_v10 = vpop.permute.xlu1 %4259  ;;  %v4285_v23 = vld [vmem:[#allocation5] sm:$0xff] }
0x2d64   :  { %4262 = vst.msk [vmem:[#allocation7] sm:$0x3] %vm309_vm0, %v4260_v10  ;;  %6628 = vmatmul.mubr.msk.f32.vlgmr.msra.gmra.mrb[32].mxu1 %vm324_vm3, %v4285_v23  ;;  %v4570_v41 = vld [vmem:[#allocation8] sm:$0x3] }
0x2d65   :  { %4482 = vst.msk [vmem:[#allocation7] sm:$0x3] %vm309_vm0, %v8520_v0  ;;  %7694 = vmatpush1.bf16.msra.mxu1 %v7693_v26  ;;  %4371 = vmatprep.mubr.f32.mxu1 %v8520_v0 }
0x2d66   :  { %7696 = vmatprep.subr.bf16.mxu1 %v7695_v28 }
0x2d67   :  { %v4276_v6 = vld [vmem:[#allocation4 + $0x8] sm:$0xff] }
0x2d68   :  { %6629 = vmatmul.mubr.msk.f32.gmra.mrb[34].mxu1 %vm324_vm3, %v4286_v36  ;;  %v4494_v19 = vld [vmem:[#allocation6] sm:$0x3] }
0x2d69   :  { %7698 = vmatpush1.bf16.msra.mxu1 %v7697_v35  ;;  %4448 = vmatprep.mubr.f32.mxu1 %v8520_v0  ;;  %v4674_v59 = vld [vmem:[#allocation9] sm:$0x3] }
0x2d6a   :  { %7282 = vmatmul.mubr.msk.f32.vlgmr.msra.gmra.mrb[40].mxu0 %vm324_vm3, %v4494_v19  ;;  %7711 = vmatprep.subr.bf16.mxu1 %v8521_v1 }
0x2d6b   :  { %7707 = vmatpush3.bf16.msra.mxu0 %v9430_v37  ;;  %7292 = vmatprep.mubr.msk.f32.mxu0 %vm8522_vm1, %v8520_v0 }
0x2d6c   :  { %6630 = vmatmul.mubr.msk.f32.vlgmr.msra.gmra.mrb[32].mxu1 %vm324_vm3, %v4275_v39  ;;  %7708 = vmatprep.subr.bf16.mxu0 %v8521_v1  ;;  %v4645_v60 = vld [vmem:[#allocation7] sm:$0x3] }
0x2d6d   :  { %4454 = vmatprep.mubr.f32.mxu1 %v8520_v0  ;;  %7713 = vmatpush3.bf16.msra.mxu1 %v9397_v11 }
0x2d6e   :  { %7714 = vmatprep.subr.bf16.mxu1 %v8521_v1 }
0x2d6f   :  { %7710 = vmatpush3.bf16.msra.mxu0 %v9437_v40 }
0x2d70   :  { %6631 = vmatmul.mubr.msk.f32.gmra.mrb[34].mxu1 %vm324_vm3, %v4276_v6  ;;  %7717 = vmatprep.subr.bf16.mxu0 %v8521_v1 }
0x2d71   :  { %7716 = vmatpush3.bf16.msra.mxu1 %v9409_v16  ;;  %7303 = vmatprep.mubr.msk.f32.mxu1 %vm8522_vm1, %v8520_v0 }
0x2d72   :  { %7293 = vmatmul.mubr.msk.f32.vlgmr.msra.gmra.mrb[42].mxu0 %vm324_vm3, %v4570_v41  ;;  %7723 = vmatprep.subr.bf16.mxu1 %v8521_v1 }
0x2d73   :  { %7719 = vmatpush3.bf16.msra.mxu0 %v9430_v37  ;;  %7314 = vmatprep.mubr.msk.f32.mxu0 %vm8522_vm1, %v8520_v0 }
0x2d74   :  { %7720 = vmatprep.subr.bf16.mxu0 %v8521_v1 }
0x2d77   :  { %7722 = vmatpush3.bf16.msra.mxu0 %v9437_v40 }
0x2d78   :  { %7729 = vmatprep.subr.bf16.mxu0 %v8521_v1 }
0x2e3d   :  { %v4564_v44 = vpop.f32.mrb[40].mxu0 }
0x2e3e   :  { %v7283_v45 = vpop.f32.mrb[41].mxu0 }
0x2e3f   :  { %v4450_v47 = vpop.f32.mrb[32].mxu1 }
0x2e40   :  { %v4473_v9 = vadd.f32 %v4466_v42, %v4450_v47  ;;  %v4452_v48 = vpop.f32.mrb[33].mxu1 }
0x2e41   :  { %v4474_v49 = vadd.f32 %v4470_v43, %v4452_v48 }
0x2e42   :  { %4477 = vst [vmem:[#allocation2] sm:$0xff] %v4473_v9 }
0x2e43   :  { %4479 = vst [vmem:[#allocation3] sm:$0xff] %v4474_v49  ;;  %v4456_v50 = vpop.f32.mrb[34].mxu1 }
0x2e44   :  { %v4475_v51 = vadd.f32 %v4466_v42, %v4456_v50  ;;  %v4458_v52 = vpop.f32.mrb[35].mxu1 }
0x2e45   :  { %v4476_v53 = vadd.f32 %v4470_v43, %v4458_v52  ;;  %v4640_v46 = vpop.f32.mrb[42].mxu0 }
0x2e46   :  { %4478 = vst [vmem:[#allocation2 + $0x8] sm:$0xff] %v4475_v51  ;;  %v7294_v54 = vpop.f32.mrb[43].mxu0 }
0x2e47   :  { %4480 = vst [vmem:[#allocation3 + $0x8] sm:$0xff] %v4476_v53 }
0x2e49   :  { %v4493_v55 = vld [vmem:[#allocation2] sm:$0x3] }
0x2e4a   :  { %v4568_v27 = vadd.f32 %v4564_v44, %v4493_v55  ;;  %v4725_v44 = vld [vmem:[#allocation2 + $0x2] sm:$0x3] }
0x2e4c   :  { %8099 = vtanh.f32 %v4568_v27  ;;  %v6634_v62 = vmul.f32 -1.442695, %v4568_v27 }
0x2e4e   :  { %v4569_v29 = vld [vmem:[#allocation3 + $0xe] sm:$0x3]  ;;  %v4801_v41 = vld [vmem:[#allocation3 + $0xc] sm:$0x3] }
0x2e4f   :  { %v4644_v56 = vadd.f32 %v4640_v46, %v4569_v29 }
0x2e51   :  { %8101 = vtanh.f32 %v4644_v56  ;;  %v6635_v61 = vmul.f32 -1.442695, %v4644_v56 }
0x2e53   :  { %8103 = vpow2.f32 %v6635_v61 }
0x2e54   :  { %8105 = vpow2.f32 %v6634_v62 }
0x2e56   :  { %v8100_v57 = vpop.eup %8099 }
0x2e57   :  { %4659 = vrot.lane.b32.xlu1 %v8100_v57, %s8524_s5 }
0x2e5b   :  { %v8102_v58 = vpop.eup %8101 }
0x2e5c   :  { %4688 = vrot.lane.b32.xlu0 %v8102_v58, %s8524_s5 }
0x2e5d   :  { %v8104_v63 = vpop.eup %8103 }
0x2e5e   :  { %v4678_v2 = vadd.f32 1.0, %v8104_v63  ;;  %v8106_v3 = vpop.eup %8105 }
0x2e5f   :  { %v4649_v4 = vadd.f32 1.0, %v8106_v3 }
0x2e60   :  { %4683 = vrot.lane.b32.xlu0 %v4674_v59, %s8523_s14  ;;  %8107 = vrcp.f32 %v4678_v2 }
0x2e61   :  { %8109 = vrcp.f32 %v4649_v4 }
0x2e64   :  { %4654 = vrot.lane.b32.xlu0 %v4645_v60, %s8523_s14 }
0x2e6a   :  { %v8108_v5 = vpop.eup %8107 }
0x2e6b   :  { %v8110_v13 = vpop.eup %8109 }
0x2ec9   :  { %v4660_v12 = vpop.permute.xlu1 %4659 }
0x2eca   :  { %v4662_v14 = vmul.f32 %v8110_v13, %v4660_v12 }
0x2ece   :  { %v4689_v7 = vpop.permute.xlu0 %4688 }
0x2ecf   :  { %v4691_v8 = vmul.f32 %v8108_v5, %v4689_v7 }
0x2ed1   :  { %4693 = vrot.lane.b32.xlu1 %v4691_v8, %s8523_s14 }
0x2ed2   :  { %v4684_v17 = vpop.permute.xlu0 %4683 }
0x2ed3   :  { %v4686_v18 = vmul.f32 %v8108_v5, %v4684_v17 }
0x2ed5   :  { %4664 = vrot.lane.b32.xlu1 %v4662_v14, %s8523_s14 }
0x2ed6   :  { %v4655_v21 = vpop.permute.xlu0 %4654 }
0x2ed7   :  { %v4657_v25 = vmul.f32 %v8110_v13, %v4655_v21 }
0x2f43   :  { %v4694_v22 = vpop.permute.xlu1 %4693 }
0x2f44   :  { %v4696_v24 = vadd.f32 %v4694_v22, %v4686_v18 }
0x2f46   :  { %8111 = vtanh.f32 %v4696_v24 }
0x2f47   :  { %v4665_v20 = vpop.permute.xlu1 %4664 }
0x2f48   :  { %v4667_v26 = vadd.f32 %v4665_v20, %v4657_v25 }
0x2f4a   :  { %8113 = vtanh.f32 %v4667_v26 }
0x2f50   :  { %v8112_v28 = vpop.eup %8111 }
0x2f51   :  { %4699 = vrot.lane.b32.xlu0 %v8112_v28, %s8524_s5  ;;  %v5033_v28 = vld [vmem:[#allocation3 + $0xa] sm:$0x3] }
0x2f54   :  { %v8114_v30 = vpop.eup %8113 }
0x2f55   :  { %4670 = vrot.lane.b32.xlu1 %v8114_v30, %s8524_s5 }
0x2fc3   :  { %v4700_v31 = vpop.permute.xlu0 %4699 }
0x2fc4   :  { %v4702_v10 = vmul.f32 %v8108_v5, %v4700_v31 }
0x2fc6   :  { %4714 = vrot.lane.b32.xlu0 %v4702_v10, %s8523_s14 }
0x2fc7   :  { %v4671_v23 = vpop.permute.xlu1 %4670 }
0x2fc8   :  { %v4673_v33 = vmul.f32 %v8110_v13, %v4671_v23  ;;  %v4957_v23 = vld [vmem:[#allocation2 + $0x4] sm:$0x3] }
0x2fca   :  { %4704 = vrot.lane.b32.xlu1 %v4673_v33, %s8523_s14  ;;  %4719 = vrot.lane.b32.xlu0 %v4696_v24, %s8525_s2 }
0x2fce   :  { %4709 = vrot.lane.b32.xlu0 %v4667_v26, %s8525_s2 }
0x3038   :  { %v4715_v34 = vpop.permute.xlu0 %4714 }
0x3039   :  { %4724 = vst.msk [vmem:[#allocation5 + $0xe] sm:$0x3] %vm309_vm0, %v4715_v34  ;;  %4717 = vst.msk [vmem:[#allocation8] sm:$0x3] %vm309_vm0, %v4715_v34 }
0x303c   :  { %v4705_v35 = vpop.permute.xlu1 %4704  ;;  %v4720_v36 = vpop.permute.xlu0 %4719 }
0x303d   :  { %4723 = vst.msk [vmem:[#allocation4] sm:$0x3] %vm309_vm0, %v4705_v35  ;;  %4707 = vst.msk [vmem:[#allocation6] sm:$0x3] %vm309_vm0, %v4705_v35 }
0x303e   :  { %4722 = vst.msk [vmem:[#allocation9] sm:$0x3] %vm309_vm0, %v4720_v36 }
0x3040   :  { %v4710_v19 = vpop.permute.xlu0 %4709  ;;  %v4802_v15 = vld [vmem:[#allocation8] sm:$0x3] }
0x3041   :  { %4712 = vst.msk [vmem:[#allocation7] sm:$0x3] %vm309_vm0, %v4710_v19  ;;  %7315 = vmatmul.mubr.msk.f32.vlgmr.msra.gmra.mrb[44].mxu0 %vm324_vm3, %v4802_v15 }
0x3042   :  { %7731 = vmatpush3.bf16.msra.mxu0 %v9430_v37  ;;  %7336 = vmatprep.mubr.msk.f32.mxu0 %vm8522_vm1, %v8520_v0 }
0x3043   :  { %7732 = vmatprep.subr.bf16.mxu0 %v8521_v1 }
0x3044   :  { %v4726_v38 = vld [vmem:[#allocation6] sm:$0x3] }
0x3045   :  { %v4906_v39 = vld [vmem:[#allocation9] sm:$0x3]  ;;  %7304 = vmatmul.mubr.msk.f32.vlgmr.msra.gmra.mrb[36].mxu1 %vm324_vm3, %v4726_v38 }
0x3046   :  { %4915 = vrot.lane.b32.xlu0 %v4906_v39, %s8523_s14  ;;  %7725 = vmatpush3.bf16.msra.mxu1 %v9397_v11 }
0x3047   :  { %7734 = vmatpush3.bf16.msra.mxu0 %v9437_v40  ;;  %7726 = vmatprep.subr.bf16.mxu1 %v8521_v1 }
0x3048   :  { %7325 = vmatprep.mubr.msk.f32.mxu1 %vm8522_vm1, %v8520_v0  ;;  %v4877_v6 = vld [vmem:[#allocation7] sm:$0x3]  ;;  %7741 = vmatprep.subr.bf16.mxu0 %v8521_v1 }
0x304a   :  { %4886 = vrot.lane.b32.xlu0 %v4877_v6, %s8523_s14  ;;  %7728 = vmatpush3.bf16.msra.mxu1 %v9409_v16 }
0x304b   :  { %7735 = vmatprep.subr.bf16.mxu1 %v8521_v1 }
0x30b8   :  { %v4916_v59 = vpop.permute.xlu0 %4915 }
0x30bc   :  { %v4887_v63 = vpop.permute.xlu0 %4886 }
0x3114   :  { %v4872_v32 = vpop.f32.mrb[44].mxu0 }
0x3115   :  { %v4876_v42 = vadd.f32 %v4872_v32, %v4801_v41  ;;  %v7316_v43 = vpop.f32.mrb[45].mxu0 }
0x3117   :  { %8115 = vtanh.f32 %v4876_v42  ;;  %v6639_v50 = vmul.f32 -1.442695, %v4876_v42 }
0x3118   :  { %v4796_v45 = vpop.f32.mrb[36].mxu1 }
0x3119   :  { %v4800_v47 = vadd.f32 %v4796_v45, %v4725_v44  ;;  %v7305_v9 = vpop.f32.mrb[37].mxu1 }
0x311b   :  { %8117 = vtanh.f32 %v4800_v47  ;;  %v6638_v51 = vmul.f32 -1.442695, %v4800_v47 }
0x311c   :  { %8119 = vpow2.f32 %v6639_v50 }
0x311d   :  { %8121 = vpow2.f32 %v6638_v51 }
0x3121   :  { %v8116_v48 = vpop.eup %8115 }
0x3122   :  { %4920 = vrot.lane.b32.xlu1 %v8116_v48, %s8524_s5 }
0x3125   :  { %v8118_v49 = vpop.eup %8117 }
0x3126   :  { %4891 = vrot.lane.b32.xlu1 %v8118_v49, %s8524_s5  ;;  %v8120_v52 = vpop.eup %8119 }
0x3127   :  { %v4910_v53 = vadd.f32 1.0, %v8120_v52  ;;  %v8122_v46 = vpop.eup %8121 }
0x3128   :  { %v4881_v54 = vadd.f32 1.0, %v8122_v46 }
0x3129   :  { %8123 = vrcp.f32 %v4910_v53 }
0x312a   :  { %8125 = vrcp.f32 %v4881_v54 }
0x3133   :  { %v8124_v55 = vpop.eup %8123 }
0x3134   :  { %v8126_v56 = vpop.eup %8125  ;;  %v4918_v60 = vmul.f32 %v8124_v55, %v4916_v59 }
0x3135   :  { %v4889_v2 = vmul.f32 %v8126_v56, %v4887_v63 }
0x3194   :  { %v4921_v27 = vpop.permute.xlu1 %4920 }
0x3195   :  { %v4923_v29 = vmul.f32 %v8124_v55, %v4921_v27 }
0x3197   :  { %4925 = vrot.lane.b32.xlu1 %v4923_v29, %s8523_s14 }
0x3198   :  { %v4892_v57 = vpop.permute.xlu1 %4891 }
0x3199   :  { %v4894_v58 = vmul.f32 %v8126_v56, %v4892_v57 }
0x319b   :  { %4896 = vrot.lane.b32.xlu1 %v4894_v58, %s8523_s14 }
0x3209   :  { %v4926_v61 = vpop.permute.xlu1 %4925 }
0x320a   :  { %v4928_v62 = vadd.f32 %v4926_v61, %v4918_v60 }
0x320c   :  { %8127 = vtanh.f32 %v4928_v62 }
0x320d   :  { %v4897_v3 = vpop.permute.xlu1 %4896 }
0x320e   :  { %v4899_v4 = vadd.f32 %v4897_v3, %v4889_v2 }
0x3210   :  { %8129 = vtanh.f32 %v4899_v4 }
0x3216   :  { %v8128_v5 = vpop.eup %8127 }
0x3217   :  { %4931 = vrot.lane.b32.xlu0 %v8128_v5, %s8524_s5  ;;  %v5265_v5 = vld [vmem:[#allocation3 + $0x8] sm:$0x3] }
0x321a   :  { %v8130_v7 = vpop.eup %8129 }
0x321b   :  { %4902 = vrot.lane.b32.xlu1 %v8130_v7, %s8524_s5 }
0x3289   :  { %v4932_v8 = vpop.permute.xlu0 %4931 }
0x328a   :  { %v4934_v12 = vmul.f32 %v8124_v55, %v4932_v8 }
0x328c   :  { %4946 = vrot.lane.b32.xlu0 %v4934_v12, %s8523_s14 }
0x328d   :  { %v4903_v13 = vpop.permute.xlu1 %4902 }
0x328e   :  { %v4905_v14 = vmul.f32 %v8126_v56, %v4903_v13  ;;  %v5189_v13 = vld [vmem:[#allocation2 + $0x6] sm:$0x3] }
0x3290   :  { %4936 = vrot.lane.b32.xlu1 %v4905_v14, %s8523_s14  ;;  %4951 = vrot.lane.b32.xlu0 %v4928_v62, %s8525_s2 }
0x3294   :  { %4941 = vrot.lane.b32.xlu0 %v4899_v4, %s8525_s2 }
0x32fe   :  { %v4947_v17 = vpop.permute.xlu0 %4946 }
0x32ff   :  { %4956 = vst.msk [vmem:[#allocation5 + $0xc] sm:$0x3] %vm309_vm0, %v4947_v17  ;;  %4949 = vst.msk [vmem:[#allocation8] sm:$0x3] %vm309_vm0, %v4947_v17 }
0x3302   :  { %v4937_v18 = vpop.permute.xlu1 %4936  ;;  %v4952_v21 = vpop.permute.xlu0 %4951 }
0x3303   :  { %4955 = vst.msk [vmem:[#allocation4 + $0x2] sm:$0x3] %vm309_vm0, %v4937_v18  ;;  %4939 = vst.msk [vmem:[#allocation6] sm:$0x3] %vm309_vm0, %v4937_v18 }
0x3304   :  { %4954 = vst.msk [vmem:[#allocation9] sm:$0x3] %vm309_vm0, %v4952_v21 }
0x3306   :  { %v4942_v22 = vpop.permute.xlu0 %4941  ;;  %v5034_v24 = vld [vmem:[#allocation8] sm:$0x3] }
0x3307   :  { %4944 = vst.msk [vmem:[#allocation7] sm:$0x3] %vm309_vm0, %v4942_v22  ;;  %7337 = vmatmul.mubr.msk.f32.vlgmr.msra.gmra.mrb[46].mxu0 %vm324_vm3, %v5034_v24 }
0x3308   :  { %7743 = vmatpush3.bf16.msra.mxu0 %v9430_v37  ;;  %7358 = vmatprep.mubr.msk.f32.mxu0 %vm8522_vm1, %v8520_v0 }
0x3309   :  { %7744 = vmatprep.subr.bf16.mxu0 %v8521_v1 }
0x330a   :  { %v4958_v25 = vld [vmem:[#allocation6] sm:$0x3] }
0x330b   :  { %v5138_v20 = vld [vmem:[#allocation9] sm:$0x3]  ;;  %7326 = vmatmul.mubr.msk.f32.vlgmr.msra.gmra.mrb[38].mxu1 %vm324_vm3, %v4958_v25 }
0x330c   :  { %5147 = vrot.lane.b32.xlu0 %v5138_v20, %s8523_s14  ;;  %7737 = vmatpush3.bf16.msra.mxu1 %v9397_v11 }
0x330d   :  { %7746 = vmatpush3.bf16.msra.mxu0 %v9437_v40  ;;  %7738 = vmatprep.subr.bf16.mxu1 %v8521_v1 }
0x330e   :  { %7347 = vmatprep.mubr.msk.f32.mxu1 %vm8522_vm1, %v8520_v0  ;;  %v5109_v26 = vld [vmem:[#allocation7] sm:$0x3]  ;;  %7753 = vmatprep.subr.bf16.mxu0 %v8521_v1 }
0x3310   :  { %5118 = vrot.lane.b32.xlu0 %v5109_v26, %s8523_s14  ;;  %7740 = vmatpush3.bf16.msra.mxu1 %v9409_v16 }
0x3311   :  { %7747 = vmatprep.subr.bf16.mxu1 %v8521_v1 }
0x337e   :  { %v5148_v48 = vpop.permute.xlu0 %5147 }
0x3382   :  { %v5119_v52 = vpop.permute.xlu0 %5118 }
0x33da   :  { %v5104_v30 = vpop.f32.mrb[46].mxu0 }
0x33db   :  { %v5108_v31 = vadd.f32 %v5104_v30, %v5033_v28  ;;  %v7338_v10 = vpop.f32.mrb[47].mxu0 }
0x33dd   :  { %8131 = vtanh.f32 %v5108_v31  ;;  %v6643_v15 = vmul.f32 -1.442695, %v5108_v31 }
0x33de   :  { %v5028_v33 = vpop.f32.mrb[38].mxu1 }
0x33df   :  { %v5032_v34 = vadd.f32 %v5028_v33, %v4957_v23  ;;  %v7327_v35 = vpop.f32.mrb[39].mxu1 }
0x33e1   :  { %8133 = vtanh.f32 %v5032_v34  ;;  %v6642_v38 = vmul.f32 -1.442695, %v5032_v34 }
0x33e2   :  { %8135 = vpow2.f32 %v6643_v15 }
0x33e3   :  { %8137 = vpow2.f32 %v6642_v38 }
0x33e7   :  { %v8132_v36 = vpop.eup %8131 }
0x33e8   :  { %5152 = vrot.lane.b32.xlu1 %v8132_v36, %s8524_s5 }
0x33eb   :  { %v8134_v19 = vpop.eup %8133 }
0x33ec   :  { %5123 = vrot.lane.b32.xlu1 %v8134_v19, %s8524_s5  ;;  %v8136_v39 = vpop.eup %8135 }
0x33ed   :  { %v5142_v6 = vadd.f32 1.0, %v8136_v39  ;;  %v8138_v41 = vpop.eup %8137 }
0x33ee   :  { %v5113_v32 = vadd.f32 1.0, %v8138_v41 }
0x33ef   :  { %8139 = vrcp.f32 %v5142_v6 }
0x33f0   :  { %8141 = vrcp.f32 %v5113_v32 }
0x33f9   :  { %v8140_v42 = vpop.eup %8139 }
0x33fa   :  { %v8142_v45 = vpop.eup %8141  ;;  %v5150_v49 = vmul.f32 %v8140_v42, %v5148_v48 }
0x33fb   :  { %v5121_v53 = vmul.f32 %v8142_v45, %v5119_v52 }
0x345a   :  { %v5153_v43 = vpop.permute.xlu1 %5152 }
0x345b   :  { %v5155_v44 = vmul.f32 %v8140_v42, %v5153_v43 }
0x345d   :  { %5157 = vrot.lane.b32.xlu1 %v5155_v44, %s8523_s14 }
0x345e   :  { %v5124_v47 = vpop.permute.xlu1 %5123 }
0x345f   :  { %v5126_v9 = vmul.f32 %v8142_v45, %v5124_v47 }
0x3461   :  { %5128 = vrot.lane.b32.xlu1 %v5126_v9, %s8523_s14 }
0x34cf   :  { %v5158_v50 = vpop.permute.xlu1 %5157 }
0x34d0   :  { %v5160_v51 = vadd.f32 %v5158_v50, %v5150_v49 }
0x34d2   :  { %8143 = vtanh.f32 %v5160_v51 }
0x34d3   :  { %v5129_v46 = vpop.permute.xlu1 %5128 }
0x34d4   :  { %v5131_v54 = vadd.f32 %v5129_v46, %v5121_v53 }
0x34d6   :  { %8145 = vtanh.f32 %v5131_v54 }
0x34dc   :  { %v8144_v55 = vpop.eup %8143 }
0x34dd   :  { %5163 = vrot.lane.b32.xlu0 %v8144_v55, %s8524_s5  ;;  %v5497_v55 = vld [vmem:[#allocation3 + $0x6] sm:$0x3] }
0x34e0   :  { %v8146_v27 = vpop.eup %8145 }
0x34e1   :  { %5134 = vrot.lane.b32.xlu1 %v8146_v27, %s8524_s5 }
0x354f   :  { %v5164_v29 = vpop.permute.xlu0 %5163 }
0x3550   :  { %v5166_v56 = vmul.f32 %v8140_v42, %v5164_v29 }
0x3552   :  { %5178 = vrot.lane.b32.xlu0 %v5166_v56, %s8523_s14 }
0x3553   :  { %v5135_v57 = vpop.permute.xlu1 %5134 }
0x3554   :  { %v5137_v58 = vmul.f32 %v8142_v45, %v5135_v57  ;;  %v5421_v57 = vld [vmem:[#allocation2 + $0x8] sm:$0x3] }
0x3556   :  { %5168 = vrot.lane.b32.xlu1 %v5137_v58, %s8523_s14  ;;  %5183 = vrot.lane.b32.xlu0 %v5160_v51, %s8525_s2 }
0x355a   :  { %5173 = vrot.lane.b32.xlu0 %v5131_v54, %s8525_s2 }
0x35c4   :  { %v5179_v59 = vpop.permute.xlu0 %5178 }
0x35c5   :  { %5188 = vst.msk [vmem:[#allocation5 + $0xa] sm:$0x3] %vm309_vm0, %v5179_v59  ;;  %5181 = vst.msk [vmem:[#allocation8] sm:$0x3] %vm309_vm0, %v5179_v59 }
0x35c8   :  { %v5169_v60 = vpop.permute.xlu1 %5168  ;;  %v5184_v61 = vpop.permute.xlu0 %5183 }
0x35c9   :  { %5187 = vst.msk [vmem:[#allocation4 + $0x4] sm:$0x3] %vm309_vm0, %v5169_v60  ;;  %5171 = vst.msk [vmem:[#allocation6] sm:$0x3] %vm309_vm0, %v5169_v60 }
0x35ca   :  { %5186 = vst.msk [vmem:[#allocation9] sm:$0x3] %vm309_vm0, %v5184_v61 }
0x35cc   :  { %v5174_v62 = vpop.permute.xlu0 %5173  ;;  %v5266_v63 = vld [vmem:[#allocation8] sm:$0x3] }
0x35cd   :  { %5176 = vst.msk [vmem:[#allocation7] sm:$0x3] %vm309_vm0, %v5174_v62  ;;  %7359 = vmatmul.mubr.msk.f32.vlgmr.msra.gmra.mrb[48].mxu0 %vm324_vm3, %v5266_v63 }
0x35ce   :  { %7755 = vmatpush3.bf16.msra.mxu0 %v9430_v37  ;;  %7380 = vmatprep.mubr.msk.f32.mxu0 %vm8522_vm1, %v8520_v0 }
0x35cf   :  { %7756 = vmatprep.subr.bf16.mxu0 %v8521_v1 }
0x35d0   :  { %v5190_v2 = vld [vmem:[#allocation6] sm:$0x3] }
0x35d1   :  { %v5370_v3 = vld [vmem:[#allocation9] sm:$0x3]  ;;  %7348 = vmatmul.mubr.msk.f32.vlgmr.msra.gmra.mrb[40].mxu1 %vm324_vm3, %v5190_v2 }
0x35d2   :  { %5379 = vrot.lane.b32.xlu0 %v5370_v3, %s8523_s14  ;;  %7749 = vmatpush3.bf16.msra.mxu1 %v9397_v11 }
0x35d3   :  { %7758 = vmatpush3.bf16.msra.mxu0 %v9437_v40  ;;  %7750 = vmatprep.subr.bf16.mxu1 %v8521_v1 }
0x35d4   :  { %7369 = vmatprep.mubr.msk.f32.mxu1 %vm8522_vm1, %v8520_v0  ;;  %v5341_v4 = vld [vmem:[#allocation7] sm:$0x3]  ;;  %7765 = vmatprep.subr.bf16.mxu0 %v8521_v1 }
0x35d6   :  { %5350 = vrot.lane.b32.xlu0 %v5341_v4, %s8523_s14  ;;  %7752 = vmatpush3.bf16.msra.mxu1 %v9409_v16 }
0x35d7   :  { %7759 = vmatprep.subr.bf16.mxu1 %v8521_v1 }
0x3644   :  { %v5380_v36 = vpop.permute.xlu0 %5379 }
0x3648   :  { %v5351_v39 = vpop.permute.xlu0 %5350 }
0x36a0   :  { %v5336_v7 = vpop.f32.mrb[48].mxu0 }
0x36a1   :  { %v5340_v8 = vadd.f32 %v5336_v7, %v5265_v5  ;;  %v7360_v12 = vpop.f32.mrb[49].mxu0 }
0x36a3   :  { %8147 = vtanh.f32 %v5340_v8  ;;  %v6647_v24 = vmul.f32 -1.442695, %v5340_v8 }
0x36a4   :  { %v5260_v14 = vpop.f32.mrb[40].mxu1 }
0x36a5   :  { %v5264_v17 = vadd.f32 %v5260_v14, %v5189_v13  ;;  %v7349_v18 = vpop.f32.mrb[41].mxu1 }
0x36a7   :  { %8149 = vtanh.f32 %v5264_v17  ;;  %v6646_v25 = vmul.f32 -1.442695, %v5264_v17 }
0x36a8   :  { %8151 = vpow2.f32 %v6647_v24 }
0x36a9   :  { %8153 = vpow2.f32 %v6646_v25 }
0x36ad   :  { %v8148_v21 = vpop.eup %8147 }
0x36ae   :  { %5384 = vrot.lane.b32.xlu1 %v8148_v21, %s8524_s5 }
0x36b1   :  { %v8150_v22 = vpop.eup %8149 }
0x36b2   :  { %5355 = vrot.lane.b32.xlu1 %v8150_v22, %s8524_s5  ;;  %v8152_v20 = vpop.eup %8151 }
0x36b3   :  { %v5374_v26 = vadd.f32 1.0, %v8152_v20  ;;  %v8154_v28 = vpop.eup %8153 }
0x36b4   :  { %v5345_v30 = vadd.f32 1.0, %v8154_v28 }
0x36b5   :  { %8155 = vrcp.f32 %v5374_v26 }
0x36b6   :  { %8157 = vrcp.f32 %v5345_v30 }
0x36bf   :  { %v8156_v31 = vpop.eup %8155 }
0x36c0   :  { %v8158_v33 = vpop.eup %8157  ;;  %v5382_v19 = vmul.f32 %v8156_v31, %v5380_v36 }
0x36c1   :  { %v5353_v6 = vmul.f32 %v8158_v33, %v5351_v39 }
0x3720   :  { %v5385_v10 = vpop.permute.xlu1 %5384 }
0x3721   :  { %v5387_v23 = vmul.f32 %v8156_v31, %v5385_v10 }
0x3723   :  { %5389 = vrot.lane.b32.xlu1 %v5387_v23, %s8523_s14 }
0x3724   :  { %v5356_v34 = vpop.permute.xlu1 %5355 }
0x3725   :  { %v5358_v35 = vmul.f32 %v8158_v33, %v5356_v34 }
0x3727   :  { %5360 = vrot.lane.b32.xlu1 %v5358_v35, %s8523_s14 }
0x3795   :  { %v5390_v15 = vpop.permute.xlu1 %5389 }
0x3796   :  { %v5392_v38 = vadd.f32 %v5390_v15, %v5382_v19 }
0x3798   :  { %8159 = vtanh.f32 %v5392_v38 }
0x3799   :  { %v5361_v41 = vpop.permute.xlu1 %5360 }
0x379a   :  { %v5363_v32 = vadd.f32 %v5361_v41, %v5353_v6 }
0x379c   :  { %8161 = vtanh.f32 %v5363_v32 }
0x37a2   :  { %v8160_v42 = vpop.eup %8159 }
0x37a3   :  { %5395 = vrot.lane.b32.xlu0 %v8160_v42, %s8524_s5  ;;  %v5729_v42 = vld [vmem:[#allocation3 + $0x4] sm:$0x3] }
0x37a6   :  { %v8162_v43 = vpop.eup %8161 }
0x37a7   :  { %5366 = vrot.lane.b32.xlu1 %v8162_v43, %s8524_s5 }
0x3815   :  { %v5396_v44 = vpop.permute.xlu0 %5395 }
0x3816   :  { %v5398_v45 = vmul.f32 %v8156_v31, %v5396_v44 }
0x3818   :  { %5410 = vrot.lane.b32.xlu0 %v5398_v45, %s8523_s14 }
0x3819   :  { %v5367_v47 = vpop.permute.xlu1 %5366 }
0x381a   :  { %v5369_v9 = vmul.f32 %v8158_v33, %v5367_v47  ;;  %v5653_v47 = vld [vmem:[#allocation2 + $0xa] sm:$0x3] }
0x381c   :  { %5400 = vrot.lane.b32.xlu1 %v5369_v9, %s8523_s14  ;;  %5415 = vrot.lane.b32.xlu0 %v5392_v38, %s8525_s2 }
0x3820   :  { %5405 = vrot.lane.b32.xlu0 %v5363_v32, %s8525_s2 }
0x388a   :  { %v5411_v48 = vpop.permute.xlu0 %5410 }
0x388b   :  { %5420 = vst.msk [vmem:[#allocation5 + $0x8] sm:$0x3] %vm309_vm0, %v5411_v48  ;;  %5413 = vst.msk [vmem:[#allocation8] sm:$0x3] %vm309_vm0, %v5411_v48 }
0x388e   :  { %v5401_v49 = vpop.permute.xlu1 %5400  ;;  %v5416_v50 = vpop.permute.xlu0 %5415 }
0x388f   :  { %5419 = vst.msk [vmem:[#allocation4 + $0x6] sm:$0x3] %vm309_vm0, %v5401_v49  ;;  %5403 = vst.msk [vmem:[#allocation6] sm:$0x3] %vm309_vm0, %v5401_v49 }
0x3890   :  { %5418 = vst.msk [vmem:[#allocation9] sm:$0x3] %vm309_vm0, %v5416_v50 }
0x3892   :  { %v5406_v51 = vpop.permute.xlu0 %5405  ;;  %v5498_v52 = vld [vmem:[#allocation8] sm:$0x3] }
0x3893   :  { %5408 = vst.msk [vmem:[#allocation7] sm:$0x3] %vm309_vm0, %v5406_v51  ;;  %7381 = vmatmul.mubr.msk.f32.vlgmr.msra.gmra.mrb[50].mxu0 %vm324_vm3, %v5498_v52 }
0x3894   :  { %7767 = vmatpush3.bf16.msra.mxu0 %v9430_v37  ;;  %7402 = vmatprep.mubr.msk.f32.mxu0 %vm8522_vm1, %v8520_v0 }
0x3895   :  { %7768 = vmatprep.subr.bf16.mxu0 %v8521_v1 }
0x3896   :  { %v5422_v53 = vld [vmem:[#allocation6] sm:$0x3] }
0x3897   :  { %v5602_v46 = vld [vmem:[#allocation9] sm:$0x3]  ;;  %7370 = vmatmul.mubr.msk.f32.vlgmr.msra.gmra.mrb[42].mxu1 %vm324_vm3, %v5422_v53 }
0x3898   :  { %5611 = vrot.lane.b32.xlu0 %v5602_v46, %s8523_s14  ;;  %7761 = vmatpush3.bf16.msra.mxu1 %v9397_v11 }
0x3899   :  { %7770 = vmatpush3.bf16.msra.mxu0 %v9437_v40  ;;  %7762 = vmatprep.subr.bf16.mxu1 %v8521_v1 }
0x389a   :  { %7391 = vmatprep.mubr.msk.f32.mxu1 %vm8522_vm1, %v8520_v0  ;;  %v5573_v54 = vld [vmem:[#allocation7] sm:$0x3]  ;;  %7777 = vmatprep.subr.bf16.mxu0 %v8521_v1 }
0x389c   :  { %5582 = vrot.lane.b32.xlu0 %v5573_v54, %s8523_s14  ;;  %7764 = vmatpush3.bf16.msra.mxu1 %v9409_v16 }
0x389d   :  { %7771 = vmatprep.subr.bf16.mxu1 %v8521_v1 }
0x390a   :  { %v5612_v21 = vpop.permute.xlu0 %5611 }
0x390e   :  { %v5583_v20 = vpop.permute.xlu0 %5582 }
0x3966   :  { %v5568_v27 = vpop.f32.mrb[50].mxu0 }
0x3967   :  { %v5572_v29 = vadd.f32 %v5568_v27, %v5497_v55  ;;  %v7382_v56 = vpop.f32.mrb[51].mxu0 }
0x3969   :  { %8163 = vtanh.f32 %v5572_v29  ;;  %v6651_v63 = vmul.f32 -1.442695, %v5572_v29 }
0x396a   :  { %v5492_v58 = vpop.f32.mrb[42].mxu1 }
0x396b   :  { %v5496_v59 = vadd.f32 %v5492_v58, %v5421_v57  ;;  %v7371_v60 = vpop.f32.mrb[43].mxu1 }
0x396d   :  { %8165 = vtanh.f32 %v5496_v59  ;;  %v6650_v2 = vmul.f32 -1.442695, %v5496_v59 }
0x396e   :  { %8167 = vpow2.f32 %v6651_v63 }
0x396f   :  { %8169 = vpow2.f32 %v6650_v2 }
0x3973   :  { %v8164_v61 = vpop.eup %8163 }
0x3974   :  { %5616 = vrot.lane.b32.xlu1 %v8164_v61, %s8524_s5 }
0x3977   :  { %v8166_v62 = vpop.eup %8165 }
0x3978   :  { %5587 = vrot.lane.b32.xlu1 %v8166_v62, %s8524_s5  ;;  %v8168_v3 = vpop.eup %8167 }
0x3979   :  { %v5606_v4 = vadd.f32 1.0, %v8168_v3  ;;  %v8170_v5 = vpop.eup %8169 }
0x397a   :  { %v5577_v7 = vadd.f32 1.0, %v8170_v5 }
0x397b   :  { %8171 = vrcp.f32 %v5606_v4 }
0x397c   :  { %8173 = vrcp.f32 %v5577_v7 }
0x3985   :  { %v8172_v8 = vpop.eup %8171 }
0x3986   :  { %v8174_v14 = vpop.eup %8173  ;;  %v5614_v22 = vmul.f32 %v8172_v8, %v5612_v21 }
0x3987   :  { %v5585_v26 = vmul.f32 %v8174_v14, %v5583_v20 }
0x39e6   :  { %v5617_v12 = vpop.permute.xlu1 %5616 }
0x39e7   :  { %v5619_v13 = vmul.f32 %v8172_v8, %v5617_v12 }
0x39e9   :  { %5621 = vrot.lane.b32.xlu1 %v5619_v13, %s8523_s14 }
0x39ea   :  { %v5588_v17 = vpop.permute.xlu1 %5587 }
0x39eb   :  { %v5590_v18 = vmul.f32 %v8174_v14, %v5588_v17 }
0x39ed   :  { %5592 = vrot.lane.b32.xlu1 %v5590_v18, %s8523_s14 }
0x3a5b   :  { %v5622_v24 = vpop.permute.xlu1 %5621 }
0x3a5c   :  { %v5624_v25 = vadd.f32 %v5622_v24, %v5614_v22 }
0x3a5e   :  { %8175 = vtanh.f32 %v5624_v25 }
0x3a5f   :  { %v5593_v28 = vpop.permute.xlu1 %5592 }
0x3a60   :  { %v5595_v30 = vadd.f32 %v5593_v28, %v5585_v26 }
0x3a62   :  { %8177 = vtanh.f32 %v5595_v30 }
0x3a68   :  { %v8176_v31 = vpop.eup %8175 }
0x3a69   :  { %5627 = vrot.lane.b32.xlu0 %v8176_v31, %s8524_s5 }
0x3a6c   :  { %v8178_v10 = vpop.eup %8177 }
0x3a6d   :  { %5598 = vrot.lane.b32.xlu1 %v8178_v10, %s8524_s5 }
0x3adb   :  { %v5628_v23 = vpop.permute.xlu0 %5627 }
0x3adc   :  { %v5630_v33 = vmul.f32 %v8172_v8, %v5628_v23 }
0x3ade   :  { %5642 = vrot.lane.b32.xlu0 %v5630_v33, %s8523_s14  ;;  %v5885_v33 = vld [vmem:[#allocation2 + $0xc] sm:$0x3] }
0x3adf   :  { %v5599_v34 = vpop.permute.xlu1 %5598 }
0x3ae0   :  { %v5601_v35 = vmul.f32 %v8174_v14, %v5599_v34 }
0x3ae2   :  { %5632 = vrot.lane.b32.xlu1 %v5601_v35, %s8523_s14  ;;  %5647 = vrot.lane.b32.xlu0 %v5624_v25, %s8525_s2 }
0x3ae6   :  { %5637 = vrot.lane.b32.xlu0 %v5595_v30, %s8525_s2  ;;  %v5961_v30 = vld [vmem:[#allocation3 + $0x2] sm:$0x3] }
0x3b50   :  { %v5643_v36 = vpop.permute.xlu0 %5642 }
0x3b51   :  { %5652 = vst.msk [vmem:[#allocation5 + $0x6] sm:$0x3] %vm309_vm0, %v5643_v36  ;;  %5645 = vst.msk [vmem:[#allocation8] sm:$0x3] %vm309_vm0, %v5643_v36 }
0x3b54   :  { %v5633_v19 = vpop.permute.xlu1 %5632  ;;  %v5648_v15 = vpop.permute.xlu0 %5647 }
0x3b55   :  { %5651 = vst.msk [vmem:[#allocation4 + $0x8] sm:$0x3] %vm309_vm0, %v5633_v19  ;;  %5635 = vst.msk [vmem:[#allocation6] sm:$0x3] %vm309_vm0, %v5633_v19 }
0x3b56   :  { %5650 = vst.msk [vmem:[#allocation9] sm:$0x3] %vm309_vm0, %v5648_v15 }
0x3b58   :  { %v5638_v38 = vpop.permute.xlu0 %5637  ;;  %v5730_v39 = vld [vmem:[#allocation8] sm:$0x3] }
0x3b59   :  { %5640 = vst.msk [vmem:[#allocation7] sm:$0x3] %vm309_vm0, %v5638_v38  ;;  %7403 = vmatmul.mubr.msk.f32.vlgmr.msra.gmra.mrb[52].mxu0 %vm324_vm3, %v5730_v39 }
0x3b5a   :  { %7779 = vmatpush3.bf16.msra.mxu0 %v9430_v37  ;;  %7424 = vmatprep.mubr.msk.f32.mxu0 %vm8522_vm1, %v8520_v0 }
0x3b5b   :  { %7780 = vmatprep.subr.bf16.mxu0 %v8521_v1 }
0x3b5c   :  { %v5654_v6 = vld [vmem:[#allocation6] sm:$0x3] }
0x3b5d   :  { %v5834_v41 = vld [vmem:[#allocation9] sm:$0x3]  ;;  %7392 = vmatmul.mubr.msk.f32.vlgmr.msra.gmra.mrb[44].mxu1 %vm324_vm3, %v5654_v6 }
0x3b5e   :  { %5843 = vrot.lane.b32.xlu0 %v5834_v41, %s8523_s14  ;;  %7773 = vmatpush3.bf16.msra.mxu1 %v9397_v11 }
0x3b5f   :  { %7782 = vmatpush3.bf16.msra.mxu0 %v9437_v40  ;;  %7774 = vmatprep.subr.bf16.mxu1 %v8521_v1 }
0x3b60   :  { %7413 = vmatprep.mubr.msk.f32.mxu1 %vm8522_vm1, %v8520_v0  ;;  %v5805_v32 = vld [vmem:[#allocation7] sm:$0x3]  ;;  %7789 = vmatprep.subr.bf16.mxu0 %v8521_v1 }
0x3b62   :  { %5814 = vrot.lane.b32.xlu0 %v5805_v32, %s8523_s14  ;;  %7776 = vmatpush3.bf16.msra.mxu1 %v9409_v16 }
0x3b63   :  { %7783 = vmatprep.subr.bf16.mxu1 %v8521_v1 }
0x3bd0   :  { %v5844_v61 = vpop.permute.xlu0 %5843 }
0x3bd4   :  { %v5815_v3 = vpop.permute.xlu0 %5814 }
0x3c2c   :  { %v5800_v43 = vpop.f32.mrb[52].mxu0 }
0x3c2d   :  { %v5804_v44 = vadd.f32 %v5800_v43, %v5729_v42  ;;  %v7404_v45 = vpop.f32.mrb[53].mxu0 }
0x3c2f   :  { %8179 = vtanh.f32 %v5804_v44  ;;  %v6655_v52 = vmul.f32 -1.442695, %v5804_v44 }
0x3c30   :  { %v5724_v9 = vpop.f32.mrb[44].mxu1 }
0x3c31   :  { %v5728_v48 = vadd.f32 %v5724_v9, %v5653_v47  ;;  %v7393_v49 = vpop.f32.mrb[45].mxu1 }
0x3c33   :  { %8181 = vtanh.f32 %v5728_v48  ;;  %v6654_v53 = vmul.f32 -1.442695, %v5728_v48 }
0x3c34   :  { %8183 = vpow2.f32 %v6655_v52 }
0x3c35   :  { %8185 = vpow2.f32 %v6654_v53 }
0x3c39   :  { %v8180_v50 = vpop.eup %8179 }
0x3c3a   :  { %5848 = vrot.lane.b32.xlu1 %v8180_v50, %s8524_s5 }
0x3c3d   :  { %v8182_v51 = vpop.eup %8181 }
0x3c3e   :  { %5819 = vrot.lane.b32.xlu1 %v8182_v51, %s8524_s5  ;;  %v8184_v46 = vpop.eup %8183 }
0x3c3f   :  { %v5838_v54 = vadd.f32 1.0, %v8184_v46  ;;  %v8186_v55 = vpop.eup %8185 }
0x3c40   :  { %v5809_v27 = vadd.f32 1.0, %v8186_v55 }
0x3c41   :  { %8187 = vrcp.f32 %v5838_v54 }
0x3c42   :  { %8189 = vrcp.f32 %v5809_v27 }
0x3c4b   :  { %v8188_v29 = vpop.eup %8187 }
0x3c4c   :  { %v8190_v58 = vpop.eup %8189  ;;  %v5846_v62 = vmul.f32 %v8188_v29, %v5844_v61 }
0x3c4d   :  { %v5817_v4 = vmul.f32 %v8190_v58, %v5815_v3 }
0x3cac   :  { %v5849_v56 = vpop.permute.xlu1 %5848 }
0x3cad   :  { %v5851_v57 = vmul.f32 %v8188_v29, %v5849_v56 }
0x3caf   :  { %5853 = vrot.lane.b32.xlu1 %v5851_v57, %s8523_s14 }
0x3cb0   :  { %v5820_v59 = vpop.permute.xlu1 %5819 }
0x3cb1   :  { %v5822_v60 = vmul.f32 %v8190_v58, %v5820_v59 }
0x3cb3   :  { %5824 = vrot.lane.b32.xlu1 %v5822_v60, %s8523_s14 }
0x3d21   :  { %v5854_v63 = vpop.permute.xlu1 %5853 }
0x3d22   :  { %v5856_v2 = vadd.f32 %v5854_v63, %v5846_v62  ;;  %v6193_v63 = vld [vmem:[#allocation3] sm:$0x3] }
0x3d24   :  { %8191 = vtanh.f32 %v5856_v2 }
0x3d25   :  { %v5825_v5 = vpop.permute.xlu1 %5824 }
0x3d26   :  { %v5827_v7 = vadd.f32 %v5825_v5, %v5817_v4  ;;  %v6117_v5 = vld [vmem:[#allocation2 + $0xe] sm:$0x3] }
0x3d28   :  { %8193 = vtanh.f32 %v5827_v7 }
0x3d2e   :  { %v8192_v8 = vpop.eup %8191 }
0x3d2f   :  { %5859 = vrot.lane.b32.xlu0 %v8192_v8, %s8524_s5 }
0x3d32   :  { %v8194_v12 = vpop.eup %8193 }
0x3d33   :  { %5830 = vrot.lane.b32.xlu1 %v8194_v12, %s8524_s5 }
0x3da1   :  { %v5860_v13 = vpop.permute.xlu0 %5859 }
0x3da2   :  { %v5862_v14 = vmul.f32 %v8188_v29, %v5860_v13 }
0x3da4   :  { %5874 = vrot.lane.b32.xlu0 %v5862_v14, %s8523_s14 }
0x3da5   :  { %v5831_v17 = vpop.permute.xlu1 %5830 }
0x3da6   :  { %v5833_v18 = vmul.f32 %v8190_v58, %v5831_v17 }
0x3da8   :  { %5864 = vrot.lane.b32.xlu1 %v5833_v18, %s8523_s14  ;;  %5879 = vrot.lane.b32.xlu0 %v5856_v2, %s8525_s2 }
0x3dac   :  { %5869 = vrot.lane.b32.xlu0 %v5827_v7, %s8525_s2 }
0x3e16   :  { %v5875_v21 = vpop.permute.xlu0 %5874 }
0x3e17   :  { %5884 = vst.msk [vmem:[#allocation5 + $0x4] sm:$0x3] %vm309_vm0, %v5875_v21  ;;  %5877 = vst.msk [vmem:[#allocation8] sm:$0x3] %vm309_vm0, %v5875_v21 }
0x3e1a   :  { %v5865_v22 = vpop.permute.xlu1 %5864  ;;  %v5880_v24 = vpop.permute.xlu0 %5879 }
0x3e1b   :  { %5883 = vst.msk [vmem:[#allocation4 + $0xa] sm:$0x3] %vm309_vm0, %v5865_v22  ;;  %5867 = vst.msk [vmem:[#allocation6] sm:$0x3] %vm309_vm0, %v5865_v22 }
0x3e1c   :  { %5882 = vst.msk [vmem:[#allocation9] sm:$0x3] %vm309_vm0, %v5880_v24 }
0x3e1e   :  { %v5870_v25 = vpop.permute.xlu0 %5869  ;;  %v5962_v20 = vld [vmem:[#allocation8] sm:$0x3] }
0x3e1f   :  { %5872 = vst.msk [vmem:[#allocation7] sm:$0x3] %vm309_vm0, %v5870_v25  ;;  %7425 = vmatmul.mubr.msk.f32.vlgmr.msra.gmra.mrb[54].mxu0 %vm324_vm3, %v5962_v20 }
0x3e20   :  { %7791 = vmatpush3.bf16.msra.mxu0 %v9430_v37  ;;  %7446 = vmatprep.mubr.msk.f32.mxu0 %vm8522_vm1, %v8520_v0 }
0x3e21   :  { %7792 = vmatprep.subr.bf16.mxu0 %v8521_v1 }
0x3e22   :  { %v5886_v26 = vld [vmem:[#allocation6] sm:$0x3] }
0x3e23   :  { %v6066_v28 = vld [vmem:[#allocation9] sm:$0x3]  ;;  %7414 = vmatmul.mubr.msk.f32.vlgmr.msra.gmra.mrb[46].mxu1 %vm324_vm3, %v5886_v26 }
0x3e24   :  { %6075 = vrot.lane.b32.xlu0 %v6066_v28, %s8523_s14  ;;  %7785 = vmatpush3.bf16.msra.mxu1 %v9397_v11 }
0x3e25   :  { %7794 = vmatpush3.bf16.msra.mxu0 %v9437_v40  ;;  %7786 = vmatprep.subr.bf16.mxu1 %v8521_v1 }
0x3e26   :  { %7435 = vmatprep.mubr.msk.f32.mxu1 %vm8522_vm1, %v8520_v0  ;;  %v6037_v37 = vld [vmem:[#allocation7] sm:$0x3] }
0x3e28   :  { %6046 = vrot.lane.b32.xlu0 %v6037_v37, %s8523_s14  ;;  %7788 = vmatpush3.bf16.msra.mxu1 %v9409_v16 }
0x3e96   :  { %v6076_v44 = vpop.permute.xlu0 %6075 }
0x3e9a   :  { %v6047_v48 = vpop.permute.xlu0 %6046 }
0x3ef2   :  { %v6032_v31 = vpop.f32.mrb[54].mxu0 }
0x3ef3   :  { %v6036_v10 = vadd.f32 %v6032_v31, %v5961_v30  ;;  %v7426_v23 = vpop.f32.mrb[55].mxu0 }
0x3ef5   :  { %8195 = vtanh.f32 %v6036_v10  ;;  %v6659_v0 = vmul.f32 -1.442695, %v6036_v10 }
0x3ef6   :  { %v5956_v34 = vpop.f32.mrb[46].mxu1 }
0x3ef7   :  { %v5960_v11 = vadd.f32 %v5956_v34, %v5885_v33  ;;  %v7415_v35 = vpop.f32.mrb[47].mxu1 }
0x3ef9   :  { %8197 = vtanh.f32 %v5960_v11  ;;  %v6658_v36 = vmul.f32 -1.442695, %v5960_v11 }
0x3efa   :  { %8199 = vpow2.f32 %v6659_v0 }
0x3efb   :  { %8201 = vpow2.f32 %v6658_v36 }
0x3eff   :  { %v8196_v40 = vpop.eup %8195 }
0x3f00   :  { %6080 = vrot.lane.b32.xlu1 %v8196_v40, %s8524_s5 }
0x3f03   :  { %v8198_v1 = vpop.eup %8197 }
0x3f04   :  { %6051 = vrot.lane.b32.xlu1 %v8198_v1, %s8524_s5  ;;  %v8200_v16 = vpop.eup %8199 }
0x3f05   :  { %v6070_v19 = vadd.f32 1.0, %v8200_v16  ;;  %v8202_v15 = vpop.eup %8201  ;;  %v6357_v16 = vld [vmem:[#allocation27 + $0x20] sm:$0xff] }
0x3f06   :  { %v6041_v38 = vadd.f32 1.0, %v8202_v15 }
0x3f07   :  { %8203 = vrcp.f32 %v6070_v19  ;;  %v6358_v19 = vld [vmem:[#allocation27 + $0x28] sm:$0xff] }
0x3f08   :  { %8205 = vrcp.f32 %v6041_v38  ;;  %v7795_v15 = vpack.c.bf16 %v6358_v19, %v6357_v16  ;;  %v6359_v38 = vld [vmem:[#allocation27 + $0x30] sm:$0xff] }
0x3f0a   :  { %7796 = vmatprep.subr.bf16.mxu1 %v7795_v15 }
0x3f11   :  { %v8204_v39 = vpop.eup %8203 }
0x3f12   :  { %v8206_v32 = vpop.eup %8205  ;;  %v6078_v45 = vmul.f32 %v8204_v39, %v6076_v44 }
0x3f13   :  { %v6049_v49 = vmul.f32 %v8206_v32, %v6047_v48 }
0x3f72   :  { %v6081_v6 = vpop.permute.xlu1 %6080 }
0x3f73   :  { %v6083_v41 = vmul.f32 %v8204_v39, %v6081_v6 }
0x3f75   :  { %6085 = vrot.lane.b32.xlu1 %v6083_v41, %s8523_s14  ;;  %v6351_v41 = vld [vmem:[#allocation27] sm:$0xff] }
0x3f76   :  { %v6052_v42 = vpop.permute.xlu1 %6051 }
0x3f77   :  { %v6054_v43 = vmul.f32 %v8206_v32, %v6052_v42 }
0x3f79   :  { %6056 = vrot.lane.b32.xlu1 %v6054_v43, %s8523_s14 }
0x3fe7   :  { %v6086_v47 = vpop.permute.xlu1 %6085 }
0x3fe8   :  { %v6088_v9 = vadd.f32 %v6086_v47, %v6078_v45 }
0x3fea   :  { %8207 = vtanh.f32 %v6088_v9 }
0x3feb   :  { %v6057_v50 = vpop.permute.xlu1 %6056 }
0x3fec   :  { %v6059_v51 = vadd.f32 %v6057_v50, %v6049_v49  ;;  %v6353_v50 = vld [vmem:[#allocation27 + $0x10] sm:$0xff] }
0x3fee   :  { %8209 = vtanh.f32 %v6059_v51 }
0x3ff4   :  { %v8208_v52 = vpop.eup %8207 }
0x3ff5   :  { %6091 = vrot.lane.b32.xlu0 %v8208_v52, %s8524_s5 }
0x3ff8   :  { %v8210_v53 = vpop.eup %8209 }
0x3ff9   :  { %6062 = vrot.lane.b32.xlu1 %v8210_v53, %s8524_s5 }
0x4067   :  { %v6092_v46 = vpop.permute.xlu0 %6091 }
0x4068   :  { %v6094_v54 = vmul.f32 %v8204_v39, %v6092_v46  ;;  %v6360_v39 = vld [vmem:[#allocation27 + $0x38] sm:$0xff] }
0x4069   :  { %v7799_v6 = vpack.c.bf16 %v6360_v39, %v6359_v38 }
0x406a   :  { %6106 = vrot.lane.b32.xlu0 %v6094_v54, %s8523_s14  ;;  %v6356_v54 = vld [vmem:[#allocation5 + $0x8] sm:$0xff] }
0x406b   :  { %v6063_v55 = vpop.permute.xlu1 %6062 }
0x406c   :  { %v6065_v27 = vmul.f32 %v8206_v32, %v6063_v55  ;;  %v6352_v32 = vld [vmem:[#allocation27 + $0x8] sm:$0xff]  ;;  %v6349_v55 = vld [vmem:[#allocation4] sm:$0xff] }
0x406d   :  { %v7803_v42 = vpack.c.bf16 %v6352_v32, %v6351_v41 }
0x406e   :  { %6096 = vrot.lane.b32.xlu1 %v6065_v27, %s8523_s14  ;;  %6111 = vrot.lane.b32.xlu0 %v6088_v9, %s8525_s2 }
0x4072   :  { %6101 = vrot.lane.b32.xlu0 %v6059_v51, %s8525_s2  ;;  %v6354_v51 = vld [vmem:[#allocation27 + $0x18] sm:$0xff] }
0x4073   :  { %v7807_v46 = vpack.c.bf16 %v6354_v51, %v6353_v50 }
0x40dc   :  { %v6107_v29 = vpop.permute.xlu0 %6106 }
0x40dd   :  { %6116 = vst.msk [vmem:[#allocation5 + $0x2] sm:$0x3] %vm309_vm0, %v6107_v29  ;;  %6109 = vst.msk [vmem:[#allocation8] sm:$0x3] %vm309_vm0, %v6107_v29  ;;  %v6668_v29 = vld [vmem:[%s9730_s15] ss:$0 sm:$0xff] }
0x40e0   :  { %v6097_v56 = vpop.permute.xlu1 %6096  ;;  %v6112_v57 = vpop.permute.xlu0 %6111 }
0x40e1   :  { %6115 = vst.msk [vmem:[#allocation4 + $0xc] sm:$0x3] %vm309_vm0, %v6097_v56  ;;  %6099 = vst.msk [vmem:[#allocation6] sm:$0x3] %vm309_vm0, %v6097_v56 }
0x40e2   :  { %6114 = vst.msk [vmem:[#allocation9] sm:$0x3] %vm309_vm0, %v6112_v57 }
0x40e4   :  { %v6102_v58 = vpop.permute.xlu0 %6101  ;;  %v6194_v59 = vld [vmem:[#allocation8] sm:$0x3] }
0x40e5   :  { %6104 = vst.msk [vmem:[#allocation7] sm:$0x3] %vm309_vm0, %v6102_v58  ;;  %7447 = vmatmul.mubr.msk.f32.vlgmr.msra.gmra.mrb[56].mxu0 %vm324_vm3, %v6194_v59 }
0x40e8   :  { %v6118_v60 = vld [vmem:[#allocation6] sm:$0x3] }
0x40e9   :  { %v6298_v61 = vld [vmem:[#allocation9] sm:$0x3]  ;;  %7436 = vmatmul.mubr.msk.f32.vlgmr.msra.gmra.mrb[48].mxu1 %vm324_vm3, %v6118_v60 }
0x40ea   :  { %6307 = vrot.lane.b32.xlu0 %v6298_v61, %s8523_s14  ;;  %7798 = vmatpush3.bf16.msra.mxu1 %v7795_v15 }
0x40eb   :  { %7800 = vmatprep.subr.bf16.mxu1 %v7799_v6 }
0x40ec   :  { %v6269_v62 = vld [vmem:[#allocation7] sm:$0x3] }
0x40ee   :  { %6278 = vrot.lane.b32.xlu0 %v6269_v62, %s8523_s14  ;;  %7802 = vmatpush3.bf16.msra.mxu1 %v7799_v6 }
0x40ef   :  { %7804 = vmatprep.subr.bf16.mxu1 %v7803_v42 }
0x415c   :  { %v6308_v10 = vpop.permute.xlu0 %6307 }
0x4160   :  { %v6279_v11 = vpop.permute.xlu0 %6278 }
0x41b8   :  { %v6264_v2 = vpop.f32.mrb[56].mxu0 }
0x41b9   :  { %v6268_v3 = vadd.f32 %v6264_v2, %v6193_v63  ;;  %v7448_v4 = vpop.f32.mrb[57].mxu0 }
0x41bb   :  { %8211 = vtanh.f32 %v6268_v3  ;;  %v6663_v17 = vmul.f32 -1.442695, %v6268_v3 }
0x41bc   :  { %v6188_v7 = vpop.f32.mrb[48].mxu1 }
0x41bd   :  { %v6192_v8 = vadd.f32 %v6188_v7, %v6117_v5  ;;  %v7437_v12 = vpop.f32.mrb[49].mxu1 }
0x41bf   :  { %8213 = vtanh.f32 %v6192_v8  ;;  %v6662_v18 = vmul.f32 -1.442695, %v6192_v8 }
0x41c0   :  { %8215 = vpow2.f32 %v6663_v17 }
0x41c1   :  { %8217 = vpow2.f32 %v6662_v18 }
0x41c5   :  { %v8212_v13 = vpop.eup %8211 }
0x41c6   :  { %6312 = vrot.lane.b32.xlu1 %v8212_v13, %s8524_s5 }
0x41c9   :  { %v8214_v14 = vpop.eup %8213 }
0x41ca   :  { %6283 = vrot.lane.b32.xlu1 %v8214_v14, %s8524_s5  ;;  %v8216_v21 = vpop.eup %8215 }
0x41cb   :  { %v6302_v22 = vadd.f32 1.0, %v8216_v21  ;;  %v8218_v24 = vpop.eup %8217 }
0x41cc   :  { %v6273_v25 = vadd.f32 1.0, %v8218_v24 }
0x41cd   :  { %8219 = vrcp.f32 %v6302_v22 }
0x41ce   :  { %8221 = vrcp.f32 %v6273_v25 }
0x41d7   :  { %v8220_v20 = vpop.eup %8219 }
0x41d8   :  { %v8222_v37 = vpop.eup %8221  ;;  %v6310_v23 = vmul.f32 %v8220_v20, %v6308_v10 }
0x41d9   :  { %v6281_v35 = vmul.f32 %v8222_v37, %v6279_v11 }
0x4238   :  { %v6313_v26 = vpop.permute.xlu1 %6312 }
0x4239   :  { %v6315_v28 = vmul.f32 %v8220_v20, %v6313_v26 }
0x423b   :  { %6317 = vrot.lane.b32.xlu1 %v6315_v28, %s8523_s14 }
0x423c   :  { %v6284_v30 = vpop.permute.xlu1 %6283 }
0x423d   :  { %v6286_v31 = vmul.f32 %v8222_v37, %v6284_v30 }
0x423f   :  { %6288 = vrot.lane.b32.xlu1 %v6286_v31, %s8523_s14 }
0x42ad   :  { %v6318_v33 = vpop.permute.xlu1 %6317 }
0x42ae   :  { %v6320_v34 = vadd.f32 %v6318_v33, %v6310_v23 }
0x42b0   :  { %8223 = vtanh.f32 %v6320_v34 }
0x42b1   :  { %v6289_v40 = vpop.permute.xlu1 %6288 }
0x42b2   :  { %v6291_v1 = vadd.f32 %v6289_v40, %v6281_v35 }
0x42b4   :  { %8225 = vtanh.f32 %v6291_v1 }
0x42ba   :  { %v8224_v0 = vpop.eup %8223 }
0x42bb   :  { %6323 = vrot.lane.b32.xlu0 %v8224_v0, %s8524_s5 }
0x42be   :  { %v8226_v36 = vpop.eup %8225 }
0x42bf   :  { %6294 = vrot.lane.b32.xlu1 %v8226_v36, %s8524_s5 }
0x432d   :  { %v6324_v43 = vpop.permute.xlu0 %6323 }
0x432e   :  { %v6326_v44 = vmul.f32 %v8220_v20, %v6324_v43 }
0x4330   :  { %6338 = vrot.lane.b32.xlu0 %v6326_v44, %s8523_s14 }
0x4331   :  { %v6295_v45 = vpop.permute.xlu1 %6294 }
0x4332   :  { %v6297_v47 = vmul.f32 %v8222_v37, %v6295_v45 }
0x4334   :  { %6328 = vrot.lane.b32.xlu1 %v6297_v47, %s8523_s14  ;;  %6333 = vrot.lane.b32.xlu0 %v6291_v1, %s8525_s2 }
0x4338   :  { %6343 = vrot.lane.b32.xlu1 %v6320_v34, %s8525_s2 }
0x43a2   :  { %v6339_v9 = vpop.permute.xlu0 %6338 }
0x43a3   :  { %6341 = vst.msk [vmem:[#allocation8] sm:$0x3] %vm309_vm0, %v6339_v9  ;;  %6348 = vst.msk [vmem:[#allocation5] sm:$0x3] %vm309_vm0, %v6339_v9 }
0x43a6   :  { %v6329_v48 = vpop.permute.xlu1 %6328  ;;  %v6334_v49 = vpop.permute.xlu0 %6333 }
0x43a7   :  { %6331 = vst.msk [vmem:[#allocation6] sm:$0x3] %vm309_vm0, %v6329_v48  ;;  %6347 = vst.msk [vmem:[#allocation4 + $0xe] sm:$0x3] %vm309_vm0, %v6329_v48 }
0x43a8   :  { %6336 = vst.msk [vmem:[#allocation7] sm:$0x3] %vm309_vm0, %v6334_v49 }
0x43aa   :  { %v6344_v52 = vpop.permute.xlu1 %6343  ;;  %v6355_v53 = vld [vmem:[#allocation5] sm:$0xff] }
0x43ab   :  { %6346 = vst.msk [vmem:[#allocation9] sm:$0x3] %vm309_vm0, %v6344_v52  ;;  %7457 = vmatprep.mubr.msk.f32.mxu1 %vm324_vm3, %v6355_v53 }
0x43ac   :  { %7458 = vmatmul.mubr.msk.f32.vlgmr.msra.gmra.mrb[50].mxu1 %vm324_vm3, %v6356_v54 }
0x43ad   :  { %7806 = vmatpush3.bf16.msra.mxu1 %v7803_v42  ;;  %7468 = vmatprep.mubr.msk.f32.mxu1 %vm324_vm3, %v6349_v55 }
0x43ae   :  { %7808 = vmatprep.subr.bf16.mxu1 %v7807_v46  ;;  %v6350_v27 = vld [vmem:[#allocation4 + $0x8] sm:$0xff] }
0x43b1   :  { %7810 = vmatpush3.bf16.msra.mxu1 %v7807_v46 }
0x43b4   :  { %7469 = vmatmul.mubr.msk.f32.vlgmr.msra.gmra.mrb[50].mxu1 %vm324_vm3, %v6350_v27 }
0x4487   :  { %v7470_v56 = vpop.f32.mrb[50].mxu1 }
0x4488   :  { %v6531_v57 = vadd.f32 %v7470_v56, %v6668_v29  ;;  %v6514_v58 = vpop.f32.mrb[51].mxu1 }
0x4489   :  { %v6530_v59 = vadd.f32 %v6668_v29, %v6514_v58 }
0x448a   :  { %v6533_v60 = vmax.f32 %v6531_v57, 0.0 }
0x448b   :  { %v6532_v61 = vmax.f32 %v6530_v59, 0.0 }
0x448c   :  { %6535 = vst [vmem:[#allocation28 + $0x8] sm:$0xff] %v6533_v60 }
0x448d   :  { %6534 = vst [vmem:[#allocation28] sm:$0xff] %v6532_v61 }
0x448e   :  { %8480 = shalt.err (!%p8477_p8)
}
0x448f   :  { %s8481_s25 = scalar_lea.hbm %s9731_s16, 256 }
0x4490   :  { %p8482_p9 = scmp.ne.s32.totalorder %s9731_s16, %s8481_s25  ;;  %p8485_p10 = scmp.lt.u32.totalorder %s8481_s25, %s9731_s16 }
0x4492   :  { %p8487_p11 = pnand %p8485_p10, %p8482_p9 }
0x4494   :  { %8490 = shalt.err (!%p8487_p11)
}
0x4495   :  { %6547 = dma.vmem_to_hbm [thread:$0]  %s6542_s4, 256, %s9731_s16, [#allocation12], %s8507_s18, %s8507_s18, %s8508_s19  }
0x4496   :  { %8503 = dma.done.wait [#allocation12], 256  }
0x4497   :  { %8504 = vsyncadd [#allocation12], 4294967040 }
0x4498   :  { %6551 = vsyncpa [#allocation11], 1 }
0x4499   :  { %6552 = vsyncpa [#allocation14], 1 }
0x449a   :  { %6553 = vsyncpa [#allocation17], 1 }
0x449b   :  { %6554 = vsyncpa [#allocation20], 1 }
0x449c   :  { %6555 = vsyncpa [#allocation23], 1 }
0x449d   :  { %6556 = vsyncpa [#allocation26], 1 }
0x449e   :  { %6557 = vsyncpa [#allocation12], 1 }

</bundles_post_ra>
